<compile_context>
chip_gen: v6e
topology: v6e:2x2x1
jax: 0.10.0
libtpu: 0.0.40
codegen_flags: <defaults>
</compile_context>

<pallas_src>
import functools

import jax
import jax.numpy as jnp
from jax.experimental import pallas as pl
from jax.experimental.pallas import tpu as pltpu

HIDDEN = 256
_VPU_FIRST_LAYER_MAX_K = 32   # below this fan-in, layer 1 runs on the VPU


def _softplus_f32(z):
    # Matches torch.nn.Softplus default (beta=1, threshold=20).
    return jnp.where(z > 20.0, z, jnp.log1p(jnp.exp(jnp.minimum(z, 20.0))))


def _static_pow(base, m):
    """base**m with m a static Python scalar.

    Non-negative integer m -> exponentiation by squaring (pure VPU multiplies).
    Otherwise -> exp(m*log(base)) with the base guarded away from 0.
    """
    if float(m) == int(m) and int(m) >= 0:
        n = int(m)
        if n == 0:
            return jnp.ones_like(base)
        result = None
        acc = base
        while n > 0:
            if n & 1:
                result = acc if result is None else result * acc
            n >>= 1
            if n:
                acc = acc * acc
        return result
    safe = jnp.maximum(base, jnp.float32(jnp.finfo(jnp.float32).tiny))
    return jnp.exp(jnp.float32(m) * jnp.log(safe))


def _first_layer_T(xT, w1, b1, compute_dtype):
    """h1^T = W1 @ x^T + b1 with tiny K = A.

    For small fan-in this is A unrolled broadcast multiply-adds on the VPU in
    f32, so the MXU never issues pushes with K padded to the systolic tile.
    Falls back to a normal MXU matmul when the fan-in is large.
    """
    k_dim = xT.shape[0]
    if k_dim > _VPU_FIRST_LAYER_MAX_K:
        return jnp.dot(w1.astype(compute_dtype), xT.astype(compute_dtype),
                       preferred_element_type=jnp.float32) + b1
    h = b1 + w1[:, 0:1] * xT[0:1, :]          # (HIDDEN, 1)*(1, B) -> (HIDDEN, B)
    for k in range(1, k_dim):                  # static unroll, A is tiny
        h = h + w1[:, k:k + 1] * xT[k:k + 1, :]
    return h


def _mlp3_T(xT, w1, b1, w2, b2, w3, b3, compute_dtype):
    """(Linear-ReLU-Linear-ReLU-Linear)(x) in transposed (feature-major) layout.

    Layer 1 runs on the VPU (f32); layers 2/3 use the MXU with `compute_dtype`
    operands and f32 accumulation.  Weights are PyTorch-layout (out, in) tiles;
    biases are (out, 1) f32 columns.  Returns (out, B) f32 pre-activations.
    """
    h = _first_layer_T(xT, w1, b1, compute_dtype)           # (HIDDEN, B) f32
    h = jnp.maximum(h, 0.0).astype(compute_dtype)
    h = jnp.dot(w2, h, preferred_element_type=jnp.float32) + b2
    h = jnp.maximum(h, 0.0).astype(compute_dtype)
    return jnp.dot(w3, h, preferred_element_type=jnp.float32) + b3


def double_nn_kernel(x_ref,
                     fw1, fb1, fw2, fb2, fw3, fb3,     # fee_net params
                     pw1, pb1, pw2, pb2, pw3, pb3,     # prob_net params
                     out_ref,                          # packed (3*A, B_blk)
                     *, m_static, compute_dtype, a_dim):
    xT = x_ref[...]                                    # (A, B_blk) f32, batch on lanes

    # fee = Softplus(fee_net(x))
    fee = _softplus_f32(
        _mlp3_T(xT, fw1[...], fb1[...], fw2[...], fb2[...], fw3[...], fb3[...],
                compute_dtype))

    # prob = Tanh(prob_net(fee))   (identical values for prob and prob_ in fwd)
    prob = jnp.tanh(
        _mlp3_T(fee, pw1[...], pb1[...], pw2[...], pb2[...], pw3[...], pb3[...],
                compute_dtype))

    # rev = (1 - (1 - prob)**m) * (x - fee)   -- m is static, VPU multiplies.
    rev = (1.0 - _static_pow(1.0 - prob, m_static)) * (xT - fee)

    # Packed feature-major output: rows [0:A)=prob, [A:2A)=fee, [2A:3A)=rev.
    # A = 8 keeps these static slices sublane-aligned for f32 (8, 128) tiles.
    out_ref[0:a_dim, :] = prob
    out_ref[a_dim:2 * a_dim, :] = fee
    out_ref[2 * a_dim:3 * a_dim, :] = rev


def _round_up(x, n):
    return ((x + n - 1) // n) * n


def _device_tuning():
    """Returns (max batch tile, vmem_limit_bytes) for the local TPU generation."""
    try:
        kind = jax.devices()[0].device_kind.lower()
    except Exception:
        kind = ""
    if "v7" in kind:
        return 4096, 48 * 1024 * 1024      # 64 MiB physical VMEM per TC
    return 8192, 64 * 1024 * 1024           # 128 MiB parts (v5e / v6e / others)


def _choose_block_b(B, cap):
    """Largest lane tile (multiple of 128) <= cap, with >= 2 grid steps when B > 128
    so v7x megacore has something to shard."""
    if B <= 128:
        return 128
    half = _round_up(pl.cdiv(B, 2), 128)
    return max(128, min(cap, half))


def prepare_params(params, compute_dtype=jnp.bfloat16):
    """Hoist dtype casts / bias reshapes out of the forward call (done once).

    Layer-1 weights stay f32 (VPU broadcast-FMA path); layer-2/3 weights are
    cast to `compute_dtype` for the MXU; biases become f32 (out, 1) columns.
    """
    prep = {}
    for net in ("f", "p"):
        prep[net + "w1"] = jnp.asarray(params[net + "w1"], jnp.float32)
        prep[net + "w2"] = jnp.asarray(params[net + "w2"], compute_dtype)
        prep[net + "w3"] = jnp.asarray(params[net + "w3"], compute_dtype)
        for layer in ("1", "2", "3"):
            prep[net + "b" + layer] = jnp.asarray(
                params[net + "b" + layer], jnp.float32).reshape(-1, 1)
    return prep


def double_nn_forward_fm(xT, m, prep, *, block_b=None,
                         compute_dtype=jnp.bfloat16):
    """Feature-major forward: xT is (A, B) with batch on the lane axis.

    Returns one packed f32 array of shape (3*A, B): rows [0:A)=prob,
    [A:2A)=fee, [2A:3A)=rev.  No wrapper-side transposes at all (only a
    right-pad of the batch when B is not a multiple of the tile).
    """
    A, B = xT.shape
    # The model implicitly requires num_actions == num_agents (fee feeds
    # prob_net, rev multiplies by x).
    assert prep["fw3"].shape[0] == A and prep["pw1"].shape[1] == A, (
        "DoubleNN forward requires num_actions == num_agents")

    cap, vmem_limit = _device_tuning()
    if block_b is None:
        block_b = _choose_block_b(B, cap)
    assert block_b % 128 == 0, "block_b must be a multiple of 128 (lane width)"

    n_blocks = pl.cdiv(B, block_b)
    Bp = n_blocks * block_b
    xT = xT.astype(jnp.float32)
    if Bp != B:
        xT = jnp.pad(xT, ((0, 0), (0, Bp - B)))

    weight_args = tuple(prep[k] for k in (
        "fw1", "fb1", "fw2", "fb2", "fw3", "fb3",
        "pw1", "pb1", "pw2", "pb2", "pw3", "pb3"))

    x_spec = pl.BlockSpec((A, block_b), lambda i: (0, i))
    out_spec = pl.BlockSpec((3 * A, block_b), lambda i: (0, i))
    # Full-array weight blocks with a constant block index: DMA'd once, then
    # VMEM-resident across all batch tiles.
    w_specs = [pl.BlockSpec(a.shape, lambda i: (0, 0)) for a in weight_args]

    flops = 2 * 2 * Bp * (A * HIDDEN + HIDDEN * HIDDEN + HIDDEN * A)
    bytes_accessed = (A * Bp * 4 + 3 * A * Bp * 4
                      + sum(int(a.size) * a.dtype.itemsize for a in weight_args))
    cost = pl.CostEstimate(flops=flops,
                           transcendentals=3 * Bp * A,
                           bytes_accessed=bytes_accessed)

    kernel = functools.partial(double_nn_kernel,
                               m_static=float(m),
                               compute_dtype=compute_dtype,
                               a_dim=A)

    packed = pl.pallas_call(
        kernel,
        out_shape=jax.ShapeDtypeStruct((3 * A, Bp), jnp.float32),
        grid=(n_blocks,),
        in_specs=[x_spec] + w_specs,
        out_specs=out_spec,
        compiler_params=pltpu.CompilerParams(
            dimension_semantics=("parallel",),         # megacore sharding on v7x
            vmem_limit_bytes=vmem_limit),
        cost_estimate=cost,
    )(xT, *weight_args)

    return packed[:, :B] if Bp != B else packed


def double_nn_forward(x, m, prep, *, block_b=None, compute_dtype=jnp.bfloat16):
    """Batch-major (PyTorch-layout) forward.

    x: (B, A) f32, m: static Python scalar, prep: prepare_params(...) output.
    Returns (prob, fee, rev), each (B, A) f32.  Only one transpose + split of
    the packed kernel output happens outside the kernel.
    """
    B, A = x.shape
    packed = double_nn_forward_fm(x.astype(jnp.float32).T, m, prep,
                                  block_b=block_b, compute_dtype=compute_dtype)
    out = packed.T                                      # (B, 3*A), single transpose
    return out[:, :A], out[:, A:2 * A], out[:, 2 * A:3 * A]


def init_params(key, num_agents, num_actions, hidden=HIDDEN):
    """PyTorch-style init U(-1/sqrt(fan_in), 1/sqrt(fan_in)), PyTorch layouts:
    weights (out, in), biases (out,)."""
    def linear(k, fan_in, fan_out):
        kw, kb = jax.random.split(k)
        bound = 1.0 / (fan_in ** 0.5)
        wgt = jax.random.uniform(kw, (fan_out, fan_in), jnp.float32, -bound, bound)
        bias = jax.random.uniform(kb, (fan_out,), jnp.float32, -bound, bound)
        return wgt, bias

    keys = jax.random.split(key, 6)
    p = {}
    p["pw1"], p["pb1"] = linear(keys[0], num_agents, hidden)
    p["pw2"], p["pb2"] = linear(keys[1], hidden, hidden)
    p["pw3"], p["pb3"] = linear(keys[2], hidden, num_actions)
    p["fw1"], p["fb1"] = linear(keys[3], num_agents, hidden)
    p["fw2"], p["fb2"] = linear(keys[4], hidden, hidden)
    p["fw3"], p["fb3"] = linear(keys[5], hidden, num_actions)
    return p


def reference_forward(x, m, p, compute_dtype=jnp.bfloat16):
    """Pure-JAX reference matching the kernel's numerics:
    f32 layer 1, bf16-operand / f32-accumulate layers 2-3."""
    def mlp(z, w1, b1, w2, b2, w3, b3):
        h = jnp.dot(z, w1.T, preferred_element_type=jnp.float32) + b1
        h = jnp.maximum(h, 0.0)
        h = jnp.dot(h.astype(compute_dtype), w2.astype(compute_dtype).T,
                    preferred_element_type=jnp.float32) + b2
        h = jnp.maximum(h, 0.0)
        return jnp.dot(h.astype(compute_dtype), w3.astype(compute_dtype).T,
                       preferred_element_type=jnp.float32) + b3

    fee = _softplus_f32(mlp(x, p["fw1"], p["fb1"], p["fw2"], p["fb2"],
                            p["fw3"], p["fb3"]))
    prob = jnp.tanh(mlp(fee, p["pw1"], p["pb1"], p["pw2"], p["pb2"],
                        p["pw3"], p["pb3"]))
    rev = (1.0 - _static_pow(1.0 - prob, m)) * (x - fee)
    return prob, fee, rev


if __name__ == "__main__":
    num_agents = 8
    num_actions = 8        # prob_net(fee) requires num_actions == num_agents
    batch = 200            # not a multiple of 128 -> exercises padding + 2-step grid
    m = 3.0

    key = jax.random.PRNGKey(0)
    kx, kp = jax.random.split(key)
    x = jax.random.uniform(kx, (batch, num_agents), jnp.float32, 0.0, 1.0)
    params = init_params(kp, num_agents, num_actions)
    prep = prepare_params(params)          # casts / bias reshapes hoisted, done once

    prob, fee, rev = double_nn_forward(x, m, prep)
    jax.block_until_ready((prob, fee, rev))

    prob_r, fee_r, rev_r = reference_forward(x, m, params)
    assert prob.shape == (batch, num_actions)
    assert fee.shape == (batch, num_actions)
    assert rev.shape == (batch, num_actions)
    # Kernel and reference share identical operand quantization; remaining
    # differences are f32 accumulation-order noise propagated through 3 layers.
    assert jnp.allclose(prob, prob_r, atol=2e-3, rtol=2e-3)
    assert jnp.allclose(fee, fee_r, atol=2e-3, rtol=2e-3)
    assert jnp.allclose(rev, rev_r, atol=2e-3, rtol=2e-3)

    # TODO(synk): learn()/Adam optimizers and autograd (detach/no_grad) are
    # training-side machinery with no forward-pass Pallas equivalent.

    print("KERNEL_OK")
</pallas_src>

<mosaic_0001>
module attributes {stable_mosaic.version = 11 : i64} {
  func.func @double_nn_kernel(%arg0: i32, %arg1: memref<8x128xf32, #tpu.memory_space<vmem>>, %arg2: memref<256x8xf32, #tpu.memory_space<vmem>>, %arg3: memref<256x1xf32, #tpu.memory_space<vmem>>, %arg4: memref<256x256xbf16, #tpu.memory_space<vmem>>, %arg5: memref<256x1xf32, #tpu.memory_space<vmem>>, %arg6: memref<8x256xbf16, #tpu.memory_space<vmem>>, %arg7: memref<8x1xf32, #tpu.memory_space<vmem>>, %arg8: memref<256x8xf32, #tpu.memory_space<vmem>>, %arg9: memref<256x1xf32, #tpu.memory_space<vmem>>, %arg10: memref<256x256xbf16, #tpu.memory_space<vmem>>, %arg11: memref<256x1xf32, #tpu.memory_space<vmem>>, %arg12: memref<8x256xbf16, #tpu.memory_space<vmem>>, %arg13: memref<8x1xf32, #tpu.memory_space<vmem>>, %arg14: memref<24x128xf32, #tpu.memory_space<vmem>>) attributes {dimension_semantics = [#tpu.dimension_semantics<parallel>], iteration_bounds = array<i64: 2>, scalar_prefetch = 0 : i64, scratch_operands = 0 : i64, tpu.core_type = #tpu.core_type<tc>, window_params = [{transform_indices = @transform_0, window_bounds = array<i64: 8, 128>}, {pipeline_mode = #tpu.pipeline_mode<synchronous>, transform_indices = @transform_1, window_bounds = array<i64: 256, 8>}, {pipeline_mode = #tpu.pipeline_mode<synchronous>, transform_indices = @transform_2, window_bounds = array<i64: 256, 1>}, {pipeline_mode = #tpu.pipeline_mode<synchronous>, transform_indices = @transform_3, window_bounds = array<i64: 256, 256>}, {pipeline_mode = #tpu.pipeline_mode<synchronous>, transform_indices = @transform_4, window_bounds = array<i64: 256, 1>}, {pipeline_mode = #tpu.pipeline_mode<synchronous>, transform_indices = @transform_5, window_bounds = array<i64: 8, 256>}, {pipeline_mode = #tpu.pipeline_mode<synchronous>, transform_indices = @transform_6, window_bounds = array<i64: 8, 1>}, {pipeline_mode = #tpu.pipeline_mode<synchronous>, transform_indices = @transform_7, window_bounds = array<i64: 256, 8>}, {pipeline_mode = #tpu.pipeline_mode<synchronous>, transform_indices = @transform_8, window_bounds = array<i64: 256, 1>}, {pipeline_mode = #tpu.pipeline_mode<synchronous>, transform_indices = @transform_9, window_bounds = array<i64: 256, 256>}, {pipeline_mode = #tpu.pipeline_mode<synchronous>, transform_indices = @transform_10, window_bounds = array<i64: 256, 1>}, {pipeline_mode = #tpu.pipeline_mode<synchronous>, transform_indices = @transform_11, window_bounds = array<i64: 8, 256>}, {pipeline_mode = #tpu.pipeline_mode<synchronous>, transform_indices = @transform_12, window_bounds = array<i64: 8, 1>}, {transform_indices = @transform_13, window_bounds = array<i64: 24, 128>}]} {
    %c0 = arith.constant 0 : index
    %c0_0 = arith.constant 0 : index
    %0 = vector.load %arg1[%c0, %c0_0] : memref<8x128xf32, #tpu.memory_space<vmem>>, vector<8x128xf32>
    %c0_1 = arith.constant 0 : index
    %c0_2 = arith.constant 0 : index
    %1 = vector.load %arg2[%c0_1, %c0_2] : memref<256x8xf32, #tpu.memory_space<vmem>>, vector<256x8xf32>
    %c0_3 = arith.constant 0 : index
    %c0_4 = arith.constant 0 : index
    %2 = vector.load %arg3[%c0_3, %c0_4] : memref<256x1xf32, #tpu.memory_space<vmem>>, vector<256x1xf32>
    %c0_5 = arith.constant 0 : index
    %c0_6 = arith.constant 0 : index
    %3 = vector.load %arg4[%c0_5, %c0_6] : memref<256x256xbf16, #tpu.memory_space<vmem>>, vector<256x256xbf16>
    %c0_7 = arith.constant 0 : index
    %c0_8 = arith.constant 0 : index
    %4 = vector.load %arg5[%c0_7, %c0_8] : memref<256x1xf32, #tpu.memory_space<vmem>>, vector<256x1xf32>
    %c0_9 = arith.constant 0 : index
    %c0_10 = arith.constant 0 : index
    %5 = vector.load %arg6[%c0_9, %c0_10] : memref<8x256xbf16, #tpu.memory_space<vmem>>, vector<8x256xbf16>
    %c0_11 = arith.constant 0 : index
    %c0_12 = arith.constant 0 : index
    %6 = vector.load %arg7[%c0_11, %c0_12] : memref<8x1xf32, #tpu.memory_space<vmem>>, vector<8x1xf32>
    %7 = vector.extract_strided_slice %1 {offsets = [0, 0], sizes = [256, 1], strides = [1, 1]} : vector<256x8xf32> to vector<256x1xf32>
    %8 = vector.extract_strided_slice %0 {offsets = [0, 0], sizes = [1, 128], strides = [1, 1]} : vector<8x128xf32> to vector<1x128xf32>
    %9 = vector.broadcast %7 : vector<256x1xf32> to vector<256x128xf32>
    %10 = vector.broadcast %8 : vector<1x128xf32> to vector<256x128xf32>
    %11 = arith.mulf %9, %10 : vector<256x128xf32>
    %12 = vector.broadcast %2 : vector<256x1xf32> to vector<256x128xf32>
    %13 = arith.addf %12, %11 : vector<256x128xf32>
    %14 = vector.extract_strided_slice %1 {offsets = [0, 1], sizes = [256, 1], strides = [1, 1]} : vector<256x8xf32> to vector<256x1xf32>
    %15 = vector.extract_strided_slice %0 {offsets = [1, 0], sizes = [1, 128], strides = [1, 1]} : vector<8x128xf32> to vector<1x128xf32>
    %16 = vector.broadcast %14 : vector<256x1xf32> to vector<256x128xf32>
    %17 = vector.broadcast %15 : vector<1x128xf32> to vector<256x128xf32>
    %18 = arith.mulf %16, %17 : vector<256x128xf32>
    %19 = arith.addf %13, %18 : vector<256x128xf32>
    %20 = vector.extract_strided_slice %1 {offsets = [0, 2], sizes = [256, 1], strides = [1, 1]} : vector<256x8xf32> to vector<256x1xf32>
    %21 = vector.extract_strided_slice %0 {offsets = [2, 0], sizes = [1, 128], strides = [1, 1]} : vector<8x128xf32> to vector<1x128xf32>
    %22 = vector.broadcast %20 : vector<256x1xf32> to vector<256x128xf32>
    %23 = vector.broadcast %21 : vector<1x128xf32> to vector<256x128xf32>
    %24 = arith.mulf %22, %23 : vector<256x128xf32>
    %25 = arith.addf %19, %24 : vector<256x128xf32>
    %26 = vector.extract_strided_slice %1 {offsets = [0, 3], sizes = [256, 1], strides = [1, 1]} : vector<256x8xf32> to vector<256x1xf32>
    %27 = vector.extract_strided_slice %0 {offsets = [3, 0], sizes = [1, 128], strides = [1, 1]} : vector<8x128xf32> to vector<1x128xf32>
    %28 = vector.broadcast %26 : vector<256x1xf32> to vector<256x128xf32>
    %29 = vector.broadcast %27 : vector<1x128xf32> to vector<256x128xf32>
    %30 = arith.mulf %28, %29 : vector<256x128xf32>
    %31 = arith.addf %25, %30 : vector<256x128xf32>
    %32 = vector.extract_strided_slice %1 {offsets = [0, 4], sizes = [256, 1], strides = [1, 1]} : vector<256x8xf32> to vector<256x1xf32>
    %33 = vector.extract_strided_slice %0 {offsets = [4, 0], sizes = [1, 128], strides = [1, 1]} : vector<8x128xf32> to vector<1x128xf32>
    %34 = vector.broadcast %32 : vector<256x1xf32> to vector<256x128xf32>
    %35 = vector.broadcast %33 : vector<1x128xf32> to vector<256x128xf32>
    %36 = arith.mulf %34, %35 : vector<256x128xf32>
    %37 = arith.addf %31, %36 : vector<256x128xf32>
    %38 = vector.extract_strided_slice %1 {offsets = [0, 5], sizes = [256, 1], strides = [1, 1]} : vector<256x8xf32> to vector<256x1xf32>
    %39 = vector.extract_strided_slice %0 {offsets = [5, 0], sizes = [1, 128], strides = [1, 1]} : vector<8x128xf32> to vector<1x128xf32>
    %40 = vector.broadcast %38 : vector<256x1xf32> to vector<256x128xf32>
    %41 = vector.broadcast %39 : vector<1x128xf32> to vector<256x128xf32>
    %42 = arith.mulf %40, %41 : vector<256x128xf32>
    %43 = arith.addf %37, %42 : vector<256x128xf32>
    %44 = vector.extract_strided_slice %1 {offsets = [0, 6], sizes = [256, 1], strides = [1, 1]} : vector<256x8xf32> to vector<256x1xf32>
    %45 = vector.extract_strided_slice %0 {offsets = [6, 0], sizes = [1, 128], strides = [1, 1]} : vector<8x128xf32> to vector<1x128xf32>
    %46 = vector.broadcast %44 : vector<256x1xf32> to vector<256x128xf32>
    %47 = vector.broadcast %45 : vector<1x128xf32> to vector<256x128xf32>
    %48 = arith.mulf %46, %47 : vector<256x128xf32>
    %49 = arith.addf %43, %48 : vector<256x128xf32>
    %50 = vector.extract_strided_slice %1 {offsets = [0, 7], sizes = [256, 1], strides = [1, 1]} : vector<256x8xf32> to vector<256x1xf32>
    %51 = vector.extract_strided_slice %0 {offsets = [7, 0], sizes = [1, 128], strides = [1, 1]} : vector<8x128xf32> to vector<1x128xf32>
    %52 = vector.broadcast %50 : vector<256x1xf32> to vector<256x128xf32>
    %53 = vector.broadcast %51 : vector<1x128xf32> to vector<256x128xf32>
    %54 = arith.mulf %52, %53 : vector<256x128xf32>
    %55 = arith.addf %49, %54 : vector<256x128xf32>
    %cst = arith.constant 0.000000e+00 : f32
    %56 = vector.broadcast %cst : f32 to vector<256x128xf32>
    %57 = arith.maximumf %55, %56 : vector<256x128xf32>
    %58 = arith.truncf %57 : vector<256x128xf32> to vector<256x128xbf16>
    %cst_13 = arith.constant dense<0.000000e+00> : vector<256x128xf32>
    %59 = tpu.matmul %3, %58, %cst_13 {dimension_numbers = #tpu.dot_dimension_numbers<[1], [0], [0], [1], [0, 0, 1, 1], [], []>} : vector<256x256xbf16>, vector<256x128xbf16>, vector<256x128xf32> -> vector<256x128xf32>
    %60 = vector.broadcast %4 : vector<256x1xf32> to vector<256x128xf32>
    %61 = arith.addf %59, %60 : vector<256x128xf32>
    %cst_14 = arith.constant 0.000000e+00 : f32
    %62 = vector.broadcast %cst_14 : f32 to vector<256x128xf32>
    %63 = arith.maximumf %61, %62 : vector<256x128xf32>
    %64 = arith.truncf %63 : vector<256x128xf32> to vector<256x128xbf16>
    %cst_15 = arith.constant dense<0.000000e+00> : vector<8x128xf32>
    %65 = tpu.matmul %5, %64, %cst_15 {dimension_numbers = #tpu.dot_dimension_numbers<[1], [0], [0], [1], [0, 0, 1, 1], [], []>} : vector<8x256xbf16>, vector<256x128xbf16>, vector<8x128xf32> -> vector<8x128xf32>
    %66 = vector.broadcast %6 : vector<8x1xf32> to vector<8x128xf32>
    %67 = arith.addf %65, %66 : vector<8x128xf32>
    %cst_16 = arith.constant 2.000000e+01 : f32
    %68 = vector.broadcast %cst_16 : f32 to vector<8x128xf32>
    %69 = arith.cmpf ogt, %67, %68 : vector<8x128xf32>
    %cst_17 = arith.constant 2.000000e+01 : f32
    %70 = vector.broadcast %cst_17 : f32 to vector<8x128xf32>
    %71 = arith.minimumf %67, %70 : vector<8x128xf32>
    %72 = math.exp %71 : vector<8x128xf32>
    %73 = math.log1p %72 : vector<8x128xf32>
    %74 = arith.select %69, %67, %73 : vector<8x128xi1>, vector<8x128xf32>
    %c0_18 = arith.constant 0 : index
    %c0_19 = arith.constant 0 : index
    %75 = vector.load %arg8[%c0_18, %c0_19] : memref<256x8xf32, #tpu.memory_space<vmem>>, vector<256x8xf32>
    %c0_20 = arith.constant 0 : index
    %c0_21 = arith.constant 0 : index
    %76 = vector.load %arg9[%c0_20, %c0_21] : memref<256x1xf32, #tpu.memory_space<vmem>>, vector<256x1xf32>
    %c0_22 = arith.constant 0 : index
    %c0_23 = arith.constant 0 : index
    %77 = vector.load %arg10[%c0_22, %c0_23] : memref<256x256xbf16, #tpu.memory_space<vmem>>, vector<256x256xbf16>
    %c0_24 = arith.constant 0 : index
    %c0_25 = arith.constant 0 : index
    %78 = vector.load %arg11[%c0_24, %c0_25] : memref<256x1xf32, #tpu.memory_space<vmem>>, vector<256x1xf32>
    %c0_26 = arith.constant 0 : index
    %c0_27 = arith.constant 0 : index
    %79 = vector.load %arg12[%c0_26, %c0_27] : memref<8x256xbf16, #tpu.memory_space<vmem>>, vector<8x256xbf16>
    %c0_28 = arith.constant 0 : index
    %c0_29 = arith.constant 0 : index
    %80 = vector.load %arg13[%c0_28, %c0_29] : memref<8x1xf32, #tpu.memory_space<vmem>>, vector<8x1xf32>
    %81 = vector.extract_strided_slice %75 {offsets = [0, 0], sizes = [256, 1], strides = [1, 1]} : vector<256x8xf32> to vector<256x1xf32>
    %82 = vector.extract_strided_slice %74 {offsets = [0, 0], sizes = [1, 128], strides = [1, 1]} : vector<8x128xf32> to vector<1x128xf32>
    %83 = vector.broadcast %81 : vector<256x1xf32> to vector<256x128xf32>
    %84 = vector.broadcast %82 : vector<1x128xf32> to vector<256x128xf32>
    %85 = arith.mulf %83, %84 : vector<256x128xf32>
    %86 = vector.broadcast %76 : vector<256x1xf32> to vector<256x128xf32>
    %87 = arith.addf %86, %85 : vector<256x128xf32>
    %88 = vector.extract_strided_slice %75 {offsets = [0, 1], sizes = [256, 1], strides = [1, 1]} : vector<256x8xf32> to vector<256x1xf32>
    %89 = vector.extract_strided_slice %74 {offsets = [1, 0], sizes = [1, 128], strides = [1, 1]} : vector<8x128xf32> to vector<1x128xf32>
    %90 = vector.broadcast %88 : vector<256x1xf32> to vector<256x128xf32>
    %91 = vector.broadcast %89 : vector<1x128xf32> to vector<256x128xf32>
    %92 = arith.mulf %90, %91 : vector<256x128xf32>
    %93 = arith.addf %87, %92 : vector<256x128xf32>
    %94 = vector.extract_strided_slice %75 {offsets = [0, 2], sizes = [256, 1], strides = [1, 1]} : vector<256x8xf32> to vector<256x1xf32>
    %95 = vector.extract_strided_slice %74 {offsets = [2, 0], sizes = [1, 128], strides = [1, 1]} : vector<8x128xf32> to vector<1x128xf32>
    %96 = vector.broadcast %94 : vector<256x1xf32> to vector<256x128xf32>
    %97 = vector.broadcast %95 : vector<1x128xf32> to vector<256x128xf32>
    %98 = arith.mulf %96, %97 : vector<256x128xf32>
    %99 = arith.addf %93, %98 : vector<256x128xf32>
    %100 = vector.extract_strided_slice %75 {offsets = [0, 3], sizes = [256, 1], strides = [1, 1]} : vector<256x8xf32> to vector<256x1xf32>
    %101 = vector.extract_strided_slice %74 {offsets = [3, 0], sizes = [1, 128], strides = [1, 1]} : vector<8x128xf32> to vector<1x128xf32>
    %102 = vector.broadcast %100 : vector<256x1xf32> to vector<256x128xf32>
    %103 = vector.broadcast %101 : vector<1x128xf32> to vector<256x128xf32>
    %104 = arith.mulf %102, %103 : vector<256x128xf32>
    %105 = arith.addf %99, %104 : vector<256x128xf32>
    %106 = vector.extract_strided_slice %75 {offsets = [0, 4], sizes = [256, 1], strides = [1, 1]} : vector<256x8xf32> to vector<256x1xf32>
    %107 = vector.extract_strided_slice %74 {offsets = [4, 0], sizes = [1, 128], strides = [1, 1]} : vector<8x128xf32> to vector<1x128xf32>
    %108 = vector.broadcast %106 : vector<256x1xf32> to vector<256x128xf32>
    %109 = vector.broadcast %107 : vector<1x128xf32> to vector<256x128xf32>
    %110 = arith.mulf %108, %109 : vector<256x128xf32>
    %111 = arith.addf %105, %110 : vector<256x128xf32>
    %112 = vector.extract_strided_slice %75 {offsets = [0, 5], sizes = [256, 1], strides = [1, 1]} : vector<256x8xf32> to vector<256x1xf32>
    %113 = vector.extract_strided_slice %74 {offsets = [5, 0], sizes = [1, 128], strides = [1, 1]} : vector<8x128xf32> to vector<1x128xf32>
    %114 = vector.broadcast %112 : vector<256x1xf32> to vector<256x128xf32>
    %115 = vector.broadcast %113 : vector<1x128xf32> to vector<256x128xf32>
    %116 = arith.mulf %114, %115 : vector<256x128xf32>
    %117 = arith.addf %111, %116 : vector<256x128xf32>
    %118 = vector.extract_strided_slice %75 {offsets = [0, 6], sizes = [256, 1], strides = [1, 1]} : vector<256x8xf32> to vector<256x1xf32>
    %119 = vector.extract_strided_slice %74 {offsets = [6, 0], sizes = [1, 128], strides = [1, 1]} : vector<8x128xf32> to vector<1x128xf32>
    %120 = vector.broadcast %118 : vector<256x1xf32> to vector<256x128xf32>
    %121 = vector.broadcast %119 : vector<1x128xf32> to vector<256x128xf32>
    %122 = arith.mulf %120, %121 : vector<256x128xf32>
    %123 = arith.addf %117, %122 : vector<256x128xf32>
    %124 = vector.extract_strided_slice %75 {offsets = [0, 7], sizes = [256, 1], strides = [1, 1]} : vector<256x8xf32> to vector<256x1xf32>
    %125 = vector.extract_strided_slice %74 {offsets = [7, 0], sizes = [1, 128], strides = [1, 1]} : vector<8x128xf32> to vector<1x128xf32>
    %126 = vector.broadcast %124 : vector<256x1xf32> to vector<256x128xf32>
    %127 = vector.broadcast %125 : vector<1x128xf32> to vector<256x128xf32>
    %128 = arith.mulf %126, %127 : vector<256x128xf32>
    %129 = arith.addf %123, %128 : vector<256x128xf32>
    %cst_30 = arith.constant 0.000000e+00 : f32
    %130 = vector.broadcast %cst_30 : f32 to vector<256x128xf32>
    %131 = arith.maximumf %129, %130 : vector<256x128xf32>
    %132 = arith.truncf %131 : vector<256x128xf32> to vector<256x128xbf16>
    %cst_31 = arith.constant dense<0.000000e+00> : vector<256x128xf32>
    %133 = tpu.matmul %77, %132, %cst_31 {dimension_numbers = #tpu.dot_dimension_numbers<[1], [0], [0], [1], [0, 0, 1, 1], [], []>} : vector<256x256xbf16>, vector<256x128xbf16>, vector<256x128xf32> -> vector<256x128xf32>
    %134 = vector.broadcast %78 : vector<256x1xf32> to vector<256x128xf32>
    %135 = arith.addf %133, %134 : vector<256x128xf32>
    %cst_32 = arith.constant 0.000000e+00 : f32
    %136 = vector.broadcast %cst_32 : f32 to vector<256x128xf32>
    %137 = arith.maximumf %135, %136 : vector<256x128xf32>
    %138 = arith.truncf %137 : vector<256x128xf32> to vector<256x128xbf16>
    %cst_33 = arith.constant dense<0.000000e+00> : vector<8x128xf32>
    %139 = tpu.matmul %79, %138, %cst_33 {dimension_numbers = #tpu.dot_dimension_numbers<[1], [0], [0], [1], [0, 0, 1, 1], [], []>} : vector<8x256xbf16>, vector<256x128xbf16>, vector<8x128xf32> -> vector<8x128xf32>
    %140 = vector.broadcast %80 : vector<8x1xf32> to vector<8x128xf32>
    %141 = arith.addf %139, %140 : vector<8x128xf32>
    %142 = math.tanh %141 : vector<8x128xf32>
    %cst_34 = arith.constant 1.000000e+00 : f32
    %143 = vector.broadcast %cst_34 : f32 to vector<8x128xf32>
    %144 = arith.subf %143, %142 : vector<8x128xf32>
    %145 = arith.mulf %144, %144 : vector<8x128xf32>
    %146 = arith.mulf %144, %145 : vector<8x128xf32>
    %cst_35 = arith.constant 1.000000e+00 : f32
    %147 = vector.broadcast %cst_35 : f32 to vector<8x128xf32>
    %148 = arith.subf %147, %146 : vector<8x128xf32>
    %149 = arith.subf %0, %74 : vector<8x128xf32>
    %150 = arith.mulf %148, %149 : vector<8x128xf32>
    %c0_36 = arith.constant 0 : index
    %c0_37 = arith.constant 0 : index
    %151 = vector.load %arg14[%c0_36, %c0_37] : memref<24x128xf32, #tpu.memory_space<vmem>>, vector<8x128xf32>
    tpu.vector_store %arg14[%c0_36, %c0_37], %142 {strides = array<i32>} : memref<24x128xf32, #tpu.memory_space<vmem>>, vector<8x128xf32>,
    %c8 = arith.constant 8 : index
    %c0_38 = arith.constant 0 : index
    %152 = vector.load %arg14[%c8, %c0_38] : memref<24x128xf32, #tpu.memory_space<vmem>>, vector<8x128xf32>
    tpu.vector_store %arg14[%c8, %c0_38], %74 {strides = array<i32>} : memref<24x128xf32, #tpu.memory_space<vmem>>, vector<8x128xf32>,
    %c16 = arith.constant 16 : index
    %c0_39 = arith.constant 0 : index
    %153 = vector.load %arg14[%c16, %c0_39] : memref<24x128xf32, #tpu.memory_space<vmem>>, vector<8x128xf32>
    tpu.vector_store %arg14[%c16, %c0_39], %150 {strides = array<i32>} : memref<24x128xf32, #tpu.memory_space<vmem>>, vector<8x128xf32>,
    return
  }
  func.func @transform_0(%arg0: i32) -> (i32, i32) {
    %c0_i32 = arith.constant 0 : i32
    %c0_i32_0 = arith.constant 0 : i32
    return %c0_i32, %arg0 : i32, i32
  }
  func.func @transform_1(%arg0: i32) -> (i32, i32) {
    %c0_i32 = arith.constant 0 : i32
    %c0_i32_0 = arith.constant 0 : i32
    %c0_i32_1 = arith.constant 0 : i32
    return %c0_i32, %c0_i32_0 : i32, i32
  }
  func.func @transform_2(%arg0: i32) -> (i32, i32) {
    %c0_i32 = arith.constant 0 : i32
    %c0_i32_0 = arith.constant 0 : i32
    %c0_i32_1 = arith.constant 0 : i32
    return %c0_i32, %c0_i32_0 : i32, i32
  }
  func.func @transform_3(%arg0: i32) -> (i32, i32) {
    %c0_i32 = arith.constant 0 : i32
    %c0_i32_0 = arith.constant 0 : i32
    %c0_i32_1 = arith.constant 0 : i32
    return %c0_i32, %c0_i32_0 : i32, i32
  }
  func.func @transform_4(%arg0: i32) -> (i32, i32) {
    %c0_i32 = arith.constant 0 : i32
    %c0_i32_0 = arith.constant 0 : i32
    %c0_i32_1 = arith.constant 0 : i32
    return %c0_i32, %c0_i32_0 : i32, i32
  }
  func.func @transform_5(%arg0: i32) -> (i32, i32) {
    %c0_i32 = arith.constant 0 : i32
    %c0_i32_0 = arith.constant 0 : i32
    %c0_i32_1 = arith.constant 0 : i32
    return %c0_i32, %c0_i32_0 : i32, i32
  }
  func.func @transform_6(%arg0: i32) -> (i32, i32) {
    %c0_i32 = arith.constant 0 : i32
    %c0_i32_0 = arith.constant 0 : i32
    %c0_i32_1 = arith.constant 0 : i32
    return %c0_i32, %c0_i32_0 : i32, i32
  }
  func.func @transform_7(%arg0: i32) -> (i32, i32) {
    %c0_i32 = arith.constant 0 : i32
    %c0_i32_0 = arith.constant 0 : i32
    %c0_i32_1 = arith.constant 0 : i32
    return %c0_i32, %c0_i32_0 : i32, i32
  }
  func.func @transform_8(%arg0: i32) -> (i32, i32) {
    %c0_i32 = arith.constant 0 : i32
    %c0_i32_0 = arith.constant 0 : i32
    %c0_i32_1 = arith.constant 0 : i32
    return %c0_i32, %c0_i32_0 : i32, i32
  }
  func.func @transform_9(%arg0: i32) -> (i32, i32) {
    %c0_i32 = arith.constant 0 : i32
    %c0_i32_0 = arith.constant 0 : i32
    %c0_i32_1 = arith.constant 0 : i32
    return %c0_i32, %c0_i32_0 : i32, i32
  }
  func.func @transform_10(%arg0: i32) -> (i32, i32) {
    %c0_i32 = arith.constant 0 : i32
    %c0_i32_0 = arith.constant 0 : i32
    %c0_i32_1 = arith.constant 0 : i32
    return %c0_i32, %c0_i32_0 : i32, i32
  }
  func.func @transform_11(%arg0: i32) -> (i32, i32) {
    %c0_i32 = arith.constant 0 : i32
    %c0_i32_0 = arith.constant 0 : i32
    %c0_i32_1 = arith.constant 0 : i32
    return %c0_i32, %c0_i32_0 : i32, i32
  }
  func.func @transform_12(%arg0: i32) -> (i32, i32) {
    %c0_i32 = arith.constant 0 : i32
    %c0_i32_0 = arith.constant 0 : i32
    %c0_i32_1 = arith.constant 0 : i32
    return %c0_i32, %c0_i32_0 : i32, i32
  }
  func.func @transform_13(%arg0: i32) -> (i32, i32) {
    %c0_i32 = arith.constant 0 : i32
    %c0_i32_0 = arith.constant 0 : i32
    return %c0_i32, %arg0 : i32, i32
  }
}

</mosaic_0001>

<bundles_post_ra>
// kernel: tpu_custom_call.1
= control target key start
LH: loop header
LB: loop body
LE: loop exit
PB: predicated region body
PF: predicated region fallthrough
CT: control target
= control target key end

     0   :  { %s11983_s0 = inlined_call_operand.vmem [shape: f32[8,256], index: 0, kind: input, shape index: {}]   ;;  %s11984_s1 = inlined_call_operand.vmem [shape: f32[256,8], index: 1, kind: input, shape index: {}]   ;;  %s11985_s2 = inlined_call_operand.vmem [shape: f32[256,1], index: 2, kind: input, shape index: {}]   ;;  %s11986_s3 = inlined_call_operand.vmem [shape: bf16[256,256], index: 3, kind: input, shape index: {}]   ;;  %s11987_s4 = inlined_call_operand.vmem [shape: f32[256,1], index: 4, kind: input, shape index: {}]   ;;  %s11988_s5 = inlined_call_operand.vmem [shape: bf16[8,256], index: 5, kind: input, shape index: {}]   ;;  %s11989_s6 = inlined_call_operand.vmem [shape: f32[8,1], index: 6, kind: input, shape index: {}]   ;;  %s11990_s7 = inlined_call_operand.vmem [shape: f32[256,8], index: 7, kind: input, shape index: {}]   ;;  %s11991_s8 = inlined_call_operand.vmem [shape: f32[256,1], index: 8, kind: input, shape index: {}]   ;;  %s11992_s9 = inlined_call_operand.vmem [shape: bf16[256,256], index: 9, kind: input, shape index: {}]   ;;  %s11993_s10 = inlined_call_operand.vmem [shape: f32[256,1], index: 10, kind: input, shape index: {}]   ;;  %s11994_s11 = inlined_call_operand.vmem [shape: bf16[8,256], index: 11, kind: input, shape index: {}]   ;;  %s11995_s12 = inlined_call_operand.vmem [shape: f32[8,1], index: 12, kind: input, shape index: {}]   ;;  %s11996_s13 = inlined_call_operand.hbm [shape: f32[24,256], index: 13, kind: output, shape index: {}]  }
   0x1   :  { %12060 = sst [smem:[#allocation249_spill]] %s11983_s0 }
   0x2   :  { %12061 = sst [smem:[#allocation250_spill]] %s11984_s1 }
   0x3   :  { %18 = vsyncpa [#allocation3], 0 }
   0x4   :  { %20 = vsyncpa [#allocation3 + $0x1], 0  ;;  %s6396_s25 = smov 0   ;;  %s6398_s26 = smov 0  }
   0x5   :  { %s6400_s27 = smov 0   ;;  %s6402_s28 = smov 0  }
   0x6 LB: > { %12062 = sst [smem:[#allocation5_spill]] %s6308_s27  ;;  %s6417_s29 = sadd.s32 4294967295, %s6312_s28   ;;  %s6312_s28 = sphi %s6402_s28, %s13451_s28   ;;  %s6308_s27 = sphi %s6400_s27, %s13448_s27   ;;  %s6304_s26 = sphi %s6398_s26, %s13450_s26   ;;  %s6300_s25 = sphi %s6396_s25, %s13449_s25  }
   0x7   : > { %s5575_s30 = sadd.s32 4294967294, %s6312_s28   ;;  %s6421_s14 = sadd.s32 1, %s6312_s28  }
   0x8   : > { %s311_s15 = sadd.s32 1, %s6308_s27  ;;  %s308_s16 = ssub.s32 %s6312_s28, %s6421_s14 }
   0x9   : > { %p321_p0 = scmp.ne.s32.totalorder %s6308_s27, %s6304_s26  ;;  %p309_p1 = scmp.eq.s32.totalorder %s308_s16, 0 }
   0xa   : > { %p322_p2 = scmp.eq.s32.totalorder %s6417_s29, 1  ;;  %p327_p3 = scmp.ne.s32.totalorder %s6304_s26, %s6300_s25 }
   0xb   : > { %p328_p4 = scmp.eq.s32.totalorder %s5575_s30, 1  ;;  %p5578_p7 = scmp.ge.s32.totalorder %s6312_s28, 1 }
   0xc   : > { %s6432_s17 = scalar_select %p309_p1, %s6308_s27, %s311_s15  }
   0xd   : > { %p6434_p5 = por %p322_p2, %p321_p0  ;;  %p6438_p6 = por %p328_p4, %p327_p3 }
   0xe   : > { %12063 = sst [smem:[#allocation6_spill]] %s6432_s17  ;;  %p389_p8 = scmp.lt.s32.totalorder %s6312_s28, 3 }
  0x10   : > { %p390_p9 = pnand %p5578_p7, %p389_p8 }
  0x12   : > { %393 = sbr.rel (%p390_p9) target bundleno = 2207 (0x89f), region = 72 }
  0x17   : > { %s12066_s1 = sld [smem:[#allocation250_spill]]  ;;  %v12000_v2 = vmov 0   ;;  %v471_v33 = vld [vmem:[%s11985_s2 + $0x8] sm:$0xff]  ;;  %v470_v34 = vld [vmem:[%s11985_s2] sm:$0xff]  ;;  %v473_v35 = vld [vmem:[%s11985_s2 + $0x18] sm:$0xff]  ;;  %p432_p10 = scmp.lt.s32.totalorder %s6417_s29, 1 }
  0x18   : > { %5971 = vset.pattern.permute.xlu1 %v12000_v2  ;;  %5970 = vset.pattern.permute.xlu0 %v12000_v2  ;;  %v472_v36 = vld [vmem:[%s11985_s2 + $0x10] sm:$0xff]  ;;  %v475_v37 = vld [vmem:[%s11985_s2 + $0x28] sm:$0xff]  ;;  %v474_v38 = vld [vmem:[%s11985_s2 + $0x20] sm:$0xff]  ;;  %s12270_s0 = sld [smem:[#allocation249_spill]]  ;;  %s13446_s30 = sand.u32 1, %s6304_s26  }
  0x19   : > { %v477_v39 = vld [vmem:[%s11985_s2 + $0x38] sm:$0xff]  ;;  %v476_v40 = vld [vmem:[%s11985_s2 + $0x30] sm:$0xff]  ;;  %v479_v41 = vld [vmem:[%s11985_s2 + $0x48] sm:$0xff]  ;;  %s433_s15 = scalar_select %p432_p10, %s6417_s29, 1 }
  0x1a   : > { %v478_v42 = vld [vmem:[%s11985_s2 + $0x40] sm:$0xff]  ;;  %v481_v43 = vld [vmem:[%s11985_s2 + $0x58] sm:$0xff]  ;;  %v480_v44 = vld [vmem:[%s11985_s2 + $0x50] sm:$0xff] }
  0x1b   : > { %v483_v45 = vld [vmem:[%s11985_s2 + $0x68] sm:$0xff]  ;;  %v482_v46 = vld [vmem:[%s11985_s2 + $0x60] sm:$0xff]  ;;  %v485_v47 = vld [vmem:[%s11985_s2 + $0x78] sm:$0xff]  ;;  %s5579_s21 = sshll.u32 %s433_s15, 3 }
  0x1c   : > { %v484_v48 = vld [vmem:[%s11985_s2 + $0x70] sm:$0xff]  ;;  %v487_v49 = vld [vmem:[%s11985_s2 + $0x88] sm:$0xff]  ;;  %v486_v50 = vld [vmem:[%s11985_s2 + $0x80] sm:$0xff] }
  0x1d   : > { %v6447_v0 = vld [vmem:[%s12066_s1 + $0x10] sm:$0xff]  ;;  %v6452_v1 = vld [vmem:[%s12066_s1] sm:$0xff]  ;;  %v6461_v3 = vld [vmem:[%s12066_s1 + $0x18] sm:$0xff] }
  0x1e   : > { %580 = vperm.xlu1 %5971, %v6447_v0   ;;  %570 = vperm.xlu0 %5970, %v6452_v1   ;;  %v6466_v4 = vld [vmem:[%s12066_s1 + $0x8] sm:$0xff]  ;;  %v6478_v6 = vld [vmem:[%s12066_s1 + $0x20] sm:$0xff]  ;;  %v6485_v7 = vld [vmem:[%s12066_s1 + $0x38] sm:$0xff]  ;;  %s7520_s16 = scalar_lea.vmem %s12270_s0, %s5579_s21  ;;  %s12059_s21 = sand.u32 1, %s6304_s26  }
  0x1f   : > { %v6473_v5 = vld [vmem:[%s12066_s1 + $0x28] sm:$0xff]  ;;  %v6490_v8 = vld [vmem:[%s12066_s1 + $0x30] sm:$0xff]  ;;  %v6502_v10 = vld [vmem:[%s12066_s1 + $0x40] sm:$0xff]  ;;  %s5919_s22 = smul.u32 24, %s12059_s21  ;;  %s5648_s21 = sshll.u32 %s6417_s29, 7 }
  0x20   : > { %v6497_v9 = vld [vmem:[%s12066_s1 + $0x48] sm:$0xff]  ;;  %v6509_v11 = vld [vmem:[%s12066_s1 + $0x58] sm:$0xff]  ;;  %v6514_v12 = vld [vmem:[%s12066_s1 + $0x50] sm:$0xff]  ;;  %s11943_s29 = scalar_lea.sflag [#allocation3], %s13446_s30 }
  0x21   : > { %v6519_v13 = vld [vmem:[%s12066_s1 + $0x68] sm:$0xff]  ;;  %v6524_v14 = vld [vmem:[%s12066_s1 + $0x60] sm:$0xff]  ;;  %v6531_v15 = vld [vmem:[%s12066_s1 + $0x78] sm:$0xff]  ;;  %s10346_s23 = scalar_lea.vmem [#allocation2], %s5919_s22 }
  0x22   : > { %585 = vperm.xlu1 %5971, %v6461_v3   ;;  %575 = vperm.xlu0 %5970, %v6466_v4   ;;  %v6536_v16 = vld [vmem:[%s12066_s1 + $0x70] sm:$0xff]  ;;  %v6543_v17 = vld [vmem:[%s12066_s1 + $0x88] sm:$0xff]  ;;  %v6548_v18 = vld [vmem:[%s12066_s1 + $0x80] sm:$0xff]  ;;  %s5513_s22 = sshll.u32 %s10346_s23, 4  ;;  %s11938_s22 = int_to_ptr.vmem [resolvable:$true] %s5513_s22 }
  0x23   : > { %v6555_v19 = vld [vmem:[%s12066_s1 + $0x98] sm:$0xff]  ;;  %v6560_v20 = vld [vmem:[%s12066_s1 + $0x90] sm:$0xff]  ;;  %v6567_v21 = vld [vmem:[%s12066_s1 + $0xa8] sm:$0xff]  ;;  %s6252_s27 = scalar_lea.vmem %s11938_s22, 384 }
  0x24   : > { %v6572_v22 = vld [vmem:[%s12066_s1 + $0xa0] sm:$0xff]  ;;  %v6581_v23 = vld [vmem:[%s12066_s1 + $0xb8] sm:$0xff]  ;;  %v6586_v24 = vld [vmem:[%s12066_s1 + $0xb0] sm:$0xff]  ;;  %p6253_p11 = scmp.ne.s32.totalorder %s11938_s22, %s6252_s27 }
  0x25   : > { %v6593_v25 = vld [vmem:[%s12066_s1 + $0xc8] sm:$0xff]  ;;  %v6598_v26 = vld [vmem:[%s12066_s1 + $0xc0] sm:$0xff]  ;;  %v6605_v27 = vld [vmem:[%s12066_s1 + $0xd8] sm:$0xff] }
  0x26   : > { %595 = vperm.xlu1 %5971, %v6473_v5   ;;  %590 = vperm.xlu0 %5970, %v6478_v6   ;;  %v6610_v28 = vld [vmem:[%s12066_s1 + $0xd0] sm:$0xff]  ;;  %v6617_v29 = vld [vmem:[%s12066_s1 + $0xe8] sm:$0xff]  ;;  %v6622_v30 = vld [vmem:[%s12066_s1 + $0xe0] sm:$0xff]  ;;  %p6254_p12 = pnand %p6253_p11, %p6434_p5 }
  0x27   : > { %v6629_v31 = vld [vmem:[%s12066_s1 + $0xf8] sm:$0xff]  ;;  %v6634_v32 = vld [vmem:[%s12066_s1 + $0xf0] sm:$0xff]  ;;  %v491_v53 = vld [vmem:[%s11985_s2 + $0xa8] sm:$0xff] }
  0x28   : > { %v489_v51 = vld [vmem:[%s11985_s2 + $0x98] sm:$0xff]  ;;  %v488_v52 = vld [vmem:[%s11985_s2 + $0x90] sm:$0xff]  ;;  %v490_v54 = vld [vmem:[%s11985_s2 + $0xa0] sm:$0xff]  ;;  %p6255_p13 = pneg %p6254_p12 }
  0x29   : > { %v493_v55 = vld [vmem:[%s11985_s2 + $0xb8] sm:$0xff]  ;;  %v492_v56 = vld [vmem:[%s11985_s2 + $0xb0] sm:$0xff]  ;;  %v495_v57 = vld [vmem:[%s11985_s2 + $0xc8] sm:$0xff] }
  0x2a   : > { %605 = vperm.xlu1 %5971, %v6485_v7   ;;  %600 = vperm.xlu0 %5970, %v6490_v8   ;;  %v494_v58 = vld [vmem:[%s11985_s2 + $0xc0] sm:$0xff]  ;;  %v497_v59 = vld [vmem:[%s11985_s2 + $0xd8] sm:$0xff]  ;;  %v496_v60 = vld [vmem:[%s11985_s2 + $0xd0] sm:$0xff] }
  0x2b   : > { %v499_v61 = vld [vmem:[%s11985_s2 + $0xe8] sm:$0xff]  ;;  %v498_v62 = vld [vmem:[%s11985_s2 + $0xe0] sm:$0xff]  ;;  %v501_v63 = vld [vmem:[%s11985_s2 + $0xf8] sm:$0xff] }
  0x2e   : > { %615 = vperm.xlu1 %5971, %v6497_v9   ;;  %610 = vperm.xlu0 %5970, %v6502_v10  }
  0x32   : > { %625 = vperm.xlu1 %5971, %v6509_v11   ;;  %620 = vperm.xlu0 %5970, %v6514_v12  }
  0x36   : > { %635 = vperm.xlu1 %5971, %v6519_v13   ;;  %630 = vperm.xlu0 %5970, %v6524_v14  }
  0x3a   : > { %645 = vperm.xlu1 %5971, %v6531_v15   ;;  %640 = vperm.xlu0 %5970, %v6536_v16  }
  0x3e   : > { %655 = vperm.xlu1 %5971, %v6543_v17   ;;  %650 = vperm.xlu0 %5970, %v6548_v18  }
  0x42   : > { %665 = vperm.xlu1 %5971, %v6555_v19   ;;  %660 = vperm.xlu0 %5970, %v6560_v20  }
  0x46   : > { %675 = vperm.xlu1 %5971, %v6567_v21   ;;  %670 = vperm.xlu0 %5970, %v6572_v22  }
  0x4a   : > { %685 = vperm.xlu1 %5971, %v6581_v23   ;;  %680 = vperm.xlu0 %5970, %v6586_v24  }
  0x4e   : > { %695 = vperm.xlu1 %5971, %v6593_v25   ;;  %690 = vperm.xlu0 %5970, %v6598_v26  }
  0x52   : > { %705 = vperm.xlu1 %5971, %v6605_v27   ;;  %700 = vperm.xlu0 %5970, %v6610_v28  }
  0x56   : > { %715 = vperm.xlu1 %5971, %v6617_v29   ;;  %710 = vperm.xlu0 %5970, %v6622_v30  }
  0x5a   : > { %725 = vperm.xlu1 %5971, %v6629_v31   ;;  %720 = vperm.xlu0 %5970, %v6634_v32  }
  0x5e   : > { %771 = vperm.xlu1 %5971, %v471_v33   ;;  %766 = vperm.xlu0 %5970, %v470_v34   ;;  %v500_v33 = vld [vmem:[%s11985_s2 + $0xf0] sm:$0xff] }
  0x62   : > { %781 = vperm.xlu1 %5971, %v473_v35   ;;  %776 = vperm.xlu0 %5970, %v472_v36  }
  0x66   : > { %791 = vperm.xlu1 %5971, %v475_v37   ;;  %786 = vperm.xlu0 %5970, %v474_v38   ;;  %v11998_v38 = vmov 1  }
  0x6a   : > { %801 = vperm.xlu1 %5971, %v477_v39   ;;  %796 = vperm.xlu0 %5970, %v476_v40  }
  0x6e   : > { %811 = vperm.xlu1 %5971, %v479_v41   ;;  %806 = vperm.xlu0 %5970, %v478_v42  }
  0x72   : > { %821 = vperm.xlu1 %5971, %v481_v43   ;;  %816 = vperm.xlu0 %5970, %v480_v44  }
  0x76   : > { %831 = vperm.xlu1 %5971, %v483_v45   ;;  %826 = vperm.xlu0 %5970, %v482_v46  }
  0x7a   : > { %841 = vperm.xlu1 %5971, %v485_v47   ;;  %836 = vperm.xlu0 %5970, %v484_v48  }
  0x7e   : > { %851 = vperm.xlu1 %5971, %v487_v49   ;;  %846 = vperm.xlu0 %5970, %v486_v50  }
  0x82   : > { %861 = vperm.xlu1 %5971, %v489_v51   ;;  %856 = vperm.xlu0 %5970, %v488_v52  }
  0x86   : > { %871 = vperm.xlu1 %5971, %v491_v53   ;;  %866 = vperm.xlu0 %5970, %v490_v54  }
  0x8a   : > { %881 = vperm.xlu1 %5971, %v493_v55   ;;  %876 = vperm.xlu0 %5970, %v492_v56  }
  0x8e   : > { %891 = vperm.xlu1 %5971, %v495_v57   ;;  %886 = vperm.xlu0 %5970, %v494_v58  }
  0x92   : > { %901 = vperm.xlu1 %5971, %v497_v59   ;;  %896 = vperm.xlu0 %5970, %v496_v60  }
  0x96   : > { %911 = vperm.xlu1 %5971, %v499_v61   ;;  %906 = vperm.xlu0 %5970, %v498_v62  }
  0x99   : > { %v6734_v34 = vpop.permute.xlu1 %580  ;;  %v6736_v35 = vpop.permute.xlu0 %570 }
  0x9a   : > { %921 = vperm.xlu1 %5971, %v501_v63   ;;  %916 = vperm.xlu0 %5970, %v500_v33  }
  0x9d   : > { %v6738_v36 = vpop.permute.xlu1 %585  ;;  %v6740_v37 = vpop.permute.xlu0 %575 }
  0x9e   : > { %5973 = vset.pattern.permute.xlu1 %v11998_v38  ;;  %5972 = vset.pattern.permute.xlu0 %v11998_v38 }
  0x9f   : > { %961 = vperm.xlu1 %5973, %v6466_v4   ;;  %957 = vperm.xlu0 %5972, %v6452_v1  }
  0xa1   : > { %v6746_v39 = vpop.permute.xlu1 %595  ;;  %v6748_v40 = vpop.permute.xlu0 %590 }
  0xa3   : > { %965 = vperm.xlu1 %5973, %v6447_v0   ;;  %969 = vperm.xlu0 %5972, %v6461_v3  }
  0xa5   : > { %v6752_v41 = vpop.permute.xlu1 %605  ;;  %v6754_v42 = vpop.permute.xlu0 %600 }
  0xa7   : > { %973 = vperm.xlu1 %5973, %v6478_v6   ;;  %977 = vperm.xlu0 %5972, %v6473_v5  }
  0xa9   : > { %v6758_v43 = vpop.permute.xlu1 %615  ;;  %v6760_v44 = vpop.permute.xlu0 %610 }
  0xab   : > { %981 = vperm.xlu1 %5973, %v6490_v8   ;;  %985 = vperm.xlu0 %5972, %v6485_v7  }
  0xad   : > { %v6764_v45 = vpop.permute.xlu1 %625  ;;  %v6766_v46 = vpop.permute.xlu0 %620 }
  0xaf   : > { %989 = vperm.xlu1 %5973, %v6502_v10   ;;  %993 = vperm.xlu0 %5972, %v6497_v9  }
  0xb1   : > { %v6770_v47 = vpop.permute.xlu1 %635  ;;  %v6772_v48 = vpop.permute.xlu0 %630 }
  0xb3   : > { %997 = vperm.xlu1 %5973, %v6514_v12   ;;  %1001 = vperm.xlu0 %5972, %v6509_v11  }
  0xb5   : > { %v6776_v49 = vpop.permute.xlu1 %645  ;;  %v6778_v50 = vpop.permute.xlu0 %640 }
  0xb7   : > { %1005 = vperm.xlu1 %5973, %v6524_v14   ;;  %1009 = vperm.xlu0 %5972, %v6519_v13  }
  0xb9   : > { %v6782_v51 = vpop.permute.xlu1 %655  ;;  %v6784_v52 = vpop.permute.xlu0 %650 }
  0xbb   : > { %1013 = vperm.xlu1 %5973, %v6536_v16   ;;  %1017 = vperm.xlu0 %5972, %v6531_v15  }
  0xbd   : > { %v6788_v53 = vpop.permute.xlu1 %665  ;;  %v6790_v54 = vpop.permute.xlu0 %660 }
  0xbf   : > { %1021 = vperm.xlu1 %5973, %v6548_v18   ;;  %1025 = vperm.xlu0 %5972, %v6543_v17  }
  0xc1   : > { %v6794_v55 = vpop.permute.xlu1 %675  ;;  %v6796_v56 = vpop.permute.xlu0 %670 }
  0xc3   : > { %1029 = vperm.xlu1 %5973, %v6560_v20   ;;  %1033 = vperm.xlu0 %5972, %v6555_v19  }
  0xc5   : > { %v6800_v57 = vpop.permute.xlu1 %685  ;;  %v6802_v58 = vpop.permute.xlu0 %680 }
  0xc7   : > { %1037 = vperm.xlu1 %5973, %v6572_v22   ;;  %1041 = vperm.xlu0 %5972, %v6567_v21  }
  0xc9   : > { %v6806_v59 = vpop.permute.xlu1 %695  ;;  %v6808_v60 = vpop.permute.xlu0 %690 }
  0xca   : > { %12067 = vst [vmem:[#allocation7_spill] sm:$0xff] %v6808_v60  ;;  %v12002_v60 = vmov 2  }
  0xcb   : > { %1045 = vperm.xlu1 %5973, %v6586_v24   ;;  %1049 = vperm.xlu0 %5972, %v6581_v23  }
  0xcd   : > { %v6812_v61 = vpop.permute.xlu1 %705  ;;  %v6814_v62 = vpop.permute.xlu0 %700 }
  0xce   : > { %12068 = vst [vmem:[#allocation8_spill] sm:$0xff] %v6812_v61  ;;  %12069 = vst [vmem:[#allocation9_spill] sm:$0xff] %v6814_v62 }
  0xcf   : > { %1053 = vperm.xlu1 %5973, %v6598_v26   ;;  %1057 = vperm.xlu0 %5972, %v6593_v25  }
  0xd1   : > { %v6818_v63 = vpop.permute.xlu1 %715  ;;  %v6820_v33 = vpop.permute.xlu0 %710 }
  0xd2   : > { %12070 = vst [vmem:[#allocation10_spill] sm:$0xff] %v6818_v63  ;;  %12071 = vst [vmem:[#allocation11_spill] sm:$0xff] %v6820_v33 }
  0xd3   : > { %1061 = vperm.xlu1 %5973, %v6610_v28   ;;  %1065 = vperm.xlu0 %5972, %v6605_v27  }
  0xd5   : > { %v6824_v38 = vpop.permute.xlu1 %725  ;;  %v6826_v2 = vpop.permute.xlu0 %720 }
  0xd6   : > { %12072 = vst [vmem:[#allocation12_spill] sm:$0xff] %v6824_v38  ;;  %12073 = vst [vmem:[#allocation13_spill] sm:$0xff] %v6826_v2 }
  0xd7   : > { %1069 = vperm.xlu1 %5973, %v6622_v30   ;;  %1073 = vperm.xlu0 %5972, %v6617_v29  }
  0xd9   : > { %v6830_v62 = vpop.permute.xlu1 %771  ;;  %v6832_v61 = vpop.permute.xlu0 %766 }
  0xda   : > { %12074 = vst [vmem:[#allocation14_spill] sm:$0xff] %v6830_v62  ;;  %12075 = vst [vmem:[#allocation15_spill] sm:$0xff] %v6832_v61 }
  0xdb   : > { %1077 = vperm.xlu1 %5973, %v6634_v32   ;;  %1081 = vperm.xlu0 %5972, %v6629_v31  }
  0xdd   : > { %v6836_v33 = vpop.permute.xlu1 %781  ;;  %v6838_v63 = vpop.permute.xlu0 %776 }
  0xde   : > { %12076 = vst [vmem:[#allocation16_spill] sm:$0xff] %v6836_v33  ;;  %12077 = vst [vmem:[#allocation17_spill] sm:$0xff] %v6838_v63 }
  0xdf   : > { %5974 = vset.pattern.permute.xlu1 %v12002_v60  ;;  %5975 = vset.pattern.permute.xlu0 %v12002_v60 }
  0xe0   : > { %1153 = vperm.xlu1 %5974, %v6452_v1   ;;  %1157 = vperm.xlu0 %5975, %v6466_v4  }
  0xe1   : > { %v6844_v62 = vpop.permute.xlu1 %791  ;;  %v6846_v61 = vpop.permute.xlu0 %786 }
  0xe2   : > { %12078 = vst [vmem:[#allocation18_spill] sm:$0xff] %v6844_v62  ;;  %12079 = vst [vmem:[#allocation19_spill] sm:$0xff] %v6846_v61 }
  0xe4   : > { %1161 = vperm.xlu1 %5974, %v6447_v0   ;;  %1169 = vperm.xlu0 %5975, %v6478_v6  }
  0xe5   : > { %v6850_v33 = vpop.permute.xlu1 %801  ;;  %v6852_v63 = vpop.permute.xlu0 %796 }
  0xe6   : > { %12080 = vst [vmem:[#allocation20_spill] sm:$0xff] %v6850_v33  ;;  %12081 = vst [vmem:[#allocation21_spill] sm:$0xff] %v6852_v63 }
  0xe8   : > { %1165 = vperm.xlu1 %5974, %v6461_v3   ;;  %1177 = vperm.xlu0 %5975, %v6490_v8  }
  0xe9   : > { %v6856_v60 = vpop.permute.xlu1 %811  ;;  %v6858_v2 = vpop.permute.xlu0 %806 }
  0xea   : > { %12082 = vst [vmem:[#allocation22_spill] sm:$0xff] %v6856_v60  ;;  %12083 = vst [vmem:[#allocation23_spill] sm:$0xff] %v6858_v2 }
  0xec   : > { %1173 = vperm.xlu1 %5974, %v6473_v5   ;;  %1185 = vperm.xlu0 %5975, %v6502_v10  }
  0xed   : > { %v6862_v61 = vpop.permute.xlu1 %821  ;;  %v6864_v62 = vpop.permute.xlu0 %816 }
  0xee   : > { %12084 = vst [vmem:[#allocation24_spill] sm:$0xff] %v6862_v61  ;;  %12085 = vst [vmem:[#allocation25_spill] sm:$0xff] %v6864_v62 }
  0xf0   : > { %1181 = vperm.xlu1 %5974, %v6485_v7   ;;  %1193 = vperm.xlu0 %5975, %v6514_v12  }
  0xf1   : > { %v6868_v63 = vpop.permute.xlu1 %831  ;;  %v6870_v33 = vpop.permute.xlu0 %826 }
  0xf2   : > { %12086 = vst [vmem:[#allocation26_spill] sm:$0xff] %v6868_v63  ;;  %12087 = vst [vmem:[#allocation27_spill] sm:$0xff] %v6870_v33 }
  0xf4   : > { %1189 = vperm.xlu1 %5974, %v6497_v9   ;;  %1201 = vperm.xlu0 %5975, %v6524_v14  }
  0xf5   : > { %v6874_v2 = vpop.permute.xlu1 %841  ;;  %v6876_v60 = vpop.permute.xlu0 %836 }
  0xf6   : > { %12088 = vst [vmem:[#allocation28_spill] sm:$0xff] %v6874_v2  ;;  %12089 = vst [vmem:[#allocation29_spill] sm:$0xff] %v6876_v60 }
  0xf8   : > { %1197 = vperm.xlu1 %5974, %v6509_v11   ;;  %1209 = vperm.xlu0 %5975, %v6536_v16  }
  0xf9   : > { %v6880_v62 = vpop.permute.xlu1 %851  ;;  %v6882_v61 = vpop.permute.xlu0 %846 }
  0xfa   : > { %12090 = vst [vmem:[#allocation30_spill] sm:$0xff] %v6880_v62  ;;  %12091 = vst [vmem:[#allocation31_spill] sm:$0xff] %v6882_v61 }
  0xfc   : > { %1205 = vperm.xlu1 %5974, %v6519_v13   ;;  %1217 = vperm.xlu0 %5975, %v6548_v18  }
  0xfd   : > { %v6886_v33 = vpop.permute.xlu1 %861  ;;  %v6888_v63 = vpop.permute.xlu0 %856 }
  0xfe   : > { %12092 = vst [vmem:[#allocation32_spill] sm:$0xff] %v6886_v33  ;;  %12093 = vst [vmem:[#allocation33_spill] sm:$0xff] %v6888_v63 }
 0x100   : > { %1213 = vperm.xlu1 %5974, %v6531_v15   ;;  %1225 = vperm.xlu0 %5975, %v6560_v20  }
 0x101   : > { %v6892_v60 = vpop.permute.xlu1 %871  ;;  %v6894_v2 = vpop.permute.xlu0 %866 }
 0x102   : > { %12094 = vst [vmem:[#allocation34_spill] sm:$0xff] %v6892_v60  ;;  %12095 = vst [vmem:[#allocation35_spill] sm:$0xff] %v6894_v2 }
 0x104   : > { %1221 = vperm.xlu1 %5974, %v6543_v17   ;;  %1233 = vperm.xlu0 %5975, %v6572_v22  }
 0x105   : > { %v6898_v61 = vpop.permute.xlu1 %881  ;;  %v6900_v62 = vpop.permute.xlu0 %876 }
 0x106   : > { %12096 = vst [vmem:[#allocation36_spill] sm:$0xff] %v6898_v61  ;;  %12097 = vst [vmem:[#allocation37_spill] sm:$0xff] %v6900_v62 }
 0x108   : > { %1229 = vperm.xlu1 %5974, %v6555_v19   ;;  %1241 = vperm.xlu0 %5975, %v6586_v24  }
 0x109   : > { %v6904_v63 = vpop.permute.xlu1 %891  ;;  %v6906_v33 = vpop.permute.xlu0 %886 }
 0x10a   : > { %12098 = vst [vmem:[#allocation38_spill] sm:$0xff] %v6904_v63  ;;  %12099 = vst [vmem:[#allocation39_spill] sm:$0xff] %v6906_v33 }
 0x10c   : > { %1237 = vperm.xlu1 %5974, %v6567_v21   ;;  %1249 = vperm.xlu0 %5975, %v6598_v26  }
 0x10d   : > { %v6910_v2 = vpop.permute.xlu1 %901  ;;  %v6912_v60 = vpop.permute.xlu0 %896 }
 0x10e   : > { %12100 = vst [vmem:[#allocation40_spill] sm:$0xff] %v6910_v2  ;;  %12101 = vst [vmem:[#allocation41_spill] sm:$0xff] %v6912_v60 }
 0x110   : > { %1245 = vperm.xlu1 %5974, %v6581_v23   ;;  %1257 = vperm.xlu0 %5975, %v6610_v28  }
 0x111   : > { %v6916_v62 = vpop.permute.xlu1 %911  ;;  %v6918_v61 = vpop.permute.xlu0 %906 }
 0x112   : > { %12102 = vst [vmem:[#allocation42_spill] sm:$0xff] %v6916_v62  ;;  %12103 = vst [vmem:[#allocation43_spill] sm:$0xff] %v6918_v61  ;;  %v12004_v62 = vmov 3  }
 0x114   : > { %1253 = vperm.xlu1 %5974, %v6593_v25   ;;  %1265 = vperm.xlu0 %5975, %v6622_v30  }
 0x115   : > { %v6922_v33 = vpop.permute.xlu1 %921  ;;  %v6924_v63 = vpop.permute.xlu0 %916 }
 0x116   : > { %12104 = vst [vmem:[#allocation44_spill] sm:$0xff] %v6922_v33  ;;  %12105 = vst [vmem:[#allocation45_spill] sm:$0xff] %v6924_v63 }
 0x118   : > { %1261 = vperm.xlu1 %5974, %v6605_v27   ;;  %1273 = vperm.xlu0 %5975, %v6634_v32  }
 0x11a   : > { %v6928_v60 = vpop.permute.xlu1 %961  ;;  %v6930_v2 = vpop.permute.xlu0 %957 }
 0x11b   : > { %12106 = vst [vmem:[#allocation46_spill] sm:$0xff] %v6928_v60  ;;  %12107 = vst [vmem:[#allocation47_spill] sm:$0xff] %v6930_v2 }
 0x11c   : > { %1269 = vperm.xlu1 %5974, %v6617_v29   ;;  %5976 = vset.pattern.permute.xlu0 %v12004_v62 }
 0x11d   : > { %1349 = vperm.xlu0 %5976, %v6452_v1  }
 0x11e   : > { %v6935_v61 = vpop.permute.xlu1 %965  ;;  %v6937_v33 = vpop.permute.xlu0 %969 }
 0x11f   : > { %12108 = vst [vmem:[#allocation48_spill] sm:$0xff] %v6935_v61  ;;  %12109 = vst [vmem:[#allocation49_spill] sm:$0xff] %v6937_v33 }
 0x120   : > { %1277 = vperm.xlu1 %5974, %v6629_v31  }
 0x121   : > { %1361 = vperm.xlu0 %5976, %v6461_v3  }
 0x122   : > { %v6941_v63 = vpop.permute.xlu1 %973  ;;  %v6943_v60 = vpop.permute.xlu0 %977 }
 0x123   : > { %12110 = vst [vmem:[#allocation50_spill] sm:$0xff] %v6941_v63  ;;  %12111 = vst [vmem:[#allocation51_spill] sm:$0xff] %v6943_v60 }
 0x124   : > { %5977 = vset.pattern.permute.xlu1 %v12004_v62 }
 0x125   : > { %1353 = vperm.xlu1 %5977, %v6466_v4   ;;  %1369 = vperm.xlu0 %5976, %v6473_v5  }
 0x126   : > { %v6948_v2 = vpop.permute.xlu1 %981  ;;  %v6950_v38 = vpop.permute.xlu0 %985 }
 0x127   : > { %12112 = vst [vmem:[#allocation52_spill] sm:$0xff] %v6948_v2  ;;  %12113 = vst [vmem:[#allocation53_spill] sm:$0xff] %v6950_v38 }
 0x129   : > { %1357 = vperm.xlu1 %5977, %v6447_v0   ;;  %1377 = vperm.xlu0 %5976, %v6485_v7  }
 0x12a   : > { %v6954_v33 = vpop.permute.xlu1 %989  ;;  %v6956_v61 = vpop.permute.xlu0 %993 }
 0x12b   : > { %12114 = vst [vmem:[#allocation54_spill] sm:$0xff] %v6954_v33  ;;  %12115 = vst [vmem:[#allocation55_spill] sm:$0xff] %v6956_v61 }
 0x12d   : > { %1365 = vperm.xlu1 %5977, %v6478_v6   ;;  %1385 = vperm.xlu0 %5976, %v6497_v9  }
 0x12e   : > { %v6960_v62 = vpop.permute.xlu1 %997  ;;  %v6962_v60 = vpop.permute.xlu0 %1001 }
 0x12f   : > { %12116 = vst [vmem:[#allocation56_spill] sm:$0xff] %v6960_v62  ;;  %12117 = vst [vmem:[#allocation57_spill] sm:$0xff] %v6962_v60 }
 0x131   : > { %1373 = vperm.xlu1 %5977, %v6490_v8   ;;  %1393 = vperm.xlu0 %5976, %v6509_v11  }
 0x132   : > { %v6966_v38 = vpop.permute.xlu1 %1005  ;;  %v6968_v2 = vpop.permute.xlu0 %1009 }
 0x133   : > { %12118 = vst [vmem:[#allocation58_spill] sm:$0xff] %v6966_v38  ;;  %12119 = vst [vmem:[#allocation59_spill] sm:$0xff] %v6968_v2 }
 0x135   : > { %1381 = vperm.xlu1 %5977, %v6502_v10   ;;  %1401 = vperm.xlu0 %5976, %v6519_v13  }
 0x136   : > { %v6972_v61 = vpop.permute.xlu1 %1013  ;;  %v6974_v33 = vpop.permute.xlu0 %1017 }
 0x137   : > { %12120 = vst [vmem:[#allocation60_spill] sm:$0xff] %v6972_v61  ;;  %12121 = vst [vmem:[#allocation61_spill] sm:$0xff] %v6974_v33 }
 0x139   : > { %1389 = vperm.xlu1 %5977, %v6514_v12   ;;  %1409 = vperm.xlu0 %5976, %v6531_v15  }
 0x13a   : > { %v6978_v60 = vpop.permute.xlu1 %1021  ;;  %v6980_v62 = vpop.permute.xlu0 %1025 }
 0x13b   : > { %12122 = vst [vmem:[#allocation62_spill] sm:$0xff] %v6978_v60  ;;  %12123 = vst [vmem:[#allocation63_spill] sm:$0xff] %v6980_v62 }
 0x13d   : > { %1397 = vperm.xlu1 %5977, %v6524_v14   ;;  %1417 = vperm.xlu0 %5976, %v6543_v17  }
 0x13e   : > { %v6984_v2 = vpop.permute.xlu1 %1029  ;;  %v6986_v38 = vpop.permute.xlu0 %1033 }
 0x13f   : > { %12124 = vst [vmem:[#allocation64_spill] sm:$0xff] %v6984_v2  ;;  %12125 = vst [vmem:[#allocation65_spill] sm:$0xff] %v6986_v38 }
 0x141   : > { %1405 = vperm.xlu1 %5977, %v6536_v16   ;;  %1425 = vperm.xlu0 %5976, %v6555_v19  }
 0x142   : > { %v6990_v33 = vpop.permute.xlu1 %1037  ;;  %v6992_v61 = vpop.permute.xlu0 %1041 }
 0x143   : > { %12126 = vst [vmem:[#allocation66_spill] sm:$0xff] %v6990_v33  ;;  %12127 = vst [vmem:[#allocation67_spill] sm:$0xff] %v6992_v61 }
 0x145   : > { %1413 = vperm.xlu1 %5977, %v6548_v18   ;;  %1433 = vperm.xlu0 %5976, %v6567_v21  }
 0x146   : > { %v6996_v62 = vpop.permute.xlu1 %1045  ;;  %v6998_v60 = vpop.permute.xlu0 %1049 }
 0x147   : > { %12128 = vst [vmem:[#allocation68_spill] sm:$0xff] %v6996_v62  ;;  %12129 = vst [vmem:[#allocation69_spill] sm:$0xff] %v6998_v60 }
 0x149   : > { %1421 = vperm.xlu1 %5977, %v6560_v20   ;;  %1441 = vperm.xlu0 %5976, %v6581_v23  }
 0x14a   : > { %v7002_v38 = vpop.permute.xlu1 %1053  ;;  %v7004_v2 = vpop.permute.xlu0 %1057 }
 0x14b   : > { %12130 = vst [vmem:[#allocation70_spill] sm:$0xff] %v7002_v38  ;;  %12131 = vst [vmem:[#allocation71_spill] sm:$0xff] %v7004_v2 }
 0x14d   : > { %1429 = vperm.xlu1 %5977, %v6572_v22   ;;  %1449 = vperm.xlu0 %5976, %v6593_v25  }
 0x14e   : > { %v7008_v61 = vpop.permute.xlu1 %1061  ;;  %v7010_v33 = vpop.permute.xlu0 %1065 }
 0x14f   : > { %12132 = vst [vmem:[#allocation72_spill] sm:$0xff] %v7008_v61  ;;  %12133 = vst [vmem:[#allocation73_spill] sm:$0xff] %v7010_v33 }
 0x151   : > { %1437 = vperm.xlu1 %5977, %v6586_v24   ;;  %1457 = vperm.xlu0 %5976, %v6605_v27  }
 0x152   : > { %v7014_v60 = vpop.permute.xlu1 %1069  ;;  %v7016_v62 = vpop.permute.xlu0 %1073 }
 0x153   : > { %12134 = vst [vmem:[#allocation74_spill] sm:$0xff] %v7014_v60  ;;  %12135 = vst [vmem:[#allocation75_spill] sm:$0xff] %v7016_v62  ;;  %v12006_v60 = vmov 4  }
 0x155   : > { %1445 = vperm.xlu1 %5977, %v6598_v26   ;;  %1465 = vperm.xlu0 %5976, %v6617_v29  }
 0x156   : > { %v7020_v2 = vpop.permute.xlu1 %1077  ;;  %v7022_v38 = vpop.permute.xlu0 %1081 }
 0x157   : > { %12136 = vst [vmem:[#allocation76_spill] sm:$0xff] %v7020_v2  ;;  %12137 = vst [vmem:[#allocation77_spill] sm:$0xff] %v7022_v38 }
 0x159   : > { %1453 = vperm.xlu1 %5977, %v6610_v28   ;;  %1473 = vperm.xlu0 %5976, %v6629_v31  }
 0x15b   : > { %v7026_v33 = vpop.permute.xlu1 %1153  ;;  %v7028_v61 = vpop.permute.xlu0 %1157 }
 0x15c   : > { %12138 = vst [vmem:[#allocation78_spill] sm:$0xff] %v7026_v33  ;;  %12139 = vst [vmem:[#allocation79_spill] sm:$0xff] %v7028_v61 }
 0x15d   : > { %1461 = vperm.xlu1 %5977, %v6622_v30   ;;  %5979 = vset.pattern.permute.xlu0 %v12006_v60 }
 0x15e   : > { %1549 = vperm.xlu0 %5979, %v6466_v4  }
 0x15f   : > { %v7033_v62 = vpop.permute.xlu1 %1161  ;;  %v7035_v2 = vpop.permute.xlu0 %1169 }
 0x160   : > { %12140 = vst [vmem:[#allocation80_spill] sm:$0xff] %v7033_v62  ;;  %12141 = vst [vmem:[#allocation81_spill] sm:$0xff] %v7035_v2 }
 0x161   : > { %1469 = vperm.xlu1 %5977, %v6634_v32  }
 0x162   : > { %1561 = vperm.xlu0 %5979, %v6478_v6  }
 0x163   : > { %v7039_v38 = vpop.permute.xlu1 %1165  ;;  %v7041_v33 = vpop.permute.xlu0 %1177 }
 0x164   : > { %12142 = vst [vmem:[#allocation82_spill] sm:$0xff] %v7041_v33 }
 0x165   : > { %5978 = vset.pattern.permute.xlu1 %v12006_v60 }
 0x166   : > { %1545 = vperm.xlu1 %5978, %v6452_v1   ;;  %1569 = vperm.xlu0 %5979, %v6490_v8  }
 0x167   : > { %v7046_v61 = vpop.permute.xlu1 %1173  ;;  %v7048_v63 = vpop.permute.xlu0 %1185 }
 0x168   : > { %12143 = vst [vmem:[#allocation83_spill] sm:$0xff] %v7046_v61  ;;  %12144 = vst [vmem:[#allocation84_spill] sm:$0xff] %v7048_v63 }
 0x16a   : > { %1553 = vperm.xlu1 %5978, %v6447_v0   ;;  %1577 = vperm.xlu0 %5979, %v6502_v10  }
 0x16b   : > { %v7052_v2 = vpop.permute.xlu1 %1181  ;;  %v7054_v62 = vpop.permute.xlu0 %1193 }
 0x16c   : > { %12145 = vst [vmem:[#allocation85_spill] sm:$0xff] %v7052_v2  ;;  %12146 = vst [vmem:[#allocation86_spill] sm:$0xff] %v7054_v62 }
 0x16e   : > { %1557 = vperm.xlu1 %5978, %v6461_v3   ;;  %1585 = vperm.xlu0 %5979, %v6514_v12  }
 0x16f   : > { %v7058_v60 = vpop.permute.xlu1 %1189  ;;  %v7060_v33 = vpop.permute.xlu0 %1201 }
 0x170   : > { %12147 = vst [vmem:[#allocation87_spill] sm:$0xff] %v7058_v60  ;;  %12148 = vst [vmem:[#allocation88_spill] sm:$0xff] %v7060_v33 }
 0x172   : > { %1565 = vperm.xlu1 %5978, %v6473_v5   ;;  %1593 = vperm.xlu0 %5979, %v6524_v14  }
 0x173   : > { %v7064_v63 = vpop.permute.xlu1 %1197  ;;  %v7066_v61 = vpop.permute.xlu0 %1209 }
 0x174   : > { %12149 = vst [vmem:[#allocation89_spill] sm:$0xff] %v7064_v63  ;;  %12150 = vst [vmem:[#allocation90_spill] sm:$0xff] %v7066_v61 }
 0x176   : > { %1573 = vperm.xlu1 %5978, %v6485_v7   ;;  %1601 = vperm.xlu0 %5979, %v6536_v16  }
 0x177   : > { %v7070_v62 = vpop.permute.xlu1 %1205  ;;  %v7072_v2 = vpop.permute.xlu0 %1217 }
 0x178   : > { %12151 = vst [vmem:[#allocation91_spill] sm:$0xff] %v7070_v62  ;;  %12152 = vst [vmem:[#allocation92_spill] sm:$0xff] %v7072_v2 }
 0x17a   : > { %1581 = vperm.xlu1 %5978, %v6497_v9   ;;  %1609 = vperm.xlu0 %5979, %v6548_v18  }
 0x17b   : > { %v7076_v33 = vpop.permute.xlu1 %1213  ;;  %v7078_v60 = vpop.permute.xlu0 %1225 }
 0x17c   : > { %12153 = vst [vmem:[#allocation93_spill] sm:$0xff] %v7076_v33  ;;  %12154 = vst [vmem:[#allocation94_spill] sm:$0xff] %v7078_v60 }
 0x17e   : > { %1589 = vperm.xlu1 %5978, %v6509_v11   ;;  %1617 = vperm.xlu0 %5979, %v6560_v20  }
 0x17f   : > { %v7082_v61 = vpop.permute.xlu1 %1221  ;;  %v7084_v63 = vpop.permute.xlu0 %1233 }
 0x180   : > { %12155 = vst [vmem:[#allocation95_spill] sm:$0xff] %v7082_v61  ;;  %12156 = vst [vmem:[#allocation96_spill] sm:$0xff] %v7084_v63 }
 0x182   : > { %1597 = vperm.xlu1 %5978, %v6519_v13   ;;  %1625 = vperm.xlu0 %5979, %v6572_v22  }
 0x183   : > { %v7088_v2 = vpop.permute.xlu1 %1229  ;;  %v7090_v62 = vpop.permute.xlu0 %1241 }
 0x184   : > { %12157 = vst [vmem:[#allocation97_spill] sm:$0xff] %v7088_v2  ;;  %12158 = vst [vmem:[#allocation98_spill] sm:$0xff] %v7090_v62 }
 0x186   : > { %1605 = vperm.xlu1 %5978, %v6531_v15   ;;  %1633 = vperm.xlu0 %5979, %v6586_v24  }
 0x187   : > { %v7094_v60 = vpop.permute.xlu1 %1237  ;;  %v7096_v33 = vpop.permute.xlu0 %1249 }
 0x188   : > { %12159 = vst [vmem:[#allocation99_spill] sm:$0xff] %v7094_v60  ;;  %12160 = vst [vmem:[#allocation100_spill] sm:$0xff] %v7096_v33 }
 0x18a   : > { %1613 = vperm.xlu1 %5978, %v6543_v17   ;;  %1641 = vperm.xlu0 %5979, %v6598_v26  }
 0x18b   : > { %v7100_v63 = vpop.permute.xlu1 %1245  ;;  %v7102_v61 = vpop.permute.xlu0 %1257 }
 0x18c   : > { %12161 = vst [vmem:[#allocation101_spill] sm:$0xff] %v7100_v63  ;;  %12162 = vst [vmem:[#allocation102_spill] sm:$0xff] %v7102_v61 }
 0x18e   : > { %1621 = vperm.xlu1 %5978, %v6555_v19   ;;  %1649 = vperm.xlu0 %5979, %v6610_v28  }
 0x18f   : > { %v7106_v62 = vpop.permute.xlu1 %1253  ;;  %v7108_v2 = vpop.permute.xlu0 %1265 }
 0x190   : > { %12163 = vst [vmem:[#allocation103_spill] sm:$0xff] %v7106_v62  ;;  %12164 = vst [vmem:[#allocation104_spill] sm:$0xff] %v7108_v2  ;;  %v12008_v62 = vmov 5  }
 0x192   : > { %1629 = vperm.xlu1 %5978, %v6567_v21   ;;  %1657 = vperm.xlu0 %5979, %v6622_v30  }
 0x193   : > { %v7112_v33 = vpop.permute.xlu1 %1261  ;;  %v7114_v60 = vpop.permute.xlu0 %1273 }
 0x194   : > { %12165 = vst [vmem:[#allocation105_spill] sm:$0xff] %v7112_v33  ;;  %12166 = vst [vmem:[#allocation106_spill] sm:$0xff] %v7114_v60 }
 0x196   : > { %1637 = vperm.xlu1 %5978, %v6581_v23   ;;  %1665 = vperm.xlu0 %5979, %v6634_v32  }
 0x197   : > { %v7118_v61 = vpop.permute.xlu1 %1269 }
 0x198   : > { %12167 = vst [vmem:[#allocation107_spill] sm:$0xff] %v7118_v61  ;;  %v7120_v63 = vpop.permute.xlu0 %1349 }
 0x199   : > { %12168 = vst [vmem:[#allocation108_spill] sm:$0xff] %v7120_v63 }
 0x19a   : > { %1645 = vperm.xlu1 %5978, %v6593_v25   ;;  %5980 = vset.pattern.permute.xlu0 %v12008_v62 }
 0x19b   : > { %v7124_v2 = vpop.permute.xlu1 %1277  ;;  %1741 = vperm.xlu0 %5980, %v6452_v1  }
 0x19c   : > { %v7127_v33 = vpop.permute.xlu0 %1361 }
 0x19d   : > { %12169 = vst [vmem:[#allocation109_spill] sm:$0xff] %v7127_v33 }
 0x19e   : > { %1653 = vperm.xlu1 %5978, %v6605_v27  }
 0x19f   : > { %1753 = vperm.xlu0 %5980, %v6461_v3   ;;  %v12173_v3 = vmov 5  }
 0x1a0   : > { %v7131_v60 = vpop.permute.xlu1 %1353  ;;  %v7133_v61 = vpop.permute.xlu0 %1369 }
 0x1a1   : > { %12170 = vst [vmem:[#allocation110_spill] sm:$0xff] %v7133_v61 }
 0x1a2   : > { %1661 = vperm.xlu1 %5978, %v6617_v29  }
 0x1a3   : > { %1761 = vperm.xlu0 %5980, %v6473_v5  }
 0x1a4   : > { %v7137_v63 = vpop.permute.xlu1 %1357  ;;  %v7139_v62 = vpop.permute.xlu0 %1377 }
 0x1a5   : > { %12171 = vst [vmem:[#allocation111_spill] sm:$0xff] %v7139_v62 }
 0x1a6   : > { %1669 = vperm.xlu1 %5978, %v6629_v31  }
 0x1a7   : > { %1769 = vperm.xlu0 %5980, %v6485_v7  }
 0x1a8   : > { %v7143_v1 = vpop.permute.xlu1 %1365  ;;  %v7145_v33 = vpop.permute.xlu0 %1385 }
 0x1a9   : > { %12172 = vst [vmem:[#allocation112_spill] sm:$0xff] %v7145_v33 }
 0x1aa   : > { %5981 = vset.pattern.permute.xlu1 %v12173_v3 }
 0x1ab   : > { %1745 = vperm.xlu1 %5981, %v6466_v4   ;;  %1777 = vperm.xlu0 %5980, %v6497_v9  }
 0x1ac   : > { %v7150_v61 = vpop.permute.xlu1 %1373  ;;  %v7152_v5 = vpop.permute.xlu0 %1393 }
 0x1ad   : > { %12174 = vst [vmem:[#allocation113_spill] sm:$0xff] %v7150_v61  ;;  %12175 = vst [vmem:[#allocation114_spill] sm:$0xff] %v7152_v5  ;;  %v12348_v61 = vld [vmem:[#allocation63_spill] sm:$0xff] }
 0x1af   : > { %1749 = vperm.xlu1 %5981, %v6447_v0   ;;  %1785 = vperm.xlu0 %5980, %v6509_v11  }
 0x1b0   : > { %v7156_v62 = vpop.permute.xlu1 %1381  ;;  %v7158_v7 = vpop.permute.xlu0 %1401 }
 0x1b1   : > { %12176 = vst [vmem:[#allocation115_spill] sm:$0xff] %v7156_v62  ;;  %12177 = vst [vmem:[#allocation116_spill] sm:$0xff] %v7158_v7  ;;  %v6182_v7 = vld [vmem:[%s12066_s1 + $0x38] sm:$0xff]  ;;  %v6183_v62 = vld [vmem:[%s12066_s1 + $0x48] sm:$0xff] }
 0x1b3   : > { %1757 = vperm.xlu1 %5981, %v6478_v6   ;;  %1793 = vperm.xlu0 %5980, %v6519_v13  }
 0x1b4   : > { %v7162_v3 = vpop.permute.xlu1 %1389  ;;  %v7164_v4 = vpop.permute.xlu0 %1409 }
 0x1b5   : > { %12178 = vst [vmem:[#allocation117_spill] sm:$0xff] %v7162_v3  ;;  %12179 = vst [vmem:[#allocation118_spill] sm:$0xff] %v7164_v4 }
 0x1b7   : > { %1765 = vperm.xlu1 %5981, %v6490_v8   ;;  %1801 = vperm.xlu0 %5980, %v6531_v15  }
 0x1b8   : > { %v7168_v9 = vpop.permute.xlu1 %1397  ;;  %v7170_v0 = vpop.permute.xlu0 %1417 }
 0x1b9   : > { %12180 = vst [vmem:[#allocation119_spill] sm:$0xff] %v7168_v9  ;;  %12181 = vst [vmem:[#allocation120_spill] sm:$0xff] %v7170_v0 }
 0x1bb   : > { %1773 = vperm.xlu1 %5981, %v6502_v10   ;;  %1809 = vperm.xlu0 %5980, %v6543_v17  }
 0x1bc   : > { %v7174_v11 = vpop.permute.xlu1 %1405  ;;  %v7176_v6 = vpop.permute.xlu0 %1425 }
 0x1bd   : > { %12182 = vst [vmem:[#allocation121_spill] sm:$0xff] %v7174_v11  ;;  %12183 = vst [vmem:[#allocation122_spill] sm:$0xff] %v7176_v6 }
 0x1bf   : > { %1781 = vperm.xlu1 %5981, %v6514_v12   ;;  %1817 = vperm.xlu0 %5980, %v6555_v19  }
 0x1c0   : > { %v7180_v13 = vpop.permute.xlu1 %1413  ;;  %v7182_v8 = vpop.permute.xlu0 %1433 }
 0x1c1   : > { %12184 = vst [vmem:[#allocation123_spill] sm:$0xff] %v7180_v13  ;;  %12185 = vst [vmem:[#allocation124_spill] sm:$0xff] %v7182_v8  ;;  %v12206_v13 = vmov 6  }
 0x1c3   : > { %1789 = vperm.xlu1 %5981, %v6524_v14   ;;  %1825 = vperm.xlu0 %5980, %v6567_v21  }
 0x1c4   : > { %v7186_v15 = vpop.permute.xlu1 %1421  ;;  %v7188_v10 = vpop.permute.xlu0 %1441 }
 0x1c5   : > { %12186 = vst [vmem:[#allocation125_spill] sm:$0xff] %v7186_v15  ;;  %12187 = vst [vmem:[#allocation126_spill] sm:$0xff] %v7188_v10 }
 0x1c7   : > { %1797 = vperm.xlu1 %5981, %v6536_v16   ;;  %1833 = vperm.xlu0 %5980, %v6581_v23  }
 0x1c8   : > { %v7192_v17 = vpop.permute.xlu1 %1429  ;;  %v7194_v12 = vpop.permute.xlu0 %1449 }
 0x1c9   : > { %12188 = vst [vmem:[#allocation127_spill] sm:$0xff] %v7192_v17  ;;  %12189 = vst [vmem:[#allocation128_spill] sm:$0xff] %v7194_v12 }
 0x1cb   : > { %1805 = vperm.xlu1 %5981, %v6548_v18   ;;  %1841 = vperm.xlu0 %5980, %v6593_v25  }
 0x1cc   : > { %v7198_v19 = vpop.permute.xlu1 %1437  ;;  %v7200_v14 = vpop.permute.xlu0 %1457 }
 0x1cd   : > { %12190 = vst [vmem:[#allocation129_spill] sm:$0xff] %v7198_v19  ;;  %12191 = vst [vmem:[#allocation130_spill] sm:$0xff] %v7200_v14 }
 0x1cf   : > { %1813 = vperm.xlu1 %5981, %v6560_v20   ;;  %1849 = vperm.xlu0 %5980, %v6605_v27  }
 0x1d0   : > { %v7204_v10 = vpop.permute.xlu1 %1445  ;;  %v7206_v16 = vpop.permute.xlu0 %1465 }
 0x1d1   : > { %12192 = vst [vmem:[#allocation131_spill] sm:$0xff] %v7204_v10  ;;  %12193 = vst [vmem:[#allocation132_spill] sm:$0xff] %v7206_v16  ;;  %v12010_v10 = vmov 6  }
 0x1d3   : > { %1821 = vperm.xlu1 %5981, %v6572_v22   ;;  %1857 = vperm.xlu0 %5980, %v6617_v29  }
 0x1d4   : > { %v7210_v12 = vpop.permute.xlu1 %1453  ;;  %v7212_v17 = vpop.permute.xlu0 %1473 }
 0x1d5   : > { %12194 = vst [vmem:[#allocation133_spill] sm:$0xff] %v7210_v12  ;;  %12195 = vst [vmem:[#allocation134_spill] sm:$0xff] %v7212_v17  ;;  %v7227_v12 = vld [vmem:[%s12066_s1 + $0x8] sm:$0xff] }
 0x1d7   : > { %1829 = vperm.xlu1 %5981, %v6586_v24   ;;  %1865 = vperm.xlu0 %5980, %v6629_v31  }
 0x1d8   : > { %v7216_v14 = vpop.permute.xlu1 %1461 }
 0x1d9   : > { %12196 = vst [vmem:[#allocation135_spill] sm:$0xff] %v7216_v14  ;;  %v7218_v19 = vpop.permute.xlu0 %1549  ;;  %v7247_v14 = vld [vmem:[%s12066_s1 + $0x30] sm:$0xff] }
 0x1da   : > { %12197 = vst [vmem:[#allocation136_spill] sm:$0xff] %v7218_v19  ;;  %v7236_v19 = vld [vmem:[%s12066_s1 + $0x20] sm:$0xff] }
 0x1db   : > { %1837 = vperm.xlu1 %5981, %v6598_v26   ;;  %5983 = vset.pattern.permute.xlu0 %v12010_v10 }
 0x1dc   : > { %v7222_v16 = vpop.permute.xlu1 %1469  ;;  %1941 = vperm.xlu0 %5983, %v7227_v12  }
 0x1dd   : > { %12198 = vst [vmem:[#allocation137_spill] sm:$0xff] %v7222_v16  ;;  %v7230_v17 = vpop.permute.xlu0 %1561 }
 0x1de   : > { %12199 = vst [vmem:[#allocation138_spill] sm:$0xff] %v7230_v17 }
 0x1df   : > { %1845 = vperm.xlu1 %5981, %v6610_v28  }
 0x1e0   : > { %1953 = vperm.xlu0 %5983, %v7236_v19  }
 0x1e1   : > { %v7239_v10 = vpop.permute.xlu1 %1545  ;;  %v7241_v16 = vpop.permute.xlu0 %1569 }
 0x1e2   : > { %12200 = vst [vmem:[#allocation139_spill] sm:$0xff] %v7239_v10  ;;  %12201 = vst [vmem:[#allocation140_spill] sm:$0xff] %v7241_v16  ;;  %v7258_v10 = vld [vmem:[%s12066_s1 + $0x40] sm:$0xff] }
 0x1e3   : > { %1853 = vperm.xlu1 %5981, %v6622_v30  }
 0x1e4   : > { %1961 = vperm.xlu0 %5983, %v7247_v14  }
 0x1e5   : > { %v7250_v17 = vpop.permute.xlu1 %1553  ;;  %v7252_v15 = vpop.permute.xlu0 %1577 }
 0x1e6   : > { %12202 = vst [vmem:[#allocation141_spill] sm:$0xff] %v7250_v17  ;;  %12203 = vst [vmem:[#allocation142_spill] sm:$0xff] %v7252_v15  ;;  %v6175_v17 = vld [vmem:[%s12066_s1] sm:$0xff]  ;;  %v7272_v15 = vld [vmem:[%s12066_s1 + $0x50] sm:$0xff] }
 0x1e7   : > { %1861 = vperm.xlu1 %5981, %v6634_v32  }
 0x1e8   : > { %1969 = vperm.xlu0 %5983, %v7258_v10  }
 0x1e9   : > { %v7261_v16 = vpop.permute.xlu1 %1557  ;;  %v7263_v8 = vpop.permute.xlu0 %1585 }
 0x1ea   : > { %12204 = vst [vmem:[#allocation143_spill] sm:$0xff] %v7261_v16  ;;  %12205 = vst [vmem:[#allocation144_spill] sm:$0xff] %v7263_v8  ;;  %v7288_v8 = vld [vmem:[%s12066_s1 + $0x60] sm:$0xff] }
 0x1eb   : > { %5982 = vset.pattern.permute.xlu1 %v12206_v13  ;;  %v7282_v13 = vld [vmem:[%s12066_s1 + $0x10] sm:$0xff] }
 0x1ec   : > { %1937 = vperm.xlu1 %5982, %v6175_v17   ;;  %1977 = vperm.xlu0 %5983, %v7272_v15  }
 0x1ed   : > { %v7275_v6 = vpop.permute.xlu1 %1565  ;;  %v7277_v11 = vpop.permute.xlu0 %1593 }
 0x1ee   : > { %12207 = vst [vmem:[#allocation145_spill] sm:$0xff] %v7275_v6  ;;  %12208 = vst [vmem:[#allocation146_spill] sm:$0xff] %v7277_v11  ;;  %v6179_v11 = vld [vmem:[%s12066_s1 + $0x18] sm:$0xff]  ;;  %v7301_v6 = vld [vmem:[%s12066_s1 + $0x70] sm:$0xff] }
 0x1f0   : > { %1945 = vperm.xlu1 %5982, %v7282_v13   ;;  %1985 = vperm.xlu0 %5983, %v7288_v8  }
 0x1f1   : > { %v7291_v16 = vpop.permute.xlu1 %1573  ;;  %v7293_v0 = vpop.permute.xlu0 %1601 }
 0x1f2   : > { %12209 = vst [vmem:[#allocation147_spill] sm:$0xff] %v7291_v16  ;;  %12210 = vst [vmem:[#allocation148_spill] sm:$0xff] %v7293_v0  ;;  %v6181_v0 = vld [vmem:[%s12066_s1 + $0x28] sm:$0xff] }
 0x1f4   : > { %1949 = vperm.xlu1 %5982, %v6179_v11   ;;  %1993 = vperm.xlu0 %5983, %v7301_v6  }
 0x1f5   : > { %v7304_v9 = vpop.permute.xlu1 %1581  ;;  %v7306_v4 = vpop.permute.xlu0 %1609 }
 0x1f6   : > { %12211 = vst [vmem:[#allocation149_spill] sm:$0xff] %v7304_v9  ;;  %12212 = vst [vmem:[#allocation150_spill] sm:$0xff] %v7306_v4 }
 0x1f8   : > { %1957 = vperm.xlu1 %5982, %v6181_v0   ;;  %2001 = vperm.xlu0 %5983, %v6548_v18  }
 0x1f9   : > { %v7312_v16 = vpop.permute.xlu1 %1589  ;;  %v7314_v3 = vpop.permute.xlu0 %1617 }
 0x1fa   : > { %12213 = vst [vmem:[#allocation151_spill] sm:$0xff] %v7312_v16  ;;  %12214 = vst [vmem:[#allocation152_spill] sm:$0xff] %v7314_v3  ;;  %v6184_v16 = vld [vmem:[%s12066_s1 + $0x58] sm:$0xff] }
 0x1fc   : > { %1965 = vperm.xlu1 %5982, %v6182_v7   ;;  %2009 = vperm.xlu0 %5983, %v6560_v20  }
 0x1fd   : > { %v7320_v9 = vpop.permute.xlu1 %1597  ;;  %v7322_v4 = vpop.permute.xlu0 %1625 }
 0x1fe   : > { %12215 = vst [vmem:[#allocation153_spill] sm:$0xff] %v7320_v9  ;;  %12216 = vst [vmem:[#allocation154_spill] sm:$0xff] %v7322_v4  ;;  %v6185_v9 = vld [vmem:[%s12066_s1 + $0x68] sm:$0xff] }
 0x200   : > { %1973 = vperm.xlu1 %5982, %v6183_v62   ;;  %2017 = vperm.xlu0 %5983, %v6572_v22  }
 0x201   : > { %v7328_v18 = vpop.permute.xlu1 %1605  ;;  %v7330_v3 = vpop.permute.xlu0 %1633 }
 0x202   : > { %12217 = vst [vmem:[#allocation155_spill] sm:$0xff] %v7328_v18  ;;  %12218 = vst [vmem:[#allocation156_spill] sm:$0xff] %v7330_v3  ;;  %v6186_v18 = vld [vmem:[%s12066_s1 + $0x78] sm:$0xff] }
 0x204   : > { %1981 = vperm.xlu1 %5982, %v6184_v16   ;;  %2025 = vperm.xlu0 %5983, %v6586_v24  }
 0x205   : > { %v7336_v20 = vpop.permute.xlu1 %1613  ;;  %v7338_v4 = vpop.permute.xlu0 %1641 }
 0x206   : > { %12219 = vst [vmem:[#allocation157_spill] sm:$0xff] %v7336_v20  ;;  %12220 = vst [vmem:[#allocation158_spill] sm:$0xff] %v7338_v4  ;;  %v6187_v20 = vld [vmem:[%s12066_s1 + $0x88] sm:$0xff] }
 0x208   : > { %1989 = vperm.xlu1 %5982, %v6185_v9   ;;  %2033 = vperm.xlu0 %5983, %v6598_v26  }
 0x209   : > { %v7344_v22 = vpop.permute.xlu1 %1621  ;;  %v7346_v3 = vpop.permute.xlu0 %1649 }
 0x20a   : > { %12221 = vst [vmem:[#allocation159_spill] sm:$0xff] %v7344_v22  ;;  %12222 = vst [vmem:[#allocation160_spill] sm:$0xff] %v7346_v3  ;;  %v6188_v22 = vld [vmem:[%s12066_s1 + $0x98] sm:$0xff] }
 0x20c   : > { %1997 = vperm.xlu1 %5982, %v6186_v18   ;;  %2041 = vperm.xlu0 %5983, %v6610_v28  }
 0x20d   : > { %v7352_v24 = vpop.permute.xlu1 %1629  ;;  %v7354_v4 = vpop.permute.xlu0 %1657 }
 0x20e   : > { %12223 = vst [vmem:[#allocation161_spill] sm:$0xff] %v7352_v24  ;;  %12224 = vst [vmem:[#allocation162_spill] sm:$0xff] %v7354_v4  ;;  %v12012_v24 = vmov 7  }
 0x210   : > { %2005 = vperm.xlu1 %5982, %v6187_v20   ;;  %2049 = vperm.xlu0 %5983, %v6622_v30  }
 0x211   : > { %v7360_v26 = vpop.permute.xlu1 %1637  ;;  %v7362_v3 = vpop.permute.xlu0 %1665 }
 0x212   : > { %12225 = vst [vmem:[#allocation163_spill] sm:$0xff] %v7360_v26  ;;  %12226 = vst [vmem:[#allocation164_spill] sm:$0xff] %v7362_v3 }
 0x214   : > { %2013 = vperm.xlu1 %5982, %v6188_v22   ;;  %2057 = vperm.xlu0 %5983, %v6634_v32  }
 0x215   : > { %v7368_v28 = vpop.permute.xlu1 %1645 }
 0x216   : > { %12227 = vst [vmem:[#allocation165_spill] sm:$0xff] %v7368_v28  ;;  %v7370_v4 = vpop.permute.xlu0 %1741 }
 0x217   : > { %12228 = vst [vmem:[#allocation166_spill] sm:$0xff] %v7370_v4 }
 0x218   : > { %2021 = vperm.xlu1 %5982, %v6567_v21   ;;  %5984 = vset.pattern.permute.xlu0 %v12012_v24 }
 0x219   : > { %v7374_v30 = vpop.permute.xlu1 %1653  ;;  %2133 = vperm.xlu0 %5984, %v6175_v17  }
 0x21a   : > { %12229 = vst [vmem:[#allocation167_spill] sm:$0xff] %v7374_v30  ;;  %v7376_v3 = vpop.permute.xlu0 %1753 }
 0x21b   : > { %12230 = vst [vmem:[#allocation168_spill] sm:$0xff] %v7376_v3 }
 0x21c   : > { %2029 = vperm.xlu1 %5982, %v6581_v23  }
 0x21d   : > { %v7379_v26 = vpop.permute.xlu1 %1661  ;;  %2145 = vperm.xlu0 %5984, %v6179_v11  }
 0x21e   : > { %12231 = vst [vmem:[#allocation169_spill] sm:$0xff] %v7379_v26  ;;  %v7381_v32 = vpop.permute.xlu0 %1761 }
 0x21f   : > { %12232 = vst [vmem:[#allocation170_spill] sm:$0xff] %v7381_v32 }
 0x220   : > { %2037 = vperm.xlu1 %5982, %v6593_v25  }
 0x221   : > { %v7384_v4 = vpop.permute.xlu1 %1669  ;;  %2153 = vperm.xlu0 %5984, %v6181_v0  }
 0x222   : > { %12233 = vst [vmem:[#allocation171_spill] sm:$0xff] %v7384_v4  ;;  %v7386_v21 = vpop.permute.xlu0 %1769  ;;  %v12292_v4 = vld [vmem:[#allocation17_spill] sm:$0xff] }
 0x223   : > { %12234 = vst [vmem:[#allocation172_spill] sm:$0xff] %v7386_v21 }
 0x224   : > { %2045 = vperm.xlu1 %5982, %v6605_v27   ;;  %v12241_v27 = vmov 7  }
 0x225   : > { %2161 = vperm.xlu0 %5984, %v6182_v7  }
 0x226   : > { %v7389_v17 = vpop.permute.xlu1 %1745  ;;  %v7391_v24 = vpop.permute.xlu0 %1777 }
 0x227   : > { %12235 = vst [vmem:[#allocation173_spill] sm:$0xff] %v7389_v17  ;;  %12236 = vst [vmem:[#allocation174_spill] sm:$0xff] %v7391_v24  ;;  %v12291_v17 = vld [vmem:[#allocation16_spill] sm:$0xff] }
 0x228   : > { %2053 = vperm.xlu1 %5982, %v6617_v29  }
 0x229   : > { %2169 = vperm.xlu0 %5984, %v6183_v62  }
 0x22a   : > { %v7394_v23 = vpop.permute.xlu1 %1749  ;;  %v7396_v11 = vpop.permute.xlu0 %1785 }
 0x22b   : > { %12237 = vst [vmem:[#allocation175_spill] sm:$0xff] %v7394_v23  ;;  %12238 = vst [vmem:[#allocation176_spill] sm:$0xff] %v7396_v11  ;;  %v12290_v23 = vld [vmem:[#allocation15_spill] sm:$0xff] }
 0x22c   : > { %2061 = vperm.xlu1 %5982, %v6629_v31  }
 0x22d   : > { %2177 = vperm.xlu0 %5984, %v6184_v16  }
 0x22e   : > { %v7399_v25 = vpop.permute.xlu1 %1757  ;;  %v7401_v0 = vpop.permute.xlu0 %1793 }
 0x22f   : > { %12239 = vst [vmem:[#allocation177_spill] sm:$0xff] %v7399_v25  ;;  %12240 = vst [vmem:[#allocation178_spill] sm:$0xff] %v7401_v0  ;;  %v12288_v0 = vld [vmem:[#allocation13_spill] sm:$0xff]  ;;  %v12289_v25 = vld [vmem:[#allocation14_spill] sm:$0xff] }
 0x230   : > { %5985 = vset.pattern.permute.xlu1 %v12241_v27 }
 0x231   : > { %2137 = vperm.xlu1 %5985, %v7227_v12   ;;  %2185 = vperm.xlu0 %5984, %v6185_v9  }
 0x232   : > { %v7405_v7 = vpop.permute.xlu1 %1765  ;;  %v7407_v29 = vpop.permute.xlu0 %1801 }
 0x233   : > { %12242 = vst [vmem:[#allocation179_spill] sm:$0xff] %v7405_v7  ;;  %12243 = vst [vmem:[#allocation180_spill] sm:$0xff] %v7407_v29  ;;  %v12287_v7 = vld [vmem:[#allocation12_spill] sm:$0xff] }
 0x235   : > { %2141 = vperm.xlu1 %5985, %v7282_v13   ;;  %2193 = vperm.xlu0 %5984, %v6186_v18   ;;  %v6189_v13 = vld [vmem:[%s12066_s1 + $0xa8] sm:$0xff] }
 0x236   : > { %v7410_v62 = vpop.permute.xlu1 %1773  ;;  %v7412_v31 = vpop.permute.xlu0 %1809 }
 0x237   : > { %12244 = vst [vmem:[#allocation181_spill] sm:$0xff] %v7410_v62  ;;  %12245 = vst [vmem:[#allocation182_spill] sm:$0xff] %v7412_v31 }
 0x239   : > { %2149 = vperm.xlu1 %5985, %v7236_v19   ;;  %2201 = vperm.xlu0 %5984, %v6187_v20  }
 0x23a   : > { %v7415_v16 = vpop.permute.xlu1 %1781  ;;  %v7417_v27 = vpop.permute.xlu0 %1817 }
 0x23b   : > { %12246 = vst [vmem:[#allocation183_spill] sm:$0xff] %v7415_v16  ;;  %12247 = vst [vmem:[#allocation184_spill] sm:$0xff] %v7417_v27 }
 0x23d   : > { %2157 = vperm.xlu1 %5985, %v7247_v14   ;;  %2209 = vperm.xlu0 %5984, %v6188_v22   ;;  %v6190_v14 = vld [vmem:[%s12066_s1 + $0xb8] sm:$0xff] }
 0x23e   : > { %v7420_v9 = vpop.permute.xlu1 %1789  ;;  %v7422_v12 = vpop.permute.xlu0 %1825 }
 0x23f   : > { %12248 = vst [vmem:[#allocation185_spill] sm:$0xff] %v7420_v9  ;;  %12249 = vst [vmem:[#allocation186_spill] sm:$0xff] %v7422_v12 }
 0x241   : > { %2165 = vperm.xlu1 %5985, %v7258_v10   ;;  %2217 = vperm.xlu0 %5984, %v6189_v13   ;;  %v6191_v10 = vld [vmem:[%s12066_s1 + $0xc8] sm:$0xff] }
 0x242   : > { %v7428_v19 = vpop.permute.xlu1 %1797  ;;  %v7430_v18 = vpop.permute.xlu0 %1833 }
 0x243   : > { %12250 = vst [vmem:[#allocation187_spill] sm:$0xff] %v7428_v19  ;;  %12251 = vst [vmem:[#allocation188_spill] sm:$0xff] %v7430_v18 }
 0x245   : > { %2173 = vperm.xlu1 %5985, %v7272_v15   ;;  %2225 = vperm.xlu0 %5984, %v6190_v14   ;;  %v6192_v15 = vld [vmem:[%s12066_s1 + $0xd8] sm:$0xff] }
 0x246   : > { %v7436_v20 = vpop.permute.xlu1 %1805  ;;  %v7438_v22 = vpop.permute.xlu0 %1841 }
 0x247   : > { %12252 = vst [vmem:[#allocation189_spill] sm:$0xff] %v7436_v20  ;;  %12253 = vst [vmem:[#allocation190_spill] sm:$0xff] %v7438_v22 }
 0x249   : > { %2181 = vperm.xlu1 %5985, %v7288_v8   ;;  %2233 = vperm.xlu0 %5984, %v6191_v10   ;;  %v6193_v8 = vld [vmem:[%s12066_s1 + $0x80] sm:$0xff]  ;;  %v6194_v10 = vld [vmem:[%s12066_s1 + $0xe8] sm:$0xff] }
 0x24a   : > { %v7444_v13 = vpop.permute.xlu1 %1813  ;;  %v7446_v18 = vpop.permute.xlu0 %1849 }
 0x24b   : > { %12254 = vst [vmem:[#allocation191_spill] sm:$0xff] %v7444_v13  ;;  %12255 = vst [vmem:[#allocation192_spill] sm:$0xff] %v7446_v18 }
 0x24d   : > { %2189 = vperm.xlu1 %5985, %v7301_v6   ;;  %2241 = vperm.xlu0 %5984, %v6192_v15   ;;  %v6195_v15 = vld [vmem:[%s12066_s1 + $0x90] sm:$0xff] }
 0x24e   : > { %v7452_v14 = vpop.permute.xlu1 %1821  ;;  %v7454_v22 = vpop.permute.xlu0 %1857 }
 0x24f   : > { %12256 = vst [vmem:[#allocation193_spill] sm:$0xff] %v7452_v14  ;;  %12257 = vst [vmem:[#allocation194_spill] sm:$0xff] %v7454_v22  ;;  %v6196_v22 = vld [vmem:[%s12066_s1 + $0xf8] sm:$0xff] }
 0x251   : > { %2197 = vperm.xlu1 %5985, %v6193_v8   ;;  %2249 = vperm.xlu0 %5984, %v6194_v10   ;;  %v535_v10 = vld [vmem:[%s11987_s4 + $0x8] sm:$0xff] }
 0x252   : > { %v7462_v6 = vpop.permute.xlu1 %1829  ;;  %v7464_v18 = vpop.permute.xlu0 %1865 }
 0x253   : > { %12258 = vst [vmem:[#allocation195_spill] sm:$0xff] %v7462_v6  ;;  %12259 = vst [vmem:[#allocation196_spill] sm:$0xff] %v7464_v18  ;;  %v6197_v18 = vld [vmem:[%s12066_s1 + $0xa0] sm:$0xff] }
 0x255   : > { %2205 = vperm.xlu1 %5985, %v6195_v15   ;;  %2257 = vperm.xlu0 %5984, %v6196_v22   ;;  %v12262_v15 = vmov 0  }
 0x256   : > { %v7472_v8 = vpop.permute.xlu1 %1837 }
 0x257   : > { %12260 = vst [vmem:[#allocation197_spill] sm:$0xff] %v7472_v8  ;;  %v7474_v14 = vpop.permute.xlu0 %1941  ;;  %v6198_v8 = vld [vmem:[%s12066_s1 + $0xb0] sm:$0xff] }
 0x258   : > { %12261 = vst [vmem:[#allocation198_spill] sm:$0xff] %v7474_v14  ;;  %v538_v14 = vld [vmem:[%s11987_s4 + $0x20] sm:$0xff] }
 0x259   : > { %2213 = vperm.xlu1 %5985, %v6197_v18   ;;  %5987 = vset.pattern.permute.xlu0 %v12262_v15 }
 0x25a   : > { %v7483_v6 = vpop.permute.xlu1 %1845  ;;  %2383 = vperm.xlu0 %5987, %v535_v10   ;;  %v540_v10 = vld [vmem:[%s11987_s4 + $0x30] sm:$0xff] }
 0x25b   : > { %12263 = vst [vmem:[#allocation199_spill] sm:$0xff] %v7483_v6  ;;  %v7485_v22 = vpop.permute.xlu0 %1953  ;;  %v6199_v6 = vld [vmem:[%s12066_s1 + $0xc0] sm:$0xff] }
 0x25c   : > { %12264 = vst [vmem:[#allocation200_spill] sm:$0xff] %v7485_v22  ;;  %v728_v22 = vlaneseq }
 0x25d   : > { %2221 = vperm.xlu1 %5985, %v6198_v8  }
 0x25e   : > { %v7494_v13 = vpop.permute.xlu1 %1853  ;;  %2398 = vperm.xlu0 %5987, %v538_v14   ;;  %v542_v14 = vld [vmem:[%s11987_s4 + $0x40] sm:$0xff] }
 0x25f   : > { %12265 = vst [vmem:[#allocation201_spill] sm:$0xff] %v7494_v13  ;;  %v7496_v18 = vpop.permute.xlu0 %1961  ;;  %v6200_v13 = vld [vmem:[%s12066_s1 + $0xd0] sm:$0xff] }
 0x260   : > { %12266 = vst [vmem:[#allocation202_spill] sm:$0xff] %v7496_v18  ;;  %v7512_v18 = vshrl.u32 %v728_v22, 7  ;;  %v544_v22 = vld [vmem:[%s11987_s4 + $0x50] sm:$0xff] }
 0x261   : > { %2229 = vperm.xlu1 %5985, %v6199_v6  }
 0x262   : > { %v7505_v20 = vpop.permute.xlu1 %1861  ;;  %2408 = vperm.xlu0 %5987, %v540_v10   ;;  %12269 = vst [vmem:[#allocation205_spill] sm:$0xff] %v7512_v18 }
 0x263   : > { %12267 = vst [vmem:[#allocation203_spill] sm:$0xff] %v7505_v20  ;;  %v7507_v8 = vpop.permute.xlu0 %1969 }
 0x264   : > { %12268 = vst [vmem:[#allocation204_spill] sm:$0xff] %v7507_v8  ;;  %v12014_v8 = vsub.s32 0, %v7512_v18 }
 0x265   : > { %2237 = vperm.xlu1 %5985, %v6200_v13   ;;  %v6201_v13 = vld [vmem:[%s12066_s1 + $0xe0] sm:$0xff] }
 0x266   : > { %2418 = vperm.xlu0 %5987, %v542_v14   ;;  %v7534_v14 = vld [vmem:[%s7520_s16] sm:$0xff] }
 0x267   : > { %v7522_v6 = vpop.permute.xlu1 %1937  ;;  %v7524_v10 = vpop.permute.xlu0 %1977  ;;  %v731_v12 = vrot.slane %v7534_v14, %v12014_v8  ;;  %v12277_v8 = vsub.s32 1, %v7512_v18 }
 0x268   : > { %12271 = vst [vmem:[#allocation206_spill] sm:$0xff] %v7522_v6  ;;  %12272 = vst [vmem:[#allocation207_spill] sm:$0xff] %v7524_v10  ;;  %v546_v6 = vld [vmem:[%s11987_s4 + $0x60] sm:$0xff]  ;;  %v548_v10 = vld [vmem:[%s11987_s4 + $0x70] sm:$0xff] }
 0x269   : > { %2245 = vperm.xlu1 %5985, %v6201_v13   ;;  %v6202_v13 = vld [vmem:[%s12066_s1 + $0xf0] sm:$0xff]  ;;  %v7563_v9 = vrot.slane %v7534_v14, %v12277_v8  ;;  %v737_v27 = vmul.f32 %v731_v12, %v6746_v39  ;;  %v736_v16 = vmul.f32 %v731_v12, %v6748_v40  ;;  %v739_v31 = vmul.f32 %v731_v12, %v6752_v41  ;;  %v550_v40 = vld [vmem:[%s11987_s4 + $0x80] sm:$0xff]  ;;  %s11936_s1 = scalar_lea.hbm %s11996_s13, %s5648_s21 }
 0x26a   : > { %2428 = vperm.xlu0 %5987, %v544_v22   ;;  %v738_v8 = vmul.f32 %v731_v12, %v6754_v42  ;;  %v536_v39 = vld [vmem:[%s11987_s4 + $0x10] sm:$0xff]  ;;  %v742_v41 = vmul.f32 %v731_v12, %v6766_v46  ;;  %v745_v42 = vmul.f32 %v731_v12, %v6770_v47  ;;  %v752_v46 = vmul.f32 %v731_v12, %v6796_v56  ;;  %v12283_v56 = vld [vmem:[#allocation8_spill] sm:$0xff] }
 0x26b   : > { %v7536_v20 = vpop.permute.xlu1 %1945  ;;  %v7538_v19 = vpop.permute.xlu0 %1985  ;;  %v12286_v47 = vld [vmem:[#allocation11_spill] sm:$0xff]  ;;  %v1105_v33 = vmul.f32 %v7563_v9, %v12348_v61 }
 0x26c   : > { %12273 = vst [vmem:[#allocation208_spill] sm:$0xff] %v7536_v20  ;;  %12274 = vst [vmem:[#allocation209_spill] sm:$0xff] %v7538_v19  ;;  %v534_v19 = vld [vmem:[%s11987_s4] sm:$0xff] }
 0x26d   : > { %2253 = vperm.xlu1 %5985, %v6202_v13   ;;  %v734_v13 = vmul.f32 %v731_v12, %v6734_v34  ;;  %v741_v34 = vmul.f32 %v731_v12, %v6758_v43  ;;  %v744_v43 = vmul.f32 %v731_v12, %v6772_v48  ;;  %v755_v48 = vmul.f32 %v731_v12, %v6800_v57 }
 0x26e   : > { %2438 = vperm.xlu0 %5987, %v546_v6   ;;  %v732_v6 = vmul.f32 %v731_v12, %v6736_v35  ;;  %v740_v35 = vmul.f32 %v731_v12, %v6760_v44  ;;  %v747_v44 = vmul.f32 %v731_v12, %v6776_v49  ;;  %v754_v49 = vmul.f32 %v731_v12, %v6802_v58 }
 0x26f   : > { %v7550_v22 = vpop.permute.xlu1 %1949  ;;  %v7552_v20 = vpop.permute.xlu0 %1993  ;;  %v759_v57 = vmul.f32 %v731_v12, %v12283_v56  ;;  %v926_v32 = vadd.f32 %v12292_v4, %v734_v13  ;;  %v12293_v56 = vsub.s32 2, %v7512_v18  ;;  %v12300_v13 = vld [vmem:[#allocation22_spill] sm:$0xff] }
 0x270   : > { %12275 = vst [vmem:[#allocation210_spill] sm:$0xff] %v7550_v22  ;;  %12276 = vst [vmem:[#allocation211_spill] sm:$0xff] %v7552_v20  ;;  %v735_v22 = vmul.f32 %v731_v12, %v6738_v36  ;;  %v733_v20 = vmul.f32 %v731_v12, %v6740_v37  ;;  %v743_v36 = vmul.f32 %v731_v12, %v6764_v45 }
 0x271   : > { %5986 = vset.pattern.permute.xlu1 %v12262_v15  ;;  %v746_v45 = vmul.f32 %v731_v12, %v6778_v50  ;;  %v751_v15 = vmul.f32 %v731_v12, %v6788_v53  ;;  %v757_v50 = vmul.f32 %v731_v12, %v6806_v59  ;;  %v924_v24 = vadd.f32 %v12290_v23, %v732_v6  ;;  %v12297_v23 = vld [vmem:[#allocation21_spill] sm:$0xff] }
 0x272   : > { %2378 = vperm.xlu1 %5986, %v534_v19   ;;  %2448 = vperm.xlu0 %5987, %v548_v10   ;;  %v749_v19 = vmul.f32 %v731_v12, %v6782_v51  ;;  %v748_v10 = vmul.f32 %v731_v12, %v6784_v52  ;;  %v12280_v51 = vld [vmem:[#allocation7_spill] sm:$0xff]  ;;  %v925_v11 = vadd.f32 %v12289_v25, %v733_v20 }
 0x273   : > { %v7577_v62 = vpop.permute.xlu1 %1957  ;;  %v7579_v37 = vpop.permute.xlu0 %2001  ;;  %v756_v52 = vmul.f32 %v731_v12, %v12280_v51  ;;  %v760_v51 = vmul.f32 %v731_v12, %v12286_v47  ;;  %v927_v21 = vadd.f32 %v12291_v17, %v735_v22  ;;  %v12294_v47 = vld [vmem:[#allocation18_spill] sm:$0xff]  ;;  %v7636_v20 = vadd.f32 %v12297_v23, %v738_v8  ;;  %v12302_v8 = vld [vmem:[#allocation24_spill] sm:$0xff] }
 0x274   : > { %12278 = vst [vmem:[#allocation212_spill] sm:$0xff] %v7577_v62  ;;  %12279 = vst [vmem:[#allocation213_spill] sm:$0xff] %v7579_v37  ;;  %v750_v37 = vmul.f32 %v731_v12, %v6790_v54  ;;  %v753_v62 = vmul.f32 %v731_v12, %v6794_v55  ;;  %v537_v54 = vld [vmem:[%s11987_s4 + $0x18] sm:$0xff]  ;;  %v552_v55 = vld [vmem:[%s11987_s4 + $0x90] sm:$0xff] }
 0x275   : > { %v539_v22 = vld [vmem:[%s11987_s4 + $0x28] sm:$0xff] }
 0x276   : > { %2388 = vperm.xlu1 %5986, %v536_v39   ;;  %2458 = vperm.xlu0 %5987, %v550_v40   ;;  %v12284_v39 = vld [vmem:[#allocation9_spill] sm:$0xff]  ;;  %v12285_v40 = vld [vmem:[#allocation10_spill] sm:$0xff] }
 0x277   : > { %v7603_v29 = vpop.permute.xlu1 %1965  ;;  %v7605_v53 = vpop.permute.xlu0 %2009  ;;  %v758_v58 = vmul.f32 %v731_v12, %v12284_v39  ;;  %v761_v59 = vmul.f32 %v731_v12, %v12285_v40  ;;  %v7626_v39 = vrot.slane %v7534_v14, %v12293_v56  ;;  %v7629_v40 = vadd.f32 %v12294_v47, %v737_v27  ;;  %v554_v27 = vld [vmem:[%s11987_s4 + $0xa0] sm:$0xff]  ;;  %v12304_v47 = vld [vmem:[#allocation26_spill] sm:$0xff] }
 0x278   : > { %12281 = vst [vmem:[#allocation7_spill] sm:$0xff] %v7603_v29  ;;  %12282 = vst [vmem:[#allocation214_spill] sm:$0xff] %v7605_v53  ;;  %v763_v29 = vmul.f32 %v731_v12, %v12287_v7  ;;  %v762_v53 = vmul.f32 %v731_v12, %v12288_v0  ;;  %v12295_v7 = vld [vmem:[#allocation19_spill] sm:$0xff]  ;;  %v12296_v12 = vld [vmem:[#allocation20_spill] sm:$0xff] }
 0x279   : > { %v928_v0 = vadd.f32 %v12295_v7, %v736_v16  ;;  %v7633_v25 = vadd.f32 %v12296_v12, %v739_v31  ;;  %v7649_v16 = vadd.f32 %v12300_v13, %v741_v34  ;;  %v12301_v31 = vld [vmem:[#allocation23_spill] sm:$0xff]  ;;  %v7661_v7 = vadd.f32 %v12304_v47, %v745_v42  ;;  %v12307_v34 = vld [vmem:[#allocation29_spill] sm:$0xff]  ;;  %v12312_v47 = vld [vmem:[#allocation34_spill] sm:$0xff] }
 0x27a   : > { %2393 = vperm.xlu1 %5986, %v537_v54   ;;  %2468 = vperm.xlu0 %5987, %v552_v55   ;;  %v7652_v6 = vadd.f32 %v12301_v31, %v740_v35  ;;  %v7655_v54 = vadd.f32 %v12302_v8, %v743_v36  ;;  %v12303_v55 = vld [vmem:[#allocation25_spill] sm:$0xff]  ;;  %v12305_v12 = vld [vmem:[#allocation27_spill] sm:$0xff]  ;;  %v7670_v13 = vadd.f32 %v12307_v34, %v746_v45  ;;  %v12308_v35 = vld [vmem:[#allocation30_spill] sm:$0xff] }
 0x27b   : > { %v7638_v17 = vpop.permute.xlu1 %1973  ;;  %v7640_v4 = vpop.permute.xlu0 %2017  ;;  %v7658_v56 = vadd.f32 %v12303_v55, %v742_v41  ;;  %v7664_v23 = vadd.f32 %v12305_v12, %v744_v43  ;;  %v7673_v31 = vadd.f32 %v12308_v35, %v749_v19  ;;  %v12309_v36 = vld [vmem:[#allocation31_spill] sm:$0xff]  ;;  %v12310_v41 = vld [vmem:[#allocation32_spill] sm:$0xff]  ;;  %v12311_v42 = vld [vmem:[#allocation33_spill] sm:$0xff] }
 0x27c   : > { %12298 = vst [vmem:[#allocation8_spill] sm:$0xff] %v7638_v17  ;;  %12299 = vst [vmem:[#allocation9_spill] sm:$0xff] %v7640_v4  ;;  %v12306_v4 = vld [vmem:[#allocation28_spill] sm:$0xff]  ;;  %v7676_v8 = vadd.f32 %v12309_v36, %v748_v10  ;;  %v7679_v55 = vadd.f32 %v12310_v41, %v751_v15  ;;  %v7682_v43 = vadd.f32 %v12311_v42, %v750_v37  ;;  %v556_v37 = vld [vmem:[%s11987_s4 + $0xb0] sm:$0xff] }
 0x27d   : > { %v7667_v17 = vadd.f32 %v12306_v4, %v747_v44  ;;  %v7685_v44 = vadd.f32 %v12312_v47, %v753_v62  ;;  %v12313_v4 = vld [vmem:[#allocation35_spill] sm:$0xff]  ;;  %v12314_v12 = vld [vmem:[#allocation36_spill] sm:$0xff]  ;;  %v12317_v62 = vld [vmem:[#allocation37_spill] sm:$0xff] }
 0x27e   : > { %2403 = vperm.xlu1 %5986, %v539_v22   ;;  %2478 = vperm.xlu0 %5987, %v554_v27   ;;  %v7688_v45 = vadd.f32 %v12313_v4, %v752_v46  ;;  %v7691_v19 = vadd.f32 %v12314_v12, %v755_v48  ;;  %v541_v15 = vld [vmem:[%s11987_s4 + $0x38] sm:$0xff]  ;;  %v7704_v22 = vadd.f32 %v12317_v62, %v754_v49  ;;  %v12318_v46 = vld [vmem:[#allocation46_spill] sm:$0xff]  ;;  %v12319_v48 = vld [vmem:[#allocation47_spill] sm:$0xff] }
 0x27f   : > { %v7693_v34 = vpop.permute.xlu1 %1981  ;;  %v7695_v10 = vpop.permute.xlu0 %2025  ;;  %v1089_v27 = vmul.f32 %v7563_v9, %v12318_v46  ;;  %v1088_v35 = vmul.f32 %v7563_v9, %v12319_v48  ;;  %v12320_v41 = vld [vmem:[#allocation38_spill] sm:$0xff]  ;;  %v12321_v47 = vld [vmem:[#allocation39_spill] sm:$0xff]  ;;  %v12322_v12 = vld [vmem:[#allocation48_spill] sm:$0xff] }
 0x280   : > { %12315 = vst [vmem:[#allocation10_spill] sm:$0xff] %v7693_v34  ;;  %12316 = vst [vmem:[#allocation11_spill] sm:$0xff] %v7695_v10  ;;  %v7712_v42 = vadd.f32 %v12320_v41, %v757_v50  ;;  %v7715_v4 = vadd.f32 %v12321_v47, %v756_v52  ;;  %v1090_v10 = vmul.f32 %v7563_v9, %v12322_v12  ;;  %v12323_v34 = vld [vmem:[#allocation49_spill] sm:$0xff]  ;;  %v12324_v62 = vld [vmem:[#allocation40_spill] sm:$0xff] }
 0x281   : > { %v1091_v49 = vmul.f32 %v7563_v9, %v12323_v34  ;;  %v7722_v26 = vadd.f32 %v12324_v62, %v759_v57  ;;  %v12325_v46 = vld [vmem:[#allocation41_spill] sm:$0xff]  ;;  %v12326_v48 = vld [vmem:[#allocation42_spill] sm:$0xff]  ;;  %v12327_v50 = vld [vmem:[#allocation43_spill] sm:$0xff] }
 0x282   : > { %v7725_v3 = vadd.f32 %v12325_v46, %v758_v58  ;;  %v7728_v36 = vadd.f32 %v12326_v48, %v761_v59  ;;  %2413 = vperm.xlu1 %5986, %v541_v15   ;;  %2488 = vperm.xlu0 %5987, %v556_v37   ;;  %v7731_v52 = vadd.f32 %v12327_v50, %v760_v51  ;;  %v12328_v41 = vld [vmem:[#allocation44_spill] sm:$0xff]  ;;  %v12329_v12 = vld [vmem:[#allocation45_spill] sm:$0xff]  ;;  %v12330_v34 = vld [vmem:[#allocation50_spill] sm:$0xff]  ;;  %v12334_v46 = vsub.s32 3, %v7512_v18 }
 0x283   : > { %v7734_v47 = vadd.f32 %v12328_v41, %v763_v29  ;;  %v7737_v30 = vadd.f32 %v12329_v12, %v762_v53  ;;  %v1092_v57 = vmul.f32 %v7563_v9, %v12330_v34  ;;  %v7741_v62 = vpop.permute.xlu1 %1989  ;;  %v7743_v58 = vpop.permute.xlu0 %2033  ;;  %v543_v59 = vld [vmem:[%s11987_s4 + $0x48] sm:$0xff]  ;;  %v558_v51 = vld [vmem:[%s11987_s4 + $0xc0] sm:$0xff]  ;;  %v7751_v29 = vadd.f32 %v1089_v27, %v925_v11  ;;  %v12333_v53 = vld [vmem:[#allocation51_spill] sm:$0xff] }
 0x284   : > { %12331 = vst [vmem:[#allocation12_spill] sm:$0xff] %v7741_v62  ;;  %12332 = vst [vmem:[#allocation13_spill] sm:$0xff] %v7743_v58  ;;  %v7753_v15 = vadd.f32 %v1088_v35, %v924_v24  ;;  %v1093_v37 = vmul.f32 %v7563_v9, %v12333_v53  ;;  %v7760_v48 = vrot.slane %v7534_v14, %v12334_v46  ;;  %v12335_v12 = vld [vmem:[#allocation52_spill] sm:$0xff]  ;;  %v12336_v58 = vld [vmem:[#allocation53_spill] sm:$0xff] }
 0x285   : > { %v7762_v50 = vadd.f32 %v1090_v10, %v926_v32  ;;  %v7764_v41 = vadd.f32 %v1091_v49, %v927_v21  ;;  %v1094_v34 = vmul.f32 %v7563_v9, %v12335_v12  ;;  %v1095_v11 = vmul.f32 %v7563_v9, %v12336_v58  ;;  %v12337_v24 = vld [vmem:[#allocation54_spill] sm:$0xff]  ;;  %v12338_v35 = vld [vmem:[#allocation55_spill] sm:$0xff]  ;;  %v12339_v62 = vld [vmem:[#allocation56_spill] sm:$0xff] }
 0x286   : > { %v1096_v27 = vmul.f32 %v7563_v9, %v12337_v24  ;;  %v1097_v53 = vmul.f32 %v7563_v9, %v12338_v35  ;;  %v1098_v46 = vmul.f32 %v7563_v9, %v12339_v62  ;;  %2423 = vperm.xlu1 %5986, %v543_v59   ;;  %2498 = vperm.xlu0 %5987, %v558_v51   ;;  %v12340_v21 = vld [vmem:[#allocation57_spill] sm:$0xff]  ;;  %v12341_v49 = vld [vmem:[#allocation58_spill] sm:$0xff]  ;;  %v12342_v58 = vld [vmem:[#allocation59_spill] sm:$0xff] }
 0x287   : > { %v7776_v32 = vadd.f32 %v1092_v57, %v928_v0  ;;  %v1099_v10 = vmul.f32 %v7563_v9, %v12340_v21  ;;  %v1100_v12 = vmul.f32 %v7563_v9, %v12341_v49  ;;  %v1101_v28 = vmul.f32 %v7563_v9, %v12342_v58  ;;  %v7784_v24 = vpop.permute.xlu1 %1997  ;;  %v7786_v5 = vpop.permute.xlu0 %2041  ;;  %v545_v62 = vld [vmem:[%s11987_s4 + $0x58] sm:$0xff]  ;;  %v560_v0 = vld [vmem:[%s11987_s4 + $0xd0] sm:$0xff]  ;;  %v12346_v35 = vld [vmem:[#allocation61_spill] sm:$0xff] }
 0x288   : > { %12343 = vst [vmem:[#allocation14_spill] sm:$0xff] %v7784_v24  ;;  %12344 = vst [vmem:[#allocation15_spill] sm:$0xff] %v7786_v5  ;;  %v7795_v57 = vadd.f32 %v1093_v37, %v7629_v40  ;;  %v12345_v59 = vld [vmem:[#allocation60_spill] sm:$0xff]  ;;  %v1103_v21 = vmul.f32 %v7563_v9, %v12346_v35  ;;  %v12347_v49 = vld [vmem:[#allocation62_spill] sm:$0xff]  ;;  %v7804_v5 = vadd.f32 %v1094_v34, %v7636_v20 }
 0x289   : > { %v1102_v51 = vmul.f32 %v7563_v9, %v12345_v59  ;;  %v1104_v58 = vmul.f32 %v7563_v9, %v12347_v49  ;;  %v7807_v24 = vadd.f32 %v1095_v11, %v7633_v25  ;;  %v12349_v40 = vld [vmem:[#allocation64_spill] sm:$0xff]  ;;  %v7814_v59 = vadd.f32 %v1096_v27, %v7652_v6  ;;  %v12350_v34 = vld [vmem:[#allocation65_spill] sm:$0xff]  ;;  %v12353_v27 = vld [vmem:[#allocation66_spill] sm:$0xff] }
 0x28a   : > { %v1106_v37 = vmul.f32 %v7563_v9, %v12349_v40  ;;  %v7817_v35 = vadd.f32 %v1097_v53, %v7649_v16  ;;  %v7820_v49 = vadd.f32 %v1098_v46, %v7658_v56  ;;  %2433 = vperm.xlu1 %5986, %v545_v62   ;;  %2508 = vperm.xlu0 %5987, %v560_v0   ;;  %v547_v56 = vld [vmem:[%s11987_s4 + $0x68] sm:$0xff] }
 0x28b   : > { %v7823_v25 = vadd.f32 %v1099_v10, %v7655_v54  ;;  %v7826_v20 = vadd.f32 %v1100_v12, %v7664_v23  ;;  %v7829_v61 = vadd.f32 %v1101_v28, %v7661_v7  ;;  %v1107_v6 = vmul.f32 %v7563_v9, %v12350_v34  ;;  %v7833_v11 = vpop.permute.xlu1 %2005  ;;  %v7835_v16 = vpop.permute.xlu0 %2049  ;;  %v562_v54 = vld [vmem:[%s11987_s4 + $0xe0] sm:$0xff]  ;;  %v12354_v12 = vld [vmem:[#allocation67_spill] sm:$0xff] }
 0x28c   : > { %12351 = vst [vmem:[#allocation16_spill] sm:$0xff] %v7833_v11  ;;  %12352 = vst [vmem:[#allocation17_spill] sm:$0xff] %v7835_v16  ;;  %v7844_v23 = vadd.f32 %v1102_v51, %v7670_v13  ;;  %v7847_v28 = vadd.f32 %v1103_v21, %v7667_v17  ;;  %v7850_v7 = vadd.f32 %v1104_v58, %v7676_v8  ;;  %v12355_v13 = vld [vmem:[#allocation68_spill] sm:$0xff]  ;;  %v12356_v17 = vld [vmem:[#allocation69_spill] sm:$0xff] }
 0x28d   : > { %v1108_v53 = vmul.f32 %v7563_v9, %v12353_v27  ;;  %v7855_v46 = vadd.f32 %v1105_v33, %v7673_v31  ;;  %v7858_v10 = vadd.f32 %v1106_v37, %v7682_v43  ;;  %v1109_v62 = vmul.f32 %v7563_v9, %v12354_v12  ;;  %v12357_v8 = vld [vmem:[#allocation70_spill] sm:$0xff]  ;;  %v12358_v58 = vld [vmem:[#allocation71_spill] sm:$0xff]  ;;  %v12359_v43 = vld [vmem:[#allocation72_spill] sm:$0xff] }
 0x28e   : > { %v1110_v0 = vmul.f32 %v7563_v9, %v12355_v13  ;;  %v1111_v51 = vmul.f32 %v7563_v9, %v12356_v17  ;;  %v1112_v21 = vmul.f32 %v7563_v9, %v12357_v8  ;;  %v1113_v40 = vmul.f32 %v7563_v9, %v12358_v58  ;;  %2443 = vperm.xlu1 %5986, %v547_v56   ;;  %v6067_v33 = vld [vmem:[%s11986_s3 + $0x4] ss:$8 sps:$4 sm:$0xff]   ;;  %v12364_v8 = vld [vmem:[#allocation75_spill] sm:$0xff] }
 0x28f   : > { %2518 = vperm.xlu0 %5987, %v562_v54   ;;  %v7874_v31 = vadd.f32 %v1107_v6, %v7679_v55  ;;  %v1114_v37 = vmul.f32 %v7563_v9, %v12359_v43  ;;  %v12360_v34 = vld [vmem:[#allocation73_spill] sm:$0xff]  ;;  %v12361_v12 = vld [vmem:[#allocation74_spill] sm:$0xff]  ;;  %v7882_v17 = vpop.permute.xlu1 %2013  ;;  %v7884_v56 = vpop.permute.xlu0 %2057  ;;  %v549_v54 = vld [vmem:[%s11987_s4 + $0x78] sm:$0xff]  ;;  %v7893_v6 = vadd.f32 %v1108_v53, %v7688_v45  ;;  %v1117_v58 = vmul.f32 %v7563_v9, %v12364_v8 }
 0x290   : > { %v1115_v27 = vmul.f32 %v7563_v9, %v12360_v34  ;;  %v1116_v13 = vmul.f32 %v7563_v9, %v12361_v12  ;;  %12362 = vst [vmem:[#allocation18_spill] sm:$0xff] %v7882_v17  ;;  %12363 = vst [vmem:[#allocation19_spill] sm:$0xff] %v7884_v56  ;;  %v564_v55 = vld [vmem:[%s11987_s4 + $0xf0] sm:$0xff]  ;;  %v12365_v43 = vld [vmem:[#allocation76_spill] sm:$0xff]  ;;  %v12016_v12 = vsub.s32 4, %v7512_v18  ;;  %2728 = vmatprep.mubr.bf16.mxu0 %v6067_v33 }
 0x291   : > { %v1118_v34 = vmul.f32 %v7563_v9, %v12365_v43  ;;  %v7901_v11 = vadd.f32 %v1109_v62, %v7685_v44  ;;  %v7904_v17 = vadd.f32 %v1110_v0, %v7704_v22  ;;  %v12366_v56 = vld [vmem:[#allocation77_spill] sm:$0xff]  ;;  %v12367_v45 = vld [vmem:[#allocation78_spill] sm:$0xff]  ;;  %v7911_v8 = vadd.f32 %v1111_v51, %v7691_v19  ;;  %v12368_v62 = vld [vmem:[#allocation79_spill] sm:$0xff] }
 0x292   : > { %v1119_v16 = vmul.f32 %v7563_v9, %v12366_v56  ;;  %v1284_v53 = vmul.f32 %v7626_v39, %v12367_v45  ;;  %v7914_v43 = vadd.f32 %v1112_v21, %v7715_v4  ;;  %v7917_v33 = vadd.f32 %v1113_v40, %v7712_v42  ;;  %2453 = vperm.xlu1 %5986, %v549_v54   ;;  %v551_v42 = vld [vmem:[%s11987_s4 + $0x88] sm:$0xff] }
 0x293   : > { %2528 = vperm.xlu0 %5987, %v564_v55   ;;  %v7920_v44 = vadd.f32 %v1114_v37, %v7725_v3  ;;  %v7923_v22 = vadd.f32 %v1115_v27, %v7722_v26  ;;  %v7926_v9 = vadd.f32 %v1116_v13, %v7731_v52  ;;  %v1285_v19 = vmul.f32 %v7626_v39, %v12368_v62  ;;  %v7930_v0 = vpop.permute.xlu1 %2021  ;;  %v567_v3 = vld [vmem:[%s11989_s6] sm:$0xff]  ;;  %v12370_v52 = vld [vmem:[#allocation80_spill] sm:$0xff]  ;;  %v12373_v56 = vld [vmem:[#allocation82_spill] sm:$0xff] }
 0x294   : > { %12369 = vst [vmem:[#allocation20_spill] sm:$0xff] %v7930_v0  ;;  %v7939_v4 = vadd.f32 %v1117_v58, %v7728_v36  ;;  %v7942_v26 = vadd.f32 %v1118_v34, %v7737_v30  ;;  %v1286_v51 = vmul.f32 %v7626_v39, %v12370_v52  ;;  %v7949_v21 = vrot.slane %v7534_v14, %v12016_v12  ;;  %v7951_v40 = vpop.permute.xlu0 %2133  ;;  %v12372_v36 = vld [vmem:[#allocation81_spill] sm:$0xff]  ;;  %v12374_v55 = vld [vmem:[#allocation83_spill] sm:$0xff]  ;;  %v12375_v34 = vld [vmem:[#allocation84_spill] sm:$0xff] }
 0x295   : > { %12371 = vst [vmem:[#allocation21_spill] sm:$0xff] %v7951_v40  ;;  %v7954_v37 = vadd.f32 %v1119_v16, %v7734_v47  ;;  %v7957_v27 = vadd.f32 %v1284_v53, %v7753_v15  ;;  %v1288_v30 = vmul.f32 %v7626_v39, %v12372_v36  ;;  %v1287_v13 = vmul.f32 %v7626_v39, %v7039_v38  ;;  %v12376_v15 = vld [vmem:[#allocation85_spill] sm:$0xff]  ;;  %v12377_v53 = vld [vmem:[#allocation86_spill] sm:$0xff]  ;;  %v12378_v62 = vld [vmem:[#allocation87_spill] sm:$0xff] }
 0x296   : > { %v1290_v54 = vmul.f32 %v7626_v39, %v12373_v56  ;;  %v1289_v58 = vmul.f32 %v7626_v39, %v12374_v55  ;;  %v1292_v45 = vmul.f32 %v7626_v39, %v12375_v34  ;;  %2463 = vperm.xlu1 %5986, %v551_v42   ;;  %v7970_v47 = vadd.f32 %v1285_v19, %v7751_v29  ;;  %v553_v56 = vld [vmem:[%s11987_s4 + $0x98] sm:$0xff]  ;;  %v2972_v29 = vld [vmem:[%s11990_s7 + $0x8] sm:$0xff]  ;;  %v12381_v55 = vld [vmem:[#allocation89_spill] sm:$0xff] }
 0x297   : > { %2907 = vperm.xlu0 %5987, %v567_v3   ;;  %v1291_v16 = vmul.f32 %v7626_v39, %v12376_v15  ;;  %v1294_v38 = vmul.f32 %v7626_v39, %v12377_v53  ;;  %v1293_v52 = vmul.f32 %v7626_v39, %v12378_v62  ;;  %v7978_v36 = vpop.permute.xlu1 %2029  ;;  %v7987_v19 = vadd.f32 %v1286_v51, %v7762_v50  ;;  %v12380_v42 = vld [vmem:[#allocation88_spill] sm:$0xff]  ;;  %v12382_v15 = vld [vmem:[#allocation90_spill] sm:$0xff]  ;;  %v12384_v0 = vld [vmem:[#allocation91_spill] sm:$0xff] }
 0x298   : > { %12379 = vst [vmem:[#allocation22_spill] sm:$0xff] %v7978_v36  ;;  %v1296_v3 = vmul.f32 %v7626_v39, %v12380_v42  ;;  %v1295_v34 = vmul.f32 %v7626_v39, %v12381_v55  ;;  %v1298_v53 = vmul.f32 %v7626_v39, %v12382_v15  ;;  %v7995_v62 = vpop.permute.xlu0 %2145  ;;  %v7998_v12 = vadd.f32 %v1288_v30, %v7776_v32  ;;  %v12385_v51 = vld [vmem:[#allocation92_spill] sm:$0xff]  ;;  %v12386_v30 = vld [vmem:[#allocation93_spill] sm:$0xff] }
 0x299   : > { %12383 = vst [vmem:[#allocation23_spill] sm:$0xff] %v7995_v62  ;;  %v8001_v40 = vadd.f32 %v1287_v13, %v7764_v41  ;;  %v1297_v50 = vmul.f32 %v7626_v39, %v12384_v0  ;;  %v1300_v42 = vmul.f32 %v7626_v39, %v12385_v51  ;;  %v8008_v36 = vadd.f32 %v1290_v54, %v7804_v5  ;;  %v12388_v54 = vld [vmem:[#allocation94_spill] sm:$0xff] }
 0x29a   : > { %v8011_v55 = vadd.f32 %v1289_v58, %v7795_v57  ;;  %v8014_v15 = vadd.f32 %v1292_v45, %v7814_v59  ;;  %2473 = vperm.xlu1 %5986, %v553_v56   ;;  %v8017_v41 = vadd.f32 %v1291_v16, %v7807_v24  ;;  %v8020_v32 = vadd.f32 %v1294_v38, %v7820_v49  ;;  %v555_v57 = vld [vmem:[%s11987_s4 + $0xa8] sm:$0xff]  ;;  %v2974_v24 = vld [vmem:[%s11990_s7 + $0x18] sm:$0xff] }
 0x29b   : > { %3108 = vperm.xlu0 %5987, %v2972_v29   ;;  %v8023_v0 = vadd.f32 %v1293_v52, %v7817_v35  ;;  %v1299_v5 = vmul.f32 %v7626_v39, %v12386_v30  ;;  %v8027_v13 = vpop.permute.xlu1 %2037  ;;  %v8036_v59 = vadd.f32 %v1296_v3, %v7826_v20  ;;  %v8039_v49 = vadd.f32 %v1295_v34, %v7823_v25  ;;  %v12390_v52 = vld [vmem:[#allocation95_spill] sm:$0xff]  ;;  %v12391_v56 = vld [vmem:[#allocation96_spill] sm:$0xff]  ;;  %v12392_v29 = vld [vmem:[#allocation97_spill] sm:$0xff] }
 0x29c   : > { %12387 = vst [vmem:[#allocation24_spill] sm:$0xff] %v8027_v13  ;;  %v8042_v35 = vadd.f32 %v1298_v53, %v7844_v23  ;;  %v1302_v58 = vmul.f32 %v7626_v39, %v12388_v54  ;;  %v8046_v45 = vpop.permute.xlu0 %2153  ;;  %v8049_v16 = vadd.f32 %v1297_v50, %v7829_v61  ;;  %v8052_v38 = vadd.f32 %v1300_v42, %v7850_v7  ;;  %v12393_v3 = vld [vmem:[#allocation98_spill] sm:$0xff]  ;;  %v12394_v53 = vld [vmem:[#allocation99_spill] sm:$0xff]  ;;  %v12395_v7 = vld [vmem:[#allocation100_spill] sm:$0xff] }
 0x29d   : > { %12389 = vst [vmem:[#allocation25_spill] sm:$0xff] %v8046_v45  ;;  %v1301_v20 = vmul.f32 %v7626_v39, %v12390_v52  ;;  %v1304_v25 = vmul.f32 %v7626_v39, %v12391_v56  ;;  %v1303_v23 = vmul.f32 %v7626_v39, %v12392_v29  ;;  %v1306_v34 = vmul.f32 %v7626_v39, %v12393_v3  ;;  %v12396_v42 = vld [vmem:[#allocation101_spill] sm:$0xff]  ;;  %v12397_v54 = vld [vmem:[#allocation102_spill] sm:$0xff]  ;;  %v557_v29 = vld [vmem:[%s11987_s4 + $0xb8] sm:$0xff] }
 0x29e   : > { %v1305_v51 = vmul.f32 %v7626_v39, %v12394_v53  ;;  %2483 = vperm.xlu1 %5986, %v555_v57   ;;  %v8065_v61 = vadd.f32 %v1299_v5, %v7847_v28  ;;  %v1308_v50 = vmul.f32 %v7626_v39, %v12395_v7  ;;  %v1307_v30 = vmul.f32 %v7626_v39, %v12396_v42  ;;  %v2976_v28 = vld [vmem:[%s11990_s7 + $0x28] sm:$0xff]  ;;  %v12398_v57 = vld [vmem:[#allocation103_spill] sm:$0xff]  ;;  %v12399_v3 = vld [vmem:[#allocation104_spill] sm:$0xff] }
 0x29f   : > { %3118 = vperm.xlu0 %5987, %v2974_v24   ;;  %v1310_v52 = vmul.f32 %v7626_v39, %v12397_v54  ;;  %v8073_v56 = vpop.permute.xlu1 %2045  ;;  %v8082_v5 = vadd.f32 %v1302_v58, %v7858_v10  ;;  %v1309_v24 = vmul.f32 %v7626_v39, %v12398_v57  ;;  %v1312_v53 = vmul.f32 %v7626_v39, %v12399_v3  ;;  %v12401_v45 = vld [vmem:[#allocation105_spill] sm:$0xff]  ;;  %v12402_v58 = vld [vmem:[#allocation106_spill] sm:$0xff] }
 0x2a0   : > { %v8089_v42 = vpop.permute.xlu0 %2161  ;;  %v8092_v54 = vadd.f32 %v1301_v20, %v7855_v46  ;;  %v8095_v62 = vadd.f32 %v1304_v25, %v7893_v6  ;;  %v1311_v10 = vmul.f32 %v7626_v39, %v12401_v45  ;;  %v1314_v13 = vmul.f32 %v7626_v39, %v12402_v58  ;;  %v12403_v20 = vld [vmem:[#allocation107_spill] sm:$0xff] }
 0x2a1   : > { %12400 = vst [vmem:[#allocation26_spill] sm:$0xff] %v8089_v42  ;;  %v8102_v57 = vadd.f32 %v1303_v23, %v7874_v31  ;;  %v8105_v3 = vadd.f32 %v1306_v34, %v7904_v17  ;;  %v8108_v7 = vadd.f32 %v1305_v51, %v7901_v11  ;;  %v8111_v46 = vadd.f32 %v1308_v50, %v7914_v43  ;;  %v559_v11 = vld [vmem:[%s11987_s4 + $0xc8] sm:$0xff]  ;;  %v2978_v17 = vld [vmem:[%s11990_s7 + $0x38] sm:$0xff] }
 0x2a2   : > { %2493 = vperm.xlu1 %5986, %v557_v29   ;;  %v8114_v6 = vadd.f32 %v1307_v30, %v7911_v8  ;;  %v8117_v45 = vadd.f32 %v1310_v52, %v7920_v44  ;;  %v1313_v31 = vmul.f32 %v7626_v39, %v12403_v20  ;;  %v8130_v43 = vadd.f32 %v1309_v24, %v7917_v33  ;;  %v12404_v44 = vld [vmem:[#allocation108_spill] sm:$0xff]  ;;  %v12408_v24 = vld [vmem:[#allocation110_spill] sm:$0xff] }
 0x2a3   : > { %3128 = vperm.xlu0 %5987, %v2976_v28   ;;  %v8121_v25 = vpop.permute.xlu1 %2053  ;;  %v8133_v8 = vadd.f32 %v1312_v53, %v7926_v9  ;;  %v1480_v23 = vmul.f32 %v7760_v48, %v12404_v44  ;;  %v12405_v34 = vsub.s32 5, %v7512_v18  ;;  %v8145_v30 = vadd.f32 %v1311_v10, %v7923_v22  ;;  %v12407_v9 = vld [vmem:[#allocation109_spill] sm:$0xff]  ;;  %v12413_v44 = vld [vmem:[#allocation115_spill] sm:$0xff] }
 0x2a4   : > { %v8142_v50 = vpop.permute.xlu0 %2169  ;;  %v8148_v52 = vadd.f32 %v1314_v13, %v7942_v26  ;;  %v1315_v33 = vmul.f32 %v7626_v39, %v7124_v2  ;;  %v1483_v29 = vmul.f32 %v7760_v48, %v12407_v9  ;;  %v1481_v28 = vmul.f32 %v7760_v48, %v7131_v60  ;;  %v12409_v26 = vld [vmem:[#allocation111_spill] sm:$0xff]  ;;  %v12410_v13 = vld [vmem:[#allocation112_spill] sm:$0xff] }
 0x2a5   : > { %v8140_v51 = vrot.slane %v7534_v14, %v12405_v34  ;;  %12406 = vst [vmem:[#allocation27_spill] sm:$0xff] %v8142_v50  ;;  %v1485_v53 = vmul.f32 %v7760_v48, %v12408_v24  ;;  %v1482_v58 = vmul.f32 %v7760_v48, %v7137_v63  ;;  %v8161_v22 = vadd.f32 %v1313_v31, %v7939_v4  ;;  %v561_v63 = vld [vmem:[%s11987_s4 + $0xd8] sm:$0xff]  ;;  %v2980_v4 = vld [vmem:[%s11990_s7 + $0x48] sm:$0xff]  ;;  %v12411_v31 = vld [vmem:[#allocation113_spill] sm:$0xff] }
 0x2a6   : > { %2503 = vperm.xlu1 %5986, %v559_v11   ;;  %v1487_v2 = vmul.f32 %v7760_v48, %v12409_v26  ;;  %v1484_v39 = vmul.f32 %v7760_v48, %v7143_v1  ;;  %v1489_v60 = vmul.f32 %v7760_v48, %v12410_v13  ;;  %v8178_v20 = vadd.f32 %v1480_v23, %v7957_v27  ;;  %v12412_v1 = vld [vmem:[#allocation114_spill] sm:$0xff]  ;;  %v12415_v13 = vld [vmem:[#allocation116_spill] sm:$0xff]  ;;  %v12416_v23 = vld [vmem:[#allocation117_spill] sm:$0xff] }
 0x2a7   : > { %3138 = vperm.xlu0 %5987, %v2978_v17   ;;  %v8169_v10 = vpop.permute.xlu1 %2061  ;;  %v1486_v11 = vmul.f32 %v7760_v48, %v12411_v31  ;;  %v1491_v17 = vmul.f32 %v7760_v48, %v12412_v1  ;;  %v1488_v34 = vmul.f32 %v7760_v48, %v12413_v44  ;;  %v8189_v24 = vadd.f32 %v1315_v33, %v7954_v37 }
 0x2a8   : > { %v8186_v9 = vpop.permute.xlu0 %2177  ;;  %v8192_v26 = vadd.f32 %v1483_v29, %v8001_v40  ;;  %v1493_v27 = vmul.f32 %v7760_v48, %v12415_v13  ;;  %v1490_v31 = vmul.f32 %v7760_v48, %v12416_v23  ;;  %v8199_v42 = vadd.f32 %v1481_v28, %v7970_v47  ;;  %v12417_v29 = vld [vmem:[#allocation118_spill] sm:$0xff]  ;;  %v12418_v28 = vld [vmem:[#allocation119_spill] sm:$0xff]  ;;  %v12424_v13 = vld [vmem:[#allocation124_spill] sm:$0xff] }
 0x2a9   : > { %12414 = vst [vmem:[#allocation28_spill] sm:$0xff] %v8186_v9  ;;  %v8202_v1 = vadd.f32 %v1485_v53, %v8011_v55  ;;  %v8205_v44 = vadd.f32 %v1482_v58, %v7987_v19  ;;  %v8208_v40 = vadd.f32 %v1487_v2, %v8017_v41  ;;  %v8211_v37 = vadd.f32 %v1484_v39, %v7998_v12  ;;  %v563_v55 = vld [vmem:[%s11987_s4 + $0xe8] sm:$0xff]  ;;  %v2982_v19 = vld [vmem:[%s11990_s7 + $0x58] sm:$0xff] }
 0x2aa   : > { %2513 = vperm.xlu1 %5986, %v561_v63   ;;  %v8214_v33 = vadd.f32 %v1489_v60, %v8023_v0  ;;  %v1495_v47 = vmul.f32 %v7760_v48, %v12417_v29  ;;  %v8225_v41 = vadd.f32 %v1486_v11, %v8008_v36  ;;  %v8228_v12 = vadd.f32 %v1491_v17, %v8039_v49  ;;  %v12420_v36 = vld [vmem:[#allocation120_spill] sm:$0xff]  ;;  %v12421_v63 = vld [vmem:[#allocation121_spill] sm:$0xff]  ;;  %v12423_v17 = vld [vmem:[#allocation123_spill] sm:$0xff] }
 0x2ab   : > { %3148 = vperm.xlu0 %5987, %v2980_v4   ;;  %v8231_v0 = vadd.f32 %v1488_v34, %v8014_v15  ;;  %v1492_v53 = vmul.f32 %v7760_v48, %v12418_v28  ;;  %v8240_v39 = vadd.f32 %v1493_v27, %v8049_v16  ;;  %v8243_v60 = vadd.f32 %v1490_v31, %v8020_v32  ;;  %v12422_v4 = vld [vmem:[#allocation122_spill] sm:$0xff]  ;;  %v12425_v16 = vld [vmem:[#allocation125_spill] sm:$0xff]  ;;  %v12427_v28 = vld [vmem:[#allocation127_spill] sm:$0xff] }
 0x2ac   : > { %v8235_v58 = vpop.permute.xlu1 %2137  ;;  %v8237_v2 = vpop.permute.xlu0 %2185  ;;  %v1497_v49 = vmul.f32 %v7760_v48, %v12420_v36  ;;  %v1494_v15 = vmul.f32 %v7760_v48, %v12421_v63  ;;  %v1499_v11 = vmul.f32 %v7760_v48, %v12422_v4  ;;  %v1496_v34 = vmul.f32 %v7760_v48, %v12423_v17  ;;  %v12426_v31 = vld [vmem:[#allocation126_spill] sm:$0xff]  ;;  %v565_v63 = vld [vmem:[%s11987_s4 + $0xf8] sm:$0xff]  ;;  %v12429_v4 = vld [vmem:[#allocation129_spill] sm:$0xff] }
 0x2ad   : > { %12419 = vst [vmem:[#allocation29_spill] sm:$0xff] %v8235_v58  ;;  %v1501_v23 = vmul.f32 %v7760_v48, %v12424_v13  ;;  %v8256_v32 = vadd.f32 %v1495_v47, %v8065_v61  ;;  %v1498_v27 = vmul.f32 %v7760_v48, %v12425_v16  ;;  %v1503_v29 = vmul.f32 %v7760_v48, %v12426_v31  ;;  %v12428_v47 = vld [vmem:[#allocation128_spill] sm:$0xff]  ;;  %v12430_v13 = vld [vmem:[#allocation130_spill] sm:$0xff] }
 0x2ae   : > { %2523 = vperm.xlu1 %5986, %v563_v55   ;;  %v1500_v36 = vmul.f32 %v7760_v48, %v12427_v28  ;;  %v2984_v55 = vld [vmem:[%s11990_s7 + $0x68] sm:$0xff]  ;;  %v8271_v61 = vadd.f32 %v1492_v53, %v8036_v59  ;;  %v1502_v17 = vmul.f32 %v7760_v48, %v12429_v4  ;;  %v1507_v16 = vmul.f32 %v7760_v48, %v12430_v13  ;;  %v12432_v59 = vld [vmem:[#allocation131_spill] sm:$0xff] }
 0x2af   : > { %3158 = vperm.xlu0 %5987, %v2982_v19   ;;  %v1505_v19 = vmul.f32 %v7760_v48, %v12428_v47  ;;  %v8284_v58 = vadd.f32 %v1497_v49, %v8092_v54  ;;  %v8287_v50 = vadd.f32 %v1494_v15, %v8042_v35  ;;  %v1504_v53 = vmul.f32 %v7760_v48, %v12432_v59  ;;  %v12433_v47 = vld [vmem:[#allocation132_spill] sm:$0xff] }
 0x2b0   : > { %v8279_v31 = vpop.permute.xlu1 %2141  ;;  %v8281_v28 = vpop.permute.xlu0 %2193  ;;  %v1509_v9 = vmul.f32 %v7760_v48, %v12433_v47  ;;  %v8294_v4 = vadd.f32 %v1499_v11, %v8102_v57  ;;  %v8297_v13 = vadd.f32 %v1496_v34, %v8052_v38  ;;  %v12017_v54 = vsub.s32 6, %v7512_v18  ;;  %v12434_v57 = vld [vmem:[#allocation133_spill] sm:$0xff]  ;;  %v2986_v11 = vld [vmem:[%s11990_s7 + $0x78] sm:$0xff]  ;;  %v12435_v34 = vld [vmem:[#allocation134_spill] sm:$0xff] }
 0x2b1   : > { %12431 = vst [vmem:[#allocation30_spill] sm:$0xff] %v8279_v31  ;;  %v8300_v31 = vadd.f32 %v1501_v23, %v8108_v7  ;;  %v8304_v35 = vadd.f32 %v1498_v27, %v8082_v5  ;;  %v8307_v49 = vadd.f32 %v1503_v29, %v8114_v6  ;;  %v8310_v15 = vadd.f32 %v1500_v36, %v8095_v62  ;;  %v2971_v7 = vld [vmem:[%s11990_s7] sm:$0xff]  ;;  %v12443_v47 = vld [vmem:[#allocation140_spill] sm:$0xff] }
 0x2b2   : > { %2533 = vperm.xlu1 %5986, %v565_v63   ;;  %v1506_v38 = vmul.f32 %v7760_v48, %v12434_v57  ;;  %v8321_v5 = vadd.f32 %v1505_v19, %v8130_v43  ;;  %v8324_v6 = vadd.f32 %v1502_v17, %v8105_v3  ;;  %v8327_v62 = vadd.f32 %v1507_v16, %v8145_v30  ;;  %v12438_v43 = vld [vmem:[#allocation135_spill] sm:$0xff]  ;;  %v12440_v19 = vld [vmem:[#allocation137_spill] sm:$0xff]  ;;  %v12441_v16 = vld [vmem:[#allocation138_spill] sm:$0xff] }
 0x2b3   : > { %3168 = vperm.xlu0 %5987, %v2984_v55   ;;  %v1511_v23 = vmul.f32 %v7760_v48, %v12435_v34  ;;  %v8336_v36 = vadd.f32 %v1504_v53, %v8111_v46  ;;  %v8339_v63 = vadd.f32 %v1509_v9, %v8161_v22  ;;  %v1508_v3 = vmul.f32 %v7760_v48, %v12438_v43  ;;  %v12439_v55 = vld [vmem:[#allocation136_spill] sm:$0xff]  ;;  %v12442_v9 = vld [vmem:[#allocation139_spill] sm:$0xff] }
 0x2b4   : > { %v8331_v27 = vpop.permute.xlu1 %2149  ;;  %v8333_v29 = vpop.permute.xlu0 %2201  ;;  %v1677_v30 = vmul.f32 %v7949_v21, %v12439_v55  ;;  %v1510_v17 = vmul.f32 %v7760_v48, %v12440_v19  ;;  %v1680_v59 = vmul.f32 %v7949_v21, %v12441_v16  ;;  %v8352_v46 = vrot.slane %v7534_v14, %v12017_v54  ;;  %v12444_v48 = vld [vmem:[#allocation141_spill] sm:$0xff]  ;;  %v2973_v43 = vld [vmem:[%s11990_s7 + $0x10] sm:$0xff]  ;;  %v12447_v16 = vld [vmem:[#allocation144_spill] sm:$0xff] }
 0x2b5   : > { %12436 = vst [vmem:[#allocation31_spill] sm:$0xff] %v8331_v27  ;;  %12437 = vst [vmem:[#allocation32_spill] sm:$0xff] %v8333_v29  ;;  %v8355_v22 = vadd.f32 %v1506_v38, %v8117_v45  ;;  %v1676_v53 = vmul.f32 %v7949_v21, %v12442_v9  ;;  %v1682_v57 = vmul.f32 %v7949_v21, %v12443_v47  ;;  %v12445_v38 = vld [vmem:[#allocation142_spill] sm:$0xff]  ;;  %v12446_v55 = vld [vmem:[#allocation143_spill] sm:$0xff] }
 0x2b6   : > { %3103 = vperm.xlu1 %5986, %v2971_v7   ;;  %v1678_v34 = vmul.f32 %v7949_v21, %v12444_v48  ;;  %v2988_v7 = vld [vmem:[%s11990_s7 + $0x88] sm:$0xff]  ;;  %v8370_v45 = vadd.f32 %v1511_v23, %v8189_v24  ;;  %v1679_v19 = vmul.f32 %v7949_v21, %v12446_v55  ;;  %v1686_v9 = vmul.f32 %v7949_v21, %v12447_v16  ;;  %v12450_v24 = vld [vmem:[#allocation145_spill] sm:$0xff] }
 0x2b7   : > { %3178 = vperm.xlu0 %5987, %v2986_v11   ;;  %v1684_v11 = vmul.f32 %v7949_v21, %v12445_v38  ;;  %v8383_v54 = vadd.f32 %v1508_v3, %v8133_v8  ;;  %v8386_v29 = vadd.f32 %v1677_v30, %v8199_v42  ;;  %v1681_v23 = vmul.f32 %v7949_v21, %v12450_v24  ;;  %v12451_v38 = vld [vmem:[#allocation146_spill] sm:$0xff]  ;;  %v12453_v30 = vld [vmem:[#allocation148_spill] sm:$0xff]  ;;  %v12461_v24 = vld [vmem:[#allocation153_spill] sm:$0xff] }
 0x2b8   : > { %v8378_v47 = vpop.permute.xlu1 %2157  ;;  %v8380_v48 = vpop.permute.xlu0 %2209  ;;  %v1688_v27 = vmul.f32 %v7949_v21, %v12451_v38  ;;  %v8393_v55 = vadd.f32 %v1510_v17, %v8148_v52  ;;  %v8396_v16 = vadd.f32 %v1680_v59, %v8211_v37  ;;  %v8401_v42 = vadd.f32 %v1676_v53, %v8178_v20  ;;  %v8414_v37 = vld [vmem:[%s11990_s7 + $0x20] sm:$0xff]  ;;  %v2990_v17 = vld [vmem:[%s11990_s7 + $0x98] sm:$0xff] }
 0x2b9   : > { %12448 = vst [vmem:[#allocation33_spill] sm:$0xff] %v8378_v47  ;;  %12449 = vst [vmem:[#allocation34_spill] sm:$0xff] %v8380_v48  ;;  %v12452_v47 = vld [vmem:[#allocation147_spill] sm:$0xff]  ;;  %v8404_v8 = vadd.f32 %v1682_v57, %v8225_v41  ;;  %v8407_v3 = vadd.f32 %v1678_v34, %v8205_v44  ;;  %v1690_v52 = vmul.f32 %v7949_v21, %v12453_v30  ;;  %v12455_v59 = vld [vmem:[#allocation149_spill] sm:$0xff] }
 0x2ba   : > { %v1683_v48 = vmul.f32 %v7949_v21, %v12452_v47  ;;  %3113 = vperm.xlu1 %5986, %v2973_v43   ;;  %12454 = vst [vmem:[#allocation35_spill] sm:$0xff] %v8414_v37  ;;  %v8420_v20 = vadd.f32 %v1684_v11, %v8231_v0  ;;  %v8423_v41 = vadd.f32 %v1679_v19, %v8192_v26  ;;  %v12458_v0 = vld [vmem:[#allocation150_spill] sm:$0xff]  ;;  %v12459_v11 = vld [vmem:[#allocation151_spill] sm:$0xff] }
 0x2bb   : > { %3188 = vperm.xlu0 %5987, %v2988_v7   ;;  %v8426_v44 = vadd.f32 %v1686_v9, %v8243_v60  ;;  %v1685_v53 = vmul.f32 %v7949_v21, %v12455_v59  ;;  %v8435_v43 = vadd.f32 %v1681_v23, %v8202_v1  ;;  %v8438_v7 = vadd.f32 %v1688_v27, %v8271_v61  ;;  %v12460_v9 = vld [vmem:[#allocation152_spill] sm:$0xff]  ;;  %v12462_v61 = vld [vmem:[#allocation154_spill] sm:$0xff]  ;;  %v12463_v23 = vld [vmem:[#allocation155_spill] sm:$0xff] }
 0x2bc   : > { %v8430_v57 = vpop.permute.xlu1 %2165  ;;  %v8432_v34 = vpop.permute.xlu0 %2217  ;;  %v1692_v26 = vmul.f32 %v7949_v21, %v12458_v0  ;;  %v1687_v60 = vmul.f32 %v7949_v21, %v12459_v11  ;;  %v8445_v19 = vadd.f32 %v1683_v48, %v8208_v40  ;;  %v1694_v47 = vmul.f32 %v7949_v21, %v12460_v9  ;;  %v12464_v40 = vld [vmem:[#allocation156_spill] sm:$0xff]  ;;  %v8464_v59 = vld [vmem:[%s11990_s7 + $0x30] sm:$0xff]  ;;  %v12467_v11 = vld [vmem:[#allocation158_spill] sm:$0xff] }
 0x2bd   : > { %12456 = vst [vmem:[#allocation36_spill] sm:$0xff] %v8430_v57  ;;  %12457 = vst [vmem:[#allocation37_spill] sm:$0xff] %v8432_v34  ;;  %v1689_v38 = vmul.f32 %v7949_v21, %v12461_v24  ;;  %v8453_v1 = vadd.f32 %v1690_v52, %v8287_v50  ;;  %v1696_v27 = vmul.f32 %v7949_v21, %v12462_v61  ;;  %v12466_v52 = vld [vmem:[#allocation157_spill] sm:$0xff]  ;;  %v12468_v24 = vld [vmem:[#allocation159_spill] sm:$0xff] }
 0x2be   : > { %3123 = vperm.xlu1 %5986, %v8414_v37   ;;  %v1691_v30 = vmul.f32 %v7949_v21, %v12463_v23  ;;  %v1698_v48 = vmul.f32 %v7949_v21, %v12464_v40  ;;  %12465 = vst [vmem:[#allocation46_spill] sm:$0xff] %v8464_v59  ;;  %v8470_v50 = vadd.f32 %v1685_v53, %v8214_v33  ;;  %v12471_v33 = vld [vmem:[#allocation160_spill] sm:$0xff] }
 0x2bf   : > { %3198 = vperm.xlu0 %5987, %v2990_v17   ;;  %v2992_v17 = vld [vmem:[%s11990_s7 + $0xa8] sm:$0xff]  ;;  %v1693_v0 = vmul.f32 %v7949_v21, %v12466_v52  ;;  %v1700_v9 = vmul.f32 %v7949_v21, %v12467_v11  ;;  %v1695_v61 = vmul.f32 %v7949_v21, %v12468_v24  ;;  %v8483_v37 = vadd.f32 %v1692_v26, %v8297_v13  ;;  %v12472_v52 = vld [vmem:[#allocation161_spill] sm:$0xff] }
 0x2c0   : > { %v8478_v23 = vpop.permute.xlu1 %2173  ;;  %v8480_v40 = vpop.permute.xlu0 %2225  ;;  %v8486_v34 = vadd.f32 %v1687_v60, %v8228_v12  ;;  %v1702_v53 = vmul.f32 %v7949_v21, %v12471_v33  ;;  %v1697_v57 = vmul.f32 %v7949_v21, %v12472_v52  ;;  %v8493_v11 = vadd.f32 %v1694_v47, %v8304_v35  ;;  %v12474_v60 = vld [vmem:[#allocation163_spill] sm:$0xff]  ;;  %v8516_v47 = vld [vmem:[%s11990_s7 + $0x40] sm:$0xff] }
 0x2c1   : > { %12469 = vst [vmem:[#allocation47_spill] sm:$0xff] %v8478_v23  ;;  %12470 = vst [vmem:[#allocation38_spill] sm:$0xff] %v8480_v40  ;;  %v8496_v24 = vadd.f32 %v1689_v38, %v8240_v39  ;;  %v12473_v23 = vld [vmem:[#allocation162_spill] sm:$0xff]  ;;  %v12019_v13 = vsub.s32 7, %v7512_v18  ;;  %v8503_v12 = vadd.f32 %v1696_v27, %v8310_v15  ;;  %v8506_v26 = vadd.f32 %v1691_v30, %v8256_v32  ;;  %v2994_v38 = vld [vmem:[%s11990_s7 + $0xb8] sm:$0xff] }
 0x2c2   : > { %v1704_v40 = vmul.f32 %v7949_v21, %v12473_v23  ;;  %3133 = vperm.xlu1 %5986, %v8464_v59   ;;  %v8509_v35 = vadd.f32 %v1698_v48, %v8324_v6  ;;  %v1699_v39 = vmul.f32 %v7949_v21, %v12474_v60  ;;  %12475 = vst [vmem:[#allocation39_spill] sm:$0xff] %v8516_v47  ;;  %v12476_v27 = vld [vmem:[#allocation164_spill] sm:$0xff]  ;;  %v12482_v60 = vld [vmem:[#allocation169_spill] sm:$0xff] }
 0x2c3   : > { %3208 = vperm.xlu0 %5987, %v2992_v17   ;;  %v8522_v15 = vadd.f32 %v1693_v0, %v8284_v58  ;;  %v8525_v32 = vadd.f32 %v1700_v9, %v8336_v36  ;;  %v8528_v6 = vadd.f32 %v1695_v61, %v8294_v4  ;;  %v1706_v30 = vmul.f32 %v7949_v21, %v12476_v27  ;;  %v12478_v58 = vld [vmem:[#allocation165_spill] sm:$0xff]  ;;  %v12479_v0 = vld [vmem:[#allocation166_spill] sm:$0xff]  ;;  %v12480_v61 = vld [vmem:[#allocation167_spill] sm:$0xff] }
 0x2c4   : > { %v8532_v48 = vpop.permute.xlu1 %2181  ;;  %v8534_v17 = vpop.permute.xlu0 %2233  ;;  %v8537_v23 = vadd.f32 %v1702_v53, %v8355_v22  ;;  %v8540_v33 = vadd.f32 %v1697_v57, %v8300_v31  ;;  %v1701_v36 = vmul.f32 %v7949_v21, %v12478_v58  ;;  %v1872_v4 = vmul.f32 %v8140_v51, %v12479_v0  ;;  %v12481_v57 = vld [vmem:[#allocation168_spill] sm:$0xff] }
 0x2c5   : > { %12477 = vst [vmem:[#allocation48_spill] sm:$0xff] %v8534_v17  ;;  %v8547_v9 = vadd.f32 %v1704_v40, %v8383_v54  ;;  %v1703_v52 = vmul.f32 %v7949_v21, %v12480_v61  ;;  %v8554_v22 = vrot.slane %v7534_v14, %v12019_v13  ;;  %v8558_v31 = vadd.f32 %v1699_v39, %v8307_v49  ;;  %v12483_v40 = vld [vmem:[#allocation170_spill] sm:$0xff]  ;;  %v8569_v14 = vld [vmem:[%s11990_s7 + $0x50] sm:$0xff]  ;;  %v12486_v0 = vld [vmem:[#allocation172_spill] sm:$0xff] }
 0x2c6   : > { %3143 = vperm.xlu1 %5986, %v8516_v47   ;;  %v1875_v53 = vmul.f32 %v8140_v51, %v12481_v57  ;;  %v1705_v54 = vmul.f32 %v7949_v21, %v12482_v60  ;;  %v1877_v27 = vmul.f32 %v8140_v51, %v12483_v40  ;;  %12484 = vst [vmem:[#allocation49_spill] sm:$0xff] %v8569_v14  ;;  %v12485_v39 = vld [vmem:[#allocation171_spill] sm:$0xff]  ;;  %v12487_v57 = vld [vmem:[#allocation173_spill] sm:$0xff] }
 0x2c7   : > { %3218 = vperm.xlu0 %5987, %v2994_v38   ;;  %v2996_v38 = vld [vmem:[%s11990_s7 + $0xc8] sm:$0xff]  ;;  %v8575_v49 = vadd.f32 %v1706_v30, %v8393_v55  ;;  %v1707_v58 = vmul.f32 %v7949_v21, %v12485_v39  ;;  %v1879_v61 = vmul.f32 %v8140_v51, %v12486_v0  ;;  %v1873_v60 = vmul.f32 %v8140_v51, %v12487_v57  ;;  %v12491_v21 = vld [vmem:[#allocation175_spill] sm:$0xff]  ;;  %v12492_v57 = vld [vmem:[#allocation176_spill] sm:$0xff] }
 0x2c8   : > { %v8583_v40 = vpop.permute.xlu1 %2189  ;;  %v8585_v13 = vpop.permute.xlu0 %2241  ;;  %v8588_v18 = vadd.f32 %v1701_v36, %v8321_v5  ;;  %v8591_v47 = vadd.f32 %v1872_v4, %v8401_v42  ;;  %v12490_v55 = vld [vmem:[#allocation174_spill] sm:$0xff]  ;;  %v1874_v39 = vmul.f32 %v8140_v51, %v12491_v21  ;;  %v8598_v0 = vadd.f32 %v1703_v52, %v8327_v62  ;;  %v12493_v17 = vld [vmem:[#allocation177_spill] sm:$0xff] }
 0x2c9   : > { %12488 = vst [vmem:[#allocation40_spill] sm:$0xff] %v8585_v13  ;;  %v1881_v30 = vmul.f32 %v8140_v51, %v12490_v55  ;;  %v1883_v59 = vmul.f32 %v8140_v51, %v12492_v57  ;;  %v1876_v13 = vmul.f32 %v8140_v51, %v12493_v17  ;;  %v8606_v5 = vadd.f32 %v1875_v53, %v8423_v41  ;;  %v12495_v62 = vld [vmem:[#allocation178_spill] sm:$0xff]  ;;  %v8619_v52 = vld [vmem:[%s11990_s7 + $0x60] sm:$0xff]  ;;  %v8624_v17 = vld [vmem:[%s11990_s7 + $0xd8] sm:$0xff] }
 0x2ca   : > { %12489 = vst [vmem:[#allocation41_spill] sm:$0xff] %v8591_v47  ;;  %3153 = vperm.xlu1 %5986, %v8569_v14   ;;  %v8609_v42 = vadd.f32 %v1705_v54, %v8339_v63  ;;  %v8612_v36 = vadd.f32 %v1877_v27, %v8435_v43  ;;  %v1885_v4 = vmul.f32 %v8140_v51, %v12495_v62  ;;  %12496 = vst [vmem:[#allocation43_spill] sm:$0xff] %v8619_v52  ;;  %v12499_v53 = vld [vmem:[#allocation179_spill] sm:$0xff]  ;;  %v12502_v57 = vld [vmem:[#allocation182_spill] sm:$0xff] }
 0x2cb   : > { %3228 = vperm.xlu0 %5987, %v2996_v38   ;;  %12494 = vst [vmem:[#allocation42_spill] sm:$0xff] %v8606_v5  ;;  %12497 = vst [vmem:[#allocation44_spill] sm:$0xff] %v8624_v17  ;;  %v8627_v41 = vadd.f32 %v1707_v58, %v8370_v45  ;;  %v8630_v63 = vadd.f32 %v1879_v61, %v8445_v19  ;;  %v8633_v43 = vadd.f32 %v1873_v60, %v8386_v29  ;;  %v12500_v45 = vld [vmem:[#allocation180_spill] sm:$0xff]  ;;  %v12501_v58 = vld [vmem:[#allocation181_spill] sm:$0xff] }
 0x2cc   : > { %v1878_v54 = vmul.f32 %v8140_v51, %v12499_v53  ;;  %v8637_v27 = vpop.permute.xlu1 %2197  ;;  %v8639_v38 = vpop.permute.xlu0 %2249  ;;  %v8642_v55 = vadd.f32 %v1881_v30, %v8470_v50  ;;  %v8645_v21 = vadd.f32 %v1874_v39, %v8407_v3  ;;  %v1887_v19 = vmul.f32 %v8140_v51, %v12500_v45  ;;  %v12503_v50 = vld [vmem:[#allocation183_spill] sm:$0xff]  ;;  %v12504_v39 = vld [vmem:[#allocation184_spill] sm:$0xff]  ;;  %v8678_v53 = vld [vmem:[%s11990_s7 + $0xe8] sm:$0xff] }
 0x2cd   : > { %12498 = vst [vmem:[#allocation45_spill] sm:$0xff] %v8633_v43  ;;  %v1880_v29 = vmul.f32 %v8140_v51, %v12501_v58  ;;  %v8652_v61 = vadd.f32 %v1883_v59, %v8486_v34  ;;  %v8655_v60 = vadd.f32 %v1876_v13, %v8396_v16  ;;  %v1889_v62 = vmul.f32 %v8140_v51, %v12502_v57  ;;  %v12505_v59 = vld [vmem:[#allocation185_spill] sm:$0xff]  ;;  %v8673_v13 = vld [vmem:[%s11990_s7 + $0x70] sm:$0xff]  ;;  %v12515_v5 = vld [vmem:[#allocation192_spill] sm:$0xff] }
 0x2ce   : > { %3163 = vperm.xlu1 %5986, %v8619_v52   ;;  %v8662_v3 = vadd.f32 %v1885_v4, %v8496_v24  ;;  %v1882_v30 = vmul.f32 %v8140_v51, %v12503_v50  ;;  %v1891_v34 = vmul.f32 %v8140_v51, %v12504_v39  ;;  %v1884_v16 = vmul.f32 %v8140_v51, %v12505_v59  ;;  %v12508_v4 = vld [vmem:[#allocation186_spill] sm:$0xff]  ;;  %v12509_v58 = vld [vmem:[#allocation187_spill] sm:$0xff]  ;;  %v12510_v50 = vld [vmem:[#allocation188_spill] sm:$0xff] }
 0x2cf   : > { %3238 = vperm.xlu0 %5987, %v8624_v17   ;;  %12506 = vst [vmem:[#allocation50_spill] sm:$0xff] %v8673_v13  ;;  %12507 = vst [vmem:[#allocation51_spill] sm:$0xff] %v8678_v53  ;;  %v8681_v24 = vadd.f32 %v1878_v54, %v8404_v8  ;;  %v1893_v45 = vmul.f32 %v8140_v51, %v12508_v4  ;;  %v1886_v57 = vmul.f32 %v8140_v51, %v12509_v58  ;;  %v12511_v14 = vld [vmem:[#allocation189_spill] sm:$0xff]  ;;  %v12512_v54 = vld [vmem:[#allocation190_spill] sm:$0xff] }
 0x2d0   : > { %v1895_v39 = vmul.f32 %v8140_v51, %v12510_v50  ;;  %v8689_v59 = vpop.permute.xlu1 %2205  ;;  %v8692_v17 = vadd.f32 %v1887_v19, %v8506_v26  ;;  %v1912_v52 = vadd.f32 %v1880_v29, %v8420_v20  ;;  %v1888_v8 = vmul.f32 %v8140_v51, %v12511_v14  ;;  %v8699_v4 = vpop.permute.xlu0 %2257  ;;  %v12514_v43 = vld [vmem:[#allocation191_spill] sm:$0xff]  ;;  %v12516_v29 = vld [vmem:[#allocation193_spill] sm:$0xff] }
 0x2d1   : > { %v1897_v47 = vmul.f32 %v8140_v51, %v12512_v54  ;;  %v8702_v58 = vadd.f32 %v1889_v62, %v8522_v15  ;;  %v1890_v50 = vmul.f32 %v8140_v51, %v12514_v43  ;;  %v1899_v26 = vmul.f32 %v8140_v51, %v12515_v5  ;;  %v8720_v43 = vld [vmem:[%s11990_s7 + $0x80] sm:$0xff]  ;;  %v8725_v5 = vld [vmem:[%s11990_s7 + $0xf8] sm:$0xff]  ;;  %v12519_v62 = vld [vmem:[#allocation194_spill] sm:$0xff] }
 0x2d2   : > { %3173 = vperm.xlu1 %5986, %v8673_v13   ;;  %v1914_v20 = vadd.f32 %v1882_v30, %v8426_v44  ;;  %v8712_v14 = vadd.f32 %v1891_v34, %v8528_v6  ;;  %v1916_v19 = vadd.f32 %v1884_v16, %v8438_v7  ;;  %v1892_v15 = vmul.f32 %v8140_v51, %v12516_v29  ;;  %v12521_v29 = vld [vmem:[#allocation195_spill] sm:$0xff]  ;;  %v12532_v13 = vld [vmem:[#allocation198_spill] sm:$0xff] }
 0x2d3   : > { %12513 = vst [vmem:[#allocation52_spill] sm:$0xff] %v8702_v58  ;;  %3248 = vperm.xlu0 %5987, %v8678_v53   ;;  %12517 = vst [vmem:[#allocation53_spill] sm:$0xff] %v8720_v43  ;;  %v8728_v44 = vadd.f32 %v1893_v45, %v8540_v33  ;;  %v1918_v6 = vadd.f32 %v1886_v57, %v8453_v1  ;;  %v8732_v7 = vadd.f32 %v1895_v39, %v8558_v31  ;;  %v12522_v45 = vld [vmem:[#allocation196_spill] sm:$0xff] }
 0x2d4   : > { %12518 = vst [vmem:[#allocation54_spill] sm:$0xff] %v8725_v5  ;;  %v1901_v30 = vmul.f32 %v8140_v51, %v12519_v62  ;;  %v8736_v34 = vpop.permute.xlu1 %2213  ;;  %v8739_v16 = vadd.f32 %v1888_v8, %v8483_v37  ;;  %v8742_v54 = vadd.f32 %v1897_v47, %v8588_v18  ;;  %v1894_v33 = vmul.f32 %v8140_v51, %v12521_v29  ;;  %v12524_v62 = vld [vmem:[#allocation197_spill] sm:$0xff]  ;;  %v12525_v47 = vld [vmem:[#allocation199_spill] sm:$0xff]  ;;  %v12526_v29 = vld [vmem:[#allocation200_spill] sm:$0xff] }
 0x2d5   : > { %v1903_v1 = vmul.f32 %v8140_v51, %v12522_v45  ;;  %v8748_v57 = vpop.permute.xlu0 %2383  ;;  %v1922_v31 = vadd.f32 %v1890_v50, %v8493_v11  ;;  %v8752_v39 = vadd.f32 %v1899_v26, %v8598_v0  ;;  %v1896_v37 = vmul.f32 %v8140_v51, %v12524_v62  ;;  %v12527_v11 = vld [vmem:[#allocation201_spill] sm:$0xff]  ;;  %v8770_v50 = vld [vmem:[%s11990_s7 + $0x90] sm:$0xff]  ;;  %v3004_v26 = vld [vmem:[%s11991_s8 + $0x8] sm:$0xff] }
 0x2d6   : > { %12520 = vst [vmem:[#allocation55_spill] sm:$0xff] %v8739_v16  ;;  %12523 = vst [vmem:[#allocation56_spill] sm:$0xff] %v8748_v57  ;;  %3183 = vperm.xlu1 %5986, %v8720_v43   ;;  %v8759_v18 = vadd.f32 %v1892_v15, %v8503_v12  ;;  %v1898_v8 = vmul.f32 %v8140_v51, %v12525_v47  ;;  %v2072_v45 = vmul.f32 %v8352_v46, %v12526_v29  ;;  %v12529_v15 = vld [vmem:[#allocation202_spill] sm:$0xff]  ;;  %v12530_v47 = vld [vmem:[#allocation203_spill] sm:$0xff] }
 0x2d7   : > { %3258 = vperm.xlu0 %5987, %v8725_v5   ;;  %v1900_v0 = vmul.f32 %v8140_v51, %v12527_v11  ;;  %12528 = vst [vmem:[#allocation57_spill] sm:$0xff] %v8770_v50  ;;  %v8776_v12 = vadd.f32 %v1901_v30, %v8609_v42  ;;  %v2074_v62 = vmul.f32 %v8352_v46, %v12529_v15  ;;  %v12531_v57 = vld [vmem:[#allocation204_spill] sm:$0xff]  ;;  %v12534_v30 = vld [vmem:[#allocation207_spill] sm:$0xff]  ;;  %v12537_v16 = vld [vmem:[#allocation209_spill] sm:$0xff] }
 0x2d8   : > { %v1902_v29 = vmul.f32 %v8140_v51, %v12530_v47  ;;  %v2076_v11 = vmul.f32 %v8352_v46, %v12531_v57  ;;  %v8784_v5 = vpop.permute.xlu1 %2221  ;;  %v1926_v53 = vadd.f32 %v1894_v33, %v8509_v35  ;;  %v8788_v43 = vadd.f32 %v1903_v1, %v8627_v41  ;;  %v12536_v47 = vld [vmem:[#allocation208_spill] sm:$0xff]  ;;  %v12538_v1 = vld [vmem:[#allocation211_spill] sm:$0xff] }
 0x2d9   : > { %v8792_v42 = vmul.f32 %v8352_v46, %v12532_v13  ;;  %v2078_v15 = vmul.f32 %v8352_v46, %v12534_v30  ;;  %v8796_v58 = vpop.permute.xlu0 %2398  ;;  %v1928_v51 = vadd.f32 %v1896_v37, %v8525_v32  ;;  %v2070_v57 = vmul.f32 %v8352_v46, %v12536_v47  ;;  %v8814_v32 = vld [vmem:[%s11990_s7 + $0xa0] sm:$0xff] }
 0x2da   : > { %12535 = vst [vmem:[#allocation59_spill] sm:$0xff] %v8796_v58  ;;  %v2080_v35 = vmul.f32 %v8352_v46, %v12537_v16  ;;  %3193 = vperm.xlu1 %5986, %v8770_v50   ;;  %v1930_v41 = vadd.f32 %v1898_v8, %v8537_v23  ;;  %v8806_v13 = vadd.f32 %v2072_v45, %v8655_v60  ;;  %12539 = vst [vmem:[#allocation60_spill] sm:$0xff] %v8814_v32  ;;  %v3006_v16 = vld [vmem:[%s11991_s8 + $0x18] sm:$0xff] }
 0x2db   : > { %12533 = vst [vmem:[#allocation58_spill] sm:$0xff] %v8792_v42  ;;  %3304 = vperm.xlu0 %5987, %v3004_v26   ;;  %v1932_v33 = vadd.f32 %v1900_v0, %v8547_v9  ;;  %v2082_v30 = vmul.f32 %v8352_v46, %v12538_v1  ;;  %v8820_v37 = vadd.f32 %v2074_v62, %v8681_v24  ;;  %v12540_v9 = vld [vmem:[#allocation212_spill] sm:$0xff]  ;;  %v12541_v0 = vld [vmem:[#allocation206_spill] sm:$0xff]  ;;  %v12543_v1 = vld [vmem:[#allocation7_spill] sm:$0xff] }
 0x2dc   : > { %v1934_v23 = vadd.f32 %v1902_v29, %v8575_v49  ;;  %v8823_v60 = vadd.f32 %v2076_v11, %v1912_v52  ;;  %v2073_v8 = vmul.f32 %v8352_v46, %v12540_v9  ;;  %v8827_v45 = vpop.permute.xlu1 %2229  ;;  %v8831_v26 = vmul.f32 %v8352_v46, %v12541_v0  ;;  %v12544_v24 = vld [vmem:[#allocation214_spill] sm:$0xff]  ;;  %v12547_v11 = vld [vmem:[#allocation8_spill] sm:$0xff] }
 0x2dd   : > { %v8833_v47 = vadd.f32 %v2078_v15, %v1914_v20  ;;  %v2075_v58 = vmul.f32 %v8352_v46, %v12543_v1  ;;  %v2086_v62 = vmul.f32 %v8352_v46, %v12544_v24  ;;  %v8839_v49 = vpop.permute.xlu0 %2408  ;;  %v8842_v52 = vadd.f32 %v2070_v57, %v8645_v21  ;;  %v12548_v20 = vld [vmem:[#allocation210_spill] sm:$0xff]  ;;  %v12549_v1 = vld [vmem:[#allocation9_spill] sm:$0xff] }
 0x2de   : > { %12542 = vst [vmem:[#allocation61_spill] sm:$0xff] %v8831_v26  ;;  %12545 = vst [vmem:[#allocation62_spill] sm:$0xff] %v8839_v49  ;;  %v8844_v29 = vadd.f32 %v2080_v35, %v1916_v19  ;;  %v2077_v9 = vmul.f32 %v8352_v46, %v12547_v11  ;;  %3203 = vperm.xlu1 %5986, %v8814_v32   ;;  %v8851_v15 = vmul.f32 %v8352_v46, %v12548_v20  ;;  %v12550_v49 = vld [vmem:[#allocation10_spill] sm:$0xff]  ;;  %v8860_v19 = vld [vmem:[%s11990_s7 + $0xb0] sm:$0xff] }
 0x2df   : > { %12546 = vst [vmem:[#allocation63_spill] sm:$0xff] %v8842_v52  ;;  %3314 = vperm.xlu0 %5987, %v3006_v16   ;;  %v2114_v0 = vadd.f32 %v2082_v30, %v1918_v6  ;;  %v2088_v24 = vmul.f32 %v8352_v46, %v12549_v1  ;;  %v2079_v21 = vmul.f32 %v8352_v46, %v12550_v49  ;;  %v3008_v57 = vld [vmem:[%s11991_s8 + $0x28] sm:$0xff]  ;;  %v12551_v16 = vld [vmem:[#allocation213_spill] sm:$0xff]  ;;  %v12552_v30 = vld [vmem:[#allocation11_spill] sm:$0xff] }
 0x2e0   : > { %v8866_v35 = vadd.f32 %v2073_v8, %v8612_v36  ;;  %v8870_v6 = vmul.f32 %v8352_v46, %v12551_v16  ;;  %v2090_v11 = vmul.f32 %v8352_v46, %v12552_v30  ;;  %v12553_v49 = vld [vmem:[#allocation12_spill] sm:$0xff]  ;;  %v2238_v1 = vpop.permute.xlu1 %2237  ;;  %v8877_v32 = vadd.f32 %v2075_v58, %v8630_v63  ;;  %v12554_v26 = vld [vmem:[#allocation13_spill] sm:$0xff]  ;;  %v12555_v8 = vld [vmem:[#allocation14_spill] sm:$0xff] }
 0x2e1   : > { %v2081_v20 = vmul.f32 %v8352_v46, %v12553_v49  ;;  %v8879_v50 = vadd.f32 %v2086_v62, %v1922_v31  ;;  %v2092_v36 = vmul.f32 %v8352_v46, %v12554_v26  ;;  %v2083_v42 = vmul.f32 %v8352_v46, %v12555_v8  ;;  %v8885_v16 = vpop.permute.xlu0 %2418  ;;  %v12557_v30 = vld [vmem:[#allocation15_spill] sm:$0xff]  ;;  %v12558_v26 = vld [vmem:[#allocation17_spill] sm:$0xff] }
 0x2e2   : > { %12556 = vst [vmem:[#allocation64_spill] sm:$0xff] %v8885_v16  ;;  %v8888_v52 = vadd.f32 %v2077_v9, %v8642_v55  ;;  %v2094_v49 = vmul.f32 %v8352_v46, %v12557_v30  ;;  %v2099_v63 = vmul.f32 %v8352_v46, %v8169_v10  ;;  %3213 = vperm.xlu1 %5986, %v8860_v19   ;;  %v12559_v55 = vld [vmem:[#allocation19_spill] sm:$0xff]  ;;  %v8908_v8 = vld [vmem:[%s11990_s7 + $0xc0] sm:$0xff]  ;;  %v3010_v10 = vld [vmem:[%s11991_s8 + $0x38] sm:$0xff] }
 0x2e3   : > { %3324 = vperm.xlu0 %5987, %v3008_v57   ;;  %v8896_v58 = vadd.f32 %v2088_v24, %v8759_v18  ;;  %v8899_v31 = vadd.f32 %v2079_v21, %v8652_v61  ;;  %v2096_v62 = vmul.f32 %v8352_v46, %v12558_v26  ;;  %v2098_v9 = vmul.f32 %v8352_v46, %v12559_v55 }
 0x2e4   : > { %v8913_v18 = vadd.f32 %v2090_v11, %v1926_v53  ;;  %v2113_v61 = vadd.f32 %v2081_v20, %v8662_v3  ;;  %v2278_v24 = vmul.f32 %v8554_v22, %v8583_v40  ;;  %v2295_v21 = vmul.f32 %v8554_v22, %v8699_v4  ;;  %v2246_v57 = vpop.permute.xlu1 %2245 }
 0x2e5   : > { %v8920_v30 = vadd.f32 %v2092_v36, %v1928_v51  ;;  %v2115_v26 = vadd.f32 %v2083_v42, %v8692_v17  ;;  %v2097_v55 = vmul.f32 %v8352_v46, %v8121_v25  ;;  %v2292_v16 = vmul.f32 %v8554_v22, %v2246_v57  ;;  %v8926_v53 = vpop.permute.xlu0 %2428  ;;  %v8939_v42 = vld [vmem:[%s11990_s7 + $0xd0] sm:$0xff] }
 0x2e6   : > { %v2126_v11 = vadd.f32 %v2094_v49, %v1930_v41  ;;  %v2131_v3 = vadd.f32 %v2099_v63, %v8788_v43  ;;  %v2279_v40 = vmul.f32 %v8554_v22, %v8281_v28  ;;  %3223 = vperm.xlu1 %5986, %v8908_v8   ;;  %v2128_v4 = vadd.f32 %v2096_v62, %v1932_v33  ;;  %v3012_v28 = vld [vmem:[%s11991_s8 + $0x48] sm:$0xff] }
 0x2e7   : > { %3334 = vperm.xlu0 %5987, %v3010_v10   ;;  %v2130_v51 = vadd.f32 %v2098_v9, %v1934_v23  ;;  %v2095_v17 = vmul.f32 %v8352_v46, %v8073_v56  ;;  %v2293_v25 = vmul.f32 %v8554_v22, %v8639_v38  ;;  %v12560_v43 = vld [vmem:[#allocation22_spill] sm:$0xff]  ;;  %v2276_v33 = vmul.f32 %v8554_v22, %v8532_v48  ;;  %v12561_v9 = vld [vmem:[#allocation24_spill] sm:$0xff] }
 0x2e8   : > { %v2091_v41 = vmul.f32 %v8352_v46, %v12560_v43  ;;  %v2310_v23 = vadd.f32 %v2278_v24, %v2114_v0  ;;  %v2254_v56 = vpop.permute.xlu1 %2253  ;;  %v2327_v20 = vadd.f32 %v2295_v21, %v2131_v3  ;;  %v2129_v38 = vadd.f32 %v2097_v55, %v8776_v12  ;;  %v12562_v12 = vld [vmem:[#allocation40_spill] sm:$0xff]  ;;  %v12563_v21 = vld [vmem:[#allocation47_spill] sm:$0xff] }
 0x2e9   : > { %v2290_v36 = vmul.f32 %v8554_v22, %v2238_v1  ;;  %v2324_v49 = vadd.f32 %v2292_v16, %v2128_v4  ;;  %v2294_v63 = vmul.f32 %v8554_v22, %v2254_v56  ;;  %v8951_v62 = vpop.permute.xlu0 %2438  ;;  %v2093_v10 = vmul.f32 %v8352_v46, %v12561_v9  ;;  %v8964_v16 = vld [vmem:[%s11990_s7 + $0xe0] sm:$0xff] }
 0x2ea   : > { %v2277_v57 = vmul.f32 %v8554_v22, %v8237_v2  ;;  %v2311_v43 = vadd.f32 %v2279_v40, %v2115_v26  ;;  %3233 = vperm.xlu1 %5986, %v8939_v42   ;;  %v2127_v48 = vadd.f32 %v2095_v17, %v8752_v39  ;;  %v2291_v0 = vmul.f32 %v8554_v22, %v12562_v12  ;;  %v3014_v2 = vld [vmem:[%s11991_s8 + $0x58] sm:$0xff] }
 0x2eb   : > { %3344 = vperm.xlu0 %5987, %v3012_v28   ;;  %v2325_v1 = vadd.f32 %v2293_v25, %v2129_v38  ;;  %v2326_v24 = vadd.f32 %v2294_v63, %v2130_v51  ;;  %v2274_v26 = vmul.f32 %v8554_v22, %v12563_v21  ;;  %v2308_v55 = vadd.f32 %v2276_v33, %v8844_v29  ;;  %v12564_v38 = vld [vmem:[#allocation28_spill] sm:$0xff] }
 0x2ec   : > { %v2359_v39 = vmax.f32 %v2327_v20, 0.0  ;;  %v2342_v3 = vmax.f32 %v2310_v23, 0.0  ;;  %v2288_v40 = vmul.f32 %v8554_v22, %v8827_v45  ;;  %v2322_v4 = vadd.f32 %v2290_v36, %v2126_v11  ;;  %v12565_v33 = vld [vmem:[#allocation48_spill] sm:$0xff]  ;;  %v8987_v36 = vld [vmem:[%s11990_s7 + $0xf0] sm:$0xff] }
 0x2ed   : > { %v2356_v17 = vmax.f32 %v2324_v49, 0.0  ;;  %v8974_v25 = vpop.permute.xlu1 %2378  ;;  %v2358_v28 = vmax.f32 %v2326_v24, 0.0  ;;  %v8976_v51 = vpop.permute.xlu0 %2448  ;;  %v2125_v56 = vadd.f32 %v2093_v10, %v8742_v54  ;;  %v2275_v63 = vmul.f32 %v8554_v22, %v12564_v38  ;;  %v12566_v54 = vld [vmem:[#allocation36_spill] sm:$0xff]  ;;  %v12570_v38 = vld [vmem:[#allocation33_spill] sm:$0xff] }
 0x2ee   : > { %v2309_v9 = vadd.f32 %v2277_v57, %v2113_v61  ;;  %3243 = vperm.xlu1 %5986, %v8964_v16   ;;  %v2343_v29 = vmax.f32 %v2311_v43, 0.0  ;;  %v2289_v45 = vmul.f32 %v8554_v22, %v12565_v33  ;;  %v2323_v11 = vadd.f32 %v2291_v0, %v2127_v48  ;;  %v3016_v43 = vld [vmem:[%s11991_s8 + $0x68] sm:$0xff]  ;;  %v12567_v21 = vld [vmem:[#allocation20_spill] sm:$0xff] }
 0x2ef   : > { %3354 = vperm.xlu0 %5987, %v3014_v2   ;;  %v2357_v23 = vmax.f32 %v2325_v1, 0.0  ;;  %v2375_v20 = vpack.c.bf16 %v2359_v39, %v2358_v28  ;;  %v2272_v49 = vmul.f32 %v8554_v22, %v12566_v54  ;;  %v2306_v61 = vadd.f32 %v2274_v26, %v8833_v47  ;;  %v12568_v26 = vld [vmem:[#allocation27_spill] sm:$0xff]  ;;  %v3003_v28 = vld [vmem:[%s11991_s8] sm:$0xff]  ;;  %v12572_v54 = vld [vmem:[#allocation26_spill] sm:$0xff] }
 0x2f0   : > { %v2340_v10 = vmax.f32 %v2308_v55, 0.0  ;;  %v2367_v57 = vpack.c.bf16 %v2343_v29, %v2342_v3  ;;  %v2286_v48 = vmul.f32 %v8554_v22, %v8784_v5  ;;  %v2320_v12 = vadd.f32 %v2288_v40, %v8920_v30  ;;  %v12569_v30 = vld [vmem:[#allocation38_spill] sm:$0xff] }
 0x2f1   : > { %v2354_v0 = vmax.f32 %v2322_v4, 0.0  ;;  %v8998_v1 = vpop.permute.xlu1 %2388  ;;  %5651 = vmatprep.subr.bf16.mxu0 %v2375_v20  ;;  %v2374_v24 = vpack.c.bf16 %v2357_v23, %v2356_v17  ;;  %v9000_v2 = vpop.permute.xlu0 %2458  ;;  %v2089_v47 = vmul.f32 %v8352_v46, %v12567_v21  ;;  %v2273_v55 = vmul.f32 %v8554_v22, %v12568_v26  ;;  %v12571_v20 = vld [vmem:[#allocation18_spill] sm:$0xff] }
 0x2f2   : > { %v2307_v39 = vadd.f32 %v2275_v63, %v8899_v31  ;;  %v2341_v3 = vmax.f32 %v2309_v9, 0.0  ;;  %3253 = vperm.xlu1 %5986, %v8987_v36   ;;  %5652 = vmatpush3.bf16.msra.mxu0 %v2367_v57  ;;  %v2123_v5 = vadd.f32 %v2091_v41, %v8732_v7  ;;  %v2287_v40 = vmul.f32 %v8554_v22, %v12569_v30  ;;  %v3018_v7 = vld [vmem:[%s11991_s8 + $0x78] sm:$0xff] }
 0x2f3   : > { %v2321_v4 = vadd.f32 %v2289_v45, %v2125_v56  ;;  %v2355_v17 = vmax.f32 %v2323_v11, 0.0  ;;  %5653 = vmatprep.subr.bf16.mxu0 %v2374_v24  ;;  %3364 = vperm.xlu0 %5987, %v3016_v43   ;;  %v2270_v31 = vmul.f32 %v8554_v22, %v12570_v38  ;;  %v2304_v63 = vadd.f32 %v2272_v49, %v8823_v60 }
 0x2f4   : > { %v2338_v9 = vmax.f32 %v2306_v61, 0.0  ;;  %v2366_v29 = vpack.c.bf16 %v2341_v3, %v2340_v10  ;;  %v2284_v41 = vmul.f32 %v8554_v22, %v8736_v34  ;;  %v2318_v56 = vadd.f32 %v2286_v48, %v8913_v18  ;;  %v12573_v18 = vld [vmem:[#allocation37_spill] sm:$0xff] }
 0x2f5   : > { %v2352_v33 = vmax.f32 %v2320_v12, 0.0  ;;  %v9023_v45 = vpop.permute.xlu1 %2393  ;;  %v2373_v11 = vpack.c.bf16 %v2355_v17, %v2354_v0  ;;  %v9025_v23 = vpop.permute.xlu0 %2468  ;;  %v2087_v60 = vmul.f32 %v8352_v46, %v12571_v20  ;;  %v2271_v49 = vmul.f32 %v8554_v22, %v12572_v54  ;;  %v3005_v12 = vld [vmem:[%s11991_s8 + $0x10] sm:$0xff] }
 0x2f6   : > { %v2305_v61 = vadd.f32 %v2273_v55, %v8888_v52  ;;  %v2339_v10 = vmax.f32 %v2307_v39, 0.0  ;;  %3299 = vperm.xlu1 %5986, %v3003_v28   ;;  %5654 = vmatpush3.bf16.msra.mxu0 %v2366_v29  ;;  %v2121_v34 = vadd.f32 %v2089_v47, %v8728_v44  ;;  %v2285_v57 = vmul.f32 %v8554_v22, %v12573_v18  ;;  %v12574_v0 = vld [vmem:[#allocation31_spill] sm:$0xff]  ;;  %v3020_v44 = vld [vmem:[%s11991_s8 + $0x88] sm:$0xff] }
 0x2f7   : > { %v2319_v43 = vadd.f32 %v2287_v40, %v2123_v5  ;;  %v2353_v48 = vmax.f32 %v2321_v4, 0.0  ;;  %5655 = vmatprep.subr.bf16.mxu0 %v2373_v11  ;;  %3374 = vperm.xlu0 %5987, %v3018_v7   ;;  %v2268_v24 = vmul.f32 %v8554_v22, %v12574_v0  ;;  %v2302_v52 = vadd.f32 %v2270_v31, %v8820_v37  ;;  %v12576_v40 = vld [vmem:[#allocation16_spill] sm:$0xff]  ;;  %v12577_v4 = vld [vmem:[#allocation25_spill] sm:$0xff]  ;;  %v12579_v29 = vld [vmem:[#allocation30_spill] sm:$0xff] }
 0x2f8   : > { %v2336_v21 = vmax.f32 %v2304_v63, 0.0  ;;  %v2365_v26 = vpack.c.bf16 %v2339_v10, %v2338_v9  ;;  %v2282_v47 = vmul.f32 %v8554_v22, %v8689_v59  ;;  %v2316_v55 = vadd.f32 %v2284_v41, %v8896_v58  ;;  %v12578_v58 = vld [vmem:[#allocation34_spill] sm:$0xff]  ;;  %v12581_v10 = vld [vmem:[#allocation23_spill] sm:$0xff] }
 0x2f9   : > { %v2350_v39 = vmax.f32 %v2318_v56, 0.0  ;;  %v9047_v3 = vpop.permute.xlu1 %2403  ;;  %v2372_v5 = vpack.c.bf16 %v2353_v48, %v2352_v33  ;;  %v9049_v30 = vpop.permute.xlu0 %2478  ;;  %v2085_v37 = vmul.f32 %v8352_v46, %v12576_v40  ;;  %v2269_v17 = vmul.f32 %v8554_v22, %v12577_v4  ;;  %v3007_v46 = vld [vmem:[%s11991_s8 + $0x20] sm:$0xff] }
 0x2fa   : > { %12575 = vst [vmem:[#allocation65_spill] sm:$0xff] %v9049_v30  ;;  %v2303_v28 = vadd.f32 %v2271_v49, %v8877_v32  ;;  %v2337_v38 = vmax.f32 %v2305_v61, 0.0  ;;  %3309 = vperm.xlu1 %5986, %v3005_v12   ;;  %5656 = vmatpush3.bf16.msra.mxu0 %v2365_v26  ;;  %v2119_v59 = vadd.f32 %v2087_v60, %v8712_v14  ;;  %v2351_v9 = vmax.f32 %v2319_v43, 0.0  ;;  %v3022_v14 = vld [vmem:[%s11991_s8 + $0x98] sm:$0xff]  ;;  %v12580_v61 = vld [vmem:[#allocation42_spill] sm:$0xff] }
 0x2fb   : > { %v2283_v31 = vmul.f32 %v8554_v22, %v12578_v58  ;;  %v2317_v63 = vadd.f32 %v2285_v57, %v2121_v34  ;;  %5657 = vmatprep.subr.bf16.mxu0 %v2372_v5  ;;  %3384 = vperm.xlu0 %5987, %v3020_v44   ;;  %v2266_v7 = vmul.f32 %v8554_v22, %v12579_v29  ;;  %v2334_v41 = vmax.f32 %v2302_v52, 0.0  ;;  %v12583_v43 = vld [vmem:[#allocation32_spill] sm:$0xff]  ;;  %v12585_v52 = vld [vmem:[#allocation63_spill] sm:$0xff]  ;;  %v12589_v58 = vld [vmem:[#allocation21_spill] sm:$0xff] }
 0x2fc   : > { %v2300_v32 = vadd.f32 %v2268_v24, %v8806_v13  ;;  %v2364_v56 = vpack.c.bf16 %v2337_v38, %v2336_v21  ;;  %v2280_v33 = vmul.f32 %v8554_v22, %v8637_v27  ;;  %v2314_v11 = vadd.f32 %v2282_v47, %v8879_v50  ;;  %v12582_v27 = vld [vmem:[#allocation55_spill] sm:$0xff]  ;;  %v12584_v24 = vld [vmem:[#allocation29_spill] sm:$0xff]  ;;  %v12586_v47 = vld [vmem:[#allocation52_spill] sm:$0xff] }
 0x2fd   : > { %v2348_v20 = vmax.f32 %v2316_v55, 0.0  ;;  %v9071_v60 = vpop.permute.xlu1 %2413  ;;  %v2371_v54 = vpack.c.bf16 %v2351_v9, %v2350_v39  ;;  %v9073_v49 = vpop.permute.xlu0 %2488  ;;  %v2103_v13 = vadd.f32 %v8851_v15, %v12580_v61  ;;  %v2267_v34 = vmul.f32 %v8554_v22, %v12581_v10  ;;  %v3009_v15 = vld [vmem:[%s11991_s8 + $0x30] sm:$0xff]  ;;  %v12588_v38 = vld [vmem:[#allocation58_spill] sm:$0xff] }
 0x2fe   : > { %v2301_v18 = vadd.f32 %v2269_v17, %v8866_v35  ;;  %v2335_v57 = vmax.f32 %v2303_v28, 0.0  ;;  %3319 = vperm.xlu1 %5986, %v3007_v46   ;;  %5658 = vmatpush3.bf16.msra.mxu0 %v2364_v56  ;;  %v2116_v50 = vadd.f32 %v8870_v6, %v12582_v27  ;;  %v2281_v48 = vmul.f32 %v8554_v22, %v12583_v43  ;;  %v3024_v6 = vld [vmem:[%s11991_s8 + $0xa8] sm:$0xff]  ;;  %v12587_v28 = vld [vmem:[#allocation45_spill] sm:$0xff] }
 0x2ff   : > { %v2315_v12 = vadd.f32 %v2283_v31, %v2119_v59  ;;  %v2349_v0 = vmax.f32 %v2317_v63, 0.0  ;;  %5659 = vmatprep.subr.bf16.mxu0 %v2371_v54  ;;  %3394 = vperm.xlu0 %5987, %v3022_v14   ;;  %v2265_v35 = vmul.f32 %v8554_v22, %v12584_v24  ;;  %v2298_v21 = vadd.f32 %v2266_v7, %v12585_v52  ;;  %v12590_v7 = vld [vmem:[#allocation41_spill] sm:$0xff] }
 0x300   : > { %v2332_v26 = vmax.f32 %v2300_v32, 0.0  ;;  %v2363_v44 = vpack.c.bf16 %v2335_v57, %v2334_v41  ;;  %v2117_v55 = vadd.f32 %v2085_v37, %v12586_v47  ;;  %v2312_v39 = vadd.f32 %v2280_v33, %v2116_v50  ;;  %v3011_v37 = vld [vmem:[%s11991_s8 + $0x40] sm:$0xff]  ;;  %v3028_v50 = vld [vmem:[%s11991_s8 + $0xc8] sm:$0xff] }
 0x301   : > { %v2346_v5 = vmax.f32 %v2314_v11, 0.0  ;;  %v9094_v40 = vpop.permute.xlu1 %2423  ;;  %v2370_v4 = vpack.c.bf16 %v2349_v0, %v2348_v20  ;;  %v9096_v17 = vpop.permute.xlu0 %2498  ;;  %v2101_v59 = vadd.f32 %v12588_v38, %v12587_v28  ;;  %v2264_v31 = vmul.f32 %v8554_v22, %v12589_v58  ;;  %v12591_v32 = vld [vmem:[#allocation61_spill] sm:$0xff]  ;;  %v3026_v22 = vld [vmem:[%s11991_s8 + $0xb8] sm:$0xff]  ;;  %v3032_v47 = vld [vmem:[%s11991_s8 + $0xe8] sm:$0xff] }
 0x302   : > { %v2299_v63 = vadd.f32 %v2267_v34, %v2103_v13  ;;  %v2333_v9 = vmax.f32 %v2301_v18, 0.0  ;;  %3329 = vperm.xlu1 %5986, %v3009_v15   ;;  %5660 = vmatpush3.bf16.msra.mxu0 %v2363_v44  ;;  %v2313_v46 = vadd.f32 %v2281_v48, %v2117_v55  ;;  %v2347_v29 = vmax.f32 %v2315_v12, 0.0  ;;  %v3013_v18 = vld [vmem:[%s11991_s8 + $0x50] sm:$0xff]  ;;  %v3015_v15 = vld [vmem:[%s11991_s8 + $0x60] sm:$0xff] }
 0x303   : > { %5661 = vmatprep.subr.bf16.mxu0 %v2370_v4  ;;  %3404 = vperm.xlu0 %5987, %v3024_v6   ;;  %v2100_v41 = vadd.f32 %v12591_v32, %v12590_v7  ;;  %v2297_v56 = vadd.f32 %v2265_v35, %v2101_v59  ;;  %v2330_v14 = vmax.f32 %v2298_v21, 0.0  ;;  %v2344_v11 = vmax.f32 %v2312_v39, 0.0  ;;  %v3030_v35 = vld [vmem:[%s11991_s8 + $0xd8] sm:$0xff]  ;;  %v6065_v21 = vld [vmem:[%s11986_s3] ss:$8 sps:$4 sm:$0xff]   ;;  %v3017_v6 = vld [vmem:[%s11991_s8 + $0x70] sm:$0xff] }
 0x304   : > { %v2362_v33 = vpack.c.bf16 %v2333_v9, %v2332_v26  ;;  %v2369_v54 = vpack.c.bf16 %v2347_v29, %v2346_v5  ;;  %v2331_v10 = vmax.f32 %v2299_v63, 0.0  ;;  %v2345_v34 = vmax.f32 %v2313_v46, 0.0  ;;  %v6068_v44 = vld [vmem:[%s11986_s3 + $0x14] ss:$8 sps:$4 sm:$0xff]   ;;  %v3019_v5 = vld [vmem:[%s11991_s8 + $0x80] sm:$0xff] }
 0x305   : > { %v9110_v20 = vpop.permute.xlu1 %2433  ;;  %v9112_v61 = vpop.permute.xlu0 %2508  ;;  %v2296_v13 = vadd.f32 %v2264_v31, %v2100_v41  ;;  %v2329_v57 = vmax.f32 %v2297_v56, 0.0  ;;  %v3034_v4 = vld [vmem:[%s11991_s8 + $0xf8] sm:$0xff]  ;;  %v6071_v58 = vld [vmem:[%s11986_s3 + $0x24] ss:$8 sps:$4 sm:$0xff]   ;;  %v3021_v31 = vld [vmem:[%s11991_s8 + $0x90] sm:$0xff]  ;;  %v12595_v29 = vmov 1  }
 0x306   : > { %3339 = vperm.xlu1 %5986, %v3011_v37   ;;  %5662 = vmatpush3.bf16.msra.mxu0 %v2362_v33  ;;  %v2361_v27 = vpack.c.bf16 %v2331_v10, %v2330_v14  ;;  %v2368_v48 = vpack.c.bf16 %v2345_v34, %v2344_v11  ;;  %v6070_v38 = vld [vmem:[%s11986_s3 + $0x10] ss:$8 sps:$4 sm:$0xff]   ;;  %v3023_v46 = vld [vmem:[%s11991_s8 + $0xa0] sm:$0xff]  ;;  %v9180_v37 = vld [vmem:[%s11990_s7 + $0x8] sm:$0xff] }
 0x307   : > { %5663 = vmatprep.subr.bf16.mxu0 %v2369_v54  ;;  %3414 = vperm.xlu0 %5987, %v3026_v22   ;;  %v2328_v0 = vmax.f32 %v2296_v13, 0.0  ;;  %v6073_v32 = vld [vmem:[%s11986_s3 + $0x20] ss:$8 sps:$4 sm:$0xff]   ;;  %v6074_v56 = vld [vmem:[%s11986_s3 + $0x34] ss:$8 sps:$4 sm:$0xff]  }
 0x308   : > { %v3025_v14 = vld [vmem:[%s11991_s8 + $0xb0] sm:$0xff]  ;;  %v3027_v54 = vld [vmem:[%s11991_s8 + $0xc0] sm:$0xff]  ;;  %v12599_v13 = vld [vmem:[#allocation46_spill] sm:$0xff] }
 0x309   : > { %v9120_v43 = vpop.permute.xlu1 %2443  ;;  %v2360_v24 = vpack.c.bf16 %v2329_v57, %v2328_v0  ;;  %v12597_v33 = vld [vmem:[#allocation35_spill] sm:$0xff]  ;;  %v6077_v57 = vld [vmem:[%s11986_s3 + $0x44] ss:$8 sps:$4 sm:$0xff]  }
 0x30a   : > { %v9122_v12 = vpop.permute.xlu0 %2518  ;;  %3349 = vperm.xlu1 %5986, %v3013_v18   ;;  %5664 = vmatpush3.bf16.msra.mxu0 %v2361_v27  ;;  %v6076_v34 = vld [vmem:[%s11986_s3 + $0x30] ss:$8 sps:$4 sm:$0xff]  }
 0x30b   : > { %5665 = vmatprep.subr.bf16.mxu0 %v2368_v48  ;;  %3424 = vperm.xlu0 %5987, %v3028_v50   ;;  %v3029_v27 = vld [vmem:[%s11991_s8 + $0xd0] sm:$0xff] }
 0x30c   : > { %v12601_v50 = vld [vmem:[#allocation39_spill] sm:$0xff] }
 0x30d   : > { %v9130_v52 = vpop.permute.xlu1 %2453 }
 0x30e   : > { %v9135_v26 = vpop.permute.xlu0 %2528  ;;  %3359 = vperm.xlu1 %5986, %v3015_v15   ;;  %5666 = vmatpush3.bf16.msra.mxu0 %v2360_v24  ;;  %v3031_v15 = vld [vmem:[%s11991_s8 + $0xe0] sm:$0xff] }
 0x30f   : > { %3434 = vperm.xlu0 %5987, %v3030_v35   ;;  %v12603_v24 = vld [vmem:[#allocation49_spill] sm:$0xff] }
 0x311   : > { %v9146_v55 = vpop.permute.xlu1 %2463  ;;  %2729 = vmatmul.mubr.bf16.vlgmr.msra.gmra.mxu0 %v6065_v21  ;;  %v6079_v21 = vld [vmem:[%s11986_s3 + $0x40] ss:$8 sps:$4 sm:$0xff]  }
 0x312   : > { %v9148_v39 = vpop.permute.xlu0 %2907  ;;  %3369 = vperm.xlu1 %5986, %v3017_v6   ;;  %2736 = vmatprep.mubr.bf16.mxu0 %v6068_v44  ;;  %v6080_v6 = vld [vmem:[%s11986_s3 + $0x54] ss:$8 sps:$4 sm:$0xff]  }
 0x313   : > { %12592 = vst [vmem:[#allocation66_spill] sm:$0xff] %v9148_v39  ;;  %3444 = vperm.xlu0 %5987, %v3032_v47   ;;  %v3033_v47 = vld [vmem:[%s11991_s8 + $0xf0] sm:$0xff]  ;;  %v9585_v39 = vld [vmem:[%s11990_s7 + $0x80] sm:$0xff] }
 0x314   : > { %12671 = vst [vmem:[#allocation130_spill] sm:$0xff] %v9585_v39 }
 0x315   : > { %v9156_v28 = vpop.permute.xlu1 %2473 }
 0x316   : > { %v9161_v59 = vpop.permute.xlu0 %3108  ;;  %3379 = vperm.xlu1 %5986, %v3019_v5   ;;  %v12605_v5 = vld [vmem:[#allocation43_spill] sm:$0xff] }
 0x317   : > { %12593 = vst [vmem:[#allocation67_spill] sm:$0xff] %v9161_v59  ;;  %3454 = vperm.xlu0 %5987, %v3034_v4  }
 0x319   : > { %v9169_v63 = vpop.permute.xlu1 %2483  ;;  %2737 = vmatmul.mubr.bf16.gmra.mxu0 %v6070_v38 }
 0x31a   : > { %v9171_v9 = vpop.permute.xlu0 %3118  ;;  %3389 = vperm.xlu1 %5986, %v3021_v31   ;;  %2744 = vmatprep.mubr.bf16.mxu0 %v6071_v58  ;;  %v12608_v58 = vld [vmem:[#allocation50_spill] sm:$0xff] }
 0x31b   : > { %12594 = vst [vmem:[#allocation68_spill] sm:$0xff] %v9171_v9  ;;  %5989 = vset.pattern.permute.xlu0 %v12595_v29  ;;  %v6106_v9 = vld [vmem:[%s11986_s3 + $0xd0] ss:$8 sps:$4 sm:$0xff]  }
 0x31c   : > { %3494 = vperm.xlu0 %5989, %v9180_v37  }
 0x31d   : > { %v9183_v7 = vpop.permute.xlu1 %2493 }
 0x31e   : > { %v9188_v41 = vpop.permute.xlu0 %3128  ;;  %3399 = vperm.xlu1 %5986, %v3023_v46   ;;  %v6082_v46 = vld [vmem:[%s11986_s3 + $0x50] ss:$8 sps:$4 sm:$0xff]  }
 0x31f   : > { %12596 = vst [vmem:[#allocation69_spill] sm:$0xff] %v9188_v41  ;;  %v12647_v41 = vld [vmem:[#allocation51_spill] sm:$0xff] }
 0x320   : > { %3506 = vperm.xlu0 %5989, %v12597_v33   ;;  %v12611_v33 = vld [vmem:[#allocation53_spill] sm:$0xff] }
 0x321   : > { %v9197_v22 = vpop.permute.xlu1 %2503  ;;  %2745 = vmatmul.mubr.bf16.gmra.mxu0 %v6073_v32 }
 0x322   : > { %v9199_v11 = vpop.permute.xlu0 %3138  ;;  %3409 = vperm.xlu1 %5986, %v3025_v14   ;;  %2752 = vmatprep.mubr.bf16.mxu0 %v6074_v56  ;;  %v6083_v56 = vld [vmem:[%s11986_s3 + $0x64] ss:$8 sps:$4 sm:$0xff]  }
 0x323   : > { %12598 = vst [vmem:[#allocation70_spill] sm:$0xff] %v9199_v11  ;;  %v9260_v14 = vld [vmem:[%s11990_s7] sm:$0xff] }
 0x324   : > { %3514 = vperm.xlu0 %5989, %v12599_v13  }
 0x325   : > { %v9205_v10 = vpop.permute.xlu1 %2513 }
 0x326   : > { %v9210_v18 = vpop.permute.xlu0 %3148  ;;  %3419 = vperm.xlu1 %5986, %v3027_v54  }
 0x327   : > { %12600 = vst [vmem:[#allocation71_spill] sm:$0xff] %v9210_v18 }
 0x328   : > { %3522 = vperm.xlu0 %5989, %v12601_v50  }
 0x329   : > { %v9219_v48 = vpop.permute.xlu1 %2523  ;;  %2753 = vmatmul.mubr.bf16.gmra.mxu0 %v6076_v34  ;;  %v12614_v34 = vld [vmem:[#allocation57_spill] sm:$0xff] }
 0x32a   : > { %v9221_v0 = vpop.permute.xlu0 %3158  ;;  %3429 = vperm.xlu1 %5986, %v3029_v27   ;;  %2760 = vmatprep.mubr.bf16.mxu0 %v6077_v57  ;;  %v6085_v27 = vld [vmem:[%s11986_s3 + $0x60] ss:$8 sps:$4 sm:$0xff]  }
 0x32b   : > { %12602 = vst [vmem:[#allocation72_spill] sm:$0xff] %v9221_v0 }
 0x32c   : > { %3530 = vperm.xlu0 %5989, %v12603_v24   ;;  %v9288_v24 = vld [vmem:[%s11990_s7 + $0x18] sm:$0xff] }
 0x32d   : > { %v9227_v35 = vpop.permute.xlu1 %2533 }
 0x32e   : > { %v9232_v44 = vpop.permute.xlu0 %3168  ;;  %3439 = vperm.xlu1 %5986, %v3031_v15   ;;  %v6086_v15 = vld [vmem:[%s11986_s3 + $0x74] ss:$8 sps:$4 sm:$0xff]  }
 0x32f   : > { %12604 = vst [vmem:[#allocation73_spill] sm:$0xff] %v9232_v44  ;;  %v6094_v44 = vld [vmem:[%s11986_s3 + $0x90] ss:$8 sps:$4 sm:$0xff]  }
 0x330   : > { %3538 = vperm.xlu0 %5989, %v12605_v5   ;;  %v9299_v5 = vld [vmem:[%s11990_s7 + $0x28] sm:$0xff] }
 0x331   : > { %v9241_v4 = vpop.permute.xlu1 %3103  ;;  %2761 = vmatmul.mubr.bf16.gmra.mxu0 %v6079_v21  ;;  %v12617_v21 = vld [vmem:[#allocation60_spill] sm:$0xff] }
 0x332   : > { %12606 = vst [vmem:[#allocation74_spill] sm:$0xff] %v9241_v4  ;;  %v9243_v38 = vpop.permute.xlu0 %3178  ;;  %3449 = vperm.xlu1 %5986, %v3033_v47   ;;  %2768 = vmatprep.mubr.bf16.mxu0 %v6080_v6  ;;  %v12669_v4 = vmov 3  }
 0x333   : > { %12607 = vst [vmem:[#allocation75_spill] sm:$0xff] %v9243_v38 }
 0x334   : > { %3546 = vperm.xlu0 %5989, %v12608_v58  }
 0x335   : > { %v9246_v31 = vpop.permute.xlu1 %3113 }
 0x336   : > { %12609 = vst [vmem:[#allocation76_spill] sm:$0xff] %v9246_v31  ;;  %v9251_v32 = vpop.permute.xlu0 %3188  ;;  %5988 = vset.pattern.permute.xlu1 %v12595_v29  ;;  %v9271_v29 = vld [vmem:[%s11990_s7 + $0x10] sm:$0xff] }
 0x337   : > { %12610 = vst [vmem:[#allocation77_spill] sm:$0xff] %v9251_v32  ;;  %3490 = vperm.xlu1 %5988, %v9260_v14  }
 0x338   : > { %3554 = vperm.xlu0 %5989, %v12611_v33   ;;  %v6089_v33 = vld [vmem:[%s11986_s3 + $0x84] ss:$8 sps:$4 sm:$0xff]  }
 0x339   : > { %v9264_v54 = vpop.permute.xlu1 %3123  ;;  %2769 = vmatmul.mubr.bf16.gmra.mxu0 %v6082_v46  ;;  %v6088_v46 = vld [vmem:[%s11986_s3 + $0x70] ss:$8 sps:$4 sm:$0xff]  }
 0x33a   : > { %12612 = vst [vmem:[#allocation78_spill] sm:$0xff] %v9264_v54  ;;  %v9266_v13 = vpop.permute.xlu0 %3198  ;;  %2776 = vmatprep.mubr.bf16.mxu0 %v6083_v56 }
 0x33b   : > { %12613 = vst [vmem:[#allocation79_spill] sm:$0xff] %v9266_v13  ;;  %3498 = vperm.xlu1 %5988, %v9271_v29   ;;  %v6091_v13 = vld [vmem:[%s11986_s3 + $0x80] ss:$8 sps:$4 sm:$0xff]  }
 0x33c   : > { %3562 = vperm.xlu0 %5989, %v12614_v34  }
 0x33d   : > { %v9275_v57 = vpop.permute.xlu1 %3133 }
 0x33e   : > { %12615 = vst [vmem:[#allocation80_spill] sm:$0xff] %v9275_v57  ;;  %v9280_v50 = vpop.permute.xlu0 %3208  ;;  %v6103_v57 = vld [vmem:[%s11986_s3 + $0xc0] ss:$8 sps:$4 sm:$0xff]  }
 0x33f   : > { %12616 = vst [vmem:[#allocation81_spill] sm:$0xff] %v9280_v50  ;;  %3502 = vperm.xlu1 %5988, %v9288_v24  }
 0x340   : > { %3570 = vperm.xlu0 %5989, %v12617_v21  }
 0x341   : > { %v9292_v6 = vpop.permute.xlu1 %3143  ;;  %2777 = vmatmul.mubr.bf16.gmra.mxu0 %v6085_v27  ;;  %v9316_v27 = vld [vmem:[%s11990_s7 + $0x38] sm:$0xff] }
 0x342   : > { %12618 = vst [vmem:[#allocation82_spill] sm:$0xff] %v9292_v6  ;;  %v9294_v47 = vpop.permute.xlu0 %3218  ;;  %2784 = vmatprep.mubr.bf16.mxu0 %v6086_v15  ;;  %v6100_v6 = vld [vmem:[%s11986_s3 + $0xb0] ss:$8 sps:$4 sm:$0xff]  }
 0x343   : > { %12619 = vst [vmem:[#allocation83_spill] sm:$0xff] %v9294_v47  ;;  %3510 = vperm.xlu1 %5988, %v9299_v5  }
 0x344   : > { %3578 = vperm.xlu0 %5989, %v8860_v19  }
 0x345   : > { %v9303_v58 = vpop.permute.xlu1 %3153 }
 0x346   : > { %12620 = vst [vmem:[#allocation84_spill] sm:$0xff] %v9303_v58  ;;  %v9308_v56 = vpop.permute.xlu0 %3228  ;;  %v6097_v58 = vld [vmem:[%s11986_s3 + $0xa0] ss:$8 sps:$4 sm:$0xff]  }
 0x347   : > { %12621 = vst [vmem:[#allocation85_spill] sm:$0xff] %v9308_v56  ;;  %3518 = vperm.xlu1 %5988, %v9316_v27   ;;  %v9327_v56 = vld [vmem:[%s11990_s7 + $0x48] sm:$0xff] }
 0x348   : > { %3586 = vperm.xlu0 %5989, %v8908_v8  }
 0x349   : > { %v9320_v15 = vpop.permute.xlu1 %3163  ;;  %2785 = vmatmul.mubr.bf16.gmra.mxu0 %v6088_v46  ;;  %v6092_v46 = vld [vmem:[%s11986_s3 + $0x94] ss:$8 sps:$4 sm:$0xff]  }
 0x34a   : > { %12622 = vst [vmem:[#allocation86_spill] sm:$0xff] %v9320_v15  ;;  %v9322_v47 = vpop.permute.xlu0 %3238  ;;  %2792 = vmatprep.mubr.bf16.mxu0 %v6089_v33  ;;  %v9344_v33 = vld [vmem:[%s11990_s7 + $0x58] sm:$0xff] }
 0x34b   : > { %12623 = vst [vmem:[#allocation87_spill] sm:$0xff] %v9322_v47  ;;  %3526 = vperm.xlu1 %5988, %v9327_v56  }
 0x34c   : > { %3594 = vperm.xlu0 %5989, %v8939_v42  }
 0x34d   : > { %v9331_v50 = vpop.permute.xlu1 %3173 }
 0x34e   : > { %12624 = vst [vmem:[#allocation88_spill] sm:$0xff] %v9331_v50  ;;  %v9336_v32 = vpop.permute.xlu0 %3248 }
 0x34f   : > { %12625 = vst [vmem:[#allocation89_spill] sm:$0xff] %v9336_v32  ;;  %3534 = vperm.xlu1 %5988, %v9344_v33   ;;  %v9355_v32 = vld [vmem:[%s11990_s7 + $0x68] sm:$0xff] }
 0x350   : > { %3602 = vperm.xlu0 %5989, %v8964_v16  }
 0x351   : > { %v9348_v47 = vpop.permute.xlu1 %3183  ;;  %2793 = vmatmul.mubr.bf16.gmra.mxu0 %v6091_v13  ;;  %v6095_v13 = vld [vmem:[%s11986_s3 + $0xa4] ss:$8 sps:$4 sm:$0xff]  }
 0x352   : > { %12626 = vst [vmem:[#allocation90_spill] sm:$0xff] %v9348_v47  ;;  %v9350_v38 = vpop.permute.xlu0 %3258  ;;  %2800 = vmatprep.mubr.bf16.mxu0 %v6092_v46  ;;  %v9372_v46 = vld [vmem:[%s11990_s7 + $0x78] sm:$0xff] }
 0x353   : > { %12627 = vst [vmem:[#allocation91_spill] sm:$0xff] %v9350_v38  ;;  %3542 = vperm.xlu1 %5988, %v9355_v32   ;;  %v12630_v38 = vmov 2  }
 0x354   : > { %3610 = vperm.xlu0 %5989, %v8987_v36  }
 0x355   : > { %v9359_v50 = vpop.permute.xlu1 %3193 }
 0x356   : > { %12628 = vst [vmem:[#allocation92_spill] sm:$0xff] %v9359_v50  ;;  %v9364_v47 = vpop.permute.xlu0 %3304 }
 0x357   : > { %12629 = vst [vmem:[#allocation93_spill] sm:$0xff] %v9364_v47  ;;  %3550 = vperm.xlu1 %5988, %v9372_v46   ;;  %v9384_v47 = vld [vmem:[%s11990_s7 + $0x88] sm:$0xff] }
 0x358   : > { %5990 = vset.pattern.permute.xlu0 %v12630_v38  ;;  %12633 = vst [vmem:[#allocation96_spill] sm:$0xff] %v9384_v47 }
 0x359   : > { %v9376_v50 = vpop.permute.xlu1 %3203  ;;  %2801 = vmatmul.mubr.bf16.gmra.mxu0 %v6094_v44  ;;  %3686 = vperm.xlu0 %5990, %v9260_v14   ;;  %v6098_v44 = vld [vmem:[%s11986_s3 + $0xb4] ss:$8 sps:$4 sm:$0xff]  }
 0x35a   : > { %12631 = vst [vmem:[#allocation94_spill] sm:$0xff] %v9376_v50  ;;  %v9378_v15 = vpop.permute.xlu0 %3314  ;;  %2808 = vmatprep.mubr.bf16.mxu0 %v6095_v13  ;;  %v9401_v13 = vld [vmem:[%s11990_s7 + $0x98] sm:$0xff] }
 0x35b   : > { %12632 = vst [vmem:[#allocation95_spill] sm:$0xff] %v9378_v15  ;;  %3558 = vperm.xlu1 %5988, %v9384_v47  }
 0x35d   : > { %v9387_v0 = vpop.permute.xlu1 %3213  ;;  %3698 = vperm.xlu0 %5990, %v9288_v24  }
 0x35e   : > { %12634 = vst [vmem:[#allocation97_spill] sm:$0xff] %v9387_v0  ;;  %v9392_v50 = vpop.permute.xlu0 %3324 }
 0x35f   : > { %12635 = vst [vmem:[#allocation98_spill] sm:$0xff] %v9392_v50  ;;  %3566 = vperm.xlu1 %5988, %v9401_v13   ;;  %v9412_v50 = vld [vmem:[%s11990_s7 + $0xa8] sm:$0xff] }
 0x361   : > { %v9404_v15 = vpop.permute.xlu1 %3223  ;;  %2809 = vmatmul.mubr.bf16.gmra.mxu0 %v6097_v58  ;;  %3706 = vperm.xlu0 %5990, %v9299_v5   ;;  %v6101_v58 = vld [vmem:[%s11986_s3 + $0xc4] ss:$8 sps:$4 sm:$0xff]  }
 0x362   : > { %12636 = vst [vmem:[#allocation99_spill] sm:$0xff] %v9404_v15  ;;  %v9406_v0 = vpop.permute.xlu0 %3334  ;;  %2816 = vmatprep.mubr.bf16.mxu0 %v6098_v44  ;;  %v9429_v44 = vld [vmem:[%s11990_s7 + $0xb8] sm:$0xff] }
 0x363   : > { %12637 = vst [vmem:[#allocation100_spill] sm:$0xff] %v9406_v0  ;;  %3574 = vperm.xlu1 %5988, %v9412_v50  }
 0x365   : > { %v9415_v18 = vpop.permute.xlu1 %3233  ;;  %3714 = vperm.xlu0 %5990, %v9316_v27  }
 0x366   : > { %12638 = vst [vmem:[#allocation101_spill] sm:$0xff] %v9415_v18  ;;  %v9420_v15 = vpop.permute.xlu0 %3344 }
 0x367   : > { %12639 = vst [vmem:[#allocation102_spill] sm:$0xff] %v9420_v15  ;;  %3582 = vperm.xlu1 %5988, %v9429_v44   ;;  %v9440_v15 = vld [vmem:[%s11990_s7 + $0xc8] sm:$0xff] }
 0x369   : > { %v9432_v0 = vpop.permute.xlu1 %3243  ;;  %2817 = vmatmul.mubr.bf16.gmra.mxu0 %v6100_v6  ;;  %3722 = vperm.xlu0 %5990, %v9327_v56   ;;  %v6104_v6 = vld [vmem:[%s11986_s3 + $0xd4] ss:$8 sps:$4 sm:$0xff]  }
 0x36a   : > { %12640 = vst [vmem:[#allocation103_spill] sm:$0xff] %v9432_v0  ;;  %v9434_v18 = vpop.permute.xlu0 %3354  ;;  %2824 = vmatprep.mubr.bf16.mxu0 %v6101_v58 }
 0x36b   : > { %12641 = vst [vmem:[#allocation104_spill] sm:$0xff] %v9434_v18  ;;  %3590 = vperm.xlu1 %5988, %v9440_v15   ;;  %v12644_v18 = vld [vmem:[#allocation44_spill] sm:$0xff] }
 0x36d   : > { %v9443_v11 = vpop.permute.xlu1 %3253  ;;  %3730 = vperm.xlu0 %5990, %v9344_v33  }
 0x36e   : > { %12642 = vst [vmem:[#allocation105_spill] sm:$0xff] %v9443_v11  ;;  %v9452_v58 = vpop.permute.xlu0 %3364 }
 0x36f   : > { %12643 = vst [vmem:[#allocation106_spill] sm:$0xff] %v9452_v58  ;;  %3598 = vperm.xlu1 %5988, %v12644_v18   ;;  %v6107_v18 = vld [vmem:[%s11986_s3 + $0xe4] ss:$8 sps:$4 sm:$0xff]  }
 0x370   : > { %v12650_v58 = vld [vmem:[#allocation54_spill] sm:$0xff] }
 0x371   : > { %v9455_v0 = vpop.permute.xlu1 %3299  ;;  %2825 = vmatmul.mubr.bf16.gmra.mxu0 %v6103_v57  ;;  %3738 = vperm.xlu0 %5990, %v9355_v32  }
 0x372   : > { %12645 = vst [vmem:[#allocation107_spill] sm:$0xff] %v9455_v0  ;;  %2832 = vmatprep.mubr.bf16.mxu0 %v6104_v6  ;;  %v9458_v11 = vpop.permute.xlu0 %3374 }
 0x373   : > { %12646 = vst [vmem:[#allocation108_spill] sm:$0xff] %v9458_v11  ;;  %3606 = vperm.xlu1 %5988, %v12647_v41  }
 0x375   : > { %v9461_v54 = vpop.permute.xlu1 %3309  ;;  %3746 = vperm.xlu0 %5990, %v9372_v46  }
 0x376   : > { %12648 = vst [vmem:[#allocation109_spill] sm:$0xff] %v9461_v54  ;;  %v9470_v57 = vpop.permute.xlu0 %3384 }
 0x377   : > { %12649 = vst [vmem:[#allocation110_spill] sm:$0xff] %v9470_v57  ;;  %3614 = vperm.xlu1 %5988, %v12650_v58   ;;  %v6109_v57 = vld [vmem:[%s11986_s3 + $0xe0] ss:$8 sps:$4 sm:$0xff]  }
 0x379   : > { %v9473_v6 = vpop.permute.xlu1 %3319  ;;  %2833 = vmatmul.mubr.bf16.gmra.mxu0 %v6106_v9  ;;  %3754 = vperm.xlu0 %5990, %v9384_v47   ;;  %v6110_v9 = vld [vmem:[%s11986_s3 + $0xf4] ss:$8 sps:$4 sm:$0xff]  }
 0x37a   : > { %12651 = vst [vmem:[#allocation111_spill] sm:$0xff] %v9473_v6  ;;  %2840 = vmatprep.mubr.bf16.mxu0 %v6107_v18  ;;  %v9476_v41 = vpop.permute.xlu0 %3394  ;;  %v9533_v6 = vld [vmem:[%s11990_s7 + $0xd8] sm:$0xff] }
 0x37b   : > { %12652 = vst [vmem:[#allocation112_spill] sm:$0xff] %v9476_v41  ;;  %5991 = vset.pattern.permute.xlu1 %v12630_v38  ;;  %v9500_v41 = vld [vmem:[%s11990_s7 + $0x20] sm:$0xff]  ;;  %12662 = vst [vmem:[#allocation122_spill] sm:$0xff] %v9533_v6 }
 0x37c   : > { %3690 = vperm.xlu1 %5991, %v9180_v37  }
 0x37d   : > { %v9480_v11 = vpop.permute.xlu1 %3329  ;;  %3762 = vperm.xlu0 %5990, %v9401_v13  }
 0x37e   : > { %12653 = vst [vmem:[#allocation113_spill] sm:$0xff] %v9480_v11  ;;  %v9489_v58 = vpop.permute.xlu0 %3404 }
 0x37f   : > { %12654 = vst [vmem:[#allocation114_spill] sm:$0xff] %v9489_v58  ;;  %v6112_v58 = vld [vmem:[%s11986_s3 + $0xf0] ss:$8 sps:$4 sm:$0xff]  }
 0x380   : > { %3694 = vperm.xlu1 %5991, %v9271_v29  }
 0x381   : > { %v9492_v18 = vpop.permute.xlu1 %3339  ;;  %2841 = vmatmul.mubr.bf16.gmra.mxu0 %v6109_v57  ;;  %3770 = vperm.xlu0 %5990, %v9412_v50  }
 0x382   : > { %12655 = vst [vmem:[#allocation115_spill] sm:$0xff] %v9492_v18  ;;  %2848 = vmatprep.mubr.bf16.mxu0 %v6110_v9  ;;  %v9495_v38 = vpop.permute.xlu0 %3414  ;;  %v9514_v9 = vld [vmem:[%s11990_s7 + $0x30] sm:$0xff]  ;;  %v9525_v18 = vld [vmem:[%s11990_s7 + $0x40] sm:$0xff] }
 0x383   : > { %12656 = vst [vmem:[#allocation116_spill] sm:$0xff] %v9495_v38 }
 0x384   : > { %3702 = vperm.xlu1 %5991, %v9500_v41  }
 0x385   : > { %v9503_v11 = vpop.permute.xlu1 %3349  ;;  %3778 = vperm.xlu0 %5990, %v9429_v44  }
 0x386   : > { %12657 = vst [vmem:[#allocation117_spill] sm:$0xff] %v9503_v11  ;;  %v9509_v57 = vpop.permute.xlu0 %3424 }
 0x387   : > { %12658 = vst [vmem:[#allocation118_spill] sm:$0xff] %v9509_v57 }
 0x388   : > { %3710 = vperm.xlu1 %5991, %v9514_v9  }
 0x389   : > { %v9517_v38 = vpop.permute.xlu1 %3359  ;;  %2849 = vmatmul.mubr.bf16.gmra.mxu0 %v6112_v58  ;;  %3786 = vperm.xlu0 %5990, %v9440_v15  }
 0x38a   : > { %12659 = vst [vmem:[#allocation119_spill] sm:$0xff] %v9517_v38  ;;  %v9520_v11 = vpop.permute.xlu0 %3434 }
 0x38b   : > { %12660 = vst [vmem:[#allocation120_spill] sm:$0xff] %v9520_v11  ;;  %v9541_v11 = vld [vmem:[%s11990_s7 + $0x50] sm:$0xff] }
 0x38c   : > { %3718 = vperm.xlu1 %5991, %v9525_v18  }
 0x38d   : > { %v9528_v57 = vpop.permute.xlu1 %3369  ;;  %3794 = vperm.xlu0 %5990, %v9533_v6  }
 0x38e   : > { %12661 = vst [vmem:[#allocation121_spill] sm:$0xff] %v9528_v57  ;;  %v9536_v58 = vpop.permute.xlu0 %3444  ;;  %v9549_v57 = vld [vmem:[%s11990_s7 + $0xe8] sm:$0xff] }
 0x38f   : > { %12663 = vst [vmem:[#allocation123_spill] sm:$0xff] %v9536_v58  ;;  %v9557_v58 = vld [vmem:[%s11990_s7 + $0x60] sm:$0xff] }
 0x390   : > { %3726 = vperm.xlu1 %5991, %v9541_v11  }
 0x391   : > { %v9544_v38 = vpop.permute.xlu1 %3379  ;;  %3802 = vperm.xlu0 %5990, %v9549_v57  }
 0x392   : > { %12664 = vst [vmem:[#allocation124_spill] sm:$0xff] %v9544_v38  ;;  %v9552_v54 = vpop.permute.xlu0 %3454  ;;  %v9565_v38 = vld [vmem:[%s11990_s7 + $0xf8] sm:$0xff] }
 0x393   : > { %12665 = vst [vmem:[#allocation125_spill] sm:$0xff] %v9552_v54  ;;  %v9573_v54 = vld [vmem:[%s11990_s7 + $0x70] sm:$0xff] }
 0x394   : > { %3734 = vperm.xlu1 %5991, %v9557_v58  }
 0x395   : > { %v9560_v0 = vpop.permute.xlu1 %3389  ;;  %3810 = vperm.xlu0 %5990, %v9565_v38  }
 0x396   : > { %12666 = vst [vmem:[#allocation126_spill] sm:$0xff] %v9560_v0 }
 0x397   : > { %v9568_v31 = vpop.permute.xlu0 %3494 }
 0x398   : > { %12667 = vst [vmem:[#allocation127_spill] sm:$0xff] %v9568_v31  ;;  %3742 = vperm.xlu1 %5991, %v9573_v54  }
 0x399   : > { %v9576_v59 = vpop.permute.xlu1 %3399  ;;  %5993 = vset.pattern.permute.xlu0 %v12669_v4 }
 0x39a   : > { %12668 = vst [vmem:[#allocation128_spill] sm:$0xff] %v9576_v59  ;;  %3886 = vperm.xlu0 %5993, %v9180_v37  }
 0x39b   : > { %v9580_v0 = vpop.permute.xlu0 %3506 }
 0x39c   : > { %12670 = vst [vmem:[#allocation129_spill] sm:$0xff] %v9580_v0  ;;  %3750 = vperm.xlu1 %5991, %v9585_v39  }
 0x39d   : > { %v9588_v31 = vpop.permute.xlu1 %3409 }
 0x39e   : > { %12672 = vst [vmem:[#allocation131_spill] sm:$0xff] %v9588_v31  ;;  %3898 = vperm.xlu0 %5993, %v9500_v41  }
 0x39f   : > { %v9592_v59 = vpop.permute.xlu0 %3514 }
 0x3a0   : > { %3758 = vperm.xlu1 %5991, %v12614_v34   ;;  %12673 = vst [vmem:[#allocation132_spill] sm:$0xff] %v9592_v59 }
 0x3a1   : > { %v9594_v30 = vpop.permute.xlu1 %3419 }
 0x3a2   : > { %12674 = vst [vmem:[#allocation133_spill] sm:$0xff] %v9594_v30  ;;  %3906 = vperm.xlu0 %5993, %v9514_v9  }
 0x3a3   : > { %v9601_v0 = vpop.permute.xlu0 %3522 }
 0x3a4   : > { %3766 = vperm.xlu1 %5991, %v12617_v21   ;;  %12676 = vst [vmem:[#allocation135_spill] sm:$0xff] %v9601_v0 }
 0x3a5   : > { %v9598_v37 = vpop.permute.xlu1 %3429 }
 0x3a6   : > { %12675 = vst [vmem:[#allocation134_spill] sm:$0xff] %v9598_v37  ;;  %3914 = vperm.xlu0 %5993, %v9525_v18  }
 0x3a7   : > { %v9608_v34 = vpop.permute.xlu0 %3530 }
 0x3a8   : > { %3774 = vperm.xlu1 %5991, %v8860_v19   ;;  %12678 = vst [vmem:[#allocation137_spill] sm:$0xff] %v9608_v34 }
 0x3a9   : > { %v9604_v31 = vpop.permute.xlu1 %3439 }
 0x3aa   : > { %12677 = vst [vmem:[#allocation136_spill] sm:$0xff] %v9604_v31  ;;  %3922 = vperm.xlu0 %5993, %v9541_v11  }
 0x3ab   : > { %v9616_v37 = vpop.permute.xlu0 %3538 }
 0x3ac   : > { %3782 = vperm.xlu1 %5991, %v8908_v8   ;;  %12681 = vst [vmem:[#allocation140_spill] sm:$0xff] %v9616_v37 }
 0x3ad   : > { %v9610_v30 = vpop.permute.xlu1 %3449 }
 0x3ae   : > { %12679 = vst [vmem:[#allocation138_spill] sm:$0xff] %v9610_v30  ;;  %3930 = vperm.xlu0 %5993, %v9557_v58  }
 0x3af   : > { %v9624_v31 = vpop.permute.xlu0 %3546 }
 0x3b0   : > { %3790 = vperm.xlu1 %5991, %v8939_v42   ;;  %12683 = vst [vmem:[#allocation142_spill] sm:$0xff] %v9624_v31  ;;  %v9631_v42 = vld [vmem:[%s11990_s7 + $0x90] sm:$0xff] }
 0x3b1   : > { %12685 = vst [vmem:[#allocation144_spill] sm:$0xff] %v9631_v42 }
 0x3b2   : > { %v9614_v21 = vpop.permute.xlu1 %3490  ;;  %3938 = vperm.xlu0 %5993, %v9573_v54  }
 0x3b3   : > { %12680 = vst [vmem:[#allocation139_spill] sm:$0xff] %v9614_v21  ;;  %v9638_v37 = vpop.permute.xlu0 %3554  ;;  %v12700_v21 = vld [vmem:[#allocation56_spill] sm:$0xff] }
 0x3b4   : > { %3798 = vperm.xlu1 %5991, %v8964_v16   ;;  %12687 = vst [vmem:[#allocation146_spill] sm:$0xff] %v9638_v37 }
 0x3b6   : > { %v9620_v19 = vpop.permute.xlu1 %3498  ;;  %3946 = vperm.xlu0 %5993, %v9585_v39  }
 0x3b7   : > { %12682 = vst [vmem:[#allocation141_spill] sm:$0xff] %v9620_v19  ;;  %v9645_v34 = vpop.permute.xlu0 %3562 }
 0x3b8   : > { %3806 = vperm.xlu1 %5991, %v8987_v36   ;;  %12689 = vst [vmem:[#allocation148_spill] sm:$0xff] %v9645_v34 }
 0x3ba   : > { %v9626_v30 = vpop.permute.xlu1 %3502  ;;  %3954 = vperm.xlu0 %5993, %v9631_v42  }
 0x3bb   : > { %12684 = vst [vmem:[#allocation143_spill] sm:$0xff] %v9626_v30  ;;  %v9654_v37 = vpop.permute.xlu0 %3570 }
 0x3bc   : > { %5992 = vset.pattern.permute.xlu1 %v12669_v4  ;;  %12692 = vst [vmem:[#allocation151_spill] sm:$0xff] %v9654_v37 }
 0x3bd   : > { %3882 = vperm.xlu1 %5992, %v9260_v14  }
 0x3be   : > { %v9636_v16 = vpop.permute.xlu1 %3510  ;;  %4002 = vperm.xlu0 %5993, %v8987_v36  }
 0x3bf   : > { %12686 = vst [vmem:[#allocation145_spill] sm:$0xff] %v9636_v16  ;;  %v9661_v34 = vpop.permute.xlu0 %3578 }
 0x3c0   : > { %12694 = vst [vmem:[#allocation153_spill] sm:$0xff] %v9661_v34 }
 0x3c1   : > { %3890 = vperm.xlu1 %5992, %v9271_v29  }
 0x3c2   : > { %v9642_v31 = vpop.permute.xlu1 %3518  ;;  %3998 = vperm.xlu0 %5993, %v9549_v57  }
 0x3c3   : > { %12688 = vst [vmem:[#allocation147_spill] sm:$0xff] %v9642_v31  ;;  %v9675_v34 = vpop.permute.xlu0 %3586 }
 0x3c4   : > { %12698 = vst [vmem:[#allocation157_spill] sm:$0xff] %v9675_v34 }
 0x3c5   : > { %3894 = vperm.xlu1 %5992, %v9288_v24  }
 0x3c6   : > { %v9648_v0 = vpop.permute.xlu1 %3526  ;;  %3990 = vperm.xlu0 %5993, %v9533_v6  }
 0x3c7   : > { %12690 = vst [vmem:[#allocation149_spill] sm:$0xff] %v9648_v0  ;;  %v9685_v39 = vpop.permute.xlu0 %3594 }
 0x3c8   : > { %12702 = vst [vmem:[#allocation159_spill] sm:$0xff] %v9685_v39 }
 0x3c9   : > { %3902 = vperm.xlu1 %5992, %v9299_v5   ;;  %v9669_v5 = vld [vmem:[%s11990_s7 + $0xa0] sm:$0xff] }
 0x3ca   : > { %v9652_v59 = vpop.permute.xlu1 %3534  ;;  %3978 = vperm.xlu0 %5993, %v8908_v8   ;;  %12696 = vst [vmem:[#allocation155_spill] sm:$0xff] %v9669_v5 }
 0x3cb   : > { %12691 = vst [vmem:[#allocation150_spill] sm:$0xff] %v9652_v59  ;;  %v12699_v59 = vmov 4  }
 0x3cd   : > { %3910 = vperm.xlu1 %5992, %v9316_v27  }
 0x3ce   : > { %v9658_v31 = vpop.permute.xlu1 %3542  ;;  %3974 = vperm.xlu0 %5993, %v9429_v44  }
 0x3cf   : > { %12693 = vst [vmem:[#allocation152_spill] sm:$0xff] %v9658_v31 }
 0x3d1   : > { %3918 = vperm.xlu1 %5992, %v9327_v56   ;;  %v5667_v24 = vpop.f32.mrf.mxu0 }
 0x3d2   : > { %v9664_v0 = vpop.permute.xlu1 %3550  ;;  %3962 = vperm.xlu0 %5993, %v9669_v5  }
 0x3d3   : > { %12695 = vst [vmem:[#allocation154_spill] sm:$0xff] %v9664_v0  ;;  %v5668_v8 = vpop.f32.mrf.mxu0 }
 0x3d4   : > { %v5669_v27 = vadd.f32 %v5668_v8, %v5667_v24 }
 0x3d5   : > { %3926 = vperm.xlu1 %5992, %v9344_v33   ;;  %v5670_v37 = vpop.f32.mrf.mxu0 }
 0x3d6   : > { %v9673_v31 = vpop.permute.xlu1 %3558  ;;  %6028 = vset.pattern.permute.xlu0 %v12699_v59  ;;  %v2731_v0 = vadd.f32 %v5669_v27, %v8974_v25  ;;  %v9698_v27 = vpop.permute.xlu0 %3602 }
 0x3d7   : > { %12697 = vst [vmem:[#allocation156_spill] sm:$0xff] %v9673_v31  ;;  %v5671_v16 = vpop.f32.mrf.mxu0  ;;  %4198 = vperm.xlu0 %6028, %v8987_v36   ;;  %12706 = vst [vmem:[#allocation163_spill] sm:$0xff] %v9698_v27 }
 0x3d8   : > { %v5672_v30 = vadd.f32 %v5671_v16, %v5670_v37  ;;  %v2857_v31 = vmax.f32 %v2731_v0, 0.0 }
 0x3d9   : > { %3934 = vperm.xlu1 %5992, %v9355_v32   ;;  %v5673_v19 = vpop.f32.mrf.mxu0 }
 0x3da   : > { %v2734_v24 = vadd.f32 %v5672_v30, %v12700_v21  ;;  %v9682_v8 = vpop.permute.xlu1 %3566 }
 0x3db   : > { %12701 = vst [vmem:[#allocation158_spill] sm:$0xff] %v9682_v8  ;;  %v5674_v42 = vpop.f32.mrf.mxu0  ;;  %4138 = vperm.xlu0 %6028, %v9372_v46  }
 0x3dc   : > { %v2858_v34 = vmax.f32 %v2734_v24, 0.0  ;;  %v5675_v5 = vadd.f32 %v5674_v42, %v5673_v19 }
 0x3dd   : > { %3942 = vperm.xlu1 %5992, %v9372_v46   ;;  %v5676_v36 = vpop.f32.mrf.mxu0 }
 0x3de   : > { %v9688_v25 = vpop.permute.xlu1 %3574  ;;  %v9690_v37 = vpack.c.bf16 %v2858_v34, %v2857_v31  ;;  %v2739_v30 = vadd.f32 %v5675_v5, %v8998_v1 }
 0x3df   : > { %12703 = vst [vmem:[#allocation160_spill] sm:$0xff] %v9688_v25  ;;  %v5677_v16 = vpop.f32.mrf.mxu0  ;;  %4194 = vperm.xlu0 %6028, %v9549_v57  }
 0x3e0   : > { %12704 = vst [vmem:[#allocation161_spill] sm:$0xff] %v9690_v37  ;;  %v5678_v21 = vadd.f32 %v5677_v16, %v5676_v36  ;;  %v2859_v31 = vmax.f32 %v2739_v30, 0.0  ;;  %v12709_v16 = vld [vmem:[#allocation59_spill] sm:$0xff] }
 0x3e1   : > { %3950 = vperm.xlu1 %5992, %v9384_v47   ;;  %v5679_v0 = vpop.f32.mrf.mxu0 }
 0x3e2   : > { %v2742_v19 = vadd.f32 %v5678_v21, %v9023_v45  ;;  %v9696_v42 = vpop.permute.xlu1 %3582  ;;  %v9709_v45 = vld [vmem:[%s11990_s7 + $0xd0] sm:$0xff] }
 0x3e3   : > { %12705 = vst [vmem:[#allocation162_spill] sm:$0xff] %v9696_v42  ;;  %v5680_v24 = vpop.f32.mrf.mxu0  ;;  %4126 = vperm.xlu0 %6028, %v9557_v58  }
 0x3e4   : > { %v2860_v34 = vmax.f32 %v2742_v19, 0.0  ;;  %v5681_v39 = vadd.f32 %v5680_v24, %v5679_v0  ;;  %v9713_v19 = vpop.permute.xlu0 %3610 }
 0x3e5   : > { %3958 = vperm.xlu1 %5992, %v9401_v13   ;;  %v5682_v25 = vpop.f32.mrf.mxu0  ;;  %12710 = vst [vmem:[#allocation166_spill] sm:$0xff] %v9713_v19 }
 0x3e6   : > { %v9702_v1 = vpop.permute.xlu1 %3590  ;;  %v9704_v5 = vpack.c.bf16 %v2860_v34, %v2859_v31  ;;  %v2747_v21 = vadd.f32 %v5681_v39, %v12709_v16  ;;  %v12715_v16 = vld [vmem:[#allocation62_spill] sm:$0xff] }
 0x3e7   : > { %12707 = vst [vmem:[#allocation164_spill] sm:$0xff] %v9702_v1  ;;  %v5683_v36 = vpop.f32.mrf.mxu0  ;;  %4182 = vperm.xlu0 %6028, %v9709_v45  }
 0x3e8   : > { %12708 = vst [vmem:[#allocation165_spill] sm:$0xff] %v9704_v5  ;;  %v5684_v30 = vadd.f32 %v5683_v36, %v5682_v25  ;;  %v2861_v27 = vmax.f32 %v2747_v21, 0.0  ;;  %v9724_v25 = vpop.permute.xlu0 %3686 }
 0x3e9   : > { %4006 = vperm.xlu1 %5992, %v9565_v38   ;;  %v5685_v0 = vpop.f32.mrf.mxu0  ;;  %12713 = vst [vmem:[#allocation169_spill] sm:$0xff] %v9724_v25  ;;  %v9737_v25 = vld [vmem:[%s11990_s7 + $0xb0] sm:$0xff] }
 0x3ea   : > { %v2750_v24 = vadd.f32 %v5684_v30, %v9047_v3  ;;  %v9717_v31 = vpop.permute.xlu1 %3598  ;;  %12717 = vst [vmem:[#allocation172_spill] sm:$0xff] %v9737_v25 }
 0x3eb   : > { %12711 = vst [vmem:[#allocation167_spill] sm:$0xff] %v9717_v31  ;;  %v5686_v34 = vpop.f32.mrf.mxu0  ;;  %4178 = vperm.xlu0 %6028, %v9440_v15   ;;  %v12723_v31 = vmov 5  }
 0x3ec   : > { %v2862_v1 = vmax.f32 %v2750_v24, 0.0  ;;  %v5687_v42 = vadd.f32 %v5686_v34, %v5685_v0 }
 0x3ed   : > { %5994 = vset.pattern.permute.xlu1 %v12699_v59  ;;  %v5688_v8 = vpop.f32.mrf.mxu0 }
 0x3ee   : > { %4202 = vperm.xlu1 %5994, %v9565_v38   ;;  %v9722_v39 = vpop.permute.xlu1 %3606  ;;  %v9726_v36 = vpack.c.bf16 %v2862_v1, %v2861_v27  ;;  %v2755_v30 = vadd.f32 %v5687_v42, %v12715_v16  ;;  %v9740_v42 = vpop.permute.xlu0 %3698  ;;  %v9755_v16 = vld [vmem:[%s11990_s7 + $0xe0] sm:$0xff] }
 0x3ef   : > { %12712 = vst [vmem:[#allocation168_spill] sm:$0xff] %v9722_v39  ;;  %v5689_v3 = vpop.f32.mrf.mxu0  ;;  %4110 = vperm.xlu0 %6028, %v9525_v18   ;;  %12718 = vst [vmem:[#allocation173_spill] sm:$0xff] %v9740_v42 }
 0x3f0   : > { %12714 = vst [vmem:[#allocation170_spill] sm:$0xff] %v9726_v36  ;;  %v5690_v19 = vadd.f32 %v5689_v3, %v5688_v8  ;;  %v2863_v27 = vmax.f32 %v2755_v30, 0.0 }
 0x3f1   : > { %v5691_v21 = vpop.f32.mrf.mxu0 }
 0x3f2   : > { %v2758_v0 = vadd.f32 %v5690_v19, %v9071_v60  ;;  %4134 = vperm.xlu1 %5994, %v9573_v54   ;;  %v9732_v24 = vpop.permute.xlu1 %3614  ;;  %v9745_v60 = vld [vmem:[%s11988_s5] sm:$0xff] }
 0x3f3   : > { %12716 = vst [vmem:[#allocation171_spill] sm:$0xff] %v9732_v24  ;;  %v5692_v34 = vpop.f32.mrf.mxu0  ;;  %4166 = vperm.xlu0 %6028, %v9737_v25   ;;  %12719 = vst [vmem:[#allocation174_spill] sm:$0xff] %v9745_v60  ;;  %v5613_v19 = vcombine.high %v9745_v60, %v9745_v60 }
 0x3f4   : > { %v2864_v1 = vmax.f32 %v2758_v0, 0.0  ;;  %v5693_v39 = vadd.f32 %v5692_v34, %v5691_v21  ;;  %v12721_v0 = vld [vmem:[#allocation64_spill] sm:$0xff] }
 0x3f5   : > { %v5694_v8 = vpop.f32.mrf.mxu0  ;;  %2949 = vmatprep.mubr.bf16.mxu1 %v5613_v19 }
 0x3f6   : > { %5995 = vset.pattern.permute.xlu1 %v12669_v4  ;;  %v9750_v3 = vpack.c.bf16 %v2864_v1, %v2863_v27  ;;  %v2763_v34 = vadd.f32 %v5693_v39, %v12721_v0  ;;  %v9763_v1 = vpop.permute.xlu0 %3706  ;;  %v9772_v39 = vld [vmem:[%s11990_s7 + $0xf0] sm:$0xff] }
 0x3f7   : > { %3994 = vperm.xlu1 %5995, %v9755_v16   ;;  %v9758_v30 = vpop.permute.xlu1 %3690  ;;  %v5695_v21 = vpop.f32.mrf.mxu0  ;;  %4162 = vperm.xlu0 %6028, %v9412_v50   ;;  %12722 = vst [vmem:[#allocation176_spill] sm:$0xff] %v9763_v1  ;;  %12725 = vst [vmem:[#allocation178_spill] sm:$0xff] %v9772_v39 }
 0x3f8   : > { %12720 = vst [vmem:[#allocation175_spill] sm:$0xff] %v9758_v30  ;;  %v5696_v42 = vadd.f32 %v5695_v21, %v5694_v8  ;;  %v2865_v30 = vmax.f32 %v2763_v34, 0.0 }
 0x3f9   : > { %v5697_v24 = vpop.f32.mrf.mxu0 }
 0x3fa   : > { %v2766_v27 = vadd.f32 %v5696_v42, %v9094_v40 }
 0x3fb   : > { %5996 = vset.pattern.permute.xlu1 %v12723_v31  ;;  %v9766_v25 = vpop.permute.xlu1 %3694  ;;  %v5698_v37 = vpop.f32.mrf.mxu0  ;;  %4094 = vperm.xlu0 %6028, %v9500_v41  }
 0x3fc   : > { %12724 = vst [vmem:[#allocation177_spill] sm:$0xff] %v9766_v25  ;;  %v2866_v60 = vmax.f32 %v2766_v27, 0.0  ;;  %v5699_v5 = vadd.f32 %v5698_v37, %v5697_v24  ;;  %4394 = vperm.xlu1 %5996, %v9772_v39   ;;  %v9782_v37 = vpop.permute.xlu0 %3714 }
 0x3fd   : > { %v5700_v40 = vpop.f32.mrf.mxu0  ;;  %12727 = vst [vmem:[#allocation180_spill] sm:$0xff] %v9782_v37  ;;  %v12733_v37 = vmov 6  }
 0x3fe   : > { %v9775_v42 = vpack.c.bf16 %v2866_v60, %v2865_v30  ;;  %v2771_v21 = vadd.f32 %v5699_v5, %v8926_v53 }
 0x3ff   : > { %v9777_v8 = vpop.permute.xlu1 %3702  ;;  %v5701_v19 = vpop.f32.mrf.mxu0  ;;  %4154 = vperm.xlu0 %6028, %v9401_v13  }
 0x400   : > { %12726 = vst [vmem:[#allocation179_spill] sm:$0xff] %v9777_v8  ;;  %v5702_v0 = vadd.f32 %v5701_v19, %v5700_v40  ;;  %4398 = vperm.xlu1 %5996, %v9565_v38   ;;  %v2867_v60 = vmax.f32 %v2771_v21, 0.0  ;;  %v9789_v53 = vpop.permute.xlu0 %3722 }
 0x401   : > { %v5703_v24 = vpop.f32.mrf.mxu0  ;;  %12729 = vst [vmem:[#allocation182_spill] sm:$0xff] %v9789_v53 }
 0x402   : > { %v2774_v34 = vadd.f32 %v5702_v0, %v9110_v20 }
 0x403   : > { %v9785_v27 = vpop.permute.xlu1 %3710  ;;  %v5704_v1 = vpop.f32.mrf.mxu0  ;;  %4086 = vperm.xlu0 %6028, %v9271_v29  }
 0x404   : > { %12728 = vst [vmem:[#allocation181_spill] sm:$0xff] %v9785_v27  ;;  %v2868_v30 = vmax.f32 %v2774_v34, 0.0  ;;  %v5705_v8 = vadd.f32 %v5704_v1, %v5703_v24  ;;  %4334 = vperm.xlu1 %5996, %v9372_v46  }
 0x405   : > { %v5706_v25 = vpop.f32.mrf.mxu0 }
 0x406   : > { %v9791_v5 = vpack.c.bf16 %v2868_v30, %v2867_v60  ;;  %v2779_v20 = vadd.f32 %v5705_v8, %v8951_v62 }
 0x407   : > { %v9793_v40 = vpop.permute.xlu1 %3718  ;;  %v5707_v19 = vpop.f32.mrf.mxu0  ;;  %4146 = vperm.xlu0 %6028, %v9384_v47  }
 0x408   : > { %12730 = vst [vmem:[#allocation183_spill] sm:$0xff] %v9793_v40  ;;  %v5708_v0 = vadd.f32 %v5707_v19, %v5706_v25  ;;  %5997 = vset.pattern.permute.xlu1 %v12699_v59  ;;  %v2869_v60 = vmax.f32 %v2779_v20, 0.0  ;;  %v9803_v40 = vpop.permute.xlu0 %3730 }
 0x409   : > { %4190 = vperm.xlu1 %5997, %v9755_v16   ;;  %v5709_v1 = vpop.f32.mrf.mxu0  ;;  %12732 = vst [vmem:[#allocation185_spill] sm:$0xff] %v9803_v40 }
 0x40a   : > { %v2782_v21 = vadd.f32 %v5708_v0, %v9120_v43 }
 0x40b   : > { %v9800_v24 = vpop.permute.xlu1 %3726  ;;  %v5710_v34 = vpop.f32.mrf.mxu0  ;;  %4078 = vperm.xlu0 %6028, %v9260_v14  }
 0x40c   : > { %12731 = vst [vmem:[#allocation184_spill] sm:$0xff] %v9800_v24  ;;  %v2870_v30 = vmax.f32 %v2782_v21, 0.0  ;;  %v5711_v53 = vadd.f32 %v5710_v34, %v5709_v1  ;;  %v9816_v21 = vpop.permute.xlu0 %3738 }
 0x40d   : > { %5998 = vset.pattern.permute.xlu1 %v12733_v37  ;;  %v5712_v62 = vpop.f32.mrf.mxu0  ;;  %12735 = vst [vmem:[#allocation187_spill] sm:$0xff] %v9816_v21 }
 0x40e   : > { %4590 = vperm.xlu1 %5998, %v9772_v39   ;;  %v9807_v25 = vpack.c.bf16 %v2870_v30, %v2869_v60  ;;  %v2787_v19 = vadd.f32 %v5711_v53, %v8976_v51 }
 0x40f   : > { %v9809_v8 = vpop.permute.xlu1 %3734  ;;  %v5713_v43 = vpop.f32.mrf.mxu0  ;;  %6052 = vset.pattern.permute.xlu0 %v12723_v31 }
 0x410   : > { %12734 = vst [vmem:[#allocation186_spill] sm:$0xff] %v9809_v8  ;;  %v5714_v0 = vadd.f32 %v5713_v43, %v5712_v62  ;;  %4330 = vperm.xlu0 %6052, %v9573_v54   ;;  %v2871_v30 = vmax.f32 %v2787_v19, 0.0 }
 0x411   : > { %v5715_v20 = vpop.f32.mrf.mxu0 }
 0x412   : > { %v2790_v1 = vadd.f32 %v5714_v0, %v9130_v52  ;;  %4594 = vperm.xlu1 %5998, %v9565_v38   ;;  %v9828_v0 = vpop.permute.xlu0 %3746 }
 0x413   : > { %v9818_v34 = vpop.permute.xlu1 %3742  ;;  %v5716_v60 = vpop.f32.mrf.mxu0  ;;  %12738 = vst [vmem:[#allocation190_spill] sm:$0xff] %v9828_v0 }
 0x414   : > { %12736 = vst [vmem:[#allocation188_spill] sm:$0xff] %v9818_v34  ;;  %v2872_v8 = vmax.f32 %v2790_v1, 0.0  ;;  %v5717_v40 = vadd.f32 %v5716_v60, %v5715_v20  ;;  %4326 = vperm.xlu0 %6052, %v9355_v32  }
 0x415   : > { %v5718_v24 = vpop.f32.mrf.mxu0 }
 0x416   : > { %5999 = vset.pattern.permute.xlu1 %v12699_v59  ;;  %v9822_v51 = vpack.c.bf16 %v2872_v8, %v2871_v30  ;;  %v2795_v62 = vadd.f32 %v5717_v40, %v9000_v2  ;;  %v9837_v40 = vpop.permute.xlu0 %3754 }
 0x417   : > { %4130 = vperm.xlu1 %5999, %v9355_v32   ;;  %v9825_v52 = vpop.permute.xlu1 %3750  ;;  %v5719_v53 = vpop.f32.mrf.mxu0  ;;  %12740 = vst [vmem:[#allocation192_spill] sm:$0xff] %v9837_v40 }
 0x418   : > { %12737 = vst [vmem:[#allocation189_spill] sm:$0xff] %v9825_v52  ;;  %v5720_v43 = vadd.f32 %v5719_v53, %v5718_v24  ;;  %4382 = vperm.xlu0 %6052, %v9533_v6   ;;  %v2873_v60 = vmax.f32 %v2795_v62, 0.0 }
 0x419   : > { %v5721_v19 = vpop.f32.mrf.mxu0 }
 0x41a   : > { %v2798_v20 = vadd.f32 %v5720_v43, %v9146_v55 }
 0x41b   : > { %6000 = vset.pattern.permute.xlu1 %v12733_v37  ;;  %v9833_v1 = vpop.permute.xlu1 %3758  ;;  %v5722_v8 = vpop.f32.mrf.mxu0 }
 0x41c   : > { %12739 = vst [vmem:[#allocation191_spill] sm:$0xff] %v9833_v1  ;;  %v2874_v30 = vmax.f32 %v2798_v20, 0.0  ;;  %v5723_v34 = vadd.f32 %v5722_v8, %v5721_v19  ;;  %4530 = vperm.xlu1 %6000, %v9372_v46   ;;  %4314 = vperm.xlu0 %6052, %v9541_v11  }
 0x41d   : > { %v5724_v2 = vpop.f32.mrf.mxu0 }
 0x41e   : > { %v9839_v24 = vpack.c.bf16 %v2874_v30, %v2873_v60  ;;  %v2803_v43 = vadd.f32 %v5723_v34, %v9025_v23 }
 0x41f   : > { %v9841_v53 = vpop.permute.xlu1 %3766  ;;  %v5725_v55 = vpop.f32.mrf.mxu0 }
 0x420   : > { %12741 = vst [vmem:[#allocation193_spill] sm:$0xff] %v9839_v24  ;;  %12742 = vst [vmem:[#allocation194_spill] sm:$0xff] %v9841_v53  ;;  %v5726_v52 = vadd.f32 %v5725_v55, %v5724_v2  ;;  %6001 = vset.pattern.permute.xlu1 %v12669_v4  ;;  %4310 = vperm.xlu0 %6052, %v9327_v56   ;;  %v2875_v60 = vmax.f32 %v2803_v43, 0.0  ;;  %v9854_v53 = vpop.permute.xlu0 %3762 }
 0x421   : > { %3986 = vperm.xlu1 %6001, %v9709_v45   ;;  %v9847_v62 = vpop.f32.mrf.mxu0  ;;  %12744 = vst [vmem:[#allocation196_spill] sm:$0xff] %v9854_v53 }
 0x422   : > { %v2806_v19 = vadd.f32 %v5726_v52, %v9156_v28 }
 0x423   : > { %v9850_v20 = vpop.permute.xlu1 %3774  ;;  %v9852_v8 = vpop.f32.mrf.mxu0 }
 0x424   : > { %12743 = vst [vmem:[#allocation195_spill] sm:$0xff] %v9850_v20  ;;  %v2876_v30 = vmax.f32 %v2806_v19, 0.0  ;;  %4366 = vperm.xlu0 %6052, %v9429_v44   ;;  %v9871_v2 = vpop.permute.xlu0 %3770  ;;  %v12749_v19 = vmov 7  }
 0x425   : > { %6002 = vset.pattern.permute.xlu1 %v12723_v31  ;;  %v9858_v23 = vpop.f32.mrf.mxu0  ;;  %12747 = vst [vmem:[#allocation200_spill] sm:$0xff] %v9871_v2 }
 0x426   : > { %4386 = vperm.xlu1 %6002, %v9755_v16   ;;  %v9861_v56 = vpack.c.bf16 %v2876_v30, %v2875_v60 }
 0x427   : > { %v9863_v34 = vpop.permute.xlu1 %3782  ;;  %v9865_v28 = vpop.f32.mrf.mxu0 }
 0x428   : > { %12745 = vst [vmem:[#allocation197_spill] sm:$0xff] %v9861_v56  ;;  %12746 = vst [vmem:[#allocation199_spill] sm:$0xff] %v9863_v34  ;;  %4298 = vperm.xlu0 %6052, %v9514_v9   ;;  %v9886_v34 = vpop.permute.xlu0 %3778 }
 0x429   : > { %v9868_v52 = vpop.f32.mrf.mxu0  ;;  %12751 = vst [vmem:[#allocation203_spill] sm:$0xff] %v9886_v34 }
 0x42a   : > { %4390 = vperm.xlu1 %6002, %v9549_v57  }
 0x42b   : > { %v9873_v44 = vpop.permute.xlu1 %3790  ;;  %v9875_v55 = vpop.f32.mrf.mxu0 }
 0x42c   : > { %12748 = vst [vmem:[#allocation201_spill] sm:$0xff] %v9873_v44  ;;  %4358 = vperm.xlu0 %6052, %v9412_v50  }
 0x42d   : > { %v9878_v43 = vpop.f32.mrf.mxu0 }
 0x42e   : > { %6003 = vset.pattern.permute.xlu1 %v12749_v19 }
 0x42f   : > { %4790 = vperm.xlu1 %6003, %v9565_v38   ;;  %v9882_v60 = vpop.permute.xlu1 %3798  ;;  %v9884_v30 = vpop.f32.mrf.mxu0 }
 0x430   : > { %12750 = vst [vmem:[#allocation202_spill] sm:$0xff] %v9882_v60  ;;  %4290 = vperm.xlu0 %6052, %v9500_v41   ;;  %v9898_v60 = vpop.permute.xlu0 %3786 }
 0x431   : > { %v9889_v20 = vpop.f32.mrf.mxu0  ;;  %12753 = vst [vmem:[#allocation198_spill] sm:$0xff] %v9898_v60 }
 0x433   : > { %6004 = vset.pattern.permute.xlu1 %v12723_v31  ;;  %v9892_v44 = vpop.permute.xlu1 %3806  ;;  %v9894_v50 = vpop.f32.mrf.mxu0 }
 0x434   : > { %12752 = vst [vmem:[#allocation204_spill] sm:$0xff] %v9892_v44  ;;  %4322 = vperm.xlu1 %6004, %v9557_v58   ;;  %4350 = vperm.xlu0 %6052, %v9401_v13   ;;  %v9907_v40 = vpop.permute.xlu0 %3794 }
 0x435   : > { %v5742_v38 = vpop.f32.mrf.mxu0  ;;  %12756 = vst [vmem:[#allocation209_spill] sm:$0xff] %v9907_v40 }
 0x437   : > { %v5743_v2 = vpop.f32.mrf.mxu0 }
 0x438   : > { %6005 = vset.pattern.permute.xlu1 %v12749_v19  ;;  %v9901_v34 = vpop.permute.xlu1 %3882  ;;  %4282 = vperm.xlu0 %6052, %v9271_v29  }
 0x439   : > { %12754 = vst [vmem:[#allocation207_spill] sm:$0xff] %v9901_v34  ;;  %4722 = vperm.xlu1 %6005, %v9573_v54   ;;  %v5745_v53 = vpop.f32.mrf.mxu0  ;;  %v9916_v34 = vpop.permute.xlu0 %3802 }
 0x43a   : > { %12758 = vst [vmem:[#allocation212_spill] sm:$0xff] %v9916_v34 }
 0x43b   : > { %v5746_v44 = vpop.f32.mrf.mxu0 }
 0x43c   : > { %v9905_v1 = vpop.permute.xlu1 %3890  ;;  %4342 = vperm.xlu0 %6052, %v9384_v47  }
 0x43d   : > { %12755 = vst [vmem:[#allocation208_spill] sm:$0xff] %v9905_v1  ;;  %4726 = vperm.xlu1 %6005, %v9372_v46   ;;  %v5748_v13 = vpop.f32.mrf.mxu0 }
 0x43f   : > { %v5749_v60 = vpop.f32.mrf.mxu0 }
 0x440   : > { %v9911_v0 = vpop.permute.xlu1 %3894  ;;  %4274 = vperm.xlu0 %6052, %v9260_v14  }
 0x441   : > { %12757 = vst [vmem:[#allocation211_spill] sm:$0xff] %v9911_v0  ;;  %6006 = vset.pattern.permute.xlu1 %v12699_v59  ;;  %v5751_v29 = vpop.f32.mrf.mxu0  ;;  %v9926_v0 = vpop.permute.xlu0 %3810 }
 0x442   : > { %4186 = vperm.xlu1 %6006, %v9533_v6   ;;  %12761 = vst [vmem:[#allocation214_spill] sm:$0xff] %v9926_v0  ;;  %v5750_v0 = vadd.f32 %v5749_v60, %v5748_v13 }
 0x443   : > { %v5752_v1 = vpop.f32.mrf.mxu0 }
 0x444   : > { %v9918_v21 = vpop.permute.xlu1 %3902  ;;  %6057 = vset.pattern.permute.xlu0 %v12733_v37  ;;  %v5753_v39 = vadd.f32 %v5752_v1, %v5751_v29  ;;  %v5744_v29 = vadd.f32 %v5743_v2, %v5742_v38 }
 0x445   : > { %12759 = vst [vmem:[#allocation206_spill] sm:$0xff] %v9918_v21  ;;  %v5754_v40 = vpop.f32.mrf.mxu0  ;;  %4526 = vperm.xlu0 %6057, %v9573_v54   ;;  %v9934_v56 = vpop.permute.xlu0 %3886 }
 0x446   : > { %6007 = vset.pattern.permute.xlu1 %v12733_v37  ;;  %12762 = vst [vmem:[#allocation8_spill] sm:$0xff] %v9934_v56 }
 0x447   : > { %4582 = vperm.xlu1 %6007, %v9755_v16   ;;  %v5755_v14 = vpop.f32.mrf.mxu0 }
 0x448   : > { %v9924_v46 = vpop.permute.xlu1 %3910  ;;  %v5756_v34 = vadd.f32 %v5755_v14, %v5754_v40  ;;  %v2843_v40 = vadd.f32 %v5753_v39, %v9122_v12  ;;  %v2838_v14 = vadd.f32 %v5750_v0, %v9205_v10  ;;  %v5741_v12 = vadd.f32 %v9894_v50, %v9889_v20 }
 0x449   : > { %12760 = vst [vmem:[#allocation7_spill] sm:$0xff] %v9924_v46  ;;  %v5757_v27 = vpop.f32.mrf.mxu0  ;;  %4586 = vperm.xlu0 %6057, %v9549_v57   ;;  %v9948_v13 = vpop.permute.xlu0 %3898 }
 0x44a   : > { %v2846_v36 = vadd.f32 %v5756_v34, %v9219_v48 }
 0x44b   : > { %6008 = vset.pattern.permute.xlu1 %v12699_v59  ;;  %v5758_v21 = vpop.f32.mrf.mxu0 }
 0x44c   : > { %v5759_v6 = vadd.f32 %v5758_v21, %v5757_v27  ;;  %4118 = vperm.xlu1 %6008, %v9541_v11   ;;  %v9931_v54 = vpop.permute.xlu1 %3918  ;;  %v5747_v21 = vadd.f32 %v5746_v44, %v5745_v53  ;;  %v2886_v60 = vmax.f32 %v2846_v36, 0.0  ;;  %v2884_v36 = vmax.f32 %v2838_v14, 0.0  ;;  %v12768_v14 = vld [vmem:[#allocation197_spill] sm:$0xff] }
 0x44d   : > { %v5760_v24 = vpop.f32.mrf.mxu0  ;;  %4518 = vperm.xlu0 %6057, %v9557_v58   ;;  %v5735_v53 = vadd.f32 %v9875_v55, %v9868_v52  ;;  %v9966_v2 = vpop.permute.xlu0 %3906 }
 0x44e   : > { %v2851_v27 = vadd.f32 %v5759_v6, %v9135_v26  ;;  %v2835_v26 = vadd.f32 %v5747_v21, %v9112_v61  ;;  %v2830_v6 = vadd.f32 %v5744_v29, %v9197_v22  ;;  %v2827_v61 = vadd.f32 %v5741_v12, %v9096_v17  ;;  %v12767_v29 = vld [vmem:[#allocation170_spill] sm:$0xff] }
 0x44f   : > { %v5761_v46 = vpop.f32.mrf.mxu0  ;;  %v5732_v22 = vadd.f32 %v9865_v28, %v9858_v23  ;;  %v5729_v17 = vadd.f32 %v9852_v8, %v9847_v62  ;;  %v12764_v62 = vld [vmem:[#allocation65_spill] sm:$0xff] }
 0x450   : > { %v5762_v47 = vadd.f32 %v5761_v46, %v5760_v24  ;;  %4122 = vperm.xlu1 %6008, %v9344_v33   ;;  %v9938_v59 = vpop.permute.xlu1 %3926  ;;  %v2887_v24 = vmax.f32 %v2851_v27, 0.0  ;;  %v2883_v20 = vmax.f32 %v2835_v26, 0.0  ;;  %v2881_v52 = vmax.f32 %v2827_v61, 0.0  ;;  %v12773_v26 = vld [vmem:[#allocation161_spill] sm:$0xff] }
 0x451   : > { %4510 = vperm.xlu0 %6057, %v9541_v11  }
 0x452   : > { %v2854_v1 = vadd.f32 %v5762_v47, %v9227_v35  ;;  %v2885_v35 = vmax.f32 %v2843_v40, 0.0  ;;  %v5738_v47 = vadd.f32 %v9884_v30, %v9878_v43  ;;  %v2882_v43 = vmax.f32 %v2830_v6, 0.0 }
 0x453   : > { %v2902_v30 = vpack.c.bf16 %v2884_v36, %v2883_v20 }
 0x454   : > { %6009 = vset.pattern.permute.xlu1 %v12733_v37  ;;  %v9946_v48 = vpop.permute.xlu1 %3934  ;;  %v2888_v34 = vmax.f32 %v2854_v1, 0.0  ;;  %v2903_v0 = vpack.c.bf16 %v2886_v60, %v2885_v35  ;;  %v2822_v44 = vadd.f32 %v5738_v47, %v9183_v7  ;;  %v2814_v7 = vadd.f32 %v5732_v22, %v9169_v63  ;;  %v6237_v22 = vld [vmem:[%s11990_s7 + $0x58] sm:$0xff] }
 0x455   : > { %4522 = vperm.xlu1 %6009, %v9355_v32   ;;  %4570 = vperm.xlu0 %6057, %v9440_v15   ;;  %v2901_v55 = vpack.c.bf16 %v2882_v43, %v2881_v52  ;;  %v12774_v35 = vmov 4  }
 0x456   : > { %v2904_v10 = vpack.c.bf16 %v2888_v34, %v2887_v24  ;;  %v2880_v23 = vmax.f32 %v2822_v44, 0.0  ;;  %v2878_v50 = vmax.f32 %v2814_v7, 0.0  ;;  %v12771_v24 = vld [vmem:[#allocation193_spill] sm:$0xff]  ;;  %v12772_v34 = vld [vmem:[#allocation174_spill] sm:$0xff]  ;;  %v12785_v7 = vmov 0  }
 0x457   : > { %v5612_v12 = vcombine.low %v12772_v34, %v12772_v34 }
 0x458   : > { %v9958_v39 = vpop.permute.xlu1 %3942  ;;  %5763 = vmatprep.subr.bf16.mxu1 %v2904_v10  ;;  %v10030_v10 = vld [vmem:[%s11990_s7 + $0xc0] sm:$0xff] }
 0x459   : > { %6010 = vset.pattern.permute.xlu1 %v12669_v4  ;;  %5764 = vmatpush3.bf16.msra.mxu1 %v9822_v51 }
 0x45a   : > { %3982 = vperm.xlu1 %6010, %v9440_v15   ;;  %5765 = vmatprep.subr.bf16.mxu1 %v2903_v0  ;;  %v2819_v15 = vadd.f32 %v5735_v53, %v9073_v49  ;;  %v2811_v49 = vadd.f32 %v5729_v17, %v12764_v62  ;;  %v12779_v0 = vld [vmem:[#allocation122_spill] sm:$0xff] }
 0x45b   : > { %4502 = vperm.xlu0 %6057, %v9525_v18  }
 0x45c   : > { %v9972_v51 = vpop.permute.xlu1 %3950  ;;  %v2879_v8 = vmax.f32 %v2819_v15, 0.0  ;;  %v2877_v46 = vmax.f32 %v2811_v49, 0.0  ;;  %v10079_v15 = vld [vmem:[%s11990_s7 + $0x8] sm:$0xff] }
 0x45d   : > { %12763 = vst [vmem:[#allocation210_spill] sm:$0xff] %v9972_v51  ;;  %5766 = vmatpush3.bf16.msra.mxu1 %v9807_v25  ;;  %v9984_v25 = vpop.permute.xlu0 %3914 }
 0x45e   : > { %6011 = vset.pattern.permute.xlu1 %v12723_v31  ;;  %5767 = vmatprep.subr.bf16.mxu1 %v2902_v30  ;;  %v2900_v38 = vpack.c.bf16 %v2880_v23, %v2879_v8  ;;  %v2899_v21 = vpack.c.bf16 %v2878_v50, %v2877_v46  ;;  %v12784_v30 = vld [vmem:[#allocation172_spill] sm:$0xff] }
 0x45f   : > { %4378 = vperm.xlu1 %6011, %v9709_v45   ;;  %4494 = vperm.xlu0 %6057, %v9514_v9   ;;  %v10112_v46 = vld [vmem:[%s11990_s7 + $0xb8] sm:$0xff] }
 0x460   : > { %v9982_v28 = vpop.permute.xlu1 %3958 }
 0x461   : > { %5768 = vmatpush3.bf16.msra.mxu1 %v9791_v5  ;;  %v9994_v27 = vpop.permute.xlu0 %3922  ;;  %v6234_v5 = vld [vmem:[%s11990_s7 + $0x10] sm:$0xff] }
 0x462   : > { %5769 = vmatprep.subr.bf16.mxu1 %v2901_v55  ;;  %v6239_v55 = vld [vmem:[%s11990_s7 + $0xc8] sm:$0xff] }
 0x463   : > { %6012 = vset.pattern.permute.xlu1 %v12749_v19  ;;  %4486 = vperm.xlu0 %6057, %v9500_v41  }
 0x464   : > { %4778 = vperm.xlu1 %6012, %v9755_v16   ;;  %v9991_v63 = vpop.permute.xlu1 %4006  ;;  %v12766_v16 = vld [vmem:[#allocation96_spill] sm:$0xff] }
 0x465   : > { %5770 = vmatpush3.bf16.msra.mxu1 %v9775_v42  ;;  %v10005_v42 = vpop.permute.xlu0 %3930 }
 0x466   : > { %5771 = vmatprep.subr.bf16.mxu1 %v2900_v38 }
 0x467   : > { %4478 = vperm.xlu0 %6057, %v6234_v5  }
 0x468   : > { %4782 = vperm.xlu1 %6012, %v9549_v57   ;;  %v12769_v57 = vld [vmem:[#allocation178_spill] sm:$0xff] }
 0x469   : > { %v10000_v40 = vpop.permute.xlu1 %4202  ;;  %5772 = vmatpush3.bf16.msra.mxu1 %v9750_v3  ;;  %v12770_v3 = vld [vmem:[#allocation165_spill] sm:$0xff] }
 0x46a   : > { %12765 = vst [vmem:[#allocation9_spill] sm:$0xff] %v10000_v40  ;;  %5773 = vmatprep.subr.bf16.mxu1 %v2899_v21  ;;  %v12826_v40 = vld [vmem:[#allocation66_spill] sm:$0xff] }
 0x46b   : > { %4538 = vperm.xlu0 %6057, %v12766_v16   ;;  %v10130_v16 = vld [vmem:[%s11990_s7 + $0x38] sm:$0xff] }
 0x46c   : > { %6013 = vset.pattern.permute.xlu1 %v12723_v31 }
 0x46d   : > { %4318 = vperm.xlu1 %6013, %v9344_v33   ;;  %v10008_v1 = vpop.permute.xlu1 %4134  ;;  %5774 = vmatpush3.bf16.msra.mxu1 %v12767_v29  ;;  %v10020_v33 = vpop.permute.xlu0 %3938 }
 0x46e   : > { %5775 = vmatprep.subr.bf16.mxu1 %v12768_v14 }
 0x46f   : > { %6061 = vset.pattern.permute.xlu0 %v12749_v19 }
 0x470   : > { %4786 = vperm.xlu0 %6061, %v12769_v57  }
 0x471   : > { %6014 = vset.pattern.permute.xlu1 %v12749_v19  ;;  %5776 = vmatpush3.bf16.msra.mxu1 %v12770_v3  ;;  %v10035_v47 = vpop.permute.xlu0 %3946  ;;  %v10147_v3 = vld [vmem:[%s11990_s7 + $0xa8] sm:$0xff] }
 0x472   : > { %4718 = vperm.xlu1 %6014, %v9355_v32   ;;  %v10017_v60 = vpop.permute.xlu1 %3994  ;;  %5777 = vmatprep.subr.bf16.mxu1 %v12771_v24  ;;  %12776 = vst [vmem:[#allocation213_spill] sm:$0xff] %v10035_v47  ;;  %v12802_v47 = vld [vmem:[#allocation155_spill] sm:$0xff] }
 0x474   : > { %4714 = vperm.xlu0 %6061, %v9557_v58  }
 0x475   : > { %5778 = vmatpush3.bf16.msra.mxu1 %v12773_v26  ;;  %v10043_v6 = vpop.permute.xlu0 %3954 }
 0x476   : > { %6015 = vset.pattern.permute.xlu1 %v12774_v35 }
 0x477   : > { %4174 = vperm.xlu1 %6015, %v10030_v10   ;;  %v10033_v32 = vpop.permute.xlu1 %4394 }
 0x478   : > { %12775 = vst [vmem:[#allocation10_spill] sm:$0xff] %v10033_v32  ;;  %2950 = vmatmul.mubr.bf16.vlgmr.msra.gmra.mxu1 %v5612_v12  ;;  %4770 = vperm.xlu0 %6061, %v9709_v45  }
 0x479   : > { %v10052_v61 = vpop.permute.xlu0 %4002 }
 0x47b   : > { %6016 = vset.pattern.permute.xlu1 %v12733_v37  ;;  %v10039_v58 = vpop.permute.xlu1 %4398 }
 0x47c   : > { %12777 = vst [vmem:[#allocation11_spill] sm:$0xff] %v10039_v58  ;;  %4574 = vperm.xlu1 %6016, %v9709_v45   ;;  %4698 = vperm.xlu0 %6061, %v9525_v18   ;;  %v10058_v45 = vld [vmem:[%s11990_s7 + $0x48] sm:$0xff] }
 0x47d   : > { %v10067_v44 = vpop.permute.xlu0 %3998 }
 0x47f   : > { %v10045_v36 = vpop.permute.xlu1 %4334 }
 0x480   : > { %12778 = vst [vmem:[#allocation12_spill] sm:$0xff] %v10045_v36  ;;  %4578 = vperm.xlu1 %6016, %v12779_v0   ;;  %4690 = vperm.xlu0 %6061, %v9514_v9  }
 0x481   : > { %v10074_v17 = vpop.permute.xlu0 %3990 }
 0x484   : > { %6017 = vset.pattern.permute.xlu1 %v12774_v35  ;;  %v10050_v53 = vpop.permute.xlu1 %4190  ;;  %4682 = vperm.xlu0 %6061, %v9500_v41   ;;  %v12782_v41 = vld [vmem:[#allocation130_spill] sm:$0xff] }
 0x485   : > { %12780 = vst [vmem:[#allocation13_spill] sm:$0xff] %v10050_v53  ;;  %4114 = vperm.xlu1 %6017, %v10058_v45  }
 0x488   : > { %4674 = vperm.xlu0 %6061, %v6234_v5   ;;  %v10123_v5 = vpop.permute.xlu0 %3978 }
 0x489   : > { %6018 = vset.pattern.permute.xlu1 %v12733_v37  ;;  %v10062_v20 = vpop.permute.xlu1 %4590 }
 0x48a   : > { %12781 = vst [vmem:[#allocation14_spill] sm:$0xff] %v10062_v20  ;;  %4514 = vperm.xlu1 %6018, %v6237_v22  }
 0x48c   : > { %4730 = vperm.xlu0 %6061, %v12782_v41   ;;  %v10133_v29 = vpop.permute.xlu0 %3974 }
 0x48d   : > { %v10070_v43 = vpop.permute.xlu1 %4594 }
 0x48e   : > { %12783 = vst [vmem:[#allocation15_spill] sm:$0xff] %v10070_v43  ;;  %6019 = vset.pattern.permute.xlu1 %v12669_v4 }
 0x48f   : > { %3970 = vperm.xlu1 %6019, %v12784_v30  }
 0x490   : > { %4670 = vperm.xlu0 %6061, %v10079_v15  }
 0x492   : > { %v10082_v52 = vpop.permute.xlu1 %4130 }
 0x493   : > { %6020 = vset.pattern.permute.xlu1 %v12723_v31 }
 0x494   : > { %4370 = vperm.xlu1 %6020, %v10030_v10   ;;  %6064 = vset.pattern.permute.xlu0 %v12785_v7 }
 0x497   : > { %v10087_v23 = vpop.permute.xlu1 %4530 }
 0x498   : > { %12786 = vst [vmem:[#allocation17_spill] sm:$0xff] %v10087_v23  ;;  %4374 = vperm.xlu1 %6020, %v6239_v55  }
 0x49c   : > { %6021 = vset.pattern.permute.xlu1 %v12749_v19  ;;  %v10093_v62 = vpop.permute.xlu1 %3986 }
 0x49d   : > { %4774 = vperm.xlu1 %6021, %v12779_v0  }
 0x4a1   : > { %6022 = vset.pattern.permute.xlu1 %v12723_v31  ;;  %v10097_v49 = vpop.permute.xlu1 %4386 }
 0x4a2   : > { %12787 = vst [vmem:[#allocation19_spill] sm:$0xff] %v10097_v49  ;;  %4306 = vperm.xlu1 %6022, %v9525_v18  }
 0x4a5   : > { %v10100_v8 = vpop.permute.xlu1 %4390 }
 0x4a6   : > { %12788 = vst [vmem:[#allocation22_spill] sm:$0xff] %v10100_v8  ;;  %6023 = vset.pattern.permute.xlu1 %v12749_v19 }
 0x4a7   : > { %4706 = vperm.xlu1 %6023, %v9541_v11  }
 0x4aa   : > { %v10104_v50 = vpop.permute.xlu1 %4790 }
 0x4ab   : > { %12789 = vst [vmem:[#allocation24_spill] sm:$0xff] %v10104_v50  ;;  %4710 = vperm.xlu1 %6023, %v6237_v22  }
 0x4af   : > { %6024 = vset.pattern.permute.xlu1 %v12774_v35  ;;  %v10107_v38 = vpop.permute.xlu1 %4322 }
 0x4b0   : > { %12790 = vst [vmem:[#allocation40_spill] sm:$0xff] %v10107_v38  ;;  %4170 = vperm.xlu1 %6024, %v10112_v46  }
 0x4b4   : > { %6025 = vset.pattern.permute.xlu1 %v12733_v37  ;;  %v10116_v18 = vpop.permute.xlu1 %4722 }
 0x4b5   : > { %12791 = vst [vmem:[#allocation47_spill] sm:$0xff] %v10116_v18  ;;  %4566 = vperm.xlu1 %6025, %v10030_v10  }
 0x4b8   : > { %v10119_v11 = vpop.permute.xlu1 %4726 }
 0x4b9   : > { %12792 = vst [vmem:[#allocation28_spill] sm:$0xff] %v10119_v11  ;;  %6026 = vset.pattern.permute.xlu1 %v12774_v35 }
 0x4ba   : > { %4102 = vperm.xlu1 %6026, %v9514_v9   ;;  %v10139_v9 = vpop.permute.xlu0 %3962 }
 0x4bd   : > { %v10125_v21 = vpop.permute.xlu1 %4186 }
 0x4be   : > { %12793 = vst [vmem:[#allocation48_spill] sm:$0xff] %v10125_v21  ;;  %4106 = vperm.xlu1 %6026, %v10130_v16   ;;  %v10153_v34 = vpop.permute.xlu0 %4198 }
 0x4bf   : > { %12795 = vst [vmem:[#allocation20_spill] sm:$0xff] %v10153_v34 }
 0x4c2   : > { %6027 = vset.pattern.permute.xlu1 %v12733_v37  ;;  %v10136_v14 = vpop.permute.xlu1 %4582 }
 0x4c3   : > { %12794 = vst [vmem:[#allocation36_spill] sm:$0xff] %v10136_v14  ;;  %4506 = vperm.xlu1 %6027, %v10058_v45  }
 0x4c7   : > { %6029 = vset.pattern.permute.xlu1 %v12669_v4  ;;  %v10142_v57 = vpop.permute.xlu1 %4118  ;;  %v10160_v4 = vpop.permute.xlu0 %4138 }
 0x4c8   : > { %3966 = vperm.xlu1 %6029, %v10147_v3  }
 0x4cb   : > { %v10150_v24 = vpop.permute.xlu1 %4122  ;;  %v10164_v0 = vpop.permute.xlu0 %4194 }
 0x4cc   : > { %6030 = vset.pattern.permute.xlu1 %v12723_v31  ;;  %12797 = vst [vmem:[#allocation38_spill] sm:$0xff] %v10164_v0 }
 0x4cd   : > { %4362 = vperm.xlu1 %6030, %v12784_v30  }
 0x4cf   : > { %v10170_v41 = vpop.permute.xlu0 %4126 }
 0x4d0   : > { %v10156_v12 = vpop.permute.xlu1 %4522 }
 0x4d1   : > { %12796 = vst [vmem:[#allocation27_spill] sm:$0xff] %v10156_v12  ;;  %6031 = vset.pattern.permute.xlu1 %v12749_v19 }
 0x4d2   : > { %4762 = vperm.xlu1 %6031, %v10030_v10  }
 0x4d5   : > { %v10162_v26 = vpop.permute.xlu1 %3982 }
 0x4d6   : > { %4766 = vperm.xlu1 %6031, %v6239_v55   ;;  %v10179_v55 = vpop.permute.xlu0 %4182 }
 0x4d7   : > { %12801 = vst [vmem:[#allocation37_spill] sm:$0xff] %v10179_v55  ;;  %v12864_v55 = vld [vmem:[#allocation67_spill] sm:$0xff] }
 0x4da   : > { %6032 = vset.pattern.permute.xlu1 %v12723_v31  ;;  %v10167_v22 = vpop.permute.xlu1 %4378  ;;  %v10186_v50 = vpop.permute.xlu0 %4178 }
 0x4db   : > { %12798 = vst [vmem:[#allocation33_spill] sm:$0xff] %v10167_v22  ;;  %4302 = vperm.xlu1 %6032, %v10130_v16   ;;  %12804 = vst [vmem:[#allocation16_spill] sm:$0xff] %v10186_v50  ;;  %v12866_v50 = vld [vmem:[#allocation76_spill] sm:$0xff] }
 0x4df   : > { %6033 = vset.pattern.permute.xlu1 %v12749_v19  ;;  %v10173_v56 = vpop.permute.xlu1 %4778 }
 0x4e0   : > { %12799 = vst [vmem:[#allocation18_spill] sm:$0xff] %v10173_v56  ;;  %4702 = vperm.xlu1 %6033, %v10058_v45   ;;  %v10191_v45 = vpop.permute.xlu0 %4110  ;;  %v10199_v56 = vld [vmem:[%s11990_s7 + $0x28] sm:$0xff] }
 0x4e3   : > { %v10176_v10 = vpop.permute.xlu1 %4782 }
 0x4e4   : > { %12800 = vst [vmem:[#allocation26_spill] sm:$0xff] %v10176_v10  ;;  %6034 = vset.pattern.permute.xlu1 %v12774_v35  ;;  %v10202_v18 = vpop.permute.xlu0 %4166 }
 0x4e5   : > { %4158 = vperm.xlu1 %6034, %v12802_v47  }
 0x4e8   : > { %v10182_v51 = vpop.permute.xlu1 %4318  ;;  %v10211_v20 = vpop.permute.xlu0 %4162 }
 0x4e9   : > { %12803 = vst [vmem:[#allocation31_spill] sm:$0xff] %v10182_v51  ;;  %6035 = vset.pattern.permute.xlu1 %v12733_v37 }
 0x4ea   : > { %4558 = vperm.xlu1 %6035, %v12784_v30  }
 0x4ec   : > { %v10218_v23 = vpop.permute.xlu0 %4094 }
 0x4ed   : > { %v10188_v11 = vpop.permute.xlu1 %4718 }
 0x4ee   : > { %12805 = vst [vmem:[#allocation25_spill] sm:$0xff] %v10188_v11  ;;  %4562 = vperm.xlu1 %6035, %v10112_v46  }
 0x4f2   : > { %6036 = vset.pattern.permute.xlu1 %v12774_v35  ;;  %v10194_v10 = vpop.permute.xlu1 %4174 }
 0x4f3   : > { %12806 = vst [vmem:[#allocation34_spill] sm:$0xff] %v10194_v10  ;;  %4098 = vperm.xlu1 %6036, %v10199_v56  }
 0x4f7   : > { %6037 = vset.pattern.permute.xlu1 %v12733_v37  ;;  %v10205_v11 = vpop.permute.xlu1 %4574 }
 0x4f8   : > { %12807 = vst [vmem:[#allocation30_spill] sm:$0xff] %v10205_v11  ;;  %4498 = vperm.xlu1 %6037, %v10130_v16   ;;  %v10223_v11 = vpop.permute.xlu0 %4154 }
 0x4fb   : > { %v10208_v43 = vpop.permute.xlu1 %4578 }
 0x4fc   : > { %12808 = vst [vmem:[#allocation42_spill] sm:$0xff] %v10208_v43  ;;  %6038 = vset.pattern.permute.xlu1 %v12723_v31  ;;  %v10229_v58 = vpop.permute.xlu0 %4086 }
 0x4fd   : > { %4354 = vperm.xlu1 %6038, %v12802_v47  }
 0x500   : > { %v10214_v14 = vpop.permute.xlu1 %4114 }
 0x501   : > { %6039 = vset.pattern.permute.xlu1 %v12749_v19 }
 0x502   : > { %4754 = vperm.xlu1 %6039, %v12784_v30  }
 0x505   : > { %v10220_v12 = vpop.permute.xlu1 %4514 }
 0x506   : > { %12809 = vst [vmem:[#allocation23_spill] sm:$0xff] %v10220_v12  ;;  %4758 = vperm.xlu1 %6039, %v10112_v46   ;;  %v10238_v46 = vpop.permute.xlu0 %4146  ;;  %v12813_v12 = vld [vmem:[#allocation144_spill] sm:$0xff] }
 0x507   : > { %12812 = vst [vmem:[#allocation29_spill] sm:$0xff] %v10238_v46 }
 0x50a   : > { %6040 = vset.pattern.permute.xlu1 %v12723_v31  ;;  %v10226_v43 = vpop.permute.xlu1 %3970  ;;  %v10245_v49 = vpop.permute.xlu0 %4078 }
 0x50b   : > { %4294 = vperm.xlu1 %6040, %v10199_v56   ;;  %12815 = vst [vmem:[#allocation52_spill] sm:$0xff] %v10245_v49 }
 0x50f   : > { %6041 = vset.pattern.permute.xlu1 %v12749_v19  ;;  %v10232_v32 = vpop.permute.xlu1 %4370 }
 0x510   : > { %12810 = vst [vmem:[#allocation55_spill] sm:$0xff] %v10232_v32  ;;  %4694 = vperm.xlu1 %6041, %v10130_v16   ;;  %v10250_v16 = vpop.permute.xlu0 %4330  ;;  %v6245_v32 = vld [vmem:[%s11990_s7 + $0x90] sm:$0xff] }
 0x511   : > { %12817 = vst [vmem:[#allocation58_spill] sm:$0xff] %v10250_v16 }
 0x513   : > { %v10235_v30 = vpop.permute.xlu1 %4374 }
 0x514   : > { %12811 = vst [vmem:[#allocation32_spill] sm:$0xff] %v10235_v30  ;;  %6042 = vset.pattern.permute.xlu1 %v12774_v35  ;;  %v10263_v49 = vpop.permute.xlu0 %4326 }
 0x515   : > { %4150 = vperm.xlu1 %6042, %v12813_v12   ;;  %v10258_v12 = vld [vmem:[%s11990_s7 + $0x18] sm:$0xff]  ;;  %12820 = vst [vmem:[#allocation61_spill] sm:$0xff] %v10263_v49 }
 0x518   : > { %v10241_v8 = vpop.permute.xlu1 %4774 }
 0x519   : > { %12814 = vst [vmem:[#allocation63_spill] sm:$0xff] %v10241_v8  ;;  %6043 = vset.pattern.permute.xlu1 %v12733_v37 }
 0x51a   : > { %4550 = vperm.xlu1 %6043, %v12802_v47  }
 0x51d   : > { %v10247_v22 = vpop.permute.xlu1 %4306 }
 0x51e   : > { %12816 = vst [vmem:[#allocation45_spill] sm:$0xff] %v10247_v22  ;;  %4554 = vperm.xlu1 %6043, %v10147_v3  }
 0x522   : > { %6044 = vset.pattern.permute.xlu1 %v12774_v35  ;;  %v10253_v30 = vpop.permute.xlu1 %4706 }
 0x523   : > { %12818 = vst [vmem:[#allocation21_spill] sm:$0xff] %v10253_v30  ;;  %4090 = vperm.xlu1 %6044, %v10258_v12   ;;  %v10270_v30 = vpop.permute.xlu0 %4382 }
 0x524   : > { %12822 = vst [vmem:[#allocation46_spill] sm:$0xff] %v10270_v30 }
 0x526   : > { %v10261_v46 = vpop.permute.xlu1 %4710 }
 0x527   : > { %12819 = vst [vmem:[#allocation41_spill] sm:$0xff] %v10261_v46  ;;  %6045 = vset.pattern.permute.xlu1 %v12733_v37  ;;  %v10279_v46 = vpop.permute.xlu0 %4314 }
 0x528   : > { %4490 = vperm.xlu1 %6045, %v10199_v56   ;;  %12824 = vst [vmem:[#allocation49_spill] sm:$0xff] %v10279_v46 }
 0x52b   : > { %v10267_v8 = vpop.permute.xlu1 %4170  ;;  %v10284_v38 = vpop.permute.xlu0 %4310 }
 0x52c   : > { %12821 = vst [vmem:[#allocation35_spill] sm:$0xff] %v10267_v8  ;;  %6046 = vset.pattern.permute.xlu1 %v12723_v31  ;;  %12825 = vst [vmem:[#allocation43_spill] sm:$0xff] %v10284_v38 }
 0x52d   : > { %4346 = vperm.xlu1 %6046, %v6245_v32  }
 0x52f   : > { %v10293_v0 = vpop.permute.xlu0 %4366 }
 0x530   : > { %v10275_v36 = vpop.permute.xlu1 %4566  ;;  %12828 = vst [vmem:[#allocation53_spill] sm:$0xff] %v10293_v0 }
 0x531   : > { %12823 = vst [vmem:[#allocation39_spill] sm:$0xff] %v10275_v36  ;;  %6047 = vset.pattern.permute.xlu1 %v12749_v19 }
 0x532   : > { %4746 = vperm.xlu1 %6047, %v12802_v47  }
 0x535   : > { %v10281_v16 = vpop.permute.xlu1 %4102 }
 0x536   : > { %4750 = vperm.xlu1 %6047, %v10147_v3  }
 0x538   : > { %v5779_v49 = vpop.f32.mrf.mxu1 }
 0x539   : > { %v10286_v30 = vpop.permute.xlu1 %4106 }
 0x53a   : > { %6048 = vset.pattern.permute.xlu1 %v12723_v31  ;;  %v5780_v51 = vpop.f32.mrf.mxu1 }
 0x53b   : > { %v5781_v22 = vadd.f32 %v5780_v51, %v5779_v49  ;;  %4286 = vperm.xlu1 %6048, %v10258_v12   ;;  %v10300_v51 = vpop.permute.xlu0 %4298 }
 0x53c   : > { %v5782_v36 = vpop.f32.mrf.mxu1  ;;  %12830 = vst [vmem:[#allocation60_spill] sm:$0xff] %v10300_v51 }
 0x53d   : > { %v2952_v47 = vadd.f32 %v5781_v22, %v12826_v40  ;;  %v10305_v40 = vld [vmem:[%s11990_s7 + $0x80] sm:$0xff] }
 0x53e   : > { %v10291_v34 = vpop.permute.xlu1 %4506  ;;  %v5783_v46 = vpop.f32.mrf.mxu1 }
 0x53f   : > { %12827 = vst [vmem:[#allocation50_spill] sm:$0xff] %v10291_v34  ;;  %v2958_v3 = vmin.f32 %v2952_v47, 20.0  ;;  %6049 = vset.pattern.permute.xlu1 %v12749_v19  ;;  %vm2957_vm1 = vcmp.gt.f32.partialorder %v2952_v47, 20.0 }
 0x540   : > { %4686 = vperm.xlu1 %6049, %v10199_v56   ;;  %v10311_v56 = vpop.permute.xlu0 %4358 }
 0x541   : > { %v2959_v38 = vmul.f32 1.442695, %v2958_v3  ;;  %12832 = vst [vmem:[#allocation51_spill] sm:$0xff] %v10311_v56 }
 0x543   : > { %6165 = vpow2.f32 %v2959_v38  ;;  %v10297_v53 = vpop.permute.xlu1 %3966  ;;  %v6247_v38 = vld [vmem:[%s11990_s7 + $0x98] sm:$0xff] }
 0x544   : > { %12829 = vst [vmem:[#allocation57_spill] sm:$0xff] %v10297_v53  ;;  %6050 = vset.pattern.permute.xlu1 %v12774_v35  ;;  %v10318_v46 = vpop.permute.xlu0 %4290 }
 0x545   : > { %4142 = vperm.xlu1 %6050, %v10305_v40   ;;  %12834 = vst [vmem:[#allocation56_spill] sm:$0xff] %v10318_v46 }
 0x548   : > { %v10308_v36 = vpop.permute.xlu1 %4362 }
 0x549   : > { %12831 = vst [vmem:[#allocation44_spill] sm:$0xff] %v10308_v36  ;;  %6051 = vset.pattern.permute.xlu1 %v12733_v37 }
 0x54a   : > { %4542 = vperm.xlu1 %6051, %v6245_v32  }
 0x54d   : > { %v10313_v49 = vpop.permute.xlu1 %4762 }
 0x54e   : > { %12833 = vst [vmem:[#allocation54_spill] sm:$0xff] %v10313_v49  ;;  %4546 = vperm.xlu1 %6051, %v6247_v38   ;;  %v10326_v49 = vpop.permute.xlu0 %4350 }
 0x54f   : > { %12837 = vst [vmem:[#allocation64_spill] sm:$0xff] %v10326_v49 }
 0x550   : > { %v6166_v22 = vpop.eup %6165 }
 0x551   : > { %v2961_v3 = vadd.f32 1.0, %v6166_v22  ;;  %v10320_v53 = vpop.permute.xlu1 %4766  ;;  %v2964_v34 = vmul.f32 -0.5, %v6166_v22 }
 0x552   : > { %12835 = vst [vmem:[#allocation59_spill] sm:$0xff] %v10320_v53  ;;  %6053 = vset.pattern.permute.xlu1 %v12774_v35  ;;  %v10334_v53 = vpop.permute.xlu0 %4282 }
 0x553   : > { %6167 = vlog2.f32 %v2961_v3  ;;  %4082 = vperm.xlu1 %6053, %v10079_v15   ;;  %12839 = vst [vmem:[#allocation96_spill] sm:$0xff] %v10334_v53  ;;  %v2965_v35 = vadd.f32 1.0, %v2964_v34  ;;  %v2967_v3 = vand.u32 2147483647, %v6166_v22 }
 0x555   : > { %v2966_v51 = vmul.f32 %v6166_v22, %v2965_v35  ;;  %vm2968_vm0 = vcmp.lt.f32.partialorder %v2967_v3, 0.0004427343 }
 0x556   : > { %v10324_v36 = vpop.permute.xlu1 %4302 }
 0x557   : > { %12836 = vst [vmem:[#allocation62_spill] sm:$0xff] %v10324_v36  ;;  %6054 = vset.pattern.permute.xlu1 %v12733_v37 }
 0x558   : > { %4482 = vperm.xlu1 %6054, %v10258_v12  }
 0x55b   : > { %v10330_v0 = vpop.permute.xlu1 %4702 }
 0x55c   : > { %12838 = vst [vmem:[#allocation65_spill] sm:$0xff] %v10330_v0  ;;  %6055 = vset.pattern.permute.xlu1 %v12723_v31  ;;  %v10342_v0 = vpop.permute.xlu0 %4342 }
 0x55d   : > { %4338 = vperm.xlu1 %6055, %v10305_v40   ;;  %12841 = vst [vmem:[#allocation197_spill] sm:$0xff] %v10342_v0 }
 0x560   : > { %v6168_v36 = vpop.eup %6167  ;;  %v10339_v56 = vpop.permute.xlu1 %4158 }
 0x561   : > { %12840 = vst [vmem:[#allocation170_spill] sm:$0xff] %v10339_v56  ;;  %v2963_v49 = vmul.f32 0.6931472, %v6168_v36  ;;  %6056 = vset.pattern.permute.xlu1 %v12749_v19  ;;  %v10349_v21 = vpop.permute.xlu0 %4274 }
 0x562   : > { %4738 = vperm.xlu1 %6056, %v6245_v32   ;;  %12843 = vst [vmem:[#allocation165_spill] sm:$0xff] %v10349_v21  ;;  %v12845_v32 = vld [vmem:[#allocation205_spill] sm:$0xff] }
 0x563   : > { %v2969_v46 = vsel %vm2968_vm0, %v2966_v51, %v2963_v49  ;;  %v12846_v22 = vsub.s32 0, %v12845_v32  ;;  %v12849_v49 = vsub.s32 1, %v12845_v32 }
 0x564   : > { %v2970_v53 = vsel %vm2957_vm1, %v2952_v47, %v2969_v46 }
 0x565   : > { %v10344_v34 = vpop.permute.xlu1 %4558  ;;  %5498 = vst [vmem:[%s10346_s23 + $0x8] sm:$0xff] %v2970_v53  ;;  %v3264_v35 = vrot.slane %v2970_v53, %v12846_v22  ;;  %v10359_v47 = vpop.permute.xlu0 %4526  ;;  %v10363_v46 = vrot.slane %v2970_v53, %v12849_v49  ;;  %v12855_v22 = vsub.s32 4, %v12845_v32  ;;  %v12859_v49 = vsub.s32 6, %v12845_v32 }
 0x566   : > { %12842 = vst [vmem:[#allocation178_spill] sm:$0xff] %v10344_v34  ;;  %4742 = vperm.xlu1 %6056, %v6247_v38   ;;  %12848 = vst [vmem:[#allocation161_spill] sm:$0xff] %v10359_v47  ;;  %v12851_v38 = vsub.s32 2, %v12845_v32 }
 0x567   : > { %12850 = vst [vmem:[#allocation122_spill] sm:$0xff] %v10363_v46  ;;  %v10376_v0 = vrot.slane %v2970_v53, %v12855_v22  ;;  %v10385_v34 = vrot.slane %v2970_v53, %v12859_v49  ;;  %v10395_v22 = vmul.f32 %v3264_v35, %v12864_v55  ;;  %v10398_v10 = vmul.f32 %v3264_v35, %v12866_v50  ;;  %v12872_v49 = vld [vmem:[#allocation69_spill] sm:$0xff]  ;;  %v12878_v55 = vld [vmem:[#allocation82_spill] sm:$0xff]  ;;  %v12880_v50 = vld [vmem:[#allocation71_spill] sm:$0xff] }
 0x568   : > { %v10368_v3 = vrot.slane %v2970_v53, %v12851_v38  ;;  %v12861_v38 = vsub.s32 7, %v12845_v32 }
 0x569   : > { %v10351_v36 = vpop.permute.xlu1 %4562  ;;  %12856 = vst [vmem:[#allocation155_spill] sm:$0xff] %v10376_v0  ;;  %12860 = vst [vmem:[#allocation66_spill] sm:$0xff] %v10385_v34  ;;  %v10407_v34 = vmul.f32 %v3264_v35, %v12872_v49 }
 0x56a   : > { %12844 = vst [vmem:[#allocation193_spill] sm:$0xff] %v10351_v36  ;;  %6058 = vset.pattern.permute.xlu1 %v12723_v31  ;;  %12852 = vst [vmem:[#allocation130_spill] sm:$0xff] %v10368_v3  ;;  %v12853_v31 = vsub.s32 3, %v12845_v32  ;;  %v12857_v36 = vsub.s32 5, %v12845_v32  ;;  %v10389_v56 = vrot.slane %v2970_v53, %v12861_v38  ;;  %v12876_v38 = vld [vmem:[#allocation70_spill] sm:$0xff] }
 0x56b   : > { %4278 = vperm.xlu1 %6058, %v10079_v15   ;;  %12867 = vst [vmem:[#allocation67_spill] sm:$0xff] %v10398_v10  ;;  %v10419_v10 = vmul.f32 %v3264_v35, %v12880_v50  ;;  %v12890_v50 = vld [vmem:[#allocation88_spill] sm:$0xff] }
 0x56c   : > { %v10372_v21 = vrot.slane %v2970_v53, %v12853_v31  ;;  %12862 = vst [vmem:[#allocation205_spill] sm:$0xff] %v10389_v56  ;;  %v12863_v31 = vld [vmem:[#allocation74_spill] sm:$0xff] }
 0x56d   : > { %v10392_v47 = vmul.f32 %v3264_v35, %v12863_v31  ;;  %12865 = vst [vmem:[#allocation74_spill] sm:$0xff] %v10395_v22  ;;  %v10413_v31 = vmul.f32 %v3264_v35, %v12876_v38  ;;  %v10416_v22 = vmul.f32 %v3264_v35, %v12878_v55  ;;  %v10436_v55 = vpop.permute.xlu0 %4586 }
 0x56e   : > { %v10357_v51 = vpop.permute.xlu1 %4098  ;;  %12854 = vst [vmem:[#allocation172_spill] sm:$0xff] %v10372_v21 }
 0x56f   : > { %12847 = vst [vmem:[#allocation174_spill] sm:$0xff] %v10357_v51  ;;  %6059 = vset.pattern.permute.xlu1 %v12749_v19  ;;  %v10380_v51 = vrot.slane %v2970_v53, %v12857_v36  ;;  %v12868_v36 = vld [vmem:[#allocation68_spill] sm:$0xff]  ;;  %12879 = vst [vmem:[#allocation70_spill] sm:$0xff] %v10416_v22  ;;  %v10439_v22 = vmul.f32 %v3264_v35, %v12890_v50 }
 0x570   : > { %4678 = vperm.xlu1 %6059, %v10258_v12   ;;  %v12870_v12 = vld [vmem:[#allocation78_spill] sm:$0xff]  ;;  %v12874_v53 = vld [vmem:[#allocation80_spill] sm:$0xff] }
 0x571   : > { %12858 = vst [vmem:[#allocation144_spill] sm:$0xff] %v10380_v51  ;;  %v10401_v51 = vmul.f32 %v3264_v35, %v12868_v36  ;;  %v10404_v8 = vmul.f32 %v3264_v35, %v12870_v12  ;;  %12873 = vst [vmem:[#allocation78_spill] sm:$0xff] %v10407_v34  ;;  %v10410_v32 = vmul.f32 %v3264_v35, %v12874_v53  ;;  %v12886_v34 = vld [vmem:[#allocation86_spill] sm:$0xff] }
 0x572   : > { %12877 = vst [vmem:[#allocation80_spill] sm:$0xff] %v10413_v31  ;;  %v10430_v53 = vmul.f32 %v3264_v35, %v12886_v34  ;;  %v12898_v34 = vld [vmem:[#allocation92_spill] sm:$0xff] }
 0x573   : > { %12869 = vst [vmem:[#allocation76_spill] sm:$0xff] %v10401_v51  ;;  %12871 = vst [vmem:[#allocation68_spill] sm:$0xff] %v10404_v8  ;;  %v10421_v36 = vpop.permute.xlu1 %4498  ;;  %v12882_v51 = vld [vmem:[#allocation84_spill] sm:$0xff] }
 0x574   : > { %12875 = vst [vmem:[#allocation69_spill] sm:$0xff] %v10410_v32  ;;  %12881 = vst [vmem:[#allocation82_spill] sm:$0xff] %v10421_v36  ;;  %v10424_v12 = vmul.f32 %v3264_v35, %v12882_v51  ;;  %v12884_v8 = vld [vmem:[#allocation72_spill] sm:$0xff]  ;;  %v12888_v32 = vld [vmem:[#allocation73_spill] sm:$0xff]  ;;  %6060 = vset.pattern.permute.xlu1 %v12733_v37 }
 0x575   : > { %v10427_v49 = vmul.f32 %v3264_v35, %v12884_v8  ;;  %12887 = vst [vmem:[#allocation72_spill] sm:$0xff] %v10430_v53  ;;  %v10433_v38 = vmul.f32 %v3264_v35, %v12888_v32  ;;  %12891 = vst [vmem:[#allocation73_spill] sm:$0xff] %v10439_v22  ;;  %v12892_v36 = vld [vmem:[#allocation75_spill] sm:$0xff]  ;;  %v12894_v51 = vld [vmem:[#allocation90_spill] sm:$0xff]  ;;  %4534 = vperm.xlu1 %6060, %v10305_v40   ;;  %v10452_v32 = vmul.f32 %v3264_v35, %v12898_v34 }
 0x576   : > { %12883 = vst [vmem:[#allocation71_spill] sm:$0xff] %v10424_v12  ;;  %v10442_v31 = vmul.f32 %v3264_v35, %v12892_v36  ;;  %v10445_v12 = vmul.f32 %v3264_v35, %v12894_v51  ;;  %v12896_v8 = vld [vmem:[#allocation77_spill] sm:$0xff]  ;;  %v12900_v37 = vld [vmem:[#allocation79_spill] sm:$0xff]  ;;  %v12902_v53 = vld [vmem:[#allocation94_spill] sm:$0xff] }
 0x577   : > { %12885 = vst [vmem:[#allocation84_spill] sm:$0xff] %v10427_v49  ;;  %12889 = vst [vmem:[#allocation86_spill] sm:$0xff] %v10433_v38  ;;  %v10448_v49 = vmul.f32 %v3264_v35, %v12896_v8  ;;  %v10455_v38 = vmul.f32 %v3264_v35, %v12900_v37  ;;  %v10458_v50 = vmul.f32 %v3264_v35, %v12902_v53  ;;  %v12904_v22 = vld [vmem:[#allocation81_spill] sm:$0xff]  ;;  %v12916_v53 = vld [vmem:[#allocation87_spill] sm:$0xff] }
 0x578   : > { %12893 = vst [vmem:[#allocation88_spill] sm:$0xff] %v10442_v31  ;;  %12895 = vst [vmem:[#allocation75_spill] sm:$0xff] %v10445_v12  ;;  %v10461_v36 = vmul.f32 %v3264_v35, %v12904_v22  ;;  %v12906_v31 = vld [vmem:[#allocation97_spill] sm:$0xff]  ;;  %v12908_v12 = vld [vmem:[#allocation83_spill] sm:$0xff] }
 0x579   : > { %12897 = vst [vmem:[#allocation90_spill] sm:$0xff] %v10448_v49  ;;  %12899 = vst [vmem:[#allocation77_spill] sm:$0xff] %v10452_v32  ;;  %v10464_v51 = vmul.f32 %v3264_v35, %v12906_v31  ;;  %v10467_v8 = vmul.f32 %v3264_v35, %v12908_v12  ;;  %v12910_v49 = vld [vmem:[#allocation99_spill] sm:$0xff]  ;;  %v12912_v34 = vld [vmem:[#allocation85_spill] sm:$0xff]  ;;  %v10487_v12 = vpop.permute.xlu1 %4354 }
 0x57a   : > { %12901 = vst [vmem:[#allocation92_spill] sm:$0xff] %v10455_v38  ;;  %12903 = vst [vmem:[#allocation79_spill] sm:$0xff] %v10458_v50  ;;  %v10470_v40 = vmul.f32 %v3264_v35, %v12910_v49  ;;  %v10473_v32 = vmul.f32 %v3264_v35, %v12912_v34  ;;  %v12914_v37 = vld [vmem:[#allocation101_spill] sm:$0xff]  ;;  %v10479_v50 = vmul.f32 %v3264_v35, %v12916_v53  ;;  %v12918_v22 = vld [vmem:[#allocation103_spill] sm:$0xff] }
 0x57b   : > { %12905 = vst [vmem:[#allocation94_spill] sm:$0xff] %v10461_v36  ;;  %12907 = vst [vmem:[#allocation81_spill] sm:$0xff] %v10464_v51  ;;  %v10476_v38 = vmul.f32 %v3264_v35, %v12914_v37  ;;  %v10482_v36 = vmul.f32 %v3264_v35, %v12918_v22  ;;  %v12920_v31 = vld [vmem:[#allocation89_spill] sm:$0xff] }
 0x57c   : > { %12909 = vst [vmem:[#allocation97_spill] sm:$0xff] %v10467_v8  ;;  %12911 = vst [vmem:[#allocation83_spill] sm:$0xff] %v10470_v40  ;;  %v10485_v51 = vmul.f32 %v3264_v35, %v12920_v31  ;;  %v12923_v8 = vld [vmem:[#allocation105_spill] sm:$0xff]  ;;  %v12925_v40 = vld [vmem:[#allocation91_spill] sm:$0xff] }
 0x57d   : > { %12913 = vst [vmem:[#allocation99_spill] sm:$0xff] %v10473_v32  ;;  %12915 = vst [vmem:[#allocation85_spill] sm:$0xff] %v10476_v38  ;;  %v10490_v49 = vmul.f32 %v3264_v35, %v12923_v8  ;;  %v10493_v34 = vmul.f32 %v3264_v35, %v12925_v40  ;;  %v12927_v32 = vld [vmem:[#allocation139_spill] sm:$0xff]  ;;  %v12929_v53 = vld [vmem:[#allocation141_spill] sm:$0xff] }
 0x57e   : > { %12917 = vst [vmem:[#allocation101_spill] sm:$0xff] %v10479_v50  ;;  %12919 = vst [vmem:[#allocation87_spill] sm:$0xff] %v10482_v36  ;;  %v10497_v37 = vmul.f32 %v10363_v46, %v12927_v32  ;;  %v10501_v50 = vmul.f32 %v10363_v46, %v12929_v53  ;;  %v6248_v22 = vld [vmem:[%s11990_s7] sm:$0xff]  ;;  %v12930_v31 = vld [vmem:[#allocation143_spill] sm:$0xff] }
 0x57f   : > { %12921 = vst [vmem:[#allocation103_spill] sm:$0xff] %v10485_v51  ;;  %12922 = vst [vmem:[#allocation89_spill] sm:$0xff] %v10487_v12  ;;  %4470 = vperm.xlu1 %6060, %v6248_v22   ;;  %v10508_v8 = vmul.f32 %v10363_v46, %v12930_v31  ;;  %v12932_v12 = vld [vmem:[#allocation129_spill] sm:$0xff]  ;;  %v12940_v31 = vld [vmem:[#allocation135_spill] sm:$0xff] }
 0x580   : > { %12924 = vst [vmem:[#allocation105_spill] sm:$0xff] %v10490_v49  ;;  %12926 = vst [vmem:[#allocation91_spill] sm:$0xff] %v10493_v34  ;;  %v10512_v35 = vmul.f32 %v10363_v46, %v12932_v12  ;;  %v12934_v40 = vld [vmem:[#allocation145_spill] sm:$0xff]  ;;  %v10522_v34 = vpop.permute.xlu0 %4518  ;;  %v12938_v49 = vld [vmem:[#allocation147_spill] sm:$0xff] }
 0x581   : > { %12928 = vst [vmem:[#allocation139_spill] sm:$0xff] %v10497_v37  ;;  %12931 = vst [vmem:[#allocation141_spill] sm:$0xff] %v10508_v8  ;;  %v10516_v32 = vmul.f32 %v10363_v46, %v12934_v40  ;;  %v12936_v37 = vld [vmem:[#allocation132_spill] sm:$0xff]  ;;  %v10526_v51 = vmul.f32 %v10363_v46, %v12938_v49  ;;  %v10530_v8 = vmul.f32 %v10363_v46, %v12940_v31  ;;  %v12942_v12 = vld [vmem:[#allocation149_spill] sm:$0xff] }
 0x582   : > { %12933 = vst [vmem:[#allocation143_spill] sm:$0xff] %v10512_v35  ;;  %v10520_v53 = vmul.f32 %v10363_v46, %v12936_v37  ;;  %v10534_v35 = vmul.f32 %v10363_v46, %v12942_v12  ;;  %v12943_v40 = vld [vmem:[#allocation137_spill] sm:$0xff]  ;;  %v12945_v37 = vld [vmem:[#allocation150_spill] sm:$0xff]  ;;  %v12947_v36 = vld [vmem:[#allocation140_spill] sm:$0xff] }
 0x583   : > { %12935 = vst [vmem:[#allocation129_spill] sm:$0xff] %v10516_v32  ;;  %12939 = vst [vmem:[#allocation132_spill] sm:$0xff] %v10526_v51  ;;  %v10538_v32 = vmul.f32 %v10363_v46, %v12943_v40  ;;  %v10546_v49 = vmul.f32 %v10363_v46, %v12947_v36  ;;  %v12949_v51 = vld [vmem:[#allocation152_spill] sm:$0xff]  ;;  %v12953_v38 = vld [vmem:[#allocation154_spill] sm:$0xff]  ;;  %4474 = vperm.xlu1 %6060, %v10079_v15  }
 0x584   : > { %12937 = vst [vmem:[#allocation145_spill] sm:$0xff] %v10520_v53  ;;  %12941 = vst [vmem:[#allocation147_spill] sm:$0xff] %v10530_v8  ;;  %v10542_v53 = vmul.f32 %v10363_v46, %v12945_v37  ;;  %v10550_v31 = vmul.f32 %v10363_v46, %v12949_v51  ;;  %v12951_v8 = vld [vmem:[#allocation142_spill] sm:$0xff]  ;;  %v10558_v40 = vmul.f32 %v10363_v46, %v12953_v38 }
 0x585   : > { %12944 = vst [vmem:[#allocation135_spill] sm:$0xff] %v10538_v32  ;;  %12948 = vst [vmem:[#allocation137_spill] sm:$0xff] %v10546_v49  ;;  %v10554_v12 = vmul.f32 %v10363_v46, %v12951_v8  ;;  %v12955_v32 = vld [vmem:[#allocation146_spill] sm:$0xff]  ;;  %v12959_v49 = vld [vmem:[#allocation148_spill] sm:$0xff]  ;;  %v10573_v8 = vpop.permute.xlu1 %4754 }
 0x586   : > { %12946 = vst [vmem:[#allocation149_spill] sm:$0xff] %v10542_v53  ;;  %12950 = vst [vmem:[#allocation150_spill] sm:$0xff] %v10550_v31  ;;  %v10562_v37 = vmul.f32 %v10363_v46, %v12955_v32  ;;  %v12957_v53 = vld [vmem:[#allocation156_spill] sm:$0xff]  ;;  %v10570_v51 = vmul.f32 %v10363_v46, %v12959_v49  ;;  %v13013_v31 = vld [vmem:[#allocation190_spill] sm:$0xff] }
 0x587   : > { %12952 = vst [vmem:[#allocation140_spill] sm:$0xff] %v10554_v12  ;;  %12954 = vst [vmem:[#allocation152_spill] sm:$0xff] %v10558_v40  ;;  %v10566_v36 = vmul.f32 %v10363_v46, %v12957_v53  ;;  %v12962_v12 = vld [vmem:[#allocation158_spill] sm:$0xff]  ;;  %v12964_v40 = vld [vmem:[#allocation151_spill] sm:$0xff]  ;;  %6062 = vset.pattern.permute.xlu1 %v12749_v19 }
 0x588   : > { %12956 = vst [vmem:[#allocation142_spill] sm:$0xff] %v10562_v37  ;;  %12960 = vst [vmem:[#allocation146_spill] sm:$0xff] %v10570_v51  ;;  %v10577_v38 = vmul.f32 %v10363_v46, %v12962_v12  ;;  %v10581_v32 = vmul.f32 %v10363_v46, %v12964_v40  ;;  %v12966_v37 = vld [vmem:[#allocation160_spill] sm:$0xff]  ;;  %v12970_v51 = vld [vmem:[#allocation162_spill] sm:$0xff] }
 0x589   : > { %12958 = vst [vmem:[#allocation154_spill] sm:$0xff] %v10566_v36  ;;  %12961 = vst [vmem:[#allocation156_spill] sm:$0xff] %v10573_v8  ;;  %v10585_v53 = vmul.f32 %v10363_v46, %v12966_v37  ;;  %v12968_v36 = vld [vmem:[#allocation153_spill] sm:$0xff]  ;;  %v10593_v15 = vmul.f32 %v10363_v46, %v12970_v51  ;;  %v6249_v19 = vld [vmem:[%s11990_s7 + $0x88] sm:$0xff] }
 0x58a   : > { %12963 = vst [vmem:[#allocation148_spill] sm:$0xff] %v10577_v38  ;;  %12965 = vst [vmem:[#allocation158_spill] sm:$0xff] %v10581_v32  ;;  %v10589_v49 = vmul.f32 %v10363_v46, %v12968_v36  ;;  %v12972_v8 = vld [vmem:[#allocation157_spill] sm:$0xff]  ;;  %v12974_v38 = vld [vmem:[#allocation164_spill] sm:$0xff]  ;;  %4734 = vperm.xlu1 %6062, %v6249_v19  }
 0x58b   : > { %12967 = vst [vmem:[#allocation151_spill] sm:$0xff] %v10585_v53  ;;  %12971 = vst [vmem:[#allocation153_spill] sm:$0xff] %v10593_v15  ;;  %v10597_v12 = vmul.f32 %v10363_v46, %v12972_v8  ;;  %v10601_v40 = vmul.f32 %v10363_v46, %v12974_v38  ;;  %v12976_v32 = vld [vmem:[#allocation159_spill] sm:$0xff]  ;;  %v12982_v15 = vld [vmem:[#allocation168_spill] sm:$0xff] }
 0x58c   : > { %12969 = vst [vmem:[#allocation160_spill] sm:$0xff] %v10589_v49  ;;  %v10605_v37 = vmul.f32 %v10363_v46, %v12976_v32  ;;  %v12978_v53 = vld [vmem:[#allocation167_spill] sm:$0xff]  ;;  %v10617_v8 = vmul.f32 %v10363_v46, %v12982_v15  ;;  %v13011_v19 = vld [vmem:[#allocation188_spill] sm:$0xff] }
 0x58d   : > { %12973 = vst [vmem:[#allocation162_spill] sm:$0xff] %v10597_v12  ;;  %12975 = vst [vmem:[#allocation157_spill] sm:$0xff] %v10601_v40  ;;  %v10609_v36 = vmul.f32 %v10363_v46, %v12978_v53  ;;  %v12980_v49 = vld [vmem:[#allocation163_spill] sm:$0xff]  ;;  %v12984_v12 = vld [vmem:[#allocation166_spill] sm:$0xff]  ;;  %v10623_v40 = vpop.permute.xlu0 %4510 }
 0x58e   : > { %12977 = vst [vmem:[#allocation164_spill] sm:$0xff] %v10605_v37  ;;  %v10613_v51 = vmul.f32 %v10363_v46, %v12980_v49  ;;  %12983 = vst [vmem:[#allocation163_spill] sm:$0xff] %v10617_v8  ;;  %v10621_v38 = vmul.f32 %v10363_v46, %v12984_v12  ;;  %v12986_v32 = vld [vmem:[#allocation171_spill] sm:$0xff]  ;;  %v12988_v53 = vld [vmem:[#allocation177_spill] sm:$0xff]  ;;  %v10642_v12 = vpop.permute.xlu1 %4758  ;;  %4666 = vperm.xlu1 %6062, %v6248_v22  }
 0x58f   : > { %12979 = vst [vmem:[#allocation159_spill] sm:$0xff] %v10609_v36  ;;  %v10627_v37 = vmul.f32 %v10363_v46, %v12986_v32  ;;  %v10631_v36 = vmul.f32 %v10368_v3, %v12988_v53  ;;  %v12989_v49 = vld [vmem:[#allocation173_spill] sm:$0xff]  ;;  %v12991_v15 = vld [vmem:[#allocation179_spill] sm:$0xff]  ;;  %v13041_v22 = vld [vmem:[#allocation204_spill] sm:$0xff] }
 0x590   : > { %12981 = vst [vmem:[#allocation167_spill] sm:$0xff] %v10613_v51  ;;  %12985 = vst [vmem:[#allocation168_spill] sm:$0xff] %v10621_v38  ;;  %v10635_v51 = vmul.f32 %v10368_v3, %v12989_v49  ;;  %v10639_v8 = vmul.f32 %v10368_v3, %v12991_v15  ;;  %v12994_v38 = vld [vmem:[#allocation176_spill] sm:$0xff]  ;;  %v12996_v46 = vld [vmem:[#allocation181_spill] sm:$0xff] }
 0x591   : > { %12987 = vst [vmem:[#allocation166_spill] sm:$0xff] %v10627_v37  ;;  %12993 = vst [vmem:[#allocation173_spill] sm:$0xff] %v10642_v12  ;;  %v10646_v32 = vmul.f32 %v10368_v3, %v12994_v38  ;;  %v10650_v53 = vmul.f32 %v10368_v3, %v12996_v46  ;;  %v12998_v37 = vld [vmem:[#allocation180_spill] sm:$0xff]  ;;  %v13002_v12 = vld [vmem:[#allocation182_spill] sm:$0xff] }
 0x592   : > { %12990 = vst [vmem:[#allocation171_spill] sm:$0xff] %v10635_v51  ;;  %12992 = vst [vmem:[#allocation177_spill] sm:$0xff] %v10639_v8  ;;  %v10654_v49 = vmul.f32 %v10368_v3, %v12998_v37  ;;  %v13000_v51 = vld [vmem:[#allocation183_spill] sm:$0xff]  ;;  %v10665_v38 = vmul.f32 %v10368_v3, %v13002_v12  ;;  %v10685_v12 = vmul.f32 %v10368_v3, %v13011_v19  ;;  %6063 = vset.pattern.permute.xlu1 %v12785_v7 }
 0x593   : > { %12995 = vst [vmem:[#allocation179_spill] sm:$0xff] %v10646_v32  ;;  %12997 = vst [vmem:[#allocation176_spill] sm:$0xff] %v10650_v53  ;;  %v10658_v15 = vmul.f32 %v10368_v3, %v13000_v51  ;;  %v13003_v32 = vld [vmem:[#allocation184_spill] sm:$0xff]  ;;  %v13005_v53 = vld [vmem:[#allocation185_spill] sm:$0xff]  ;;  %v10819_v7 = vmul.f32 %v10372_v21, %v10043_v6  ;;  %v10841_v6 = vmul.f32 %v10372_v21, %v10123_v5 }
 0x594   : > { %12999 = vst [vmem:[#allocation181_spill] sm:$0xff] %v10654_v49  ;;  %v10669_v46 = vmul.f32 %v10368_v3, %v13003_v32  ;;  %v10673_v37 = vmul.f32 %v10368_v3, %v13005_v53  ;;  %v13007_v49 = vld [vmem:[#allocation186_spill] sm:$0xff]  ;;  %v10689_v32 = vmul.f32 %v10368_v3, %v13013_v31  ;;  %v10861_v5 = vmul.f32 %v10372_v21, %v10067_v44 }
 0x595   : > { %13001 = vst [vmem:[#allocation180_spill] sm:$0xff] %v10658_v15  ;;  %v10677_v51 = vmul.f32 %v10368_v3, %v13007_v49  ;;  %v13009_v15 = vld [vmem:[#allocation187_spill] sm:$0xff]  ;;  %13012 = vst [vmem:[#allocation186_spill] sm:$0xff] %v10685_v12  ;;  %v13023_v12 = vld [vmem:[#allocation200_spill] sm:$0xff]  ;;  %v10881_v44 = vmul.f32 %v10376_v0, %v10281_v16  ;;  %v10903_v16 = vmul.f32 %v10376_v0, %v10150_v24 }
 0x596   : > { %13004 = vst [vmem:[#allocation183_spill] sm:$0xff] %v10669_v46  ;;  %13006 = vst [vmem:[#allocation182_spill] sm:$0xff] %v10673_v37  ;;  %v10681_v8 = vmul.f32 %v10368_v3, %v13009_v15  ;;  %v13015_v46 = vld [vmem:[#allocation192_spill] sm:$0xff]  ;;  %v13017_v37 = vld [vmem:[#allocation191_spill] sm:$0xff]  ;;  %v10709_v31 = vmul.f32 %v10368_v3, %v13023_v12  ;;  %v10729_v12 = vpop.permute.xlu0 %4570  ;;  %v10923_v24 = vmul.f32 %v10376_v0, %v10223_v11 }
 0x597   : > { %13008 = vst [vmem:[#allocation184_spill] sm:$0xff] %v10677_v51  ;;  %13014 = vst [vmem:[#allocation187_spill] sm:$0xff] %v10689_v32  ;;  %v10693_v53 = vmul.f32 %v10368_v3, %v13015_v46  ;;  %v10697_v49 = vmul.f32 %v10368_v3, %v13017_v37  ;;  %v13019_v51 = vld [vmem:[#allocation196_spill] sm:$0xff]  ;;  %v13025_v32 = vld [vmem:[#allocation195_spill] sm:$0xff] }
 0x598   : > { %13010 = vst [vmem:[#allocation185_spill] sm:$0xff] %v10681_v8  ;;  %v10701_v15 = vmul.f32 %v10368_v3, %v13019_v51  ;;  %v13021_v8 = vld [vmem:[#allocation194_spill] sm:$0xff]  ;;  %13024 = vst [vmem:[#allocation196_spill] sm:$0xff] %v10709_v31  ;;  %v10713_v46 = vmul.f32 %v10368_v3, %v13025_v32  ;;  %v13034_v31 = vld [vmem:[#allocation201_spill] sm:$0xff] }
 0x599   : > { %13016 = vst [vmem:[#allocation188_spill] sm:$0xff] %v10693_v53  ;;  %13018 = vst [vmem:[#allocation190_spill] sm:$0xff] %v10697_v49  ;;  %v10705_v19 = vmul.f32 %v10368_v3, %v13021_v8  ;;  %v13027_v53 = vld [vmem:[#allocation203_spill] sm:$0xff]  ;;  %v10733_v32 = vmul.f32 %v10368_v3, %v13034_v31 }
 0x59a   : > { %13020 = vst [vmem:[#allocation192_spill] sm:$0xff] %v10701_v15  ;;  %13026 = vst [vmem:[#allocation194_spill] sm:$0xff] %v10713_v46  ;;  %v10717_v37 = vmul.f32 %v10368_v3, %v13027_v53  ;;  %v13029_v49 = vld [vmem:[#allocation199_spill] sm:$0xff]  ;;  %v13031_v15 = vld [vmem:[#allocation198_spill] sm:$0xff] }
 0x59b   : > { %13022 = vst [vmem:[#allocation191_spill] sm:$0xff] %v10705_v19  ;;  %v10721_v51 = vmul.f32 %v10368_v3, %v13029_v49  ;;  %v10725_v8 = vmul.f32 %v10368_v3, %v13031_v15  ;;  %v10727_v19 = vpop.permute.xlu1 %4294  ;;  %13035 = vst [vmem:[#allocation198_spill] sm:$0xff] %v10733_v32  ;;  %v13036_v46 = vld [vmem:[#allocation209_spill] sm:$0xff]  ;;  %v13043_v32 = vld [vmem:[#allocation208_spill] sm:$0xff] }
 0x59c   : > { %13028 = vst [vmem:[#allocation200_spill] sm:$0xff] %v10717_v37  ;;  %13033 = vst [vmem:[#allocation199_spill] sm:$0xff] %v10727_v19  ;;  %v10737_v53 = vmul.f32 %v10368_v3, %v13036_v46  ;;  %v13038_v37 = vld [vmem:[#allocation202_spill] sm:$0xff]  ;;  %v10749_v19 = vmul.f32 %v10368_v3, %v13041_v22  ;;  %v10757_v46 = vmul.f32 %v10372_v21, %v13043_v32 }
 0x59d   : > { %13030 = vst [vmem:[#allocation195_spill] sm:$0xff] %v10721_v51  ;;  %13032 = vst [vmem:[#allocation203_spill] sm:$0xff] %v10725_v8  ;;  %v10741_v49 = vmul.f32 %v10368_v3, %v13038_v37  ;;  %v13039_v51 = vld [vmem:[#allocation212_spill] sm:$0xff]  ;;  %v13042_v8 = vld [vmem:[#allocation214_spill] sm:$0xff] }
 0x59e   : > { %13037 = vst [vmem:[#allocation201_spill] sm:$0xff] %v10737_v53  ;;  %v10745_v15 = vmul.f32 %v10368_v3, %v13039_v51  ;;  %v10753_v31 = vmul.f32 %v10368_v3, %v13042_v8  ;;  %v13044_v53 = vld [vmem:[#allocation211_spill] sm:$0xff]  ;;  %v10765_v51 = vmul.f32 %v10372_v21, %v9948_v13  ;;  %v10773_v8 = vmul.f32 %v10372_v21, %v9966_v2 }
 0x59f   : > { %v10761_v37 = vmul.f32 %v10372_v21, %v13044_v53  ;;  %v13046_v3 = vld [vmem:[#allocation7_spill] sm:$0xff]  ;;  %v10781_v53 = vmul.f32 %v10372_v21, %v9984_v25  ;;  %v10785_v13 = vmul.f32 %v10372_v21, %v9931_v54  ;;  %v10793_v2 = vmul.f32 %v10372_v21, %v9938_v59  ;;  %13056 = vst [vmem:[#allocation216_spill] sm:$0xff] %v10819_v7 }
 0x5a0   : > { %13040 = vst [vmem:[#allocation209_spill] sm:$0xff] %v10745_v15  ;;  %v13045_v15 = vld [vmem:[#allocation206_spill] sm:$0xff]  ;;  %v10777_v32 = vmul.f32 %v10372_v21, %v13046_v3  ;;  %v10801_v25 = vmul.f32 %v10372_v21, %v10005_v42  ;;  %v10805_v54 = vmul.f32 %v10372_v21, %v9946_v48  ;;  %v10813_v59 = vmul.f32 %v10372_v21, %v9958_v39  ;;  %v10833_v39 = vpop.permute.xlu0 %4502  ;;  %v13257_v7 = vld [vmem:[#allocation91_spill] sm:$0xff] }
 0x5a1   : > { %v10769_v22 = vmul.f32 %v10372_v21, %v13045_v15  ;;  %13048 = vst [vmem:[#allocation212_spill] sm:$0xff] %v10781_v53  ;;  %v10789_v15 = vmul.f32 %v10372_v21, %v9994_v27  ;;  %13050 = vst [vmem:[#allocation214_spill] sm:$0xff] %v10793_v2  ;;  %v6117_v3 = vld [vmem:[%s11992_s9 + $0x4] ss:$8 sps:$4 sm:$0xff]   ;;  %v10809_v27 = vmul.f32 %v10372_v21, %v10020_v33  ;;  %v10815_v2 = vpop.permute.xlu1 %4694 }
 0x5a2   : > { %13047 = vst [vmem:[#allocation202_spill] sm:$0xff] %v10777_v32  ;;  %13051 = vst [vmem:[#allocation208_spill] sm:$0xff] %v10801_v25  ;;  %v10823_v42 = vmul.f32 %v10372_v21, %v9982_v28  ;;  %v10827_v48 = vmul.f32 %v10372_v21, %v10139_v9  ;;  %v10831_v33 = vmul.f32 %v10372_v21, %v10226_v43  ;;  %5261 = vmatprep.mubr.bf16.mxu1 %v6117_v3  ;;  %v13267_v53 = vld [vmem:[#allocation149_spill] sm:$0xff] }
 0x5a3   : > { %13049 = vst [vmem:[#allocation204_spill] sm:$0xff] %v10789_v15  ;;  %13052 = vst [vmem:[#allocation211_spill] sm:$0xff] %v10805_v54  ;;  %v10845_v28 = vmul.f32 %v10372_v21, %v10162_v26  ;;  %v10849_v9 = vmul.f32 %v10372_v21, %v10093_v62  ;;  %v10853_v43 = vmul.f32 %v10372_v21, %v10074_v17  ;;  %v13260_v54 = vld [vmem:[#allocation141_spill] sm:$0xff] }
 0x5a4   : > { %13053 = vst [vmem:[#allocation206_spill] sm:$0xff] %v10809_v27  ;;  %13054 = vst [vmem:[#allocation7_spill] sm:$0xff] %v10813_v59  ;;  %v10865_v26 = vmul.f32 %v10372_v21, %v10052_v61  ;;  %v10869_v62 = vmul.f32 %v10372_v21, %v9991_v63  ;;  %v10873_v17 = vmul.f32 %v10376_v0, %v10229_v58  ;;  %v13259_v59 = vld [vmem:[#allocation50_spill] sm:$0xff]  ;;  %v13263_v15 = vld [vmem:[#allocation145_spill] sm:$0xff] }
 0x5a5   : > { %13055 = vst [vmem:[#allocation215_spill] sm:$0xff] %v10815_v2  ;;  %13057 = vst [vmem:[#allocation217_spill] sm:$0xff] %v10823_v42  ;;  %v10837_v2 = vmul.f32 %v10372_v21, %v10133_v29  ;;  %v10857_v29 = vmul.f32 %v10372_v21, %v10017_v60  ;;  %v10877_v60 = vmul.f32 %v10376_v0, %v10218_v23  ;;  %v10899_v3 = vpop.permute.xlu1 %4150  ;;  %v13083_v21 = vld [vmem:[#allocation35_spill] sm:$0xff]  ;;  %v13255_v42 = vld [vmem:[#allocation105_spill] sm:$0xff] }
 0x5a6   : > { %13058 = vst [vmem:[#allocation218_spill] sm:$0xff] %v10827_v48  ;;  %13059 = vst [vmem:[#allocation219_spill] sm:$0xff] %v10831_v33  ;;  %v10885_v61 = vmul.f32 %v10376_v0, %v10286_v30  ;;  %v10889_v63 = vmul.f32 %v10376_v0, %v10191_v45  ;;  %v10893_v58 = vmul.f32 %v10376_v0, %v10214_v14  ;;  %v13251_v33 = vld [vmem:[#allocation87_spill] sm:$0xff]  ;;  %v13268_v32 = vld [vmem:[#allocation137_spill] sm:$0xff] }
 0x5a7   : > { %13060 = vst [vmem:[#allocation220_spill] sm:$0xff] %v10837_v2  ;;  %13061 = vst [vmem:[#allocation221_spill] sm:$0xff] %v10841_v6  ;;  %v10897_v23 = vmul.f32 %v10376_v0, %v10142_v57  ;;  %v10907_v30 = vmul.f32 %v10376_v0, %v10170_v41  ;;  %v10911_v45 = vmul.f32 %v10376_v0, %v10082_v52  ;;  %v13253_v48 = vld [vmem:[#allocation103_spill] sm:$0xff] }
 0x5a8   : > { %13062 = vst [vmem:[#allocation222_spill] sm:$0xff] %v10845_v28  ;;  %13063 = vst [vmem:[#allocation223_spill] sm:$0xff] %v10849_v9  ;;  %v10915_v14 = vmul.f32 %v10376_v0, %v10008_v1  ;;  %v10919_v57 = vmul.f32 %v10376_v0, %v10160_v4  ;;  %v10927_v41 = vmul.f32 %v10376_v0, %v10211_v20  ;;  %v13238_v9 = vld [vmem:[#allocation81_spill] sm:$0xff]  ;;  %v13239_v28 = vld [vmem:[#allocation131_spill] sm:$0xff] }
 0x5a9   : > { %13064 = vst [vmem:[#allocation224_spill] sm:$0xff] %v10853_v43  ;;  %13065 = vst [vmem:[#allocation225_spill] sm:$0xff] %v10857_v29  ;;  %v10931_v52 = vmul.f32 %v10376_v0, %v10202_v18  ;;  %v10935_v1 = vmul.f32 %v10376_v0, %v13083_v21  ;;  %v13237_v29 = vld [vmem:[#allocation114_spill] sm:$0xff]  ;;  %v3479_v6 = vadd.f32 %v13239_v28, %v13238_v9  ;;  %v13249_v9 = vld [vmem:[#allocation101_spill] sm:$0xff] }
 0x5aa   : > { %13066 = vst [vmem:[#allocation226_spill] sm:$0xff] %v10861_v5  ;;  %13067 = vst [vmem:[#allocation227_spill] sm:$0xff] %v10865_v26  ;;  %v13236_v5 = vld [vmem:[#allocation94_spill] sm:$0xff] }
 0x5ab   : > { %13068 = vst [vmem:[#allocation228_spill] sm:$0xff] %v10869_v62  ;;  %13069 = vst [vmem:[#allocation229_spill] sm:$0xff] %v10877_v60  ;;  %v13226_v62 = vld [vmem:[#allocation75_spill] sm:$0xff]  ;;  %v3478_v43 = vadd.f32 %v13237_v29, %v13236_v5  ;;  %v13246_v29 = vld [vmem:[#allocation85_spill] sm:$0xff] }
 0x5ac   : > { %13070 = vst [vmem:[#allocation230_spill] sm:$0xff] %v10881_v44  ;;  %13071 = vst [vmem:[#allocation231_spill] sm:$0xff] %v10885_v61  ;;  %v13219_v61 = vld [vmem:[#allocation119_spill] sm:$0xff]  ;;  %v13221_v44 = vld [vmem:[#allocation106_spill] sm:$0xff] }
 0x5ad   : > { %13072 = vst [vmem:[#allocation232_spill] sm:$0xff] %v10889_v63  ;;  %13073 = vst [vmem:[#allocation233_spill] sm:$0xff] %v10897_v23  ;;  %v13210_v23 = vld [vmem:[#allocation100_spill] sm:$0xff]  ;;  %v13247_v5 = vld [vmem:[#allocation134_spill] sm:$0xff] }
 0x5ae   : > { %13074 = vst [vmem:[#allocation234_spill] sm:$0xff] %v10899_v3  ;;  %13075 = vst [vmem:[#allocation235_spill] sm:$0xff] %v10903_v16  ;;  %v4495_v3 = vpop.permute.xlu0 %4494  ;;  %v13121_v16 = vld [vmem:[#allocation12_spill] sm:$0xff]  ;;  %v3483_v2 = vadd.f32 %v13247_v5, %v13246_v29  ;;  %v13258_v29 = vld [vmem:[#allocation125_spill] sm:$0xff] }
 0x5af   : > { %13076 = vst [vmem:[#allocation236_spill] sm:$0xff] %v10907_v30  ;;  %13077 = vst [vmem:[#allocation237_spill] sm:$0xff] %v10911_v45  ;;  %v13102_v45 = vld [vmem:[#allocation144_spill] sm:$0xff]  ;;  %v13117_v30 = vld [vmem:[#allocation61_spill] sm:$0xff]  ;;  %v3488_v5 = vadd.f32 %v13258_v29, %v13257_v7 }
 0x5b0   : > { %13078 = vst [vmem:[#allocation238_spill] sm:$0xff] %v10915_v14  ;;  %13079 = vst [vmem:[#allocation239_spill] sm:$0xff] %v10919_v57  ;;  %v13085_v14 = vld [vmem:[#allocation34_spill] sm:$0xff]  ;;  %v13087_v57 = vld [vmem:[#allocation16_spill] sm:$0xff] }
 0x5b1   : > { %13080 = vst [vmem:[#allocation240_spill] sm:$0xff] %v10923_v24  ;;  %13081 = vst [vmem:[#allocation241_spill] sm:$0xff] %v10927_v41  ;;  %v10939_v4 = vmul.f32 %v10376_v0, %v13085_v14  ;;  %v10943_v11 = vmul.f32 %v10376_v0, %v13087_v57  ;;  %v13089_v24 = vld [vmem:[#allocation37_spill] sm:$0xff]  ;;  %v13091_v41 = vld [vmem:[#allocation48_spill] sm:$0xff] }
 0x5b2   : > { %13082 = vst [vmem:[#allocation242_spill] sm:$0xff] %v10931_v52  ;;  %13084 = vst [vmem:[#allocation35_spill] sm:$0xff] %v10935_v1  ;;  %v10947_v20 = vmul.f32 %v10376_v0, %v13089_v24  ;;  %v10951_v18 = vmul.f32 %v10376_v0, %v13091_v41  ;;  %v13093_v52 = vld [vmem:[#allocation13_spill] sm:$0xff]  ;;  %v13095_v1 = vld [vmem:[#allocation38_spill] sm:$0xff] }
 0x5b3   : > { %13086 = vst [vmem:[#allocation34_spill] sm:$0xff] %v10939_v4  ;;  %13088 = vst [vmem:[#allocation16_spill] sm:$0xff] %v10943_v11  ;;  %v10955_v21 = vmul.f32 %v10376_v0, %v13093_v52  ;;  %v10959_v14 = vmul.f32 %v10376_v0, %v13095_v1  ;;  %v13097_v4 = vld [vmem:[#allocation20_spill] sm:$0xff]  ;;  %v13099_v11 = vld [vmem:[#allocation9_spill] sm:$0xff] }
 0x5b4   : > { %13090 = vst [vmem:[#allocation37_spill] sm:$0xff] %v10947_v20  ;;  %13092 = vst [vmem:[#allocation48_spill] sm:$0xff] %v10951_v18  ;;  %v10963_v57 = vmul.f32 %v10376_v0, %v13097_v4  ;;  %v10967_v24 = vmul.f32 %v10376_v0, %v13099_v11  ;;  %v13101_v20 = vld [vmem:[#allocation96_spill] sm:$0xff]  ;;  %v3097_v4 = vld [vmem:[%s11993_s10 + $0xf0] sm:$0xff] }
 0x5b5   : > { %13094 = vst [vmem:[#allocation13_spill] sm:$0xff] %v10955_v21  ;;  %13096 = vst [vmem:[#allocation38_spill] sm:$0xff] %v10959_v14  ;;  %v10971_v41 = vmul.f32 %v13102_v45, %v13101_v20  ;;  %v13103_v18 = vld [vmem:[#allocation56_spill] sm:$0xff]  ;;  %v10981_v14 = vpop.permute.xlu1 %4550  ;;  %v13108_v11 = vld [vmem:[#allocation45_spill] sm:$0xff]  ;;  %5061 = vperm.xlu1 %6063, %v3097_v4  }
 0x5b6   : > { %13098 = vst [vmem:[#allocation20_spill] sm:$0xff] %v10963_v57  ;;  %13100 = vst [vmem:[#allocation9_spill] sm:$0xff] %v10967_v24  ;;  %v10975_v52 = vmul.f32 %v13102_v45, %v13103_v18  ;;  %v13105_v21 = vld [vmem:[#allocation60_spill] sm:$0xff]  ;;  %v10988_v0 = vmul.f32 %v13102_v45, %v13108_v11  ;;  %v13110_v20 = vld [vmem:[#allocation43_spill] sm:$0xff]  ;;  %v11008_v11 = vmul.f32 %v13102_v45, %v13117_v30 }
 0x5b7   : > { %v10979_v1 = vmul.f32 %v13102_v45, %v13105_v21  ;;  %13107 = vst [vmem:[#allocation60_spill] sm:$0xff] %v10981_v14  ;;  %v10992_v24 = vmul.f32 %v13102_v45, %v13110_v20  ;;  %v13111_v18 = vld [vmem:[#allocation49_spill] sm:$0xff]  ;;  %v13113_v21 = vld [vmem:[#allocation31_spill] sm:$0xff]  ;;  %v13115_v14 = vld [vmem:[#allocation40_spill] sm:$0xff] }
 0x5b8   : > { %13104 = vst [vmem:[#allocation96_spill] sm:$0xff] %v10975_v52  ;;  %13109 = vst [vmem:[#allocation45_spill] sm:$0xff] %v10988_v0  ;;  %v10996_v52 = vmul.f32 %v13102_v45, %v13111_v18  ;;  %v11004_v57 = vmul.f32 %v13102_v45, %v13115_v14  ;;  %v13119_v0 = vld [vmem:[#allocation58_spill] sm:$0xff]  ;;  %v11016_v18 = vmul.f32 %v13102_v45, %v13121_v16  ;;  %v13125_v4 = vld [vmem:[#allocation51_spill] sm:$0xff] }
 0x5b9   : > { %13106 = vst [vmem:[#allocation56_spill] sm:$0xff] %v10979_v1  ;;  %v11000_v1 = vmul.f32 %v13102_v45, %v13113_v21  ;;  %13118 = vst [vmem:[#allocation40_spill] sm:$0xff] %v11008_v11  ;;  %v11012_v20 = vmul.f32 %v13102_v45, %v13119_v0  ;;  %v11024_v14 = vmul.f32 %v13102_v45, %v13125_v4  ;;  %v13129_v11 = vld [vmem:[#allocation55_spill] sm:$0xff]  ;;  %v13217_v63 = vld [vmem:[#allocation104_spill] sm:$0xff] }
 0x5ba   : > { %13112 = vst [vmem:[#allocation43_spill] sm:$0xff] %v10996_v52  ;;  %13116 = vst [vmem:[#allocation31_spill] sm:$0xff] %v11004_v57  ;;  %v13123_v52 = vld [vmem:[#allocation64_spill] sm:$0xff]  ;;  %v13127_v57 = vld [vmem:[#allocation53_spill] sm:$0xff]  ;;  %v11032_v0 = vmul.f32 %v13102_v45, %v13129_v11 }
 0x5bb   : > { %13114 = vst [vmem:[#allocation49_spill] sm:$0xff] %v11000_v1  ;;  %13120 = vst [vmem:[#allocation61_spill] sm:$0xff] %v11012_v20  ;;  %v11020_v21 = vmul.f32 %v13102_v45, %v13123_v52  ;;  %v11028_v30 = vmul.f32 %v13102_v45, %v13127_v57  ;;  %v4487_v20 = vpop.permute.xlu0 %4486  ;;  %v13131_v1 = vld [vmem:[#allocation32_spill] sm:$0xff]  ;;  %v13140_v11 = vld [vmem:[#allocation22_spill] sm:$0xff] }
 0x5bc   : > { %13122 = vst [vmem:[#allocation58_spill] sm:$0xff] %v11016_v18  ;;  %13126 = vst [vmem:[#allocation64_spill] sm:$0xff] %v11024_v14  ;;  %v11036_v16 = vmul.f32 %v13102_v45, %v13131_v1  ;;  %v13133_v18 = vld [vmem:[#allocation33_spill] sm:$0xff]  ;;  %v13137_v14 = vld [vmem:[#allocation19_spill] sm:$0xff] }
 0x5bd   : > { %13124 = vst [vmem:[#allocation12_spill] sm:$0xff] %v11020_v21  ;;  %13128 = vst [vmem:[#allocation51_spill] sm:$0xff] %v11028_v30  ;;  %v11040_v52 = vmul.f32 %v13102_v45, %v13133_v18  ;;  %v13135_v21 = vld [vmem:[#allocation46_spill] sm:$0xff]  ;;  %v11048_v57 = vmul.f32 %v13102_v45, %v13137_v14  ;;  %v11050_v30 = vpop.permute.xlu1 %4554  ;;  %v13144_v18 = vld [vmem:[#allocation11_spill] sm:$0xff] }
 0x5be   : > { %13130 = vst [vmem:[#allocation53_spill] sm:$0xff] %v11032_v0  ;;  %13132 = vst [vmem:[#allocation55_spill] sm:$0xff] %v11036_v16  ;;  %v11044_v4 = vmul.f32 %v13102_v45, %v13135_v21  ;;  %v11054_v0 = vmul.f32 %v13102_v45, %v13140_v11  ;;  %v13142_v1 = vld [vmem:[#allocation10_spill] sm:$0xff]  ;;  %v13265_v7 = vld [vmem:[#allocation147_spill] sm:$0xff] }
 0x5bf   : > { %13134 = vst [vmem:[#allocation32_spill] sm:$0xff] %v11040_v52  ;;  %13138 = vst [vmem:[#allocation46_spill] sm:$0xff] %v11048_v57  ;;  %v11058_v16 = vmul.f32 %v13102_v45, %v13142_v1  ;;  %v11062_v52 = vmul.f32 %v13102_v45, %v13144_v18  ;;  %v13146_v21 = vld [vmem:[#allocation66_spill] sm:$0xff]  ;;  %v13151_v1 = vld [vmem:[#allocation23_spill] sm:$0xff] }
 0x5c0   : > { %13136 = vst [vmem:[#allocation33_spill] sm:$0xff] %v11044_v4  ;;  %13139 = vst [vmem:[#allocation19_spill] sm:$0xff] %v11050_v30  ;;  %v11065_v4 = vmul.f32 %v13146_v21, %v4487_v20  ;;  %v11068_v14 = vmul.f32 %v13146_v21, %v4495_v3  ;;  %v11072_v30 = vmul.f32 %v13146_v21, %v10833_v39  ;;  %v13154_v20 = vld [vmem:[#allocation27_spill] sm:$0xff]  ;;  %v13156_v45 = vld [vmem:[#allocation161_spill] sm:$0xff] }
 0x5c1   : > { %13141 = vst [vmem:[#allocation22_spill] sm:$0xff] %v11054_v0  ;;  %13143 = vst [vmem:[#allocation10_spill] sm:$0xff] %v11058_v16  ;;  %v11076_v11 = vmul.f32 %v13146_v21, %v10623_v40  ;;  %v11080_v16 = vmul.f32 %v13146_v21, %v13151_v1  ;;  %v11084_v18 = vmul.f32 %v13146_v21, %v10522_v34  ;;  %v13203_v0 = vld [vmem:[#allocation68_spill] sm:$0xff]  ;;  %v13204_v57 = vld [vmem:[#allocation111_spill] sm:$0xff] }
 0x5c2   : > { %13145 = vst [vmem:[#allocation11_spill] sm:$0xff] %v11062_v52  ;;  %13147 = vst [vmem:[#allocation66_spill] sm:$0xff] %v11065_v4  ;;  %v11088_v3 = vmul.f32 %v13146_v21, %v13154_v20  ;;  %v11092_v39 = vmul.f32 %v13146_v21, %v13156_v45  ;;  %v11104_v34 = vmul.f32 %v13146_v21, %v10729_v12  ;;  %v13168_v12 = vld [vmem:[#allocation36_spill] sm:$0xff] }
 0x5c3   : > { %13148 = vst [vmem:[#allocation243_spill] sm:$0xff] %v11068_v14  ;;  %13149 = vst [vmem:[#allocation244_spill] sm:$0xff] %v11072_v30  ;;  %v13158_v30 = vld [vmem:[#allocation17_spill] sm:$0xff]  ;;  %v13160_v14 = vld [vmem:[#allocation39_spill] sm:$0xff]  ;;  %v4610_v27 = vmul.f32 %v13146_v21, %v13259_v59 }
 0x5c4   : > { %13150 = vst [vmem:[#allocation245_spill] sm:$0xff] %v11076_v11  ;;  %13152 = vst [vmem:[#allocation23_spill] sm:$0xff] %v11080_v16  ;;  %v11096_v40 = vmul.f32 %v13146_v21, %v13158_v30  ;;  %v11100_v1 = vmul.f32 %v13146_v21, %v13160_v14  ;;  %v3081_v30 = vld [vmem:[%s11993_s10 + $0x70] sm:$0xff]  ;;  %v3098_v14 = vld [vmem:[%s11993_s10 + $0xf8] sm:$0xff] }
 0x5c5   : > { %13153 = vst [vmem:[#allocation246_spill] sm:$0xff] %v11084_v18  ;;  %13155 = vst [vmem:[#allocation27_spill] sm:$0xff] %v11088_v3  ;;  %v13163_v18 = vld [vmem:[#allocation30_spill] sm:$0xff]  ;;  %4981 = vperm.xlu1 %6063, %v3081_v30   ;;  %5066 = vperm.xlu0 %6064, %v3098_v14   ;;  %v3082_v30 = vld [vmem:[%s11993_s10 + $0x78] sm:$0xff] }
 0x5c6   : > { %13157 = vst [vmem:[#allocation161_spill] sm:$0xff] %v11092_v39  ;;  %13159 = vst [vmem:[#allocation17_spill] sm:$0xff] %v11096_v40  ;;  %v11108_v20 = vmul.f32 %v13146_v21, %v13163_v18  ;;  %v13165_v3 = vld [vmem:[#allocation102_spill] sm:$0xff]  ;;  %v11128_v18 = vmul.f32 %v13146_v21, %v10436_v55  ;;  %v13174_v40 = vld [vmem:[#allocation15_spill] sm:$0xff] }
 0x5c7   : > { %13161 = vst [vmem:[#allocation39_spill] sm:$0xff] %v11100_v1  ;;  %13162 = vst [vmem:[#allocation247_spill] sm:$0xff] %v11104_v34  ;;  %v3466_v45 = vadd.f32 %v13165_v3, %v10419_v10  ;;  %v13166_v1 = vld [vmem:[#allocation42_spill] sm:$0xff]  ;;  %v11124_v34 = vmul.f32 %v13146_v21, %v13168_v12  ;;  %v11138_v39 = vmul.f32 %v13146_v21, %v13174_v40  ;;  %v13178_v12 = vld [vmem:[#allocation41_spill] sm:$0xff] }
 0x5c8   : > { %13164 = vst [vmem:[#allocation30_spill] sm:$0xff] %v11108_v20  ;;  %v11120_v4 = vmul.f32 %v13146_v21, %v13166_v1  ;;  %13170 = vst [vmem:[#allocation36_spill] sm:$0xff] %v11128_v18  ;;  %v13171_v10 = vld [vmem:[#allocation14_spill] sm:$0xff]  ;;  %v11134_v20 = vpop.permute.xlu1 %4090  ;;  %v13176_v1 = vld [vmem:[#allocation21_spill] sm:$0xff] }
 0x5c9   : > { %13169 = vst [vmem:[#allocation42_spill] sm:$0xff] %v11124_v34  ;;  %v11132_v3 = vmul.f32 %v13146_v21, %v13171_v10  ;;  %13173 = vst [vmem:[#allocation248_spill] sm:$0xff] %v11134_v20  ;;  %v11146_v34 = vmul.f32 %v10389_v56, %v13178_v12  ;;  %v13180_v55 = vld [vmem:[#allocation25_spill] sm:$0xff]  ;;  %v13182_v10 = vld [vmem:[#allocation47_spill] sm:$0xff]  ;;  %4986 = vperm.xlu1 %6063, %v3082_v30  }
 0x5ca   : > { %13167 = vst [vmem:[#allocation102_spill] sm:$0xff] %v11120_v4  ;;  %13175 = vst [vmem:[#allocation15_spill] sm:$0xff] %v11138_v39  ;;  %v11142_v4 = vmul.f32 %v10389_v56, %v13176_v1  ;;  %v11150_v18 = vmul.f32 %v10389_v56, %v13180_v55  ;;  %v11157_v40 = vmul.f32 %v10389_v56, %v13182_v10  ;;  %v13184_v20 = vld [vmem:[#allocation28_spill] sm:$0xff]  ;;  %v3095_v14 = vld [vmem:[%s11993_s10 + $0xe0] sm:$0xff] }
 0x5cb   : > { %13172 = vst [vmem:[#allocation14_spill] sm:$0xff] %v11132_v3  ;;  %13179 = vst [vmem:[#allocation41_spill] sm:$0xff] %v11146_v34  ;;  %v11161_v1 = vmul.f32 %v10389_v56, %v13184_v20  ;;  %v13186_v3 = vld [vmem:[#allocation63_spill] sm:$0xff]  ;;  %v13188_v34 = vld [vmem:[#allocation18_spill] sm:$0xff]  ;;  %5051 = vperm.xlu0 %6064, %v3095_v14  }
 0x5cc   : > { %13177 = vst [vmem:[#allocation21_spill] sm:$0xff] %v11142_v4  ;;  %13181 = vst [vmem:[#allocation25_spill] sm:$0xff] %v11150_v18  ;;  %v11165_v12 = vmul.f32 %v10389_v56, %v13186_v3  ;;  %v11169_v55 = vmul.f32 %v10389_v56, %v13188_v34  ;;  %v13190_v18 = vld [vmem:[#allocation26_spill] sm:$0xff]  ;;  %v13199_v39 = vld [vmem:[#allocation67_spill] sm:$0xff] }
 0x5cd   : > { %13183 = vst [vmem:[#allocation47_spill] sm:$0xff] %v11157_v40  ;;  %13185 = vst [vmem:[#allocation28_spill] sm:$0xff] %v11161_v1  ;;  %v11176_v10 = vmul.f32 %v10389_v56, %v13190_v18  ;;  %v13192_v40 = vld [vmem:[#allocation24_spill] sm:$0xff]  ;;  %v13194_v1 = vld [vmem:[#allocation107_spill] sm:$0xff] }
 0x5ce   : > { %13187 = vst [vmem:[#allocation63_spill] sm:$0xff] %v11165_v12  ;;  %13189 = vst [vmem:[#allocation18_spill] sm:$0xff] %v11169_v55  ;;  %v11180_v20 = vmul.f32 %v10389_v56, %v13192_v40  ;;  %v11184_v3 = vadd.f32 %v13194_v1, %v10392_v47  ;;  %v3662_v12 = vadd.f32 %v10534_v35, %v3466_v45  ;;  %v13196_v34 = vld [vmem:[#allocation74_spill] sm:$0xff]  ;;  %v13197_v55 = vld [vmem:[#allocation93_spill] sm:$0xff] }
 0x5cf   : > { %13191 = vst [vmem:[#allocation26_spill] sm:$0xff] %v11176_v10  ;;  %v11189_v4 = vadd.f32 %v13197_v55, %v13196_v34  ;;  %v13200_v16 = vld [vmem:[#allocation109_spill] sm:$0xff]  ;;  %v13201_v52 = vld [vmem:[#allocation76_spill] sm:$0xff]  ;;  %v13202_v18 = vld [vmem:[#allocation95_spill] sm:$0xff]  ;;  %v3461_v40 = vadd.f32 %v13204_v57, %v13203_v0 }
 0x5d0   : > { %13193 = vst [vmem:[#allocation24_spill] sm:$0xff] %v11180_v20  ;;  %13195 = vst [vmem:[#allocation107_spill] sm:$0xff] %v11184_v3  ;;  %v3459_v11 = vadd.f32 %v13200_v16, %v13199_v39  ;;  %v3460_v10 = vadd.f32 %v13202_v18, %v13201_v52  ;;  %v13205_v56 = vld [vmem:[#allocation78_spill] sm:$0xff]  ;;  %v13207_v1 = vld [vmem:[#allocation69_spill] sm:$0xff]  ;;  %v3858_v34 = vadd.f32 %v10665_v38, %v3662_v12 }
 0x5d1   : > { %13198 = vst [vmem:[#allocation74_spill] sm:$0xff] %v11189_v4  ;;  %v13206_v20 = vld [vmem:[#allocation98_spill] sm:$0xff]  ;;  %v13208_v3 = vld [vmem:[#allocation113_spill] sm:$0xff]  ;;  %v13209_v45 = vld [vmem:[#allocation80_spill] sm:$0xff]  ;;  %v11204_v4 = vpop.permute.xlu1 %4490 }
 0x5d2   : > { %v3462_v47 = vadd.f32 %v13206_v20, %v13205_v56  ;;  %v3463_v35 = vadd.f32 %v13208_v3, %v13207_v1  ;;  %v3464_v55 = vadd.f32 %v13210_v23, %v13209_v45  ;;  %13211 = vst [vmem:[#allocation93_spill] sm:$0xff] %v11204_v4  ;;  %v13212_v16 = vld [vmem:[#allocation70_spill] sm:$0xff]  ;;  %v13213_v52 = vld [vmem:[#allocation115_spill] sm:$0xff]  ;;  %v13215_v0 = vld [vmem:[#allocation117_spill] sm:$0xff]  ;;  %v3656_v25 = vadd.f32 %v13260_v54, %v3460_v10 }
 0x5d3   : > { %v3465_v39 = vadd.f32 %v13213_v52, %v13212_v16  ;;  %v13214_v18 = vld [vmem:[#allocation71_spill] sm:$0xff]  ;;  %v13216_v30 = vld [vmem:[#allocation84_spill] sm:$0xff]  ;;  %v13220_v1 = vld [vmem:[#allocation86_spill] sm:$0xff] }
 0x5d4   : > { %v3467_v57 = vadd.f32 %v13215_v0, %v13214_v18  ;;  %v3468_v56 = vadd.f32 %v13217_v63, %v13216_v30  ;;  %v13218_v20 = vld [vmem:[#allocation72_spill] sm:$0xff]  ;;  %v3470_v23 = vadd.f32 %v13221_v44, %v13220_v1  ;;  %v13222_v45 = vld [vmem:[#allocation73_spill] sm:$0xff]  ;;  %v3096_v18 = vld [vmem:[%s11993_s10 + $0xe8] sm:$0xff] }
 0x5d5   : > { %v3469_v3 = vadd.f32 %v13219_v61, %v13218_v20  ;;  %v13223_v38 = vld [vmem:[#allocation121_spill] sm:$0xff]  ;;  %v13224_v4 = vld [vmem:[#allocation88_spill] sm:$0xff]  ;;  %v13228_v63 = vld [vmem:[#allocation90_spill] sm:$0xff]  ;;  %5056 = vperm.xlu1 %6063, %v3096_v18   ;;  %v11253_v28 = vpop.permute.xlu1 %4346  ;;  %v3661_v29 = vadd.f32 %v13265_v7, %v3465_v39 }
 0x5d6   : > { %v3471_v12 = vadd.f32 %v13223_v38, %v13222_v45  ;;  %v13225_v14 = vld [vmem:[#allocation108_spill] sm:$0xff]  ;;  %v3079_v61 = vld [vmem:[%s11993_s10 + $0x60] sm:$0xff]  ;;  %v13229_v0 = vld [vmem:[#allocation110_spill] sm:$0xff]  ;;  %13248 = vst [vmem:[#allocation67_spill] sm:$0xff] %v11253_v28  ;;  %v3664_v59 = vadd.f32 %v13267_v53, %v3468_v56 }
 0x5d7   : > { %v3472_v60 = vadd.f32 %v13225_v14, %v13224_v4  ;;  %v13227_v16 = vld [vmem:[#allocation124_spill] sm:$0xff]  ;;  %v3474_v44 = vadd.f32 %v13229_v0, %v13228_v63  ;;  %v13230_v30 = vld [vmem:[#allocation77_spill] sm:$0xff]  ;;  %v13231_v20 = vld [vmem:[#allocation126_spill] sm:$0xff]  ;;  %v4054_v14 = vadd.f32 %v10785_v13, %v3858_v34  ;;  %v3655_v63 = vadd.f32 %v10501_v50, %v3459_v11  ;;  %4971 = vperm.xlu0 %6064, %v3079_v61  }
 0x5d8   : > { %v3473_v52 = vadd.f32 %v13227_v16, %v13226_v62  ;;  %v3475_v1 = vadd.f32 %v13231_v20, %v13230_v30  ;;  %v13232_v45 = vld [vmem:[#allocation92_spill] sm:$0xff]  ;;  %v13234_v62 = vld [vmem:[#allocation79_spill] sm:$0xff]  ;;  %v3080_v0 = vld [vmem:[%s11993_s10 + $0x68] sm:$0xff]  ;;  %v3665_v54 = vadd.f32 %v13268_v32, %v3469_v3 }
 0x5d9   : > { %v13233_v38 = vld [vmem:[#allocation112_spill] sm:$0xff]  ;;  %v13240_v30 = vld [vmem:[#allocation97_spill] sm:$0xff]  ;;  %v13242_v34 = vld [vmem:[#allocation83_spill] sm:$0xff]  ;;  %v4250_v28 = vadd.f32 %v10893_v58, %v4054_v14  ;;  %4976 = vperm.xlu1 %6063, %v3080_v0  }
 0x5da   : > { %v3476_v4 = vadd.f32 %v13233_v38, %v13232_v45  ;;  %v13235_v16 = vld [vmem:[#allocation128_spill] sm:$0xff]  ;;  %v13243_v18 = vld [vmem:[#allocation133_spill] sm:$0xff]  ;;  %v13244_v38 = vld [vmem:[#allocation99_spill] sm:$0xff] }
 0x5db   : > { %v3477_v26 = vadd.f32 %v13235_v16, %v13234_v62  ;;  %v13241_v20 = vld [vmem:[#allocation116_spill] sm:$0xff]  ;;  %v3481_v45 = vadd.f32 %v13243_v18, %v13242_v34  ;;  %v13245_v62 = vld [vmem:[#allocation118_spill] sm:$0xff]  ;;  %v3093_v50 = vld [vmem:[%s11993_s10 + $0xd0] sm:$0xff]  ;;  %v4446_v53 = vadd.f32 %v10992_v24, %v4250_v28 }
 0x5dc   : > { %v3480_v13 = vadd.f32 %v13241_v20, %v13240_v30  ;;  %v3482_v16 = vadd.f32 %v13245_v62, %v13244_v38  ;;  %v13250_v11 = vld [vmem:[#allocation120_spill] sm:$0xff]  ;;  %v13254_v34 = vld [vmem:[#allocation123_spill] sm:$0xff]  ;;  %v13256_v38 = vld [vmem:[#allocation138_spill] sm:$0xff]  ;;  %5041 = vperm.xlu0 %6064, %v3093_v50  }
 0x5dd   : > { %v3484_v61 = vadd.f32 %v13250_v11, %v13249_v9  ;;  %v13252_v30 = vld [vmem:[#allocation136_spill] sm:$0xff]  ;;  %v3486_v18 = vadd.f32 %v13254_v34, %v13253_v48  ;;  %v3487_v62 = vadd.f32 %v13256_v38, %v13255_v42  ;;  %v13261_v9 = vld [vmem:[#allocation143_spill] sm:$0xff]  ;;  %v3659_v48 = vadd.f32 %v13263_v15, %v3463_v35  ;;  %v13269_v10 = vld [vmem:[#allocation150_spill] sm:$0xff]  ;;  %v11284_v15 = vpop.permute.xlu1 %4746 }
 0x5de   : > { %v3485_v20 = vadd.f32 %v13252_v30, %v13251_v33  ;;  %v3657_v11 = vadd.f32 %v13261_v9, %v3461_v40  ;;  %v13262_v33 = vld [vmem:[#allocation129_spill] sm:$0xff]  ;;  %v3851_v34 = vadd.f32 %v10631_v36, %v3655_v63  ;;  %v13264_v42 = vld [vmem:[#allocation132_spill] sm:$0xff]  ;;  %v13266_v58 = vld [vmem:[#allocation135_spill] sm:$0xff]  ;;  %v3666_v0 = vadd.f32 %v13269_v10, %v3470_v23 }
 0x5df   : > { %v3658_v30 = vadd.f32 %v13262_v33, %v3462_v47  ;;  %v3660_v38 = vadd.f32 %v13264_v42, %v3464_v55  ;;  %v3663_v14 = vadd.f32 %v13266_v58, %v3467_v57  ;;  %v13270_v40 = vld [vmem:[#allocation140_spill] sm:$0xff]  ;;  %v3077_v35 = vld [vmem:[%s11993_s10 + $0x50] sm:$0xff]  ;;  %v13272_v39 = vld [vmem:[#allocation142_spill] sm:$0xff] }
 0x5e0   : > { %v3667_v9 = vadd.f32 %v13270_v40, %v3471_v12  ;;  %v4047_v47 = vadd.f32 %v10757_v46, %v3851_v34  ;;  %v3094_v36 = vld [vmem:[%s11993_s10 + $0xd8] sm:$0xff]  ;;  %v11295_v57 = vadd.f32 %v13272_v39, %v3473_v52  ;;  %v13273_v56 = vld [vmem:[#allocation154_spill] sm:$0xff]  ;;  %v4479_v46 = vpop.permute.xlu0 %4478  ;;  %v13277_v42 = vld [vmem:[#allocation151_spill] sm:$0xff]  ;;  %4961 = vperm.xlu0 %6064, %v3077_v35  }
 0x5e1   : > { %v13271_v55 = vld [vmem:[#allocation152_spill] sm:$0xff]  ;;  %v11298_v3 = vadd.f32 %v13273_v56, %v3474_v44  ;;  %5046 = vperm.xlu1 %6063, %v3094_v36   ;;  %v13274_v23 = vld [vmem:[#allocation146_spill] sm:$0xff]  ;;  %v3674_v7 = vadd.f32 %v13277_v42, %v3478_v43  ;;  %v13279_v28 = vld [vmem:[#allocation153_spill] sm:$0xff] }
 0x5e2   : > { %v3668_v32 = vadd.f32 %v13271_v55, %v3472_v60  ;;  %v3671_v12 = vadd.f32 %v13274_v23, %v3475_v1  ;;  %v13275_v63 = vld [vmem:[#allocation148_spill] sm:$0xff]  ;;  %v13276_v33 = vld [vmem:[#allocation158_spill] sm:$0xff]  ;;  %v3676_v44 = vadd.f32 %v13279_v28, %v3480_v13  ;;  %v13281_v40 = vld [vmem:[#allocation157_spill] sm:$0xff]  ;;  %v4243_v56 = vadd.f32 %v10873_v17, %v4047_v47  ;;  %v11318_v23 = vpop.permute.xlu1 %4750 }
 0x5e3   : > { %v3672_v50 = vadd.f32 %v13275_v63, %v3476_v4  ;;  %v3673_v34 = vadd.f32 %v13276_v33, %v3477_v26  ;;  %v3078_v60 = vld [vmem:[%s11993_s10 + $0x58] sm:$0xff]  ;;  %v13280_v58 = vld [vmem:[#allocation162_spill] sm:$0xff]  ;;  %v3678_v36 = vadd.f32 %v13281_v40, %v3482_v16  ;;  %v3091_v1 = vld [vmem:[%s11993_s10 + $0xc0] sm:$0xff] }
 0x5e4   : > { %v13278_v24 = vld [vmem:[#allocation160_spill] sm:$0xff]  ;;  %v3677_v10 = vadd.f32 %v13280_v58, %v3481_v45  ;;  %v13283_v43 = vld [vmem:[#allocation159_spill] sm:$0xff]  ;;  %v13287_v33 = vld [vmem:[#allocation166_spill] sm:$0xff]  ;;  %5031 = vperm.xlu0 %6064, %v3091_v1  }
 0x5e5   : > { %v3675_v52 = vadd.f32 %v13278_v24, %v3479_v6  ;;  %v13282_v26 = vld [vmem:[#allocation164_spill] sm:$0xff]  ;;  %v3680_v35 = vadd.f32 %v13283_v43, %v3484_v61  ;;  %v13284_v55 = vld [vmem:[#allocation167_spill] sm:$0xff]  ;;  %v11320_v6 = vadd.f32 %v4610_v27, %v4446_v53  ;;  %v3684_v42 = vadd.f32 %v13287_v33, %v3488_v5  ;;  %4966 = vperm.xlu1 %6063, %v3078_v60   ;;  %v13289_v61 = vld [vmem:[#allocation177_spill] sm:$0xff] }
 0x5e6   : > { %v3679_v4 = vadd.f32 %v13282_v26, %v3483_v2  ;;  %v3681_v39 = vadd.f32 %v13284_v55, %v3485_v20  ;;  %v13285_v13 = vld [vmem:[#allocation163_spill] sm:$0xff]  ;;  %v13286_v63 = vld [vmem:[#allocation168_spill] sm:$0xff]  ;;  %v4603_v24 = vmul.f32 %v13146_v21, %v4479_v46  ;;  %v3853_v58 = vadd.f32 %v13289_v61, %v3657_v11  ;;  %v13292_v27 = vld [vmem:[#allocation181_spill] sm:$0xff]  ;;  %v11333_v55 = vpop.permute.xlu0 %4538 }
 0x5e7   : > { %v3682_v45 = vadd.f32 %v13285_v13, %v3486_v18  ;;  %v3683_v16 = vadd.f32 %v13286_v63, %v3487_v62  ;;  %v13288_v2 = vld [vmem:[#allocation171_spill] sm:$0xff]  ;;  %v13291_v17 = vld [vmem:[#allocation176_spill] sm:$0xff]  ;;  %v3856_v53 = vadd.f32 %v13292_v27, %v3660_v38  ;;  %v4439_v5 = vadd.f32 %v10971_v41, %v4243_v56  ;;  %v13295_v46 = vld [vmem:[#allocation182_spill] sm:$0xff] }
 0x5e8   : > { %v3852_v28 = vadd.f32 %v13288_v2, %v3656_v25  ;;  %v13290_v20 = vld [vmem:[#allocation179_spill] sm:$0xff]  ;;  %v3855_v47 = vadd.f32 %v13291_v17, %v3659_v48  ;;  %v13293_v26 = vld [vmem:[#allocation180_spill] sm:$0xff]  ;;  %v3860_v60 = vadd.f32 %v13295_v46, %v3664_v59  ;;  %v13297_v11 = vld [vmem:[#allocation185_spill] sm:$0xff]  ;;  %v11349_v2 = vpop.permute.xlu1 %4286 }
 0x5e9   : > { %v3854_v40 = vadd.f32 %v13290_v20, %v3658_v30  ;;  %v3857_v18 = vadd.f32 %v13293_v26, %v3661_v29  ;;  %v13294_v43 = vld [vmem:[#allocation183_spill] sm:$0xff]  ;;  %v13296_v25 = vld [vmem:[#allocation184_spill] sm:$0xff]  ;;  %v3862_v63 = vadd.f32 %v13297_v11, %v3666_v0  ;;  %v3092_v30 = vld [vmem:[%s11993_s10 + $0xc8] sm:$0xff] }
 0x5ea   : > { %v3859_v62 = vadd.f32 %v13294_v43, %v3663_v14  ;;  %v3861_v13 = vadd.f32 %v13296_v25, %v3665_v54  ;;  %v3075_v48 = vld [vmem:[%s11993_s10 + $0x40] sm:$0xff]  ;;  %v13298_v38 = vld [vmem:[#allocation186_spill] sm:$0xff]  ;;  %v13299_v14 = vld [vmem:[#allocation187_spill] sm:$0xff]  ;;  %5036 = vperm.xlu1 %6063, %v3092_v30  }
 0x5eb   : > { %v3863_v29 = vadd.f32 %v13298_v38, %v3667_v9  ;;  %v3864_v1 = vadd.f32 %v13299_v14, %v3668_v32  ;;  %v13300_v33 = vld [vmem:[#allocation190_spill] sm:$0xff]  ;;  %v13301_v56 = vld [vmem:[#allocation192_spill] sm:$0xff]  ;;  %v13302_v54 = vld [vmem:[#allocation191_spill] sm:$0xff]  ;;  %4951 = vperm.xlu0 %6064, %v3075_v48   ;;  %v3879_v14 = vadd.f32 %v10749_v19, %v3683_v16 }
 0x5ec   : > { %v3867_v41 = vadd.f32 %v13300_v33, %v3671_v12  ;;  %v3868_v59 = vadd.f32 %v13301_v56, %v3672_v50  ;;  %v3869_v0 = vadd.f32 %v13302_v54, %v3673_v34  ;;  %v13303_v61 = vld [vmem:[#allocation196_spill] sm:$0xff]  ;;  %v13304_v17 = vld [vmem:[#allocation194_spill] sm:$0xff]  ;;  %v13306_v32 = vld [vmem:[#allocation195_spill] sm:$0xff]  ;;  %v11380_v33 = vpop.permute.xlu0 %4786 }
 0x5ed   : > { %v11353_v20 = vadd.f32 %v13303_v61, %v3674_v7  ;;  %v3871_v27 = vadd.f32 %v13304_v17, %v3675_v52  ;;  %v13305_v26 = vld [vmem:[#allocation200_spill] sm:$0xff]  ;;  %v3076_v9 = vld [vmem:[%s11993_s10 + $0x48] sm:$0xff]  ;;  %v3873_v12 = vadd.f32 %v13306_v32, %v3677_v10  ;;  %v13307_v50 = vld [vmem:[#allocation203_spill] sm:$0xff]  ;;  %v11367_v52 = vadd.f32 %v4603_v24, %v4439_v5 }
 0x5ee   : > { %v3872_v43 = vadd.f32 %v13305_v26, %v3676_v44  ;;  %v3874_v46 = vadd.f32 %v13307_v50, %v3678_v36  ;;  %v13308_v25 = vld [vmem:[#allocation198_spill] sm:$0xff]  ;;  %v13309_v30 = vld [vmem:[#allocation201_spill] sm:$0xff]  ;;  %v3089_v7 = vld [vmem:[%s11993_s10 + $0xb0] sm:$0xff]  ;;  %v3877_v44 = vadd.f32 %v10741_v49, %v3681_v39  ;;  %v3880_v10 = vadd.f32 %v10753_v31, %v3684_v42  ;;  %4956 = vperm.xlu1 %6063, %v3076_v9   ;;  %v11386_v31 = vpop.permute.xlu1 %4686 }
 0x5ef   : > { %v3875_v11 = vadd.f32 %v13308_v25, %v3679_v4  ;;  %v3876_v34 = vadd.f32 %v13309_v30, %v3680_v35  ;;  %v13310_v48 = vld [vmem:[#allocation209_spill] sm:$0xff]  ;;  %v11374_v36 = vadd.f32 %v10761_v37, %v3852_v28  ;;  %v4049_v4 = vadd.f32 %v10765_v51, %v3853_v58  ;;  %v13311_v49 = vld [vmem:[#allocation202_spill] sm:$0xff]  ;;  %v13313_v19 = vld [vmem:[#allocation204_spill] sm:$0xff]  ;;  %5021 = vperm.xlu0 %6064, %v3089_v7  }
 0x5f0   : > { %v3878_v38 = vadd.f32 %v13310_v48, %v3682_v45  ;;  %v11378_v35 = vadd.f32 %v10769_v22, %v3854_v40  ;;  %v4051_v24 = vadd.f32 %v10773_v8, %v3855_v47  ;;  %v4052_v39 = vadd.f32 %v13311_v49, %v3856_v53  ;;  %v13312_v45 = vld [vmem:[#allocation212_spill] sm:$0xff]  ;;  %v13314_v37 = vld [vmem:[#allocation214_spill] sm:$0xff]  ;;  %v13316_v22 = vld [vmem:[#allocation211_spill] sm:$0xff] }
 0x5f1   : > { %v4053_v5 = vadd.f32 %v13312_v45, %v3857_v18  ;;  %v4055_v16 = vadd.f32 %v13313_v19, %v3859_v62  ;;  %v4056_v42 = vadd.f32 %v13314_v37, %v3860_v60  ;;  %v13315_v51 = vld [vmem:[#allocation208_spill] sm:$0xff]  ;;  %v4058_v58 = vadd.f32 %v13316_v22, %v3862_v63  ;;  %v13317_v40 = vld [vmem:[#allocation206_spill] sm:$0xff]  ;;  %v13318_v54 = vld [vmem:[#allocation7_spill] sm:$0xff] }
 0x5f2   : > { %v4057_v28 = vadd.f32 %v13315_v51, %v3861_v13  ;;  %v4059_v56 = vadd.f32 %v13317_v40, %v3863_v29  ;;  %v4060_v61 = vadd.f32 %v13318_v54, %v3864_v1  ;;  %v13319_v8 = vld [vmem:[#allocation216_spill] sm:$0xff]  ;;  %v13320_v53 = vld [vmem:[#allocation217_spill] sm:$0xff]  ;;  %v13321_v17 = vld [vmem:[#allocation218_spill] sm:$0xff] }
 0x5f3   : > { %v11394_v47 = vadd.f32 %v13319_v8, %v3867_v41  ;;  %v4064_v18 = vadd.f32 %v13320_v53, %v3868_v59  ;;  %v11398_v62 = vadd.f32 %v13321_v17, %v3869_v0  ;;  %v3090_v60 = vld [vmem:[%s11993_s10 + $0xb8] sm:$0xff]  ;;  %v3073_v13 = vld [vmem:[%s11993_s10 + $0x30] sm:$0xff]  ;;  %v13324_v41 = vld [vmem:[#allocation221_spill] sm:$0xff] }
 0x5f4   : > { %v13322_v63 = vld [vmem:[#allocation219_spill] sm:$0xff]  ;;  %v13323_v1 = vld [vmem:[#allocation220_spill] sm:$0xff]  ;;  %v4069_v9 = vadd.f32 %v13324_v41, %v3873_v12  ;;  %v13325_v32 = vld [vmem:[#allocation222_spill] sm:$0xff]  ;;  %5026 = vperm.xlu1 %6063, %v3090_v60   ;;  %4941 = vperm.xlu0 %6064, %v3073_v13  }
 0x5f5   : > { %v11407_v29 = vadd.f32 %v13322_v63, %v3871_v27  ;;  %v4068_v26 = vadd.f32 %v13323_v1, %v3872_v43  ;;  %v4070_v59 = vadd.f32 %v13325_v32, %v3874_v46  ;;  %v13326_v0 = vld [vmem:[#allocation223_spill] sm:$0xff]  ;;  %v13327_v25 = vld [vmem:[#allocation224_spill] sm:$0xff]  ;;  %v13328_v7 = vld [vmem:[#allocation225_spill] sm:$0xff] }
 0x5f6   : > { %v4071_v50 = vadd.f32 %v13326_v0, %v3875_v11  ;;  %v4072_v30 = vadd.f32 %v13327_v25, %v3876_v34  ;;  %v4073_v48 = vadd.f32 %v13328_v7, %v3877_v44  ;;  %v13329_v49 = vld [vmem:[#allocation226_spill] sm:$0xff]  ;;  %v3074_v27 = vld [vmem:[%s11993_s10 + $0x38] sm:$0xff]  ;;  %v13330_v19 = vld [vmem:[#allocation227_spill] sm:$0xff]  ;;  %v11423_v11 = vpop.permute.xlu0 %4714  ;;  %v11425_v34 = vpop.permute.xlu1 %4142 }
 0x5f7   : > { %v4074_v45 = vadd.f32 %v13329_v49, %v3878_v38  ;;  %v4075_v43 = vadd.f32 %v13330_v19, %v3879_v14  ;;  %v13331_v37 = vld [vmem:[#allocation228_spill] sm:$0xff]  ;;  %v13332_v51 = vld [vmem:[#allocation229_spill] sm:$0xff]  ;;  %v13333_v22 = vld [vmem:[#allocation230_spill] sm:$0xff] }
 0x5f8   : > { %v4076_v12 = vadd.f32 %v13331_v37, %v3880_v10  ;;  %v4245_v46 = vadd.f32 %v13332_v51, %v4049_v4  ;;  %v4247_v40 = vadd.f32 %v13333_v22, %v4051_v24  ;;  %v3087_v44 = vld [vmem:[%s11993_s10 + $0xa0] sm:$0xff]  ;;  %v13334_v38 = vld [vmem:[#allocation231_spill] sm:$0xff]  ;;  %v13335_v8 = vld [vmem:[#allocation232_spill] sm:$0xff]  ;;  %4946 = vperm.xlu1 %6063, %v3074_v27  }
 0x5f9   : > { %v11431_v54 = vadd.f32 %v13334_v38, %v4052_v39  ;;  %v4249_v53 = vadd.f32 %v13335_v8, %v4053_v5  ;;  %v13336_v14 = vld [vmem:[#allocation233_spill] sm:$0xff]  ;;  %v13337_v10 = vld [vmem:[#allocation235_spill] sm:$0xff]  ;;  %v13338_v4 = vld [vmem:[#allocation236_spill] sm:$0xff]  ;;  %5011 = vperm.xlu0 %6064, %v3087_v44  }
 0x5fa   : > { %v4251_v17 = vadd.f32 %v13336_v14, %v4055_v16  ;;  %v4252_v60 = vadd.f32 %v13337_v10, %v4056_v42  ;;  %v4253_v13 = vadd.f32 %v13338_v4, %v4057_v28  ;;  %v13339_v24 = vld [vmem:[#allocation237_spill] sm:$0xff]  ;;  %v13340_v1 = vld [vmem:[#allocation238_spill] sm:$0xff]  ;;  %v13341_v32 = vld [vmem:[#allocation239_spill] sm:$0xff] }
 0x5fb   : > { %v4254_v63 = vadd.f32 %v13339_v24, %v4058_v58  ;;  %v4255_v41 = vadd.f32 %v13340_v1, %v4059_v56  ;;  %v4256_v0 = vadd.f32 %v13341_v32, %v4060_v61  ;;  %v13342_v25 = vld [vmem:[#allocation240_spill] sm:$0xff]  ;;  %v13343_v49 = vld [vmem:[#allocation35_spill] sm:$0xff]  ;;  %v13344_v19 = vld [vmem:[#allocation34_spill] sm:$0xff]  ;;  %v11466_v32 = vpop.permute.xlu0 %4770 }
 0x5fc   : > { %v4260_v7 = vadd.f32 %v13342_v25, %v4064_v18  ;;  %v11442_v39 = vadd.f32 %v13343_v49, %v4068_v26  ;;  %v4265_v5 = vadd.f32 %v13344_v19, %v4069_v9  ;;  %v13345_v37 = vld [vmem:[#allocation48_spill] sm:$0xff]  ;;  %v13347_v28 = vld [vmem:[#allocation37_spill] sm:$0xff]  ;;  %v13349_v56 = vld [vmem:[#allocation38_spill] sm:$0xff]  ;;  %v11454_v9 = vpop.permute.xlu1 %4542 }
 0x5fd   : > { %v4268_v16 = vadd.f32 %v13345_v37, %v4072_v30  ;;  %v13346_v42 = vld [vmem:[#allocation16_spill] sm:$0xff]  ;;  %v4267_v22 = vadd.f32 %v13347_v28, %v4071_v50  ;;  %v13348_v58 = vld [vmem:[#allocation13_spill] sm:$0xff]  ;;  %v4270_v8 = vadd.f32 %v13349_v56, %v4074_v45  ;;  %v13352_v10 = vld [vmem:[#allocation43_spill] sm:$0xff] }
 0x5fe   : > { %v4266_v51 = vadd.f32 %v13346_v42, %v4070_v59  ;;  %v4269_v38 = vadd.f32 %v13348_v58, %v4073_v48  ;;  %v13350_v61 = vld [vmem:[#allocation20_spill] sm:$0xff]  ;;  %v13351_v14 = vld [vmem:[#allocation9_spill] sm:$0xff]  ;;  %v4447_v26 = vadd.f32 %v13352_v10, %v4251_v17  ;;  %v3088_v59 = vld [vmem:[%s11993_s10 + $0xa8] sm:$0xff] }
 0x5ff   : > { %v4271_v27 = vadd.f32 %v13350_v61, %v4075_v43  ;;  %v4272_v18 = vadd.f32 %v13351_v14, %v4076_v12  ;;  %v13353_v4 = vld [vmem:[#allocation49_spill] sm:$0xff]  ;;  %v13354_v30 = vld [vmem:[#allocation96_spill] sm:$0xff]  ;;  %v13357_v1 = vld [vmem:[#allocation58_spill] sm:$0xff]  ;;  %5016 = vperm.xlu1 %6063, %v3088_v59  }
 0x600   : > { %v4448_v24 = vadd.f32 %v13353_v4, %v4252_v60  ;;  %v3071_v50 = vld [vmem:[%s11993_s10 + $0x20] sm:$0xff]  ;;  %v4441_v48 = vadd.f32 %v13354_v30, %v4245_v46  ;;  %v13355_v45 = vld [vmem:[#allocation56_spill] sm:$0xff]  ;;  %v4452_v17 = vadd.f32 %v13357_v1, %v4256_v0  ;;  %v13359_v49 = vld [vmem:[#allocation31_spill] sm:$0xff] }
 0x601   : > { %v4443_v43 = vadd.f32 %v13355_v45, %v4247_v40  ;;  %v13356_v44 = vld [vmem:[#allocation61_spill] sm:$0xff]  ;;  %v4449_v19 = vadd.f32 %v13359_v49, %v4253_v13  ;;  %v13360_v37 = vld [vmem:[#allocation40_spill] sm:$0xff]  ;;  %4931 = vperm.xlu0 %6064, %v3071_v50   ;;  %v3072_v46 = vld [vmem:[%s11993_s10 + $0x28] sm:$0xff] }
 0x602   : > { %v4451_v12 = vadd.f32 %v13356_v44, %v4255_v41  ;;  %v13358_v60 = vld [vmem:[#allocation45_spill] sm:$0xff]  ;;  %v4450_v42 = vadd.f32 %v13360_v37, %v4254_v63  ;;  %v13362_v40 = vld [vmem:[#allocation12_spill] sm:$0xff]  ;;  %v13364_v61 = vld [vmem:[#allocation46_spill] sm:$0xff] }
 0x603   : > { %v4445_v25 = vadd.f32 %v13358_v60, %v4249_v53  ;;  %v13361_v28 = vld [vmem:[#allocation33_spill] sm:$0xff]  ;;  %v11476_v41 = vadd.f32 %v13362_v40, %v4260_v7  ;;  %v4465_v14 = vadd.f32 %v13364_v61, %v4269_v38  ;;  %v13365_v10 = vld [vmem:[#allocation22_spill] sm:$0xff]  ;;  %v3085_v13 = vld [vmem:[%s11993_s10 + $0x90] sm:$0xff]  ;;  %v11488_v7 = vpop.permute.xlu1 %4546  ;;  %4936 = vperm.xlu1 %6063, %v3072_v46   ;;  %v4699_v46 = vpop.permute.xlu0 %4698 }
 0x604   : > { %v4464_v58 = vadd.f32 %v13361_v28, %v4268_v16  ;;  %v13363_v0 = vld [vmem:[#allocation53_spill] sm:$0xff]  ;;  %v4466_v53 = vadd.f32 %v13365_v10, %v4270_v8  ;;  %v13366_v63 = vld [vmem:[#allocation55_spill] sm:$0xff]  ;;  %v13370_v1 = vld [vmem:[#allocation32_spill] sm:$0xff] }
 0x605   : > { %v4461_v56 = vadd.f32 %v13363_v0, %v4265_v5  ;;  %v4462_v16 = vadd.f32 %v13366_v63, %v4266_v51  ;;  %v13367_v4 = vld [vmem:[#allocation11_spill] sm:$0xff]  ;;  %v13368_v50 = vld [vmem:[#allocation245_spill] sm:$0xff]  ;;  %v4463_v5 = vadd.f32 %v13370_v1, %v4267_v22  ;;  %v13372_v38 = vld [vmem:[#allocation172_spill] sm:$0xff]  ;;  %5001 = vperm.xlu0 %6064, %v3085_v13  }
 0x606   : > { %v4468_v59 = vadd.f32 %v13367_v4, %v4272_v18  ;;  %v4643_v30 = vadd.f32 %v13368_v50, %v4447_v26  ;;  %v13369_v45 = vld [vmem:[#allocation23_spill] sm:$0xff]  ;;  %v13371_v60 = vld [vmem:[#allocation57_spill] sm:$0xff]  ;;  %v13375_v0 = vld [vmem:[#allocation10_spill] sm:$0xff] }
 0x607   : > { %v4644_v44 = vadd.f32 %v13369_v45, %v4448_v24  ;;  %v4034_v49 = vmul.f32 %v13372_v38, %v13371_v60  ;;  %v13373_v8 = vld [vmem:[#allocation161_spill] sm:$0xff]  ;;  %v4467_v51 = vadd.f32 %v13375_v0, %v4271_v27  ;;  %v13376_v61 = vld [vmem:[#allocation66_spill] sm:$0xff]  ;;  %v13377_v26 = vld [vmem:[#allocation243_spill] sm:$0xff] }
 0x608   : > { %v4647_v37 = vadd.f32 %v13373_v8, %v4451_v12  ;;  %v13374_v28 = vld [vmem:[#allocation17_spill] sm:$0xff]  ;;  %v11497_v18 = vadd.f32 %v13376_v61, %v4441_v48  ;;  %v11500_v10 = vadd.f32 %v13377_v26, %v4443_v43  ;;  %v13378_v24 = vld [vmem:[#allocation102_spill] sm:$0xff]  ;;  %v13379_v4 = vld [vmem:[#allocation27_spill] sm:$0xff] }
 0x609   : > { %v4648_v40 = vadd.f32 %v13374_v28, %v4452_v17  ;;  %v4660_v63 = vadd.f32 %v13378_v24, %v4464_v58  ;;  %v4066_v22 = vadd.f32 %v4034_v49, %v11353_v20  ;;  %v4646_v50 = vadd.f32 %v13379_v4, %v4450_v42  ;;  %v13380_v45 = vld [vmem:[#allocation42_spill] sm:$0xff]  ;;  %v13381_v1 = vld [vmem:[#allocation36_spill] sm:$0xff]  ;;  %v13383_v8 = vld [vmem:[#allocation15_spill] sm:$0xff]  ;;  %v11521_v24 = vpop.permute.xlu1 %4082 }
 0x60a   : > { %v4661_v12 = vadd.f32 %v13380_v45, %v4465_v14  ;;  %v4662_v17 = vadd.f32 %v13381_v1, %v4466_v53  ;;  %v13382_v60 = vld [vmem:[#allocation244_spill] sm:$0xff]  ;;  %v4664_v48 = vadd.f32 %v13383_v8, %v4468_v59  ;;  %v13384_v28 = vld [vmem:[#allocation21_spill] sm:$0xff]  ;;  %v3069_v20 = vld [vmem:[%s11993_s10 + $0x10] sm:$0xff] }
 0x60b   : > { %v4641_v27 = vadd.f32 %v13382_v60, %v4445_v25  ;;  %v4839_v0 = vadd.f32 %v13384_v28, %v4643_v30  ;;  %v13385_v43 = vld [vmem:[#allocation41_spill] sm:$0xff]  ;;  %v3086_v58 = vld [vmem:[%s11993_s10 + $0x98] sm:$0xff]  ;;  %v13386_v42 = vld [vmem:[#allocation246_spill] sm:$0xff]  ;;  %4921 = vperm.xlu0 %6064, %v3069_v20  }
 0x60c   : > { %v4840_v61 = vadd.f32 %v13385_v43, %v4644_v44  ;;  %v4645_v14 = vadd.f32 %v13386_v42, %v4449_v19  ;;  %v13387_v53 = vld [vmem:[#allocation39_spill] sm:$0xff]  ;;  %v13389_v26 = vld [vmem:[#allocation28_spill] sm:$0xff]  ;;  %5006 = vperm.xlu1 %6063, %v3086_v58   ;;  %v13391_v4 = vld [vmem:[#allocation30_spill] sm:$0xff] }
 0x60d   : > { %v4657_v13 = vadd.f32 %v13387_v53, %v4461_v56  ;;  %v13388_v49 = vld [vmem:[#allocation47_spill] sm:$0xff]  ;;  %v4844_v59 = vadd.f32 %v13389_v26, %v4648_v40  ;;  %v4659_v45 = vadd.f32 %v13391_v4, %v4463_v5  ;;  %v13393_v8 = vld [vmem:[#allocation14_spill] sm:$0xff]  ;;  %v3070_v19 = vld [vmem:[%s11993_s10 + $0x18] sm:$0xff]  ;;  %v4871_v53 = vmax.f32 %v4839_v0, 0.0 }
 0x60e   : > { %v4843_v25 = vadd.f32 %v13388_v49, %v4647_v37  ;;  %v13390_v30 = vld [vmem:[#allocation247_spill] sm:$0xff]  ;;  %v4663_v28 = vadd.f32 %v13393_v8, %v4467_v51  ;;  %v13394_v56 = vld [vmem:[#allocation241_spill] sm:$0xff]  ;;  %v13396_v58 = vld [vmem:[#allocation18_spill] sm:$0xff]  ;;  %v4872_v49 = vmax.f32 %v4840_v61, 0.0 }
 0x60f   : > { %v4658_v44 = vadd.f32 %v13390_v30, %v4462_v16  ;;  %v13392_v1 = vld [vmem:[#allocation63_spill] sm:$0xff]  ;;  %v11533_v37 = vadd.f32 %v13394_v56, %v4066_v22  ;;  %v13395_v40 = vld [vmem:[#allocation25_spill] sm:$0xff]  ;;  %v11539_v16 = vadd.f32 %v13396_v58, %v4661_v12  ;;  %v13397_v5 = vld [vmem:[#allocation26_spill] sm:$0xff] }
 0x610   : > { %v11526_v60 = vadd.f32 %v13392_v1, %v4660_v63  ;;  %v11536_v43 = vadd.f32 %v13395_v40, %v4646_v50  ;;  %v11542_v42 = vadd.f32 %v13397_v5, %v4662_v17  ;;  %v3083_v51 = vld [vmem:[%s11993_s10 + $0x80] sm:$0xff]  ;;  %v13398_v63 = vld [vmem:[#allocation24_spill] sm:$0xff]  ;;  %v4875_v30 = vmax.f32 %v4843_v25, 0.0  ;;  %v13400_v4 = vld [vmem:[#allocation54_spill] sm:$0xff]  ;;  %v4691_v1 = vpop.permute.xlu0 %4690  ;;  %4926 = vperm.xlu1 %6063, %v3070_v19  }
 0x611   : > { %v4860_v20 = vadd.f32 %v13398_v63, %v4664_v48  ;;  %v13399_v22 = vld [vmem:[#allocation205_spill] sm:$0xff]  ;;  %v4876_v50 = vmax.f32 %v4844_v59, 0.0  ;;  %v13401_v48 = vld [vmem:[#allocation242_spill] sm:$0xff]  ;;  %4991 = vperm.xlu0 %6064, %v3083_v51   ;;  %v4889_v58 = vmax.f32 %v11539_v16, 0.0  ;;  %v13403_v5 = vld [vmem:[#allocation44_spill] sm:$0xff]  ;;  %v11576_v51 = vpack.c.bf16 %v4872_v49, %v4871_v53 }
 0x612   : > { %v4827_v26 = vmul.f32 %v13399_v22, %v11380_v33  ;;  %v4809_v12 = vmul.f32 %v13399_v22, %v11423_v11  ;;  %v4821_v17 = vmul.f32 %v13399_v22, %v13400_v4  ;;  %v4263_v0 = vadd.f32 %v13401_v48, %v11407_v29  ;;  %v11559_v33 = vpop.permute.xlu1 %4482  ;;  %v13402_v11 = vld [vmem:[#allocation59_spill] sm:$0xff]  ;;  %v13404_v29 = vld [vmem:[#allocation144_spill] sm:$0xff]  ;;  %v3068_v48 = vld [vmem:[%s11993_s10 + $0x8] sm:$0xff] }
 0x613   : > { %v4823_v61 = vmul.f32 %v13399_v22, %v11466_v32  ;;  %v4822_v40 = vmul.f32 %v13399_v22, %v13402_v11  ;;  %v4805_v19 = vmul.f32 %v13399_v22, %v4699_v46  ;;  %v4427_v63 = vmul.f32 %v13404_v29, %v13403_v5  ;;  %v3084_v32 = vld [vmem:[%s11993_s10 + $0x88] sm:$0xff]  ;;  %v13416_v8 = vld [vmem:[#allocation173_spill] sm:$0xff] }
 0x614   : > { %v4859_v56 = vadd.f32 %v4827_v26, %v4663_v28  ;;  %v4841_v25 = vadd.f32 %v4809_v12, %v4645_v14  ;;  %v11561_v59 = vadd.f32 %v4821_v17, %v4657_v13  ;;  %v4890_v28 = vmax.f32 %v11542_v42, 0.0  ;;  %v3067_v14 = vld [vmem:[%s11993_s10] sm:$0xff]  ;;  %4996 = vperm.xlu1 %6063, %v3084_v32   ;;  %v13408_v5 = vld [vmem:[#allocation170_spill] sm:$0xff] }
 0x615   : > { %v4855_v26 = vadd.f32 %v4823_v61, %v4659_v45  ;;  %v4892_v13 = vmax.f32 %v4860_v20, 0.0  ;;  %v4854_v46 = vadd.f32 %v4822_v40, %v4658_v44  ;;  %v11578_v12 = vadd.f32 %v4805_v19, %v4641_v27  ;;  %v13405_v45 = vld [vmem:[#allocation62_spill] sm:$0xff]  ;;  %4911 = vperm.xlu0 %6064, %v3067_v14   ;;  %v4683_v44 = vpop.permute.xlu0 %4682 }
 0x616   : > { %v4900_v16 = vpack.c.bf16 %v4876_v50, %v4875_v30  ;;  %v4459_v42 = vadd.f32 %v4427_v63, %v4263_v0  ;;  %v4874_v4 = vmax.f32 %v11536_v43, 0.0  ;;  %v4412_v17 = vmul.f32 %v13404_v29, %v13405_v45  ;;  %v11588_v49 = vpop.permute.xlu1 %4338  ;;  %v13406_v0 = vld [vmem:[#allocation65_spill] sm:$0xff]  ;;  %v13411_v14 = vld [vmem:[#allocation174_spill] sm:$0xff] }
 0x617   : > { %v4891_v61 = vmax.f32 %v4859_v56, 0.0  ;;  %v4873_v20 = vmax.f32 %v4841_v25, 0.0  ;;  %v4885_v53 = vmax.f32 %v11561_v59, 0.0  ;;  %v4803_v27 = vmul.f32 %v13399_v22, %v4691_v1  ;;  %v13407_v25 = vld [vmem:[#allocation51_spill] sm:$0xff]  ;;  %v13412_v45 = vld [vmem:[#allocation193_spill] sm:$0xff] }
 0x618   : > { %v4887_v30 = vmax.f32 %v4855_v26, 0.0  ;;  %v4444_v43 = vadd.f32 %v4412_v17, %v11431_v54  ;;  %v4801_v50 = vmul.f32 %v13399_v22, %v4683_v44  ;;  %v4806_v11 = vmul.f32 %v13399_v22, %v13406_v0  ;;  %4916 = vperm.xlu1 %6063, %v3068_v48   ;;  %v13409_v54 = vld [vmem:[#allocation155_spill] sm:$0xff]  ;;  %v13410_v26 = vld [vmem:[#allocation178_spill] sm:$0xff] }
 0x619   : > { %v4886_v40 = vmax.f32 %v4854_v46, 0.0  ;;  %v11596_v56 = vadd.f32 %v4803_v27, %v11500_v10  ;;  %v4460_v1 = vadd.f32 %v13407_v25, %v11442_v39  ;;  %v4229_v63 = vmul.f32 %v13409_v54, %v13408_v5  ;;  %v13413_v17 = vld [vmem:[#allocation82_spill] sm:$0xff]  ;;  %v13414_v39 = vld [vmem:[#allocation89_spill] sm:$0xff]  ;;  %v13415_v25 = vld [vmem:[#allocation156_spill] sm:$0xff] }
 0x61a   : > { %v11601_v59 = vadd.f32 %v4806_v11, %v11320_v6  ;;  %v4623_v32 = vmul.f32 %v13146_v21, %v13410_v26  ;;  %v4214_v46 = vmul.f32 %v13409_v54, %v13411_v14  ;;  %v4624_v10 = vmul.f32 %v13146_v21, %v13412_v45  ;;  %v4739_v26 = vpop.permute.xlu1 %4738 }
 0x61b   : > { %v4608_v27 = vmul.f32 %v13146_v21, %v13413_v17  ;;  %v4425_v48 = vmul.f32 %v13404_v29, %v13414_v39  ;;  %v4908_v6 = vpack.c.bf16 %v4892_v13, %v4891_v61  ;;  %v4899_v44 = vpack.c.bf16 %v4874_v4, %v4873_v20 }
 0x61c   : > { %v11616_v0 = vadd.f32 %v4801_v50, %v11497_v18  ;;  %v4261_v11 = vadd.f32 %v4229_v63, %v11398_v62  ;;  %v4819_v5 = vmul.f32 %v13399_v22, %v13415_v25  ;;  %v4655_v14 = vadd.f32 %v4623_v32, %v4459_v42  ;;  %v13417_v18 = vld [vmem:[#allocation199_spill] sm:$0xff]  ;;  %v13421_v63 = vld [vmem:[#allocation234_spill] sm:$0xff] }
 0x61d   : > { %v4656_v19 = vadd.f32 %v4624_v10, %v4460_v1  ;;  %5785 = vmatprep.subr.bf16.mxu1 %v4908_v6  ;;  %v4907_v45 = vpack.c.bf16 %v4890_v28, %v4889_v58  ;;  %v4820_v17 = vmul.f32 %v13399_v22, %v13416_v8  ;;  %v4870_v39 = vmax.f32 %v11601_v59, 0.0  ;;  %v13418_v62 = vld [vmem:[#allocation215_spill] sm:$0xff]  ;;  %v13419_v1 = vld [vmem:[#allocation60_spill] sm:$0xff] }
 0x61e   : > { %v4246_v13 = vadd.f32 %v4214_v46, %v11378_v35  ;;  %5786 = vmatpush3.bf16.msra.mxu1 %v4900_v16  ;;  %v4410_v4 = vmul.f32 %v13404_v29, %v13417_v18  ;;  %v4804_v61 = vmul.f32 %v13399_v22, %v13418_v62  ;;  %v4640_v20 = vadd.f32 %v4608_v27, %v4444_v43  ;;  %v13422_v16 = vld [vmem:[#allocation19_spill] sm:$0xff]  ;;  %v4743_v46 = vpop.permute.xlu1 %4742  ;;  %v13423_v43 = vld [vmem:[#allocation64_spill] sm:$0xff] }
 0x61f   : > { %v4457_v50 = vadd.f32 %v4425_v48, %v4261_v11  ;;  %5787 = vmatprep.subr.bf16.mxu1 %v4907_v45  ;;  %v4852_v42 = vadd.f32 %v4820_v17, %v4656_v19  ;;  %v4621_v58 = vmul.f32 %v13146_v21, %v13419_v1  ;;  %v4851_v28 = vadd.f32 %v4819_v5, %v4655_v14  ;;  %v13424_v19 = vld [vmem:[#allocation93_spill] sm:$0xff]  ;;  %v13426_v17 = vld [vmem:[#allocation67_spill] sm:$0xff] }
 0x620   : > { %v13420_v8 = vmax.f32 %v11526_v60, 0.0  ;;  %v4227_v35 = vmul.f32 %v13409_v54, %v13421_v63  ;;  %v4622_v32 = vmul.f32 %v13146_v21, %v13422_v16  ;;  %v4442_v10 = vadd.f32 %v4410_v4, %v4246_v13  ;;  %v13425_v60 = vld [vmem:[#allocation248_spill] sm:$0xff] }
 0x621   : > { %v4905_v6 = vpack.c.bf16 %v4886_v40, %v4885_v53  ;;  %v4458_v27 = vadd.f32 %v13423_v43, %v11533_v37  ;;  %v4606_v48 = vmul.f32 %v13146_v21, %v13424_v19  ;;  %v4836_v11 = vadd.f32 %v4804_v61, %v4640_v20  ;;  %v13428_v19 = vld [vmem:[#allocation127_spill] sm:$0xff] }
 0x622   : > { %v4906_v59 = vpack.c.bf16 %v13420_v8, %v4887_v30  ;;  %5788 = vmatpush3.bf16.msra.mxu1 %v4899_v44  ;;  %v4653_v25 = vadd.f32 %v4621_v58, %v4457_v50  ;;  %v4212_v30 = vmul.f32 %v13409_v54, %v13425_v60  ;;  %v4817_v5 = vmul.f32 %v13399_v22, %v11284_v15  ;;  %v11656_v20 = vpop.permute.xlu1 %4278 }
 0x623   : > { %v4884_v14 = vmax.f32 %v4852_v42, 0.0  ;;  %v4654_v45 = vadd.f32 %v4622_v32, %v4458_v27  ;;  %v4423_v53 = vmul.f32 %v13404_v29, %v13426_v17  ;;  %v4818_v37 = vmul.f32 %v13399_v22, %v11318_v23 }
 0x624   : > { %5789 = vmatprep.subr.bf16.mxu1 %v4906_v59  ;;  %v4883_v40 = vmax.f32 %v4851_v28, 0.0  ;;  %v4259_v44 = vadd.f32 %v4227_v35, %v11394_v47  ;;  %v4849_v13 = vadd.f32 %v4817_v5, %v4653_v25  ;;  %v4408_v18 = vmul.f32 %v13404_v29, %v11349_v2 }
 0x625   : > { %v4638_v4 = vadd.f32 %v4606_v48, %v4442_v10  ;;  %v4850_v62 = vadd.f32 %v4818_v37, %v4654_v45  ;;  %v4802_v15 = vmul.f32 %v13399_v22, %v11386_v31  ;;  %v4619_v61 = vmul.f32 %v13146_v21, %v11454_v9  ;;  %v13429_v48 = vld [vmem:[#allocation122_spill] sm:$0xff] }
 0x626   : > { %v4867_v50 = vmax.f32 %v11596_v56, 0.0  ;;  %5790 = vmatpush3.bf16.msra.mxu1 %v11576_v51  ;;  %v4868_v23 = vmax.f32 %v4836_v11, 0.0  ;;  %v4244_v47 = vadd.f32 %v4212_v30, %v11374_v36  ;;  %v4620_v2 = vmul.f32 %v13146_v21, %v11488_v7  ;;  %v4675_v51 = vpop.permute.xlu0 %4674  ;;  %v13430_v11 = vld [vmem:[#allocation189_spill] sm:$0xff]  ;;  %v13432_v30 = vld [vmem:[#allocation188_spill] sm:$0xff] }
 0x627   : > { %5791 = vmatprep.subr.bf16.mxu1 %v4905_v6  ;;  %v4904_v42 = vpack.c.bf16 %v4884_v14, %v4883_v40  ;;  %v4455_v1 = vadd.f32 %v4423_v53, %v4259_v44  ;;  %v4882_v58 = vmax.f32 %v4850_v62, 0.0  ;;  %v4834_v31 = vadd.f32 %v4802_v15, %v4638_v4  ;;  %v13433_v53 = vld [vmem:[#allocation210_spill] sm:$0xff] }
 0x628   : > { %v13427_v28 = vmax.f32 %v11578_v12, 0.0  ;;  %v4881_v8 = vmax.f32 %v4849_v13, 0.0  ;;  %v4440_v59 = vadd.f32 %v4408_v18, %v4244_v47  ;;  %v4604_v56 = vmul.f32 %v13146_v21, %v11559_v33  ;;  %v13434_v13 = vld [vmem:[#allocation107_spill] sm:$0xff]  ;;  %v13436_v62 = vld [vmem:[#allocation74_spill] sm:$0xff] }
 0x629   : > { %v4651_v63 = vadd.f32 %v4619_v61, %v4455_v1  ;;  %v4652_v36 = vadd.f32 %v4620_v2, %v11476_v41  ;;  %v4815_v35 = vmul.f32 %v13399_v22, %v4739_v26  ;;  %v4816_v7 = vmul.f32 %v13399_v22, %v4743_v46  ;;  %v13431_v26 = vld [vmem:[#allocation130_spill] sm:$0xff]  ;;  %v13435_v18 = vld [vmem:[#allocation139_spill] sm:$0xff]  ;;  %v13438_v2 = vld [vmem:[#allocation169_spill] sm:$0xff] }
 0x62a   : > { %v4897_v9 = vpack.c.bf16 %v4870_v39, %v13427_v28  ;;  %v4799_v16 = vmul.f32 %v13399_v22, %v4675_v51  ;;  %v4896_v32 = vpack.c.bf16 %v4868_v23, %v4867_v50  ;;  %v4903_v10 = vpack.c.bf16 %v4882_v58, %v4881_v8  ;;  %v4679_v39 = vpop.permute.xlu1 %4678  ;;  %v13440_v8 = vld [vmem:[#allocation29_spill] sm:$0xff] }
 0x62b   : > { %v4866_v12 = vmax.f32 %v4834_v31, 0.0  ;;  %v4636_v6 = vadd.f32 %v4604_v56, %v4440_v59  ;;  %v4847_v43 = vadd.f32 %v4815_v35, %v4651_v63  ;;  %v4848_v27 = vadd.f32 %v4816_v7, %v4652_v36  ;;  %v13441_v35 = vld [vmem:[#allocation207_spill] sm:$0xff] }
 0x62c   : > { %5792 = vmatpush3.bf16.msra.mxu1 %v4897_v9  ;;  %v4800_v33 = vmul.f32 %v13399_v22, %v4679_v39  ;;  %v3622_v41 = vmul.f32 %v13429_v48, %v13428_v19  ;;  %v3833_v25 = vmul.f32 %v13431_v26, %v13430_v11  ;;  %v4865_v46 = vmax.f32 %v11616_v0, 0.0  ;;  %v13444_v11 = vld [vmem:[#allocation52_spill] sm:$0xff] }
 0x62d   : > { %5793 = vmatprep.subr.bf16.mxu1 %v4904_v42  ;;  %v4831_v60 = vadd.f32 %v4799_v16, %v11367_v52  ;;  %v3866_v5 = vadd.f32 %v13432_v30, %v11298_v3  ;;  %v4879_v14 = vmax.f32 %v4847_v43, 0.0  ;;  %v4880_v45 = vmax.f32 %v4848_v27, 0.0  ;;  %v13437_v3 = vld [vmem:[#allocation213_spill] sm:$0xff]  ;;  %v13439_v42 = vld [vmem:[#allocation175_spill] sm:$0xff]  ;;  %v13442_v16 = vld [vmem:[#allocation8_spill] sm:$0xff] }
 0x62e   : > { %v4832_v17 = vadd.f32 %v4800_v33, %v4636_v6  ;;  %v4030_v37 = vmul.f32 %v13372_v38, %v13433_v53  ;;  %v3865_v40 = vadd.f32 %v3833_v25, %v11295_v57  ;;  %v4895_v44 = vpack.c.bf16 %v4866_v12, %v4865_v46  ;;  %v4535_v61 = vpop.permute.xlu1 %4534  ;;  %v4731_v12 = vpop.permute.xlu0 %4730  ;;  %v13443_v6 = vld [vmem:[#allocation197_spill] sm:$0xff] }
 0x62f   : > { %v3653_v4 = vadd.f32 %v13435_v18, %v13434_v13  ;;  %v3654_v0 = vadd.f32 %v3622_v41, %v13436_v62  ;;  %v4902_v52 = vpack.c.bf16 %v4880_v45, %v4879_v14  ;;  %v4029_v50 = vmul.f32 %v13372_v38, %v13437_v3  ;;  %v13445_v14 = vld [vmem:[#allocation165_spill] sm:$0xff] }
 0x630   : > { %5794 = vmatpush3.bf16.msra.mxu1 %v4896_v32  ;;  %v4864_v15 = vmax.f32 %v4832_v17, 0.0  ;;  %v4863_v23 = vmax.f32 %v4831_v60, 0.0  ;;  %v4225_v47 = vmul.f32 %v13409_v54, %v11425_v34  ;;  %v3817_v57 = vmul.f32 %v13431_v26, %v13438_v2  ;;  %v6118_v2 = vld [vmem:[%s11992_s9 + $0x14] ss:$8 sps:$4 sm:$0xff]  }
 0x631   : > { %5795 = vmatprep.subr.bf16.mxu1 %v4903_v10  ;;  %v3818_v1 = vmul.f32 %v13431_v26, %v13439_v42  ;;  %v4062_v58 = vadd.f32 %v4030_v37, %v3866_v5  ;;  %v4061_v31 = vadd.f32 %v4029_v50, %v3865_v40  ;;  %v4421_v28 = vmul.f32 %v13404_v29, %v11588_v49  ;;  %v6123_v42 = vld [vmem:[%s11992_s9 + $0x20] ss:$8 sps:$4 sm:$0xff]  }
 0x632   : > { %v4894_v9 = vpack.c.bf16 %v4864_v15, %v4863_v23  ;;  %v4226_v59 = vmul.f32 %v13409_v54, %v13440_v8  ;;  %v3849_v56 = vadd.f32 %v3817_v57, %v3653_v4  ;;  %v4471_v34 = vpop.permute.xlu1 %4470  ;;  %v4617_v36 = vmul.f32 %v13146_v21, %v4535_v61  ;;  %v6121_v57 = vld [vmem:[%s11992_s9 + $0x24] ss:$8 sps:$4 sm:$0xff]   ;;  %v6132_v8 = vld [vmem:[%s11992_s9 + $0x50] ss:$8 sps:$4 sm:$0xff]  }
 0x633   : > { %v3850_v51 = vadd.f32 %v3818_v1, %v3654_v0  ;;  %v4257_v63 = vadd.f32 %v4225_v47, %v4061_v31  ;;  %v4013_v7 = vmul.f32 %v13372_v38, %v13441_v35  ;;  %v4014_v32 = vmul.f32 %v13372_v38, %v13442_v16  ;;  %v6115_v47 = vld [vmem:[%s11992_s9] ss:$8 sps:$4 sm:$0xff]   ;;  %v6124_v1 = vld [vmem:[%s11992_s9 + $0x34] ss:$8 sps:$4 sm:$0xff]   ;;  %v6127_v31 = vld [vmem:[%s11992_s9 + $0x44] ss:$8 sps:$4 sm:$0xff]  }
 0x634   : > { %5796 = vmatpush3.bf16.msra.mxu1 %v4895_v44  ;;  %v4258_v10 = vadd.f32 %v4226_v59, %v4062_v58  ;;  %v4210_v49 = vmul.f32 %v13409_v54, %v11521_v24  ;;  %v4422_v43 = vmul.f32 %v13404_v29, %v13443_v6  ;;  %v4406_v19 = vmul.f32 %v13404_v29, %v11656_v20  ;;  %v4671_v20 = vpop.permute.xlu0 %4670  ;;  %v6126_v58 = vld [vmem:[%s11992_s9 + $0x30] ss:$8 sps:$4 sm:$0xff]   ;;  %v6133_v59 = vld [vmem:[%s11992_s9 + $0x64] ss:$8 sps:$4 sm:$0xff]   ;;  %v6142_v35 = vld [vmem:[%s11992_s9 + $0x94] ss:$8 sps:$4 sm:$0xff]  }
 0x635   : > { %5797 = vmatprep.subr.bf16.mxu1 %v4902_v52  ;;  %v4453_v39 = vadd.f32 %v4421_v28, %v4257_v63  ;;  %v4045_v27 = vadd.f32 %v4013_v7, %v3849_v56  ;;  %v4046_v33 = vadd.f32 %v4014_v32, %v3850_v51  ;;  %v4209_v38 = vmul.f32 %v13409_v54, %v13444_v11  ;;  %v6129_v28 = vld [vmem:[%s11992_s9 + $0x40] ss:$8 sps:$4 sm:$0xff]   ;;  %v6136_v51 = vld [vmem:[%s11992_s9 + $0x74] ss:$8 sps:$4 sm:$0xff]   ;;  %v6139_v63 = vld [vmem:[%s11992_s9 + $0x84] ss:$8 sps:$4 sm:$0xff]  }
 0x636   : > { %v4475_v48 = vpop.permute.xlu1 %4474  ;;  %v4454_v26 = vadd.f32 %v4422_v43, %v4258_v10  ;;  %v4813_v46 = vmul.f32 %v13399_v22, %v4731_v12  ;;  %v4618_v30 = vmul.f32 %v13146_v21, %v11333_v55  ;;  %v4405_v45 = vmul.f32 %v13404_v29, %v13445_v14  ;;  %v6135_v56 = vld [vmem:[%s11992_s9 + $0x60] ss:$8 sps:$4 sm:$0xff]   ;;  %v6144_v7 = vld [vmem:[%s11992_s9 + $0x90] ss:$8 sps:$4 sm:$0xff]   ;;  %v6145_v16 = vld [vmem:[%s11992_s9 + $0xa4] ss:$8 sps:$4 sm:$0xff]  }
 0x637   : > { %v4649_v41 = vadd.f32 %v4617_v36, %v4453_v39  ;;  %v4242_v25 = vadd.f32 %v4210_v49, %v4046_v33  ;;  %v4602_v24 = vmul.f32 %v13146_v21, %v4475_v48  ;;  %v4241_v60 = vadd.f32 %v4209_v38, %v4045_v27  ;;  %v6141_v36 = vld [vmem:[%s11992_s9 + $0x80] ss:$8 sps:$4 sm:$0xff]   ;;  %v6148_v49 = vld [vmem:[%s11992_s9 + $0xb4] ss:$8 sps:$4 sm:$0xff]   ;;  %v6150_v12 = vld [vmem:[%s11992_s9 + $0xb0] ss:$8 sps:$4 sm:$0xff]  }
 0x638   : > { %5798 = vmatpush3.bf16.msra.mxu1 %v4894_v9  ;;  %v4650_v37 = vadd.f32 %v4618_v30, %v4454_v26  ;;  %v4601_v54 = vmul.f32 %v13146_v21, %v4471_v34  ;;  %v4798_v18 = vmul.f32 %v13399_v22, %v4671_v20  ;;  %v6130_v9 = vld [vmem:[%s11992_s9 + $0x54] ss:$8 sps:$4 sm:$0xff]   ;;  %v6138_v34 = vld [vmem:[%s11992_s9 + $0x70] ss:$8 sps:$4 sm:$0xff]   ;;  %v3100_v32 = vld [vmem:[%s11995_s12] sm:$0xff] }
 0x639   : > { %v4438_v5 = vadd.f32 %v4406_v19, %v4242_v25  ;;  %v4845_v17 = vadd.f32 %v4813_v46, %v4649_v41  ;;  %v4437_v13 = vadd.f32 %v4405_v45, %v4241_v60  ;;  %5440 = vperm.xlu0 %6064, %v3100_v32   ;;  %v6147_v10 = vld [vmem:[%s11992_s9 + $0xa0] ss:$8 sps:$4 sm:$0xff]   ;;  %v6151_v39 = vld [vmem:[%s11992_s9 + $0xc4] ss:$8 sps:$4 sm:$0xff]   ;;  %v6154_v43 = vld [vmem:[%s11992_s9 + $0xd4] ss:$8 sps:$4 sm:$0xff]  }
 0x63a   : > { %v4735_v53 = vpop.permute.xlu1 %4734  ;;  %v6153_v6 = vld [vmem:[%s11992_s9 + $0xc0] ss:$8 sps:$4 sm:$0xff]   ;;  %v6156_v27 = vld [vmem:[%s11992_s9 + $0xd0] ss:$8 sps:$4 sm:$0xff]   ;;  %v6157_v33 = vld [vmem:[%s11992_s9 + $0xe4] ss:$8 sps:$4 sm:$0xff]  }
 0x63b   : > { %v4634_v40 = vadd.f32 %v4602_v24, %v4438_v5  ;;  %v4814_v44 = vmul.f32 %v13399_v22, %v4735_v53  ;;  %v4877_v62 = vmax.f32 %v4845_v17, 0.0  ;;  %v4633_v55 = vadd.f32 %v4601_v54, %v4437_v13  ;;  %v6159_v48 = vld [vmem:[%s11992_s9 + $0xe0] ss:$8 sps:$4 sm:$0xff]   ;;  %v6160_v11 = vld [vmem:[%s11992_s9 + $0xf4] ss:$8 sps:$4 sm:$0xff]  }
 0x63c   : > { %v6162_v25 = vld [vmem:[%s11992_s9 + $0xf0] ss:$8 sps:$4 sm:$0xff]  }
 0x63d   : > { %v4846_v4 = vadd.f32 %v4814_v44, %v4650_v37  ;;  %v4830_v52 = vadd.f32 %v4798_v18, %v4634_v40 }
 0x63e   : > { %v4667_v0 = vpop.permute.xlu1 %4666 }
 0x63f   : > { %v4878_v15 = vmax.f32 %v4846_v4, 0.0  ;;  %v4797_v29 = vmul.f32 %v13399_v22, %v4667_v0  ;;  %v4862_v50 = vmax.f32 %v4830_v52, 0.0  ;;  %v6120_v22 = vld [vmem:[%s11992_s9 + $0x10] ss:$8 sps:$4 sm:$0xff]  }
 0x640   : > { %v11818_v38 = vpop.permute.xlu0 %5066 }
 0x641   : > { %v4829_v61 = vadd.f32 %v4797_v29, %v4633_v55  ;;  %v4901_v3 = vpack.c.bf16 %v4878_v15, %v4877_v62 }
 0x642   : > { %v11808_v19 = vpop.permute.xlu1 %5061 }
 0x643   : > { %v4861_v23 = vmax.f32 %v4829_v61, 0.0  ;;  %5799 = vmatprep.subr.bf16.mxu1 %v4901_v3 }
 0x645   : > { %v4893_v21 = vpack.c.bf16 %v4862_v50, %v4861_v23 }
 0x646   : > { %v11813_v41 = vpop.permute.xlu1 %4981  ;;  %v11825_v24 = vpop.permute.xlu0 %5051 }
 0x647   : > { %5800 = vmatpush3.bf16.msra.mxu1 %v4893_v21 }
 0x64a   : > { %5262 = vmatmul.mubr.bf16.vlgmr.msra.gmra.mxu1 %v6115_v47  ;;  %v11820_v26 = vpop.permute.xlu1 %4986 }
 0x64b   : > { %5269 = vmatprep.mubr.bf16.mxu1 %v6118_v2 }
 0x650   : > { %v11827_v46 = vpop.permute.xlu1 %5056 }
 0x652   : > { %5270 = vmatmul.mubr.bf16.gmra.mxu1 %v6120_v22  ;;  %v11829_v60 = vpop.permute.xlu0 %4971 }
 0x653   : > { %5277 = vmatprep.mubr.bf16.mxu1 %v6121_v57 }
 0x654   : > { %v11831_v30 = vpop.permute.xlu1 %4976 }
 0x657   : > { %v11833_v5 = vpop.permute.xlu0 %5041 }
 0x65a   : > { %5278 = vmatmul.mubr.bf16.gmra.mxu1 %v6123_v42 }
 0x65b   : > { %5285 = vmatprep.mubr.bf16.mxu1 %v6124_v1  ;;  %v11837_v45 = vpop.permute.xlu0 %4961 }
 0x65c   : > { %v11835_v14 = vpop.permute.xlu1 %5046 }
 0x65f   : > { %v11841_v17 = vpop.permute.xlu0 %5031 }
 0x660   : > { %v11839_v20 = vpop.permute.xlu1 %4966 }
 0x662   : > { %5286 = vmatmul.mubr.bf16.gmra.mxu1 %v6126_v58 }
 0x663   : > { %5293 = vmatprep.mubr.bf16.mxu1 %v6127_v31 }
 0x665   : > { %v11843_v53 = vpop.permute.xlu1 %5036 }
 0x666   : > { %v11845_v37 = vpop.permute.xlu0 %4951 }
 0x669   : > { %v11847_v54 = vpop.permute.xlu1 %4956 }
 0x66a   : > { %5294 = vmatmul.mubr.bf16.gmra.mxu1 %v6129_v28  ;;  %v11849_v40 = vpop.permute.xlu0 %5021 }
 0x66b   : > { %5301 = vmatprep.mubr.bf16.mxu1 %v6130_v9 }
 0x66f   : > { %v11851_v44 = vpop.permute.xlu1 %5026  ;;  %v4942_v13 = vpop.permute.xlu0 %4941 }
 0x672   : > { %5302 = vmatmul.mubr.bf16.gmra.mxu1 %v6132_v8 }
 0x673   : > { %5309 = vmatprep.mubr.bf16.mxu1 %v6133_v59  ;;  %v4947_v18 = vpop.permute.xlu1 %4946 }
 0x674   : > { %v11853_v4 = vpop.permute.xlu0 %5011 }
 0x67a   : > { %5310 = vmatmul.mubr.bf16.gmra.mxu1 %v6135_v56  ;;  %v11855_v62 = vpop.permute.xlu1 %5016 }
 0x67b   : > { %5317 = vmatprep.mubr.bf16.mxu1 %v6136_v51 }
 0x67c   : > { %v4932_v0 = vpop.permute.xlu0 %4931 }
 0x67e   : > { %v4937_v55 = vpop.permute.xlu1 %4936 }
 0x680   : > { %v11857_v52 = vpop.permute.xlu0 %5001 }
 0x682   : > { %5318 = vmatmul.mubr.bf16.gmra.mxu1 %v6138_v34 }
 0x683   : > { %5325 = vmatprep.mubr.bf16.mxu1 %v6139_v63 }
 0x686   : > { %v4922_v29 = vpop.permute.xlu0 %4921 }
 0x687   : > { %v11859_v15 = vpop.permute.xlu1 %5006 }
 0x68a   : > { %5326 = vmatmul.mubr.bf16.gmra.mxu1 %v6141_v36 }
 0x68b   : > { %5333 = vmatprep.mubr.bf16.mxu1 %v6142_v35  ;;  %v4927_v61 = vpop.permute.xlu1 %4926 }
 0x68c   : > { %v11861_v3 = vpop.permute.xlu0 %4991 }
 0x68f   : > { %v11863_v23 = vpop.permute.xlu1 %4996 }
 0x690   : > { %v4912_v2 = vpop.permute.xlu0 %4911 }
 0x692   : > { %5334 = vmatmul.mubr.bf16.gmra.mxu1 %v6144_v7 }
 0x693   : > { %5341 = vmatprep.mubr.bf16.mxu1 %v6145_v16  ;;  %v4917_v42 = vpop.permute.xlu1 %4916 }
 0x69a   : > { %5342 = vmatmul.mubr.bf16.gmra.mxu1 %v6147_v10 }
 0x69b   : > { %5349 = vmatprep.mubr.bf16.mxu1 %v6148_v49 }
 0x6a2   : > { %5350 = vmatmul.mubr.bf16.gmra.mxu1 %v6150_v12 }
 0x6a3   : > { %5357 = vmatprep.mubr.bf16.mxu1 %v6151_v39 }
 0x6aa   : > { %5358 = vmatmul.mubr.bf16.gmra.mxu1 %v6153_v6 }
 0x6ab   : > { %5365 = vmatprep.mubr.bf16.mxu1 %v6154_v43 }
 0x6b2   : > { %5366 = vmatmul.mubr.bf16.gmra.mxu1 %v6156_v27 }
 0x6b3   : > { %5373 = vmatprep.mubr.bf16.mxu1 %v6157_v33 }
 0x6ba   : > { %5374 = vmatmul.mubr.bf16.gmra.mxu1 %v6159_v48 }
 0x6bb   : > { %5381 = vmatprep.mubr.bf16.mxu1 %v6160_v11 }
 0x6c2   : > { %5382 = vmatmul.mubr.bf16.gmra.mxu1 %v6162_v25 }
 0x70a   : > { %v5801_v50 = vpop.f32.mrf.mxu1 }
 0x70c   : > { %v5802_v21 = vpop.f32.mrf.mxu1 }
 0x70d   : > { %v5803_v47 = vadd.f32 %v5802_v21, %v5801_v50 }
 0x70e   : > { %v5804_v22 = vpop.f32.mrf.mxu1 }
 0x70f   : > { %v5264_v1 = vadd.f32 %v5803_v47, %v4912_v2 }
 0x710   : > { %v5805_v57 = vpop.f32.mrf.mxu1 }
 0x711   : > { %v5806_v58 = vadd.f32 %v5805_v57, %v5804_v22  ;;  %v5390_v8 = vmax.f32 %v5264_v1, 0.0 }
 0x712   : > { %v5807_v31 = vpop.f32.mrf.mxu1 }
 0x713   : > { %v5267_v28 = vadd.f32 %v5806_v58, %v4917_v42 }
 0x714   : > { %v5808_v9 = vpop.f32.mrf.mxu1 }
 0x715   : > { %v5391_v59 = vmax.f32 %v5267_v28, 0.0  ;;  %v5809_v56 = vadd.f32 %v5808_v9, %v5807_v31 }
 0x716   : > { %v5810_v51 = vpop.f32.mrf.mxu1 }
 0x717   : > { %v11865_v34 = vpack.c.bf16 %v5391_v59, %v5390_v8  ;;  %v5272_v36 = vadd.f32 %v5809_v56, %v4922_v29 }
 0x718   : > { %v5811_v63 = vpop.f32.mrf.mxu1 }
 0x719   : > { %v5812_v35 = vadd.f32 %v5811_v63, %v5810_v51  ;;  %v5392_v10 = vmax.f32 %v5272_v36, 0.0 }
 0x71a   : > { %v5813_v7 = vpop.f32.mrf.mxu1 }
 0x71b   : > { %v5275_v16 = vadd.f32 %v5812_v35, %v4927_v61 }
 0x71c   : > { %v5814_v32 = vpop.f32.mrf.mxu1 }
 0x71d   : > { %v5393_v49 = vmax.f32 %v5275_v16, 0.0  ;;  %v5815_v12 = vadd.f32 %v5814_v32, %v5813_v7 }
 0x71e   : > { %v5816_v39 = vpop.f32.mrf.mxu1 }
 0x71f   : > { %v11867_v6 = vpack.c.bf16 %v5393_v49, %v5392_v10  ;;  %v5280_v27 = vadd.f32 %v5815_v12, %v4932_v0 }
 0x720   : > { %v5817_v43 = vpop.f32.mrf.mxu1 }
 0x721   : > { %v5818_v33 = vadd.f32 %v5817_v43, %v5816_v39  ;;  %v5394_v50 = vmax.f32 %v5280_v27, 0.0 }
 0x722   : > { %v5819_v48 = vpop.f32.mrf.mxu1 }
 0x723   : > { %v5283_v11 = vadd.f32 %v5818_v33, %v4937_v55  ;;  %v11874_v55 = vld [vmem:[%s11994_s11] sm:$0xff] }
 0x724   : > { %v5820_v25 = vpop.f32.mrf.mxu1  ;;  %v5647_v59 = vcombine.high %v11874_v55, %v11874_v55 }
 0x725   : > { %v5395_v21 = vmax.f32 %v5283_v11, 0.0  ;;  %v5821_v47 = vadd.f32 %v5820_v25, %v5819_v48 }
 0x726   : > { %v5822_v29 = vpop.f32.mrf.mxu1  ;;  %5482 = vmatprep.mubr.bf16.mxu0 %v5647_v59 }
 0x727   : > { %v11869_v2 = vpack.c.bf16 %v5395_v21, %v5394_v50  ;;  %v5288_v22 = vadd.f32 %v5821_v47, %v4942_v13 }
 0x728   : > { %v5823_v61 = vpop.f32.mrf.mxu1 }
 0x729   : > { %v5824_v57 = vadd.f32 %v5823_v61, %v5822_v29  ;;  %v5396_v31 = vmax.f32 %v5288_v22, 0.0 }
 0x72a   : > { %v5825_v42 = vpop.f32.mrf.mxu1 }
 0x72b   : > { %v5291_v1 = vadd.f32 %v5824_v57, %v4947_v18 }
 0x72c   : > { %v5826_v58 = vpop.f32.mrf.mxu1 }
 0x72d   : > { %v5397_v28 = vmax.f32 %v5291_v1, 0.0  ;;  %v5827_v9 = vadd.f32 %v5826_v58, %v5825_v42 }
 0x72e   : > { %v5828_v0 = vpop.f32.mrf.mxu1 }
 0x72f   : > { %v11876_v8 = vpack.c.bf16 %v5397_v28, %v5396_v31  ;;  %v5296_v13 = vadd.f32 %v5827_v9, %v11845_v37 }
 0x730   : > { %v5829_v56 = vpop.f32.mrf.mxu1 }
 0x731   : > { %v5830_v51 = vadd.f32 %v5829_v56, %v5828_v0  ;;  %v5398_v35 = vmax.f32 %v5296_v13, 0.0 }
 0x732   : > { %v5831_v18 = vpop.f32.mrf.mxu1 }
 0x733   : > { %v5299_v63 = vadd.f32 %v5830_v51, %v11847_v54 }
 0x734   : > { %v5832_v36 = vpop.f32.mrf.mxu1 }
 0x735   : > { %v5399_v7 = vmax.f32 %v5299_v63, 0.0  ;;  %v5833_v16 = vadd.f32 %v5832_v36, %v5831_v18 }
 0x736   : > { %v5834_v32 = vpop.f32.mrf.mxu1 }
 0x737   : > { %v11882_v10 = vpack.c.bf16 %v5399_v7, %v5398_v35  ;;  %v5304_v12 = vadd.f32 %v5833_v16, %v11837_v45 }
 0x738   : > { %v5835_v49 = vpop.f32.mrf.mxu1 }
 0x739   : > { %v5836_v39 = vadd.f32 %v5835_v49, %v5834_v32  ;;  %v5400_v33 = vmax.f32 %v5304_v12, 0.0 }
 0x73a   : > { %v5837_v43 = vpop.f32.mrf.mxu1 }
 0x73b   : > { %v5307_v27 = vadd.f32 %v5836_v39, %v11839_v20 }
 0x73c   : > { %v5838_v37 = vpop.f32.mrf.mxu1 }
 0x73d   : > { %v5401_v48 = vmax.f32 %v5307_v27, 0.0  ;;  %v5839_v11 = vadd.f32 %v5838_v37, %v5837_v43 }
 0x73e   : > { %v5840_v25 = vpop.f32.mrf.mxu1 }
 0x73f   : > { %v11886_v54 = vpack.c.bf16 %v5401_v48, %v5400_v33  ;;  %v5312_v21 = vadd.f32 %v5839_v11, %v11829_v60 }
 0x740   : > { %v5841_v50 = vpop.f32.mrf.mxu1 }
 0x741   : > { %v5842_v47 = vadd.f32 %v5841_v50, %v5840_v25  ;;  %v5402_v45 = vmax.f32 %v5312_v21, 0.0 }
 0x742   : > { %v5843_v29 = vpop.f32.mrf.mxu1 }
 0x743   : > { %v5315_v61 = vadd.f32 %v5842_v47, %v11831_v30 }
 0x744   : > { %v5844_v22 = vpop.f32.mrf.mxu1 }
 0x745   : > { %v5403_v57 = vmax.f32 %v5315_v61, 0.0  ;;  %v5845_v42 = vadd.f32 %v5844_v22, %v5843_v29 }
 0x746   : > { %v5846_v1 = vpop.f32.mrf.mxu1 }
 0x747   : > { %v11890_v20 = vpack.c.bf16 %v5403_v57, %v5402_v45  ;;  %v5320_v31 = vadd.f32 %v5845_v42, %v11813_v41 }
 0x748   : > { %v5847_v58 = vpop.f32.mrf.mxu1 }
 0x749   : > { %v5848_v28 = vadd.f32 %v5847_v58, %v5846_v1  ;;  %v5404_v60 = vmax.f32 %v5320_v31, 0.0 }
 0x74a   : > { %v5849_v9 = vpop.f32.mrf.mxu1 }
 0x74b   : > { %v5323_v0 = vadd.f32 %v5848_v28, %v11820_v26 }
 0x74c   : > { %v5850_v59 = vpop.f32.mrf.mxu1 }
 0x74d   : > { %v5405_v56 = vmax.f32 %v5323_v0, 0.0  ;;  %v5851_v13 = vadd.f32 %v5850_v59, %v5849_v9 }
 0x74e   : > { %v5852_v51 = vpop.f32.mrf.mxu1 }
 0x74f   : > { %v11894_v30 = vpack.c.bf16 %v5405_v56, %v5404_v60  ;;  %v5328_v63 = vadd.f32 %v5851_v13, %v11861_v3 }
 0x750   : > { %v5853_v18 = vpop.f32.mrf.mxu1 }
 0x751   : > { %v5854_v36 = vadd.f32 %v5853_v18, %v5852_v51  ;;  %v5406_v41 = vmax.f32 %v5328_v63, 0.0 }
 0x752   : > { %v5855_v35 = vpop.f32.mrf.mxu1 }
 0x753   : > { %v5331_v7 = vadd.f32 %v5854_v36, %v11863_v23 }
 0x754   : > { %v5856_v16 = vpop.f32.mrf.mxu1 }
 0x755   : > { %v5407_v32 = vmax.f32 %v5331_v7, 0.0  ;;  %v5857_v49 = vadd.f32 %v5856_v16, %v5855_v35 }
 0x756   : > { %v5858_v12 = vpop.f32.mrf.mxu1 }
 0x757   : > { %v11898_v26 = vpack.c.bf16 %v5407_v32, %v5406_v41  ;;  %v5336_v43 = vadd.f32 %v5857_v49, %v11857_v52 }
 0x758   : > { %v5859_v39 = vpop.f32.mrf.mxu1 }
 0x759   : > { %v5860_v27 = vadd.f32 %v5859_v39, %v5858_v12  ;;  %v5408_v3 = vmax.f32 %v5336_v43, 0.0 }
 0x75a   : > { %v5861_v37 = vpop.f32.mrf.mxu1 }
 0x75b   : > { %v5339_v33 = vadd.f32 %v5860_v27, %v11859_v15 }
 0x75c   : > { %v5862_v48 = vpop.f32.mrf.mxu1 }
 0x75d   : > { %v5409_v11 = vmax.f32 %v5339_v33, 0.0 }
 0x75e   : > { %v5864_v25 = vpop.f32.mrf.mxu1 }
 0x75f   : > { %v11902_v50 = vpack.c.bf16 %v5409_v11, %v5408_v3 }
 0x760   : > { %v5865_v23 = vpop.f32.mrf.mxu1 }
 0x762   : > { %v5867_v21 = vpop.f32.mrf.mxu1 }
 0x764   : > { %v5868_v47 = vpop.f32.mrf.mxu1 }
 0x766   : > { %v5870_v29 = vpop.f32.mrf.mxu1 }
 0x768   : > { %v5871_v61 = vpop.f32.mrf.mxu1 }
 0x76a   : > { %v5873_v22 = vpop.f32.mrf.mxu1 }
 0x76c   : > { %v5874_v45 = vpop.f32.mrf.mxu1 }
 0x76d   : > { %v5875_v3 = vadd.f32 %v5874_v45, %v5873_v22 }
 0x76e   : > { %v5876_v57 = vpop.f32.mrf.mxu1 }
 0x770   : > { %v5877_v42 = vpop.f32.mrf.mxu1 }
 0x771   : > { %v5878_v12 = vadd.f32 %v5877_v42, %v5876_v57  ;;  %v5866_v57 = vadd.f32 %v5865_v23, %v5864_v25 }
 0x772   : > { %v5879_v52 = vpop.f32.mrf.mxu1 }
 0x773   : > { %v5347_v42 = vadd.f32 %v5866_v57, %v11855_v62 }
 0x774   : > { %v5880_v1 = vpop.f32.mrf.mxu1 }
 0x775   : > { %v5881_v41 = vadd.f32 %v5880_v1, %v5879_v52  ;;  %v6251_v1 = vld [vmem:[%s10346_s23 + $0x8] sm:$0xff] }
 0x776   : > { %v5882_v58 = vpop.f32.mrf.mxu1 }
 0x777   : > { %v5368_v11 = vadd.f32 %v5881_v41, %v11833_v5 }
 0x778   : > { %v5883_v31 = vpop.f32.mrf.mxu1 }
 0x779   : > { %v5884_v36 = vadd.f32 %v5883_v31, %v5882_v58 }
 0x77a   : > { %v5885_v15 = vpop.f32.mrf.mxu1 }
 0x77b   : > { %v5371_v39 = vadd.f32 %v5884_v36, %v11835_v14  ;;  %v5416_v14 = vmax.f32 %v5368_v11, 0.0 }
 0x77c   : > { %v5886_v28 = vpop.f32.mrf.mxu1 }
 0x77d   : > { %v5887_v18 = vadd.f32 %v5886_v28, %v5885_v15  ;;  %v5417_v15 = vmax.f32 %v5371_v39, 0.0 }
 0x77e   : > { %v5888_v9 = vpop.f32.mrf.mxu1 }
 0x77f   : > { %v5376_v32 = vadd.f32 %v5887_v18, %v11825_v24  ;;  %v5360_v24 = vadd.f32 %v5875_v3, %v11841_v17  ;;  %v5435_v5 = vpack.c.bf16 %v5417_v15, %v5416_v14 }
 0x780   : > { %v5889_v0 = vpop.f32.mrf.mxu1 }
 0x781   : > { %v5890_v56 = vadd.f32 %v5889_v0, %v5888_v9  ;;  %v5418_v58 = vmax.f32 %v5376_v32, 0.0 }
 0x782   : > { %v5891_v59 = vpop.f32.mrf.mxu1 }
 0x783   : > { %v5379_v35 = vadd.f32 %v5890_v56, %v11827_v46  ;;  %v5872_v46 = vadd.f32 %v5871_v61, %v5870_v29  ;;  %v5863_v29 = vadd.f32 %v5862_v48, %v5861_v37  ;;  %v5414_v61 = vmax.f32 %v5360_v24, 0.0 }
 0x784   : > { %v5892_v60 = vpop.f32.mrf.mxu1 }
 0x785   : > { %v5893_v13 = vadd.f32 %v5892_v60, %v5891_v59  ;;  %v5419_v43 = vmax.f32 %v5379_v35, 0.0  ;;  %v5355_v22 = vadd.f32 %v5872_v46, %v11851_v44  ;;  %v5344_v17 = vadd.f32 %v5863_v29, %v11853_v4 }
 0x786   : > { %v5894_v51 = vpop.f32.mrf.mxu1  ;;  %v5411_v44 = vmax.f32 %v5347_v42, 0.0 }
 0x787   : > { %v5384_v7 = vadd.f32 %v5893_v13, %v11808_v19  ;;  %v5363_v19 = vadd.f32 %v5878_v12, %v11843_v53  ;;  %v5436_v52 = vpack.c.bf16 %v5419_v43, %v5418_v58 }
 0x788   : > { %v5895_v63 = vpop.f32.mrf.mxu1 }
 0x789   : > { %v5896_v16 = vadd.f32 %v5895_v63, %v5894_v51  ;;  %v5420_v27 = vmax.f32 %v5384_v7, 0.0  ;;  %v5415_v45 = vmax.f32 %v5363_v19, 0.0 }
 0x78b   : > { %v5387_v49 = vadd.f32 %v5896_v16, %v11818_v38  ;;  %v5869_v38 = vadd.f32 %v5868_v47, %v5867_v21  ;;  %v5434_v21 = vpack.c.bf16 %v5415_v45, %v5414_v61  ;;  %v6250_v47 = vld [vmem:[%s7520_s16] sm:$0xff]  ;;  %s6322_s16 = smov [#allocation2]  }
 0x78c   : > { %v5495_v28 = vsub.f32 %v6250_v47, %v6251_v1  ;;  %s6256_s15 = sshll.u32 %s6322_s16, 4  ;;  %s6257_s15 = int_to_ptr.vmem [resolvable:$false] %s6256_s15 }
 0x78d   : > { %v5421_v33 = vmax.f32 %v5387_v49, 0.0  ;;  %v5352_v53 = vadd.f32 %v5869_v38, %v11849_v40  ;;  %v5646_v40 = vcombine.low %v11874_v55, %v11874_v55  ;;  %s6258_s17 = scalar_lea.vmem %s6257_s15, 768  ;;  %p6259_p0 = scmp.lt.s32.totalorder %s11938_s22, %s6257_s15 }
 0x78e   : > { %p6260_p1 = scmp.lt.s32.totalorder %s6258_s17, %s6252_s27 }
 0x78f   : > { %v5437_v31 = vpack.c.bf16 %v5421_v33, %v5420_v27  ;;  %v5412_v25 = vmax.f32 %v5352_v53, 0.0 }
 0x790   : > { %p6261_p2 = por %p6260_p1, %p6259_p0 }
 0x791   : > { %5897 = vmatprep.subr.bf16.mxu0 %v5437_v31 }
 0x792   : > { %5898 = vmatpush3.bf16.msra.mxu0 %v11894_v30  ;;  %v5413_v30 = vmax.f32 %v5355_v22, 0.0  ;;  %p6262_p3 = pnand %p6261_p2, %p6255_p13 }
 0x793   : > { %5899 = vmatprep.subr.bf16.mxu0 %v5436_v52 }
 0x794   : > { %v5433_v23 = vpack.c.bf16 %v5413_v30, %v5412_v25 }
 0x796   : > { %5900 = vmatpush3.bf16.msra.mxu0 %v11890_v20  ;;  %v5410_v20 = vmax.f32 %v5344_v17, 0.0 }
 0x797   : > { %5901 = vmatprep.subr.bf16.mxu0 %v5435_v5 }
 0x798   : > { %v5432_v37 = vpack.c.bf16 %v5411_v44, %v5410_v20 }
 0x79a   : > { %5902 = vmatpush3.bf16.msra.mxu0 %v11886_v54 }
 0x79b   : > { %5903 = vmatprep.subr.bf16.mxu0 %v5434_v21 }
 0x79e   : > { %5904 = vmatpush3.bf16.msra.mxu0 %v11882_v10 }
 0x79f   : > { %5905 = vmatprep.subr.bf16.mxu0 %v5433_v23 }
 0x7a2   : > { %5906 = vmatpush3.bf16.msra.mxu0 %v11876_v8  ;;  %v5441_v8 = vpop.permute.xlu0 %5440 }
 0x7a3   : > { %5907 = vmatprep.subr.bf16.mxu0 %v5432_v37 }
 0x7a6   : > { %5908 = vmatpush3.bf16.msra.mxu0 %v11869_v2 }
 0x7a7   : > { %5909 = vmatprep.subr.bf16.mxu0 %v11902_v50 }
 0x7aa   : > { %5910 = vmatpush3.bf16.msra.mxu0 %v11867_v6 }
 0x7ab   : > { %5911 = vmatprep.subr.bf16.mxu0 %v11898_v26 }
 0x7ae   : > { %5912 = vmatpush3.bf16.msra.mxu0 %v11865_v34 }
 0x7b1   : > { %5483 = vmatmul.mubr.bf16.vlgmr.msra.gmra.mxu0 %v5646_v40 }
 0x871   : > { %v5913_v4 = vpop.f32.mrf.mxu0 }
 0x873   : > { %v5914_v62 = vpop.f32.mrf.mxu0 }
 0x874   : > { %v5915_v2 = vadd.f32 %v5914_v62, %v5913_v4 }
 0x875   : > { %v5916_v10 = vpop.f32.mrf.mxu0 }
 0x876   : > { %v5485_v54 = vadd.f32 %v5915_v2, %v5441_v8 }
 0x877   : > { %v5917_v48 = vpop.f32.mrf.mxu0 }
 0x878   : > { %6169 = vtanh.f32 %v5485_v54 }
 0x885   : > { %v6170_v6 = vpop.eup %6169 }
 0x886   : > { %v5491_v26 = vsub.f32 1.0, %v6170_v6  ;;  %5497 = vst [vmem:[%s10346_s23] sm:$0xff] %v6170_v6 }
 0x888   : > { %v5492_v55 = vmul.f32 %v5491_v26, %v5491_v26 }
 0x88a   : > { %v5493_v34 = vmul.f32 %v5492_v55, %v5491_v26 }
 0x88c   : > { %v5494_v50 = vsub.f32 1.0, %v5493_v34 }
 0x88e   : > { %v5496_v9 = vmul.f32 %v5495_v28, %v5494_v50 }
 0x890   : > { %5499 = vst [vmem:[%s10346_s23 + $0x10] sm:$0xff] %v5496_v9 }
 0x891   : > { %6265 = shalt.err (!%p6262_p3)
}
 0x892   : > { %s6266_s23 = scalar_lea.hbm %s11936_s1, 384  ;;  %s6270_s0 = scalar_lea.hbm %s11996_s13, 768 }
 0x893   : > { %p6267_p4 = scmp.ne.s32.totalorder %s11936_s1, %s6266_s23  ;;  %p6271_p9 = scmp.lt.s32.totalorder %s11936_s1, %s11996_s13 }
 0x894   : > { %p6272_p10 = scmp.lt.s32.totalorder %s6270_s0, %s6266_s23 }
 0x895   : > { %p6268_p7 = pnand %p6267_p4, %p6434_p5 }
 0x896   : > { %p6273_p11 = por %p6272_p10, %p6271_p9 }
 0x897   : > { %p6269_p8 = pneg %p6268_p7 }
 0x899   : > { %p6274_p12 = pnand %p6273_p11, %p6269_p8 }
 0x89b   : > { %6277 = shalt.err (!%p6274_p12)
}
 0x89c   : > { %s6323_s27 = smov 128   ;;  %s6324_s16 = smov 256  }
 0x89d   : > { %s6325_s15 = smov 8  }
 0x89e   : > { %5920 = dma.vmem_to_hbm [thread:$0]  (%p6434_p5), %s11938_s22, 384, %s11936_s1, %s11943_s29, %s6323_s27, %s6324_s16, %s6325_s15  }
 0x89f PF: > { %p5926_p13 = scmp.ge.s32.totalorder %s6312_s28, 2  ;;  %s5528_s17 = sand.u32 1, %s6300_s25  }
 0x8a0   : > { %s5529_s23 = scalar_lea.sflag [#allocation3], %s5528_s17 }
 0x8a1   : > { %p5923_p0 = pnand %p5926_p13, %p6438_p6 }
 0x8a3   : > { %p5924_p1 = pneg %p5923_p0 }
 0x8a5   : > { %6295 = dma.done.wait (%p5924_p1), %s5529_s23, 384  }
 0x8a6   : > { %6297 = vsyncadd (%p5924_p1), %s5529_s23, 4294966912  ;;  %s13447_s20 = sld [smem:[#allocation5_spill]]  ;;  %p23_p2 = scmp.ge.s32.totalorder %s6421_s14, 4  }
 0x8a7   : > { %s13448_s27 = sld [smem:[#allocation6_spill]]  ;;  %s13449_s25 = smov %s6304_s26 }
 0x8a8   : > { %s13451_s28 = smov %s6421_s14  ;;  %25 = sbr.rel (!%p23_p2) target bundleno = 6 (0x6), region = 107 }
 0x8ac   : > { %s13450_s26 = smov %s13447_s20 }
 0x8ad   :  { %5534 = vsyncpa [#allocation3], 1 }
 0x8ae   :  { %5536 = vsyncpa [#allocation3 + $0x1], 1 }

</bundles_post_ra>
